<compile_context>
chip_gen: v7x
topology: tpu7x:2x2x1
jax: 0.10.0
libtpu: 0.0.40
codegen_flags: <defaults>
</compile_context>

<pallas_src>
import jax
import jax.numpy as jnp
from jax import lax
from jax.experimental import pallas as pl
from jax.experimental.pallas import tpu as pltpu

H = 125      # model hidden_size
HP = 128     # lane-padded hidden size
DIN = 1      # input_size
OUT = 125    # output_size
OUTP = 128   # lane-padded output size


# --------------------------------------------------------------------------
# Fused Pallas kernel: lstm -> lstm_1 -> lstm_2 -> linear
# --------------------------------------------------------------------------
def _fused_kernel(x_ref, hn_in_ref, cn_in_ref,
                  wih0_ref, whh0_ref, b0_ref,
                  w1_ref, b1_ref,
                  w2_ref, b2_ref,
                  wlin_ref, blin_ref,
                  y_ref, hn_ref, cn_ref):
    # x_ref:    (B*T, 1)    f32   scalar inputs, flattened batch-major (s = b*T + t)
    # wih0_ref: (1, 4*HP)   f32   layer-0 input weights (input_size == 1)
    # whh0_ref: (HP, 4*HP)  bf16  layer-0 recurrent weights (gate order i|f|g|o)
    # w1_ref:   (2*HP,4*HP) bf16  layer-1 combined [W_ih^T ; W_hh^T]
    # w2_ref:   (2*HP,4*HP) bf16  layer-2 combined [W_ih^T ; W_hh^T]
    # b*_ref:   (1, 4*HP)   f32   b_ih + b_hh
    # wlin_ref: (HP, OUTP)  bf16, blin_ref: (1, OUTP) f32
    BT = x_ref.shape[0]
    B = y_ref.shape[0]
    T = BT // B
    bf16 = jnp.bfloat16
    f32 = jnp.float32

    def gate_math(gates, c):
        i = jax.nn.sigmoid(gates[:, 0 * HP:1 * HP])
        f = jax.nn.sigmoid(gates[:, 1 * HP:2 * HP])
        g = jnp.tanh(gates[:, 2 * HP:3 * HP])
        o = jax.nn.sigmoid(gates[:, 3 * HP:4 * HP])
        c_new = f * c + i * g
        h_new = o * jnp.tanh(c_new)
        return h_new, c_new

    # ---- layer 0: stateful, batch-1 sequence of length B*T -----------------
    # input_size == 1  =>  x @ W_ih is an outer product; hoist it (with bias)
    # out of the sequential loop as one VPU broadcast-multiply.
    gx0 = x_ref[...] * wih0_ref[...] + b0_ref[...]          # (BT, 4*HP) f32
    h = hn_in_ref[...]                                      # (1, HP) f32
    c = cn_in_ref[...]
    h0_rows = []                                            # per-step h, kept as values
    for s in range(BT):                                     # s = b*T + t
        gates = gx0[s:s + 1, :] + jnp.dot(h.astype(bf16), whh0_ref[...],
                                          preferred_element_type=f32)
        h, c = gate_math(gates, c)
        h0_rows.append(h)
    hn_ref[...] = h
    cn_ref[...] = c

    # ---- layers 1 & 2: zero initial state, wavefront-interleaved ------------
    # One (B, 2*HP) x (2*HP, 4*HP) matmul per layer per step: [x_t | h_{t-1}].
    def cell_cat(x_t, h, c, w_ref, b_ref):
        xh = jnp.concatenate([x_t, h], axis=1).astype(bf16)         # (B, 2*HP)
        gates = jnp.dot(xh, w_ref[...], preferred_element_type=f32) + b_ref[...]
        return gate_math(gates, c)

    h1 = jnp.zeros((B, HP), f32)
    c1 = jnp.zeros((B, HP), f32)
    h2 = jnp.zeros((B, HP), f32)
    c2 = jnp.zeros((B, HP), f32)
    for t in range(T):
        # rows of layer-0 output at time t (one per batch element)
        x1_t = jnp.concatenate([h0_rows[b * T + t] for b in range(B)], axis=0)
        h1, c1 = cell_cat(x1_t, h1, c1, w1_ref, b1_ref)
        h2, c2 = cell_cat(h1, h2, c2, w2_ref, b2_ref)

    # ---- linear head (only the last layer-2 hidden state is consumed) -------
    y_ref[...] = (jnp.dot(h2.astype(bf16), wlin_ref[...],
                          preferred_element_type=f32) + blin_ref[...])


# --------------------------------------------------------------------------
# pallas_call wrapper (whole forward in one launch)
# --------------------------------------------------------------------------
def lstmdf_forward(x, kp, hn=None, cn=None):
    # x: (B, T, 1) batch-first, like the PyTorch module.
    B, T, Din = x.shape
    x_flat = x.reshape(B * T, Din)             # same flattening as x.view(1, B*T, F)

    def _pad_state(s):
        # Accept (1,H)/(H,)/None; zero the padded lanes explicitly so garbage
        # can never propagate through the recurrence.
        if s is None:
            return jnp.zeros((1, HP), jnp.float32)
        s = jnp.asarray(s, jnp.float32).reshape(1, -1)[:, :H]
        return jnp.pad(s, ((0, 0), (0, HP - s.shape[1])))

    hn_p = _pad_state(hn)
    cn_p = _pad_state(cn)

    vmem = pl.BlockSpec(memory_space=pltpu.MemorySpace.VMEM)
    y, hn_out, cn_out = pl.pallas_call(
        _fused_kernel,
        out_shape=(jax.ShapeDtypeStruct((B, OUTP), jnp.float32),
                   jax.ShapeDtypeStruct((1, HP), jnp.float32),
                   jax.ShapeDtypeStruct((1, HP), jnp.float32)),
        in_specs=[vmem] * 12,
        out_specs=(vmem, vmem, vmem),
    )(x_flat, hn_p, cn_p,
      kp['wih0'], kp['whh0'], kp['b0'],
      kp['w1'], kp['b1'],
      kp['w2'], kp['b2'],
      kp['wlin'], kp['blin'])

    return y[:, :OUT, None], hn_out[:, :H], cn_out[:, :H]


# --------------------------------------------------------------------------
# Parameter init (deterministic) and padding/packing for the kernel
# --------------------------------------------------------------------------
def init_params(key):
    ks = jax.random.split(key, 7)

    def lstm_w(k1, k2, in_dim):
        w_ih = jax.random.normal(k1, (4 * H, in_dim), jnp.float32) * 0.1
        w_hh = jax.random.normal(k2, (4 * H, H), jnp.float32) * 0.1
        b_ih = jnp.zeros((4 * H,), jnp.float32)
        b_hh = jnp.zeros((4 * H,), jnp.float32)
        return w_ih, w_hh, b_ih, b_hh

    l0 = lstm_w(ks[0], ks[1], DIN)
    # mirror init_weights(): forget-gate bias of the first LSTM set to 1
    l0 = (l0[0], l0[1], l0[2].at[H:2 * H].set(1.0), l0[3])
    l1 = lstm_w(ks[2], ks[3], H)
    l2 = lstm_w(ks[4], ks[5], H)
    w_lin = jax.random.normal(ks[6], (OUT, H), jnp.float32) * 0.1
    b_lin = jnp.zeros((OUT,), jnp.float32)
    return dict(l0=l0, l1=l1, l2=l2, w_lin=w_lin, b_lin=b_lin)


def _pad_gate_rows(w):
    # pad each of the 4 gate blocks from H -> HP rows with zeros
    pads = ((0, HP - H),) + ((0, 0),) * (w.ndim - 1)
    return jnp.concatenate([jnp.pad(w[g * H:(g + 1) * H], pads) for g in range(4)],
                           axis=0)


def _pack_lstm0(w_ih, w_hh, b_ih, b_hh):
    # input_size == 1: keep W_ih as a single (1, 4*HP) f32 row (no DIN padding).
    wih_row = _pad_gate_rows(w_ih).T                                   # (1, 4*HP)
    whh_t = jnp.pad(_pad_gate_rows(w_hh), ((0, 0), (0, HP - H))).T     # (HP, 4*HP)
    b = _pad_gate_rows(b_ih + b_hh).reshape(1, 4 * HP)
    return wih_row.astype(jnp.float32), whh_t.astype(jnp.bfloat16), b


def _pack_lstm_cat(w_ih, w_hh, b_ih, b_hh):
    # combined [W_ih^T ; W_hh^T] -> (2*HP, 4*HP) so the cell does one K=256 matmul
    wih_t = jnp.pad(_pad_gate_rows(w_ih), ((0, 0), (0, HP - H))).T     # (HP, 4*HP)
    whh_t = jnp.pad(_pad_gate_rows(w_hh), ((0, 0), (0, HP - H))).T     # (HP, 4*HP)
    w_cat = jnp.concatenate([wih_t, whh_t], axis=0)                    # (2*HP, 4*HP)
    b = _pad_gate_rows(b_ih + b_hh).reshape(1, 4 * HP)
    return w_cat.astype(jnp.bfloat16), b


def pack_all(p):
    wih0, whh0, b0 = _pack_lstm0(*p['l0'])
    w1, b1 = _pack_lstm_cat(*p['l1'])
    w2, b2 = _pack_lstm_cat(*p['l2'])
    wlin = jnp.pad(p['w_lin'], ((0, OUTP - OUT), (0, HP - H))).T       # (HP, OUTP)
    blin = jnp.pad(p['b_lin'], (0, OUTP - OUT)).reshape(1, OUTP)
    return dict(wih0=wih0, whh0=whh0, b0=b0,
                w1=w1, b1=b1, w2=w2, b2=b2,
                wlin=wlin.astype(jnp.bfloat16), blin=blin)


# --------------------------------------------------------------------------
# Pure-JAX f32 reference (unpadded) for correctness checking
# --------------------------------------------------------------------------
def _ref_lstm(x, w_ih, w_hh, b_ih, b_hh, h0, c0):
    def step(carry, x_t):
        h, c = carry
        gates = x_t @ w_ih.T + h @ w_hh.T + b_ih + b_hh
        i, f, g, o = jnp.split(gates, 4, axis=-1)
        c = jax.nn.sigmoid(f) * c + jax.nn.sigmoid(i) * jnp.tanh(g)
        h = jax.nn.sigmoid(o) * jnp.tanh(c)
        return (h, c), h
    (hT, cT), outs = lax.scan(step, (h0, c0), jnp.transpose(x, (1, 0, 2)))
    return jnp.transpose(outs, (1, 0, 2)), hT, cT


def ref_forward(x, p):
    B, T, Din = x.shape
    x_long = x.reshape(1, B * T, Din)
    z1 = jnp.zeros((1, H), jnp.float32)
    out_long, _, _ = _ref_lstm(x_long, *p['l0'], z1, z1)
    out = out_long.reshape(B, T, H)
    zB = jnp.zeros((B, H), jnp.float32)
    out, _, _ = _ref_lstm(out, *p['l1'], zB, zB)
    out, _, _ = _ref_lstm(out, *p['l2'], zB, zB)
    last = out[:, -1, :]
    y = last @ p['w_lin'].T + p['b_lin']
    return y[..., None]


# --------------------------------------------------------------------------
if __name__ == "__main__":
    key = jax.random.PRNGKey(0)
    k_param, k_x = jax.random.split(key)

    params = init_params(k_param)
    kparams = pack_all(params)

    B, T = 2, 8
    x = jax.random.normal(k_x, (B, T, DIN), jnp.float32)

    fwd = jax.jit(lambda xx: lstmdf_forward(xx, kparams))
    y, hn, cn = fwd(x)
    y = jax.block_until_ready(y)

    y_ref = jax.block_until_ready(ref_forward(x, params))

    assert y.shape == (B, OUT, 1), y.shape
    # bf16 MXU operands (f32 state/accumulation) -> slightly looser tolerance
    assert jnp.allclose(y, y_ref, atol=2e-2, rtol=2e-2), \
        float(jnp.max(jnp.abs(y - y_ref)))

    print("KERNEL_OK")
</pallas_src>

<mosaic_0001>
module attributes {stable_mosaic.version = 11 : i64} {
  func.func @_fused_kernel(%arg0: memref<16x1xf32, #tpu.memory_space<vmem>>, %arg1: memref<1x128xf32, #tpu.memory_space<vmem>>, %arg2: memref<1x128xf32, #tpu.memory_space<vmem>>, %arg3: memref<1x512xf32, #tpu.memory_space<vmem>>, %arg4: memref<128x512xbf16, #tpu.memory_space<vmem>>, %arg5: memref<1x512xf32, #tpu.memory_space<vmem>>, %arg6: memref<256x512xbf16, #tpu.memory_space<vmem>>, %arg7: memref<1x512xf32, #tpu.memory_space<vmem>>, %arg8: memref<256x512xbf16, #tpu.memory_space<vmem>>, %arg9: memref<1x512xf32, #tpu.memory_space<vmem>>, %arg10: memref<128x128xbf16, #tpu.memory_space<vmem>>, %arg11: memref<1x128xf32, #tpu.memory_space<vmem>>, %arg12: memref<2x128xf32, #tpu.memory_space<vmem>>, %arg13: memref<1x128xf32, #tpu.memory_space<vmem>>, %arg14: memref<1x128xf32, #tpu.memory_space<vmem>>) attributes {dimension_semantics = [], scalar_prefetch = 0 : i64, scratch_operands = 0 : i64, tpu.core_type = #tpu.core_type<tc>} {
    %c0 = arith.constant 0 : index
    %c0_0 = arith.constant 0 : index
    %0 = vector.load %arg0[%c0, %c0_0] : memref<16x1xf32, #tpu.memory_space<vmem>>, vector<16x1xf32>
    %c0_1 = arith.constant 0 : index
    %c0_2 = arith.constant 0 : index
    %1 = vector.load %arg3[%c0_1, %c0_2] : memref<1x512xf32, #tpu.memory_space<vmem>>, vector<1x512xf32>
    %2 = vector.broadcast %0 : vector<16x1xf32> to vector<16x512xf32>
    %3 = vector.broadcast %1 : vector<1x512xf32> to vector<16x512xf32>
    %4 = arith.mulf %2, %3 : vector<16x512xf32>
    %c0_3 = arith.constant 0 : index
    %c0_4 = arith.constant 0 : index
    %5 = vector.load %arg5[%c0_3, %c0_4] : memref<1x512xf32, #tpu.memory_space<vmem>>, vector<1x512xf32>
    %6 = vector.broadcast %5 : vector<1x512xf32> to vector<16x512xf32>
    %7 = arith.addf %4, %6 : vector<16x512xf32>
    %c0_5 = arith.constant 0 : index
    %c0_6 = arith.constant 0 : index
    %8 = vector.load %arg1[%c0_5, %c0_6] : memref<1x128xf32, #tpu.memory_space<vmem>>, vector<1x128xf32>
    %c0_7 = arith.constant 0 : index
    %c0_8 = arith.constant 0 : index
    %9 = vector.load %arg2[%c0_7, %c0_8] : memref<1x128xf32, #tpu.memory_space<vmem>>, vector<1x128xf32>
    %10 = vector.extract_strided_slice %7 {offsets = [0, 0], sizes = [1, 512], strides = [1, 1]} : vector<16x512xf32> to vector<1x512xf32>
    %11 = arith.truncf %8 : vector<1x128xf32> to vector<1x128xbf16>
    %c0_9 = arith.constant 0 : index
    %c0_10 = arith.constant 0 : index
    %12 = vector.load %arg4[%c0_9, %c0_10] : memref<128x512xbf16, #tpu.memory_space<vmem>>, vector<128x512xbf16>
    %cst = arith.constant dense<0.000000e+00> : vector<1x512xf32>
    %13 = tpu.matmul %11, %12, %cst {dimension_numbers = #tpu.dot_dimension_numbers<[1], [0], [0], [1], [0, 0, 1, 1], [], []>} : vector<1x128xbf16>, vector<128x512xbf16>, vector<1x512xf32> -> vector<1x512xf32>
    %14 = arith.addf %10, %13 : vector<1x512xf32>
    %15 = vector.extract_strided_slice %14 {offsets = [0, 0], sizes = [1, 128], strides = [1, 1]} : vector<1x512xf32> to vector<1x128xf32>
    %16 = arith.negf %15 : vector<1x128xf32>
    %17 = math.exp %16 : vector<1x128xf32>
    %cst_11 = arith.constant 1.000000e+00 : f32
    %18 = vector.broadcast %cst_11 : f32 to vector<1x128xf32>
    %19 = arith.addf %18, %17 : vector<1x128xf32>
    %20 = arith.divf %18, %19 : vector<1x128xf32>
    %21 = vector.extract_strided_slice %14 {offsets = [0, 128], sizes = [1, 128], strides = [1, 1]} : vector<1x512xf32> to vector<1x128xf32>
    %22 = arith.negf %21 : vector<1x128xf32>
    %23 = math.exp %22 : vector<1x128xf32>
    %cst_12 = arith.constant 1.000000e+00 : f32
    %24 = vector.broadcast %cst_12 : f32 to vector<1x128xf32>
    %25 = arith.addf %24, %23 : vector<1x128xf32>
    %26 = arith.divf %24, %25 : vector<1x128xf32>
    %27 = vector.extract_strided_slice %14 {offsets = [0, 256], sizes = [1, 128], strides = [1, 1]} : vector<1x512xf32> to vector<1x128xf32>
    %28 = math.tanh %27 : vector<1x128xf32>
    %29 = vector.extract_strided_slice %14 {offsets = [0, 384], sizes = [1, 128], strides = [1, 1]} : vector<1x512xf32> to vector<1x128xf32>
    %30 = arith.negf %29 : vector<1x128xf32>
    %31 = math.exp %30 : vector<1x128xf32>
    %cst_13 = arith.constant 1.000000e+00 : f32
    %32 = vector.broadcast %cst_13 : f32 to vector<1x128xf32>
    %33 = arith.addf %32, %31 : vector<1x128xf32>
    %34 = arith.divf %32, %33 : vector<1x128xf32>
    %35 = arith.mulf %26, %9 : vector<1x128xf32>
    %36 = arith.mulf %20, %28 : vector<1x128xf32>
    %37 = arith.addf %35, %36 : vector<1x128xf32>
    %38 = math.tanh %37 : vector<1x128xf32>
    %39 = arith.mulf %34, %38 : vector<1x128xf32>
    %40 = vector.extract_strided_slice %7 {offsets = [1, 0], sizes = [1, 512], strides = [1, 1]} : vector<16x512xf32> to vector<1x512xf32>
    %41 = arith.truncf %39 : vector<1x128xf32> to vector<1x128xbf16>
    %c0_14 = arith.constant 0 : index
    %c0_15 = arith.constant 0 : index
    %42 = vector.load %arg4[%c0_14, %c0_15] : memref<128x512xbf16, #tpu.memory_space<vmem>>, vector<128x512xbf16>
    %cst_16 = arith.constant dense<0.000000e+00> : vector<1x512xf32>
    %43 = tpu.matmul %41, %42, %cst_16 {dimension_numbers = #tpu.dot_dimension_numbers<[1], [0], [0], [1], [0, 0, 1, 1], [], []>} : vector<1x128xbf16>, vector<128x512xbf16>, vector<1x512xf32> -> vector<1x512xf32>
    %44 = arith.addf %40, %43 : vector<1x512xf32>
    %45 = vector.extract_strided_slice %44 {offsets = [0, 0], sizes = [1, 128], strides = [1, 1]} : vector<1x512xf32> to vector<1x128xf32>
    %46 = arith.negf %45 : vector<1x128xf32>
    %47 = math.exp %46 : vector<1x128xf32>
    %cst_17 = arith.constant 1.000000e+00 : f32
    %48 = vector.broadcast %cst_17 : f32 to vector<1x128xf32>
    %49 = arith.addf %48, %47 : vector<1x128xf32>
    %50 = arith.divf %48, %49 : vector<1x128xf32>
    %51 = vector.extract_strided_slice %44 {offsets = [0, 128], sizes = [1, 128], strides = [1, 1]} : vector<1x512xf32> to vector<1x128xf32>
    %52 = arith.negf %51 : vector<1x128xf32>
    %53 = math.exp %52 : vector<1x128xf32>
    %cst_18 = arith.constant 1.000000e+00 : f32
    %54 = vector.broadcast %cst_18 : f32 to vector<1x128xf32>
    %55 = arith.addf %54, %53 : vector<1x128xf32>
    %56 = arith.divf %54, %55 : vector<1x128xf32>
    %57 = vector.extract_strided_slice %44 {offsets = [0, 256], sizes = [1, 128], strides = [1, 1]} : vector<1x512xf32> to vector<1x128xf32>
    %58 = math.tanh %57 : vector<1x128xf32>
    %59 = vector.extract_strided_slice %44 {offsets = [0, 384], sizes = [1, 128], strides = [1, 1]} : vector<1x512xf32> to vector<1x128xf32>
    %60 = arith.negf %59 : vector<1x128xf32>
    %61 = math.exp %60 : vector<1x128xf32>
    %cst_19 = arith.constant 1.000000e+00 : f32
    %62 = vector.broadcast %cst_19 : f32 to vector<1x128xf32>
    %63 = arith.addf %62, %61 : vector<1x128xf32>
    %64 = arith.divf %62, %63 : vector<1x128xf32>
    %65 = arith.mulf %56, %37 : vector<1x128xf32>
    %66 = arith.mulf %50, %58 : vector<1x128xf32>
    %67 = arith.addf %65, %66 : vector<1x128xf32>
    %68 = math.tanh %67 : vector<1x128xf32>
    %69 = arith.mulf %64, %68 : vector<1x128xf32>
    %70 = vector.extract_strided_slice %7 {offsets = [2, 0], sizes = [1, 512], strides = [1, 1]} : vector<16x512xf32> to vector<1x512xf32>
    %71 = arith.truncf %69 : vector<1x128xf32> to vector<1x128xbf16>
    %c0_20 = arith.constant 0 : index
    %c0_21 = arith.constant 0 : index
    %72 = vector.load %arg4[%c0_20, %c0_21] : memref<128x512xbf16, #tpu.memory_space<vmem>>, vector<128x512xbf16>
    %cst_22 = arith.constant dense<0.000000e+00> : vector<1x512xf32>
    %73 = tpu.matmul %71, %72, %cst_22 {dimension_numbers = #tpu.dot_dimension_numbers<[1], [0], [0], [1], [0, 0, 1, 1], [], []>} : vector<1x128xbf16>, vector<128x512xbf16>, vector<1x512xf32> -> vector<1x512xf32>
    %74 = arith.addf %70, %73 : vector<1x512xf32>
    %75 = vector.extract_strided_slice %74 {offsets = [0, 0], sizes = [1, 128], strides = [1, 1]} : vector<1x512xf32> to vector<1x128xf32>
    %76 = arith.negf %75 : vector<1x128xf32>
    %77 = math.exp %76 : vector<1x128xf32>
    %cst_23 = arith.constant 1.000000e+00 : f32
    %78 = vector.broadcast %cst_23 : f32 to vector<1x128xf32>
    %79 = arith.addf %78, %77 : vector<1x128xf32>
    %80 = arith.divf %78, %79 : vector<1x128xf32>
    %81 = vector.extract_strided_slice %74 {offsets = [0, 128], sizes = [1, 128], strides = [1, 1]} : vector<1x512xf32> to vector<1x128xf32>
    %82 = arith.negf %81 : vector<1x128xf32>
    %83 = math.exp %82 : vector<1x128xf32>
    %cst_24 = arith.constant 1.000000e+00 : f32
    %84 = vector.broadcast %cst_24 : f32 to vector<1x128xf32>
    %85 = arith.addf %84, %83 : vector<1x128xf32>
    %86 = arith.divf %84, %85 : vector<1x128xf32>
    %87 = vector.extract_strided_slice %74 {offsets = [0, 256], sizes = [1, 128], strides = [1, 1]} : vector<1x512xf32> to vector<1x128xf32>
    %88 = math.tanh %87 : vector<1x128xf32>
    %89 = vector.extract_strided_slice %74 {offsets = [0, 384], sizes = [1, 128], strides = [1, 1]} : vector<1x512xf32> to vector<1x128xf32>
    %90 = arith.negf %89 : vector<1x128xf32>
    %91 = math.exp %90 : vector<1x128xf32>
    %cst_25 = arith.constant 1.000000e+00 : f32
    %92 = vector.broadcast %cst_25 : f32 to vector<1x128xf32>
    %93 = arith.addf %92, %91 : vector<1x128xf32>
    %94 = arith.divf %92, %93 : vector<1x128xf32>
    %95 = arith.mulf %86, %67 : vector<1x128xf32>
    %96 = arith.mulf %80, %88 : vector<1x128xf32>
    %97 = arith.addf %95, %96 : vector<1x128xf32>
    %98 = math.tanh %97 : vector<1x128xf32>
    %99 = arith.mulf %94, %98 : vector<1x128xf32>
    %100 = vector.extract_strided_slice %7 {offsets = [3, 0], sizes = [1, 512], strides = [1, 1]} : vector<16x512xf32> to vector<1x512xf32>
    %101 = arith.truncf %99 : vector<1x128xf32> to vector<1x128xbf16>
    %c0_26 = arith.constant 0 : index
    %c0_27 = arith.constant 0 : index
    %102 = vector.load %arg4[%c0_26, %c0_27] : memref<128x512xbf16, #tpu.memory_space<vmem>>, vector<128x512xbf16>
    %cst_28 = arith.constant dense<0.000000e+00> : vector<1x512xf32>
    %103 = tpu.matmul %101, %102, %cst_28 {dimension_numbers = #tpu.dot_dimension_numbers<[1], [0], [0], [1], [0, 0, 1, 1], [], []>} : vector<1x128xbf16>, vector<128x512xbf16>, vector<1x512xf32> -> vector<1x512xf32>
    %104 = arith.addf %100, %103 : vector<1x512xf32>
    %105 = vector.extract_strided_slice %104 {offsets = [0, 0], sizes = [1, 128], strides = [1, 1]} : vector<1x512xf32> to vector<1x128xf32>
    %106 = arith.negf %105 : vector<1x128xf32>
    %107 = math.exp %106 : vector<1x128xf32>
    %cst_29 = arith.constant 1.000000e+00 : f32
    %108 = vector.broadcast %cst_29 : f32 to vector<1x128xf32>
    %109 = arith.addf %108, %107 : vector<1x128xf32>
    %110 = arith.divf %108, %109 : vector<1x128xf32>
    %111 = vector.extract_strided_slice %104 {offsets = [0, 128], sizes = [1, 128], strides = [1, 1]} : vector<1x512xf32> to vector<1x128xf32>
    %112 = arith.negf %111 : vector<1x128xf32>
    %113 = math.exp %112 : vector<1x128xf32>
    %cst_30 = arith.constant 1.000000e+00 : f32
    %114 = vector.broadcast %cst_30 : f32 to vector<1x128xf32>
    %115 = arith.addf %114, %113 : vector<1x128xf32>
    %116 = arith.divf %114, %115 : vector<1x128xf32>
    %117 = vector.extract_strided_slice %104 {offsets = [0, 256], sizes = [1, 128], strides = [1, 1]} : vector<1x512xf32> to vector<1x128xf32>
    %118 = math.tanh %117 : vector<1x128xf32>
    %119 = vector.extract_strided_slice %104 {offsets = [0, 384], sizes = [1, 128], strides = [1, 1]} : vector<1x512xf32> to vector<1x128xf32>
    %120 = arith.negf %119 : vector<1x128xf32>
    %121 = math.exp %120 : vector<1x128xf32>
    %cst_31 = arith.constant 1.000000e+00 : f32
    %122 = vector.broadcast %cst_31 : f32 to vector<1x128xf32>
    %123 = arith.addf %122, %121 : vector<1x128xf32>
    %124 = arith.divf %122, %123 : vector<1x128xf32>
    %125 = arith.mulf %116, %97 : vector<1x128xf32>
    %126 = arith.mulf %110, %118 : vector<1x128xf32>
    %127 = arith.addf %125, %126 : vector<1x128xf32>
    %128 = math.tanh %127 : vector<1x128xf32>
    %129 = arith.mulf %124, %128 : vector<1x128xf32>
    %130 = vector.extract_strided_slice %7 {offsets = [4, 0], sizes = [1, 512], strides = [1, 1]} : vector<16x512xf32> to vector<1x512xf32>
    %131 = arith.truncf %129 : vector<1x128xf32> to vector<1x128xbf16>
    %c0_32 = arith.constant 0 : index
    %c0_33 = arith.constant 0 : index
    %132 = vector.load %arg4[%c0_32, %c0_33] : memref<128x512xbf16, #tpu.memory_space<vmem>>, vector<128x512xbf16>
    %cst_34 = arith.constant dense<0.000000e+00> : vector<1x512xf32>
    %133 = tpu.matmul %131, %132, %cst_34 {dimension_numbers = #tpu.dot_dimension_numbers<[1], [0], [0], [1], [0, 0, 1, 1], [], []>} : vector<1x128xbf16>, vector<128x512xbf16>, vector<1x512xf32> -> vector<1x512xf32>
    %134 = arith.addf %130, %133 : vector<1x512xf32>
    %135 = vector.extract_strided_slice %134 {offsets = [0, 0], sizes = [1, 128], strides = [1, 1]} : vector<1x512xf32> to vector<1x128xf32>
    %136 = arith.negf %135 : vector<1x128xf32>
    %137 = math.exp %136 : vector<1x128xf32>
    %cst_35 = arith.constant 1.000000e+00 : f32
    %138 = vector.broadcast %cst_35 : f32 to vector<1x128xf32>
    %139 = arith.addf %138, %137 : vector<1x128xf32>
    %140 = arith.divf %138, %139 : vector<1x128xf32>
    %141 = vector.extract_strided_slice %134 {offsets = [0, 128], sizes = [1, 128], strides = [1, 1]} : vector<1x512xf32> to vector<1x128xf32>
    %142 = arith.negf %141 : vector<1x128xf32>
    %143 = math.exp %142 : vector<1x128xf32>
    %cst_36 = arith.constant 1.000000e+00 : f32
    %144 = vector.broadcast %cst_36 : f32 to vector<1x128xf32>
    %145 = arith.addf %144, %143 : vector<1x128xf32>
    %146 = arith.divf %144, %145 : vector<1x128xf32>
    %147 = vector.extract_strided_slice %134 {offsets = [0, 256], sizes = [1, 128], strides = [1, 1]} : vector<1x512xf32> to vector<1x128xf32>
    %148 = math.tanh %147 : vector<1x128xf32>
    %149 = vector.extract_strided_slice %134 {offsets = [0, 384], sizes = [1, 128], strides = [1, 1]} : vector<1x512xf32> to vector<1x128xf32>
    %150 = arith.negf %149 : vector<1x128xf32>
    %151 = math.exp %150 : vector<1x128xf32>
    %cst_37 = arith.constant 1.000000e+00 : f32
    %152 = vector.broadcast %cst_37 : f32 to vector<1x128xf32>
    %153 = arith.addf %152, %151 : vector<1x128xf32>
    %154 = arith.divf %152, %153 : vector<1x128xf32>
    %155 = arith.mulf %146, %127 : vector<1x128xf32>
    %156 = arith.mulf %140, %148 : vector<1x128xf32>
    %157 = arith.addf %155, %156 : vector<1x128xf32>
    %158 = math.tanh %157 : vector<1x128xf32>
    %159 = arith.mulf %154, %158 : vector<1x128xf32>
    %160 = vector.extract_strided_slice %7 {offsets = [5, 0], sizes = [1, 512], strides = [1, 1]} : vector<16x512xf32> to vector<1x512xf32>
    %161 = arith.truncf %159 : vector<1x128xf32> to vector<1x128xbf16>
    %c0_38 = arith.constant 0 : index
    %c0_39 = arith.constant 0 : index
    %162 = vector.load %arg4[%c0_38, %c0_39] : memref<128x512xbf16, #tpu.memory_space<vmem>>, vector<128x512xbf16>
    %cst_40 = arith.constant dense<0.000000e+00> : vector<1x512xf32>
    %163 = tpu.matmul %161, %162, %cst_40 {dimension_numbers = #tpu.dot_dimension_numbers<[1], [0], [0], [1], [0, 0, 1, 1], [], []>} : vector<1x128xbf16>, vector<128x512xbf16>, vector<1x512xf32> -> vector<1x512xf32>
    %164 = arith.addf %160, %163 : vector<1x512xf32>
    %165 = vector.extract_strided_slice %164 {offsets = [0, 0], sizes = [1, 128], strides = [1, 1]} : vector<1x512xf32> to vector<1x128xf32>
    %166 = arith.negf %165 : vector<1x128xf32>
    %167 = math.exp %166 : vector<1x128xf32>
    %cst_41 = arith.constant 1.000000e+00 : f32
    %168 = vector.broadcast %cst_41 : f32 to vector<1x128xf32>
    %169 = arith.addf %168, %167 : vector<1x128xf32>
    %170 = arith.divf %168, %169 : vector<1x128xf32>
    %171 = vector.extract_strided_slice %164 {offsets = [0, 128], sizes = [1, 128], strides = [1, 1]} : vector<1x512xf32> to vector<1x128xf32>
    %172 = arith.negf %171 : vector<1x128xf32>
    %173 = math.exp %172 : vector<1x128xf32>
    %cst_42 = arith.constant 1.000000e+00 : f32
    %174 = vector.broadcast %cst_42 : f32 to vector<1x128xf32>
    %175 = arith.addf %174, %173 : vector<1x128xf32>
    %176 = arith.divf %174, %175 : vector<1x128xf32>
    %177 = vector.extract_strided_slice %164 {offsets = [0, 256], sizes = [1, 128], strides = [1, 1]} : vector<1x512xf32> to vector<1x128xf32>
    %178 = math.tanh %177 : vector<1x128xf32>
    %179 = vector.extract_strided_slice %164 {offsets = [0, 384], sizes = [1, 128], strides = [1, 1]} : vector<1x512xf32> to vector<1x128xf32>
    %180 = arith.negf %179 : vector<1x128xf32>
    %181 = math.exp %180 : vector<1x128xf32>
    %cst_43 = arith.constant 1.000000e+00 : f32
    %182 = vector.broadcast %cst_43 : f32 to vector<1x128xf32>
    %183 = arith.addf %182, %181 : vector<1x128xf32>
    %184 = arith.divf %182, %183 : vector<1x128xf32>
    %185 = arith.mulf %176, %157 : vector<1x128xf32>
    %186 = arith.mulf %170, %178 : vector<1x128xf32>
    %187 = arith.addf %185, %186 : vector<1x128xf32>
    %188 = math.tanh %187 : vector<1x128xf32>
    %189 = arith.mulf %184, %188 : vector<1x128xf32>
    %190 = vector.extract_strided_slice %7 {offsets = [6, 0], sizes = [1, 512], strides = [1, 1]} : vector<16x512xf32> to vector<1x512xf32>
    %191 = arith.truncf %189 : vector<1x128xf32> to vector<1x128xbf16>
    %c0_44 = arith.constant 0 : index
    %c0_45 = arith.constant 0 : index
    %192 = vector.load %arg4[%c0_44, %c0_45] : memref<128x512xbf16, #tpu.memory_space<vmem>>, vector<128x512xbf16>
    %cst_46 = arith.constant dense<0.000000e+00> : vector<1x512xf32>
    %193 = tpu.matmul %191, %192, %cst_46 {dimension_numbers = #tpu.dot_dimension_numbers<[1], [0], [0], [1], [0, 0, 1, 1], [], []>} : vector<1x128xbf16>, vector<128x512xbf16>, vector<1x512xf32> -> vector<1x512xf32>
    %194 = arith.addf %190, %193 : vector<1x512xf32>
    %195 = vector.extract_strided_slice %194 {offsets = [0, 0], sizes = [1, 128], strides = [1, 1]} : vector<1x512xf32> to vector<1x128xf32>
    %196 = arith.negf %195 : vector<1x128xf32>
    %197 = math.exp %196 : vector<1x128xf32>
    %cst_47 = arith.constant 1.000000e+00 : f32
    %198 = vector.broadcast %cst_47 : f32 to vector<1x128xf32>
    %199 = arith.addf %198, %197 : vector<1x128xf32>
    %200 = arith.divf %198, %199 : vector<1x128xf32>
    %201 = vector.extract_strided_slice %194 {offsets = [0, 128], sizes = [1, 128], strides = [1, 1]} : vector<1x512xf32> to vector<1x128xf32>
    %202 = arith.negf %201 : vector<1x128xf32>
    %203 = math.exp %202 : vector<1x128xf32>
    %cst_48 = arith.constant 1.000000e+00 : f32
    %204 = vector.broadcast %cst_48 : f32 to vector<1x128xf32>
    %205 = arith.addf %204, %203 : vector<1x128xf32>
    %206 = arith.divf %204, %205 : vector<1x128xf32>
    %207 = vector.extract_strided_slice %194 {offsets = [0, 256], sizes = [1, 128], strides = [1, 1]} : vector<1x512xf32> to vector<1x128xf32>
    %208 = math.tanh %207 : vector<1x128xf32>
    %209 = vector.extract_strided_slice %194 {offsets = [0, 384], sizes = [1, 128], strides = [1, 1]} : vector<1x512xf32> to vector<1x128xf32>
    %210 = arith.negf %209 : vector<1x128xf32>
    %211 = math.exp %210 : vector<1x128xf32>
    %cst_49 = arith.constant 1.000000e+00 : f32
    %212 = vector.broadcast %cst_49 : f32 to vector<1x128xf32>
    %213 = arith.addf %212, %211 : vector<1x128xf32>
    %214 = arith.divf %212, %213 : vector<1x128xf32>
    %215 = arith.mulf %206, %187 : vector<1x128xf32>
    %216 = arith.mulf %200, %208 : vector<1x128xf32>
    %217 = arith.addf %215, %216 : vector<1x128xf32>
    %218 = math.tanh %217 : vector<1x128xf32>
    %219 = arith.mulf %214, %218 : vector<1x128xf32>
    %220 = vector.extract_strided_slice %7 {offsets = [7, 0], sizes = [1, 512], strides = [1, 1]} : vector<16x512xf32> to vector<1x512xf32>
    %221 = arith.truncf %219 : vector<1x128xf32> to vector<1x128xbf16>
    %c0_50 = arith.constant 0 : index
    %c0_51 = arith.constant 0 : index
    %222 = vector.load %arg4[%c0_50, %c0_51] : memref<128x512xbf16, #tpu.memory_space<vmem>>, vector<128x512xbf16>
    %cst_52 = arith.constant dense<0.000000e+00> : vector<1x512xf32>
    %223 = tpu.matmul %221, %222, %cst_52 {dimension_numbers = #tpu.dot_dimension_numbers<[1], [0], [0], [1], [0, 0, 1, 1], [], []>} : vector<1x128xbf16>, vector<128x512xbf16>, vector<1x512xf32> -> vector<1x512xf32>
    %224 = arith.addf %220, %223 : vector<1x512xf32>
    %225 = vector.extract_strided_slice %224 {offsets = [0, 0], sizes = [1, 128], strides = [1, 1]} : vector<1x512xf32> to vector<1x128xf32>
    %226 = arith.negf %225 : vector<1x128xf32>
    %227 = math.exp %226 : vector<1x128xf32>
    %cst_53 = arith.constant 1.000000e+00 : f32
    %228 = vector.broadcast %cst_53 : f32 to vector<1x128xf32>
    %229 = arith.addf %228, %227 : vector<1x128xf32>
    %230 = arith.divf %228, %229 : vector<1x128xf32>
    %231 = vector.extract_strided_slice %224 {offsets = [0, 128], sizes = [1, 128], strides = [1, 1]} : vector<1x512xf32> to vector<1x128xf32>
    %232 = arith.negf %231 : vector<1x128xf32>
    %233 = math.exp %232 : vector<1x128xf32>
    %cst_54 = arith.constant 1.000000e+00 : f32
    %234 = vector.broadcast %cst_54 : f32 to vector<1x128xf32>
    %235 = arith.addf %234, %233 : vector<1x128xf32>
    %236 = arith.divf %234, %235 : vector<1x128xf32>
    %237 = vector.extract_strided_slice %224 {offsets = [0, 256], sizes = [1, 128], strides = [1, 1]} : vector<1x512xf32> to vector<1x128xf32>
    %238 = math.tanh %237 : vector<1x128xf32>
    %239 = vector.extract_strided_slice %224 {offsets = [0, 384], sizes = [1, 128], strides = [1, 1]} : vector<1x512xf32> to vector<1x128xf32>
    %240 = arith.negf %239 : vector<1x128xf32>
    %241 = math.exp %240 : vector<1x128xf32>
    %cst_55 = arith.constant 1.000000e+00 : f32
    %242 = vector.broadcast %cst_55 : f32 to vector<1x128xf32>
    %243 = arith.addf %242, %241 : vector<1x128xf32>
    %244 = arith.divf %242, %243 : vector<1x128xf32>
    %245 = arith.mulf %236, %217 : vector<1x128xf32>
    %246 = arith.mulf %230, %238 : vector<1x128xf32>
    %247 = arith.addf %245, %246 : vector<1x128xf32>
    %248 = math.tanh %247 : vector<1x128xf32>
    %249 = arith.mulf %244, %248 : vector<1x128xf32>
    %250 = vector.extract_strided_slice %7 {offsets = [8, 0], sizes = [1, 512], strides = [1, 1]} : vector<16x512xf32> to vector<1x512xf32>
    %251 = arith.truncf %249 : vector<1x128xf32> to vector<1x128xbf16>
    %c0_56 = arith.constant 0 : index
    %c0_57 = arith.constant 0 : index
    %252 = vector.load %arg4[%c0_56, %c0_57] : memref<128x512xbf16, #tpu.memory_space<vmem>>, vector<128x512xbf16>
    %cst_58 = arith.constant dense<0.000000e+00> : vector<1x512xf32>
    %253 = tpu.matmul %251, %252, %cst_58 {dimension_numbers = #tpu.dot_dimension_numbers<[1], [0], [0], [1], [0, 0, 1, 1], [], []>} : vector<1x128xbf16>, vector<128x512xbf16>, vector<1x512xf32> -> vector<1x512xf32>
    %254 = arith.addf %250, %253 : vector<1x512xf32>
    %255 = vector.extract_strided_slice %254 {offsets = [0, 0], sizes = [1, 128], strides = [1, 1]} : vector<1x512xf32> to vector<1x128xf32>
    %256 = arith.negf %255 : vector<1x128xf32>
    %257 = math.exp %256 : vector<1x128xf32>
    %cst_59 = arith.constant 1.000000e+00 : f32
    %258 = vector.broadcast %cst_59 : f32 to vector<1x128xf32>
    %259 = arith.addf %258, %257 : vector<1x128xf32>
    %260 = arith.divf %258, %259 : vector<1x128xf32>
    %261 = vector.extract_strided_slice %254 {offsets = [0, 128], sizes = [1, 128], strides = [1, 1]} : vector<1x512xf32> to vector<1x128xf32>
    %262 = arith.negf %261 : vector<1x128xf32>
    %263 = math.exp %262 : vector<1x128xf32>
    %cst_60 = arith.constant 1.000000e+00 : f32
    %264 = vector.broadcast %cst_60 : f32 to vector<1x128xf32>
    %265 = arith.addf %264, %263 : vector<1x128xf32>
    %266 = arith.divf %264, %265 : vector<1x128xf32>
    %267 = vector.extract_strided_slice %254 {offsets = [0, 256], sizes = [1, 128], strides = [1, 1]} : vector<1x512xf32> to vector<1x128xf32>
    %268 = math.tanh %267 : vector<1x128xf32>
    %269 = vector.extract_strided_slice %254 {offsets = [0, 384], sizes = [1, 128], strides = [1, 1]} : vector<1x512xf32> to vector<1x128xf32>
    %270 = arith.negf %269 : vector<1x128xf32>
    %271 = math.exp %270 : vector<1x128xf32>
    %cst_61 = arith.constant 1.000000e+00 : f32
    %272 = vector.broadcast %cst_61 : f32 to vector<1x128xf32>
    %273 = arith.addf %272, %271 : vector<1x128xf32>
    %274 = arith.divf %272, %273 : vector<1x128xf32>
    %275 = arith.mulf %266, %247 : vector<1x128xf32>
    %276 = arith.mulf %260, %268 : vector<1x128xf32>
    %277 = arith.addf %275, %276 : vector<1x128xf32>
    %278 = math.tanh %277 : vector<1x128xf32>
    %279 = arith.mulf %274, %278 : vector<1x128xf32>
    %280 = vector.extract_strided_slice %7 {offsets = [9, 0], sizes = [1, 512], strides = [1, 1]} : vector<16x512xf32> to vector<1x512xf32>
    %281 = arith.truncf %279 : vector<1x128xf32> to vector<1x128xbf16>
    %c0_62 = arith.constant 0 : index
    %c0_63 = arith.constant 0 : index
    %282 = vector.load %arg4[%c0_62, %c0_63] : memref<128x512xbf16, #tpu.memory_space<vmem>>, vector<128x512xbf16>
    %cst_64 = arith.constant dense<0.000000e+00> : vector<1x512xf32>
    %283 = tpu.matmul %281, %282, %cst_64 {dimension_numbers = #tpu.dot_dimension_numbers<[1], [0], [0], [1], [0, 0, 1, 1], [], []>} : vector<1x128xbf16>, vector<128x512xbf16>, vector<1x512xf32> -> vector<1x512xf32>
    %284 = arith.addf %280, %283 : vector<1x512xf32>
    %285 = vector.extract_strided_slice %284 {offsets = [0, 0], sizes = [1, 128], strides = [1, 1]} : vector<1x512xf32> to vector<1x128xf32>
    %286 = arith.negf %285 : vector<1x128xf32>
    %287 = math.exp %286 : vector<1x128xf32>
    %cst_65 = arith.constant 1.000000e+00 : f32
    %288 = vector.broadcast %cst_65 : f32 to vector<1x128xf32>
    %289 = arith.addf %288, %287 : vector<1x128xf32>
    %290 = arith.divf %288, %289 : vector<1x128xf32>
    %291 = vector.extract_strided_slice %284 {offsets = [0, 128], sizes = [1, 128], strides = [1, 1]} : vector<1x512xf32> to vector<1x128xf32>
    %292 = arith.negf %291 : vector<1x128xf32>
    %293 = math.exp %292 : vector<1x128xf32>
    %cst_66 = arith.constant 1.000000e+00 : f32
    %294 = vector.broadcast %cst_66 : f32 to vector<1x128xf32>
    %295 = arith.addf %294, %293 : vector<1x128xf32>
    %296 = arith.divf %294, %295 : vector<1x128xf32>
    %297 = vector.extract_strided_slice %284 {offsets = [0, 256], sizes = [1, 128], strides = [1, 1]} : vector<1x512xf32> to vector<1x128xf32>
    %298 = math.tanh %297 : vector<1x128xf32>
    %299 = vector.extract_strided_slice %284 {offsets = [0, 384], sizes = [1, 128], strides = [1, 1]} : vector<1x512xf32> to vector<1x128xf32>
    %300 = arith.negf %299 : vector<1x128xf32>
    %301 = math.exp %300 : vector<1x128xf32>
    %cst_67 = arith.constant 1.000000e+00 : f32
    %302 = vector.broadcast %cst_67 : f32 to vector<1x128xf32>
    %303 = arith.addf %302, %301 : vector<1x128xf32>
    %304 = arith.divf %302, %303 : vector<1x128xf32>
    %305 = arith.mulf %296, %277 : vector<1x128xf32>
    %306 = arith.mulf %290, %298 : vector<1x128xf32>
    %307 = arith.addf %305, %306 : vector<1x128xf32>
    %308 = math.tanh %307 : vector<1x128xf32>
    %309 = arith.mulf %304, %308 : vector<1x128xf32>
    %310 = vector.extract_strided_slice %7 {offsets = [10, 0], sizes = [1, 512], strides = [1, 1]} : vector<16x512xf32> to vector<1x512xf32>
    %311 = arith.truncf %309 : vector<1x128xf32> to vector<1x128xbf16>
    %c0_68 = arith.constant 0 : index
    %c0_69 = arith.constant 0 : index
    %312 = vector.load %arg4[%c0_68, %c0_69] : memref<128x512xbf16, #tpu.memory_space<vmem>>, vector<128x512xbf16>
    %cst_70 = arith.constant dense<0.000000e+00> : vector<1x512xf32>
    %313 = tpu.matmul %311, %312, %cst_70 {dimension_numbers = #tpu.dot_dimension_numbers<[1], [0], [0], [1], [0, 0, 1, 1], [], []>} : vector<1x128xbf16>, vector<128x512xbf16>, vector<1x512xf32> -> vector<1x512xf32>
    %314 = arith.addf %310, %313 : vector<1x512xf32>
    %315 = vector.extract_strided_slice %314 {offsets = [0, 0], sizes = [1, 128], strides = [1, 1]} : vector<1x512xf32> to vector<1x128xf32>
    %316 = arith.negf %315 : vector<1x128xf32>
    %317 = math.exp %316 : vector<1x128xf32>
    %cst_71 = arith.constant 1.000000e+00 : f32
    %318 = vector.broadcast %cst_71 : f32 to vector<1x128xf32>
    %319 = arith.addf %318, %317 : vector<1x128xf32>
    %320 = arith.divf %318, %319 : vector<1x128xf32>
    %321 = vector.extract_strided_slice %314 {offsets = [0, 128], sizes = [1, 128], strides = [1, 1]} : vector<1x512xf32> to vector<1x128xf32>
    %322 = arith.negf %321 : vector<1x128xf32>
    %323 = math.exp %322 : vector<1x128xf32>
    %cst_72 = arith.constant 1.000000e+00 : f32
    %324 = vector.broadcast %cst_72 : f32 to vector<1x128xf32>
    %325 = arith.addf %324, %323 : vector<1x128xf32>
    %326 = arith.divf %324, %325 : vector<1x128xf32>
    %327 = vector.extract_strided_slice %314 {offsets = [0, 256], sizes = [1, 128], strides = [1, 1]} : vector<1x512xf32> to vector<1x128xf32>
    %328 = math.tanh %327 : vector<1x128xf32>
    %329 = vector.extract_strided_slice %314 {offsets = [0, 384], sizes = [1, 128], strides = [1, 1]} : vector<1x512xf32> to vector<1x128xf32>
    %330 = arith.negf %329 : vector<1x128xf32>
    %331 = math.exp %330 : vector<1x128xf32>
    %cst_73 = arith.constant 1.000000e+00 : f32
    %332 = vector.broadcast %cst_73 : f32 to vector<1x128xf32>
    %333 = arith.addf %332, %331 : vector<1x128xf32>
    %334 = arith.divf %332, %333 : vector<1x128xf32>
    %335 = arith.mulf %326, %307 : vector<1x128xf32>
    %336 = arith.mulf %320, %328 : vector<1x128xf32>
    %337 = arith.addf %335, %336 : vector<1x128xf32>
    %338 = math.tanh %337 : vector<1x128xf32>
    %339 = arith.mulf %334, %338 : vector<1x128xf32>
    %340 = vector.extract_strided_slice %7 {offsets = [11, 0], sizes = [1, 512], strides = [1, 1]} : vector<16x512xf32> to vector<1x512xf32>
    %341 = arith.truncf %339 : vector<1x128xf32> to vector<1x128xbf16>
    %c0_74 = arith.constant 0 : index
    %c0_75 = arith.constant 0 : index
    %342 = vector.load %arg4[%c0_74, %c0_75] : memref<128x512xbf16, #tpu.memory_space<vmem>>, vector<128x512xbf16>
    %cst_76 = arith.constant dense<0.000000e+00> : vector<1x512xf32>
    %343 = tpu.matmul %341, %342, %cst_76 {dimension_numbers = #tpu.dot_dimension_numbers<[1], [0], [0], [1], [0, 0, 1, 1], [], []>} : vector<1x128xbf16>, vector<128x512xbf16>, vector<1x512xf32> -> vector<1x512xf32>
    %344 = arith.addf %340, %343 : vector<1x512xf32>
    %345 = vector.extract_strided_slice %344 {offsets = [0, 0], sizes = [1, 128], strides = [1, 1]} : vector<1x512xf32> to vector<1x128xf32>
    %346 = arith.negf %345 : vector<1x128xf32>
    %347 = math.exp %346 : vector<1x128xf32>
    %cst_77 = arith.constant 1.000000e+00 : f32
    %348 = vector.broadcast %cst_77 : f32 to vector<1x128xf32>
    %349 = arith.addf %348, %347 : vector<1x128xf32>
    %350 = arith.divf %348, %349 : vector<1x128xf32>
    %351 = vector.extract_strided_slice %344 {offsets = [0, 128], sizes = [1, 128], strides = [1, 1]} : vector<1x512xf32> to vector<1x128xf32>
    %352 = arith.negf %351 : vector<1x128xf32>
    %353 = math.exp %352 : vector<1x128xf32>
    %cst_78 = arith.constant 1.000000e+00 : f32
    %354 = vector.broadcast %cst_78 : f32 to vector<1x128xf32>
    %355 = arith.addf %354, %353 : vector<1x128xf32>
    %356 = arith.divf %354, %355 : vector<1x128xf32>
    %357 = vector.extract_strided_slice %344 {offsets = [0, 256], sizes = [1, 128], strides = [1, 1]} : vector<1x512xf32> to vector<1x128xf32>
    %358 = math.tanh %357 : vector<1x128xf32>
    %359 = vector.extract_strided_slice %344 {offsets = [0, 384], sizes = [1, 128], strides = [1, 1]} : vector<1x512xf32> to vector<1x128xf32>
    %360 = arith.negf %359 : vector<1x128xf32>
    %361 = math.exp %360 : vector<1x128xf32>
    %cst_79 = arith.constant 1.000000e+00 : f32
    %362 = vector.broadcast %cst_79 : f32 to vector<1x128xf32>
    %363 = arith.addf %362, %361 : vector<1x128xf32>
    %364 = arith.divf %362, %363 : vector<1x128xf32>
    %365 = arith.mulf %356, %337 : vector<1x128xf32>
    %366 = arith.mulf %350, %358 : vector<1x128xf32>
    %367 = arith.addf %365, %366 : vector<1x128xf32>
    %368 = math.tanh %367 : vector<1x128xf32>
    %369 = arith.mulf %364, %368 : vector<1x128xf32>
    %370 = vector.extract_strided_slice %7 {offsets = [12, 0], sizes = [1, 512], strides = [1, 1]} : vector<16x512xf32> to vector<1x512xf32>
    %371 = arith.truncf %369 : vector<1x128xf32> to vector<1x128xbf16>
    %c0_80 = arith.constant 0 : index
    %c0_81 = arith.constant 0 : index
    %372 = vector.load %arg4[%c0_80, %c0_81] : memref<128x512xbf16, #tpu.memory_space<vmem>>, vector<128x512xbf16>
    %cst_82 = arith.constant dense<0.000000e+00> : vector<1x512xf32>
    %373 = tpu.matmul %371, %372, %cst_82 {dimension_numbers = #tpu.dot_dimension_numbers<[1], [0], [0], [1], [0, 0, 1, 1], [], []>} : vector<1x128xbf16>, vector<128x512xbf16>, vector<1x512xf32> -> vector<1x512xf32>
    %374 = arith.addf %370, %373 : vector<1x512xf32>
    %375 = vector.extract_strided_slice %374 {offsets = [0, 0], sizes = [1, 128], strides = [1, 1]} : vector<1x512xf32> to vector<1x128xf32>
    %376 = arith.negf %375 : vector<1x128xf32>
    %377 = math.exp %376 : vector<1x128xf32>
    %cst_83 = arith.constant 1.000000e+00 : f32
    %378 = vector.broadcast %cst_83 : f32 to vector<1x128xf32>
    %379 = arith.addf %378, %377 : vector<1x128xf32>
    %380 = arith.divf %378, %379 : vector<1x128xf32>
    %381 = vector.extract_strided_slice %374 {offsets = [0, 128], sizes = [1, 128], strides = [1, 1]} : vector<1x512xf32> to vector<1x128xf32>
    %382 = arith.negf %381 : vector<1x128xf32>
    %383 = math.exp %382 : vector<1x128xf32>
    %cst_84 = arith.constant 1.000000e+00 : f32
    %384 = vector.broadcast %cst_84 : f32 to vector<1x128xf32>
    %385 = arith.addf %384, %383 : vector<1x128xf32>
    %386 = arith.divf %384, %385 : vector<1x128xf32>
    %387 = vector.extract_strided_slice %374 {offsets = [0, 256], sizes = [1, 128], strides = [1, 1]} : vector<1x512xf32> to vector<1x128xf32>
    %388 = math.tanh %387 : vector<1x128xf32>
    %389 = vector.extract_strided_slice %374 {offsets = [0, 384], sizes = [1, 128], strides = [1, 1]} : vector<1x512xf32> to vector<1x128xf32>
    %390 = arith.negf %389 : vector<1x128xf32>
    %391 = math.exp %390 : vector<1x128xf32>
    %cst_85 = arith.constant 1.000000e+00 : f32
    %392 = vector.broadcast %cst_85 : f32 to vector<1x128xf32>
    %393 = arith.addf %392, %391 : vector<1x128xf32>
    %394 = arith.divf %392, %393 : vector<1x128xf32>
    %395 = arith.mulf %386, %367 : vector<1x128xf32>
    %396 = arith.mulf %380, %388 : vector<1x128xf32>
    %397 = arith.addf %395, %396 : vector<1x128xf32>
    %398 = math.tanh %397 : vector<1x128xf32>
    %399 = arith.mulf %394, %398 : vector<1x128xf32>
    %400 = vector.extract_strided_slice %7 {offsets = [13, 0], sizes = [1, 512], strides = [1, 1]} : vector<16x512xf32> to vector<1x512xf32>
    %401 = arith.truncf %399 : vector<1x128xf32> to vector<1x128xbf16>
    %c0_86 = arith.constant 0 : index
    %c0_87 = arith.constant 0 : index
    %402 = vector.load %arg4[%c0_86, %c0_87] : memref<128x512xbf16, #tpu.memory_space<vmem>>, vector<128x512xbf16>
    %cst_88 = arith.constant dense<0.000000e+00> : vector<1x512xf32>
    %403 = tpu.matmul %401, %402, %cst_88 {dimension_numbers = #tpu.dot_dimension_numbers<[1], [0], [0], [1], [0, 0, 1, 1], [], []>} : vector<1x128xbf16>, vector<128x512xbf16>, vector<1x512xf32> -> vector<1x512xf32>
    %404 = arith.addf %400, %403 : vector<1x512xf32>
    %405 = vector.extract_strided_slice %404 {offsets = [0, 0], sizes = [1, 128], strides = [1, 1]} : vector<1x512xf32> to vector<1x128xf32>
    %406 = arith.negf %405 : vector<1x128xf32>
    %407 = math.exp %406 : vector<1x128xf32>
    %cst_89 = arith.constant 1.000000e+00 : f32
    %408 = vector.broadcast %cst_89 : f32 to vector<1x128xf32>
    %409 = arith.addf %408, %407 : vector<1x128xf32>
    %410 = arith.divf %408, %409 : vector<1x128xf32>
    %411 = vector.extract_strided_slice %404 {offsets = [0, 128], sizes = [1, 128], strides = [1, 1]} : vector<1x512xf32> to vector<1x128xf32>
    %412 = arith.negf %411 : vector<1x128xf32>
    %413 = math.exp %412 : vector<1x128xf32>
    %cst_90 = arith.constant 1.000000e+00 : f32
    %414 = vector.broadcast %cst_90 : f32 to vector<1x128xf32>
    %415 = arith.addf %414, %413 : vector<1x128xf32>
    %416 = arith.divf %414, %415 : vector<1x128xf32>
    %417 = vector.extract_strided_slice %404 {offsets = [0, 256], sizes = [1, 128], strides = [1, 1]} : vector<1x512xf32> to vector<1x128xf32>
    %418 = math.tanh %417 : vector<1x128xf32>
    %419 = vector.extract_strided_slice %404 {offsets = [0, 384], sizes = [1, 128], strides = [1, 1]} : vector<1x512xf32> to vector<1x128xf32>
    %420 = arith.negf %419 : vector<1x128xf32>
    %421 = math.exp %420 : vector<1x128xf32>
    %cst_91 = arith.constant 1.000000e+00 : f32
    %422 = vector.broadcast %cst_91 : f32 to vector<1x128xf32>
    %423 = arith.addf %422, %421 : vector<1x128xf32>
    %424 = arith.divf %422, %423 : vector<1x128xf32>
    %425 = arith.mulf %416, %397 : vector<1x128xf32>
    %426 = arith.mulf %410, %418 : vector<1x128xf32>
    %427 = arith.addf %425, %426 : vector<1x128xf32>
    %428 = math.tanh %427 : vector<1x128xf32>
    %429 = arith.mulf %424, %428 : vector<1x128xf32>
    %430 = vector.extract_strided_slice %7 {offsets = [14, 0], sizes = [1, 512], strides = [1, 1]} : vector<16x512xf32> to vector<1x512xf32>
    %431 = arith.truncf %429 : vector<1x128xf32> to vector<1x128xbf16>
    %c0_92 = arith.constant 0 : index
    %c0_93 = arith.constant 0 : index
    %432 = vector.load %arg4[%c0_92, %c0_93] : memref<128x512xbf16, #tpu.memory_space<vmem>>, vector<128x512xbf16>
    %cst_94 = arith.constant dense<0.000000e+00> : vector<1x512xf32>
    %433 = tpu.matmul %431, %432, %cst_94 {dimension_numbers = #tpu.dot_dimension_numbers<[1], [0], [0], [1], [0, 0, 1, 1], [], []>} : vector<1x128xbf16>, vector<128x512xbf16>, vector<1x512xf32> -> vector<1x512xf32>
    %434 = arith.addf %430, %433 : vector<1x512xf32>
    %435 = vector.extract_strided_slice %434 {offsets = [0, 0], sizes = [1, 128], strides = [1, 1]} : vector<1x512xf32> to vector<1x128xf32>
    %436 = arith.negf %435 : vector<1x128xf32>
    %437 = math.exp %436 : vector<1x128xf32>
    %cst_95 = arith.constant 1.000000e+00 : f32
    %438 = vector.broadcast %cst_95 : f32 to vector<1x128xf32>
    %439 = arith.addf %438, %437 : vector<1x128xf32>
    %440 = arith.divf %438, %439 : vector<1x128xf32>
    %441 = vector.extract_strided_slice %434 {offsets = [0, 128], sizes = [1, 128], strides = [1, 1]} : vector<1x512xf32> to vector<1x128xf32>
    %442 = arith.negf %441 : vector<1x128xf32>
    %443 = math.exp %442 : vector<1x128xf32>
    %cst_96 = arith.constant 1.000000e+00 : f32
    %444 = vector.broadcast %cst_96 : f32 to vector<1x128xf32>
    %445 = arith.addf %444, %443 : vector<1x128xf32>
    %446 = arith.divf %444, %445 : vector<1x128xf32>
    %447 = vector.extract_strided_slice %434 {offsets = [0, 256], sizes = [1, 128], strides = [1, 1]} : vector<1x512xf32> to vector<1x128xf32>
    %448 = math.tanh %447 : vector<1x128xf32>
    %449 = vector.extract_strided_slice %434 {offsets = [0, 384], sizes = [1, 128], strides = [1, 1]} : vector<1x512xf32> to vector<1x128xf32>
    %450 = arith.negf %449 : vector<1x128xf32>
    %451 = math.exp %450 : vector<1x128xf32>
    %cst_97 = arith.constant 1.000000e+00 : f32
    %452 = vector.broadcast %cst_97 : f32 to vector<1x128xf32>
    %453 = arith.addf %452, %451 : vector<1x128xf32>
    %454 = arith.divf %452, %453 : vector<1x128xf32>
    %455 = arith.mulf %446, %427 : vector<1x128xf32>
    %456 = arith.mulf %440, %448 : vector<1x128xf32>
    %457 = arith.addf %455, %456 : vector<1x128xf32>
    %458 = math.tanh %457 : vector<1x128xf32>
    %459 = arith.mulf %454, %458 : vector<1x128xf32>
    %460 = vector.extract_strided_slice %7 {offsets = [15, 0], sizes = [1, 512], strides = [1, 1]} : vector<16x512xf32> to vector<1x512xf32>
    %461 = arith.truncf %459 : vector<1x128xf32> to vector<1x128xbf16>
    %c0_98 = arith.constant 0 : index
    %c0_99 = arith.constant 0 : index
    %462 = vector.load %arg4[%c0_98, %c0_99] : memref<128x512xbf16, #tpu.memory_space<vmem>>, vector<128x512xbf16>
    %cst_100 = arith.constant dense<0.000000e+00> : vector<1x512xf32>
    %463 = tpu.matmul %461, %462, %cst_100 {dimension_numbers = #tpu.dot_dimension_numbers<[1], [0], [0], [1], [0, 0, 1, 1], [], []>} : vector<1x128xbf16>, vector<128x512xbf16>, vector<1x512xf32> -> vector<1x512xf32>
    %464 = arith.addf %460, %463 : vector<1x512xf32>
    %465 = vector.extract_strided_slice %464 {offsets = [0, 0], sizes = [1, 128], strides = [1, 1]} : vector<1x512xf32> to vector<1x128xf32>
    %466 = arith.negf %465 : vector<1x128xf32>
    %467 = math.exp %466 : vector<1x128xf32>
    %cst_101 = arith.constant 1.000000e+00 : f32
    %468 = vector.broadcast %cst_101 : f32 to vector<1x128xf32>
    %469 = arith.addf %468, %467 : vector<1x128xf32>
    %470 = arith.divf %468, %469 : vector<1x128xf32>
    %471 = vector.extract_strided_slice %464 {offsets = [0, 128], sizes = [1, 128], strides = [1, 1]} : vector<1x512xf32> to vector<1x128xf32>
    %472 = arith.negf %471 : vector<1x128xf32>
    %473 = math.exp %472 : vector<1x128xf32>
    %cst_102 = arith.constant 1.000000e+00 : f32
    %474 = vector.broadcast %cst_102 : f32 to vector<1x128xf32>
    %475 = arith.addf %474, %473 : vector<1x128xf32>
    %476 = arith.divf %474, %475 : vector<1x128xf32>
    %477 = vector.extract_strided_slice %464 {offsets = [0, 256], sizes = [1, 128], strides = [1, 1]} : vector<1x512xf32> to vector<1x128xf32>
    %478 = math.tanh %477 : vector<1x128xf32>
    %479 = vector.extract_strided_slice %464 {offsets = [0, 384], sizes = [1, 128], strides = [1, 1]} : vector<1x512xf32> to vector<1x128xf32>
    %480 = arith.negf %479 : vector<1x128xf32>
    %481 = math.exp %480 : vector<1x128xf32>
    %cst_103 = arith.constant 1.000000e+00 : f32
    %482 = vector.broadcast %cst_103 : f32 to vector<1x128xf32>
    %483 = arith.addf %482, %481 : vector<1x128xf32>
    %484 = arith.divf %482, %483 : vector<1x128xf32>
    %485 = arith.mulf %476, %457 : vector<1x128xf32>
    %486 = arith.mulf %470, %478 : vector<1x128xf32>
    %487 = arith.addf %485, %486 : vector<1x128xf32>
    %488 = math.tanh %487 : vector<1x128xf32>
    %489 = arith.mulf %484, %488 : vector<1x128xf32>
    %c0_104 = arith.constant 0 : index
    %c0_105 = arith.constant 0 : index
    %490 = vector.load %arg13[%c0_104, %c0_105] : memref<1x128xf32, #tpu.memory_space<vmem>>, vector<1x128xf32>
    tpu.vector_store %arg13[%c0_104, %c0_105], %489 {strides = array<i32>} : memref<1x128xf32, #tpu.memory_space<vmem>>, vector<1x128xf32>,
    %c0_106 = arith.constant 0 : index
    %c0_107 = arith.constant 0 : index
    %491 = vector.load %arg14[%c0_106, %c0_107] : memref<1x128xf32, #tpu.memory_space<vmem>>, vector<1x128xf32>
    tpu.vector_store %arg14[%c0_106, %c0_107], %487 {strides = array<i32>} : memref<1x128xf32, #tpu.memory_space<vmem>>, vector<1x128xf32>,
    %cst_108 = arith.constant 0.000000e+00 : f32
    %492 = vector.broadcast %cst_108 : f32 to vector<2x128xf32>
    %cst_109 = arith.constant 0.000000e+00 : f32
    %493 = vector.broadcast %cst_109 : f32 to vector<2x128xf32>
    %cst_110 = arith.constant 0.000000e+00 : f32
    %494 = vector.broadcast %cst_110 : f32 to vector<2x128xf32>
    %cst_111 = arith.constant 0.000000e+00 : f32
    %495 = vector.broadcast %cst_111 : f32 to vector<2x128xf32>
    %496 = tpu.concatenate %39, %279 in 0 : vector<1x128xf32>, vector<1x128xf32> -> vector<2x128xf32>
    %497 = tpu.concatenate %496, %492 in 1 : vector<2x128xf32>, vector<2x128xf32> -> vector<2x256xf32>
    %498 = arith.truncf %497 : vector<2x256xf32> to vector<2x256xbf16>
    %c0_112 = arith.constant 0 : index
    %c0_113 = arith.constant 0 : index
    %499 = vector.load %arg6[%c0_112, %c0_113] : memref<256x512xbf16, #tpu.memory_space<vmem>>, vector<256x512xbf16>
    %cst_114 = arith.constant dense<0.000000e+00> : vector<2x512xf32>
    %500 = tpu.matmul %498, %499, %cst_114 {dimension_numbers = #tpu.dot_dimension_numbers<[1], [0], [0], [1], [0, 0, 1, 1], [], []>} : vector<2x256xbf16>, vector<256x512xbf16>, vector<2x512xf32> -> vector<2x512xf32>
    %c0_115 = arith.constant 0 : index
    %c0_116 = arith.constant 0 : index
    %501 = vector.load %arg7[%c0_115, %c0_116] : memref<1x512xf32, #tpu.memory_space<vmem>>, vector<1x512xf32>
    %502 = vector.broadcast %501 : vector<1x512xf32> to vector<2x512xf32>
    %503 = arith.addf %500, %502 : vector<2x512xf32>
    %504 = vector.extract_strided_slice %503 {offsets = [0, 0], sizes = [2, 128], strides = [1, 1]} : vector<2x512xf32> to vector<2x128xf32>
    %505 = arith.negf %504 : vector<2x128xf32>
    %506 = math.exp %505 : vector<2x128xf32>
    %cst_117 = arith.constant 1.000000e+00 : f32
    %507 = vector.broadcast %cst_117 : f32 to vector<2x128xf32>
    %508 = arith.addf %507, %506 : vector<2x128xf32>
    %509 = arith.divf %507, %508 : vector<2x128xf32>
    %510 = vector.extract_strided_slice %503 {offsets = [0, 128], sizes = [2, 128], strides = [1, 1]} : vector<2x512xf32> to vector<2x128xf32>
    %511 = arith.negf %510 : vector<2x128xf32>
    %512 = math.exp %511 : vector<2x128xf32>
    %cst_118 = arith.constant 1.000000e+00 : f32
    %513 = vector.broadcast %cst_118 : f32 to vector<2x128xf32>
    %514 = arith.addf %513, %512 : vector<2x128xf32>
    %515 = arith.divf %513, %514 : vector<2x128xf32>
    %516 = vector.extract_strided_slice %503 {offsets = [0, 256], sizes = [2, 128], strides = [1, 1]} : vector<2x512xf32> to vector<2x128xf32>
    %517 = math.tanh %516 : vector<2x128xf32>
    %518 = vector.extract_strided_slice %503 {offsets = [0, 384], sizes = [2, 128], strides = [1, 1]} : vector<2x512xf32> to vector<2x128xf32>
    %519 = arith.negf %518 : vector<2x128xf32>
    %520 = math.exp %519 : vector<2x128xf32>
    %cst_119 = arith.constant 1.000000e+00 : f32
    %521 = vector.broadcast %cst_119 : f32 to vector<2x128xf32>
    %522 = arith.addf %521, %520 : vector<2x128xf32>
    %523 = arith.divf %521, %522 : vector<2x128xf32>
    %524 = arith.mulf %515, %493 : vector<2x128xf32>
    %525 = arith.mulf %509, %517 : vector<2x128xf32>
    %526 = arith.addf %524, %525 : vector<2x128xf32>
    %527 = math.tanh %526 : vector<2x128xf32>
    %528 = arith.mulf %523, %527 : vector<2x128xf32>
    %529 = tpu.concatenate %528, %494 in 1 : vector<2x128xf32>, vector<2x128xf32> -> vector<2x256xf32>
    %530 = arith.truncf %529 : vector<2x256xf32> to vector<2x256xbf16>
    %c0_120 = arith.constant 0 : index
    %c0_121 = arith.constant 0 : index
    %531 = vector.load %arg8[%c0_120, %c0_121] : memref<256x512xbf16, #tpu.memory_space<vmem>>, vector<256x512xbf16>
    %cst_122 = arith.constant dense<0.000000e+00> : vector<2x512xf32>
    %532 = tpu.matmul %530, %531, %cst_122 {dimension_numbers = #tpu.dot_dimension_numbers<[1], [0], [0], [1], [0, 0, 1, 1], [], []>} : vector<2x256xbf16>, vector<256x512xbf16>, vector<2x512xf32> -> vector<2x512xf32>
    %c0_123 = arith.constant 0 : index
    %c0_124 = arith.constant 0 : index
    %533 = vector.load %arg9[%c0_123, %c0_124] : memref<1x512xf32, #tpu.memory_space<vmem>>, vector<1x512xf32>
    %534 = vector.broadcast %533 : vector<1x512xf32> to vector<2x512xf32>
    %535 = arith.addf %532, %534 : vector<2x512xf32>
    %536 = vector.extract_strided_slice %535 {offsets = [0, 0], sizes = [2, 128], strides = [1, 1]} : vector<2x512xf32> to vector<2x128xf32>
    %537 = arith.negf %536 : vector<2x128xf32>
    %538 = math.exp %537 : vector<2x128xf32>
    %cst_125 = arith.constant 1.000000e+00 : f32
    %539 = vector.broadcast %cst_125 : f32 to vector<2x128xf32>
    %540 = arith.addf %539, %538 : vector<2x128xf32>
    %541 = arith.divf %539, %540 : vector<2x128xf32>
    %542 = vector.extract_strided_slice %535 {offsets = [0, 128], sizes = [2, 128], strides = [1, 1]} : vector<2x512xf32> to vector<2x128xf32>
    %543 = arith.negf %542 : vector<2x128xf32>
    %544 = math.exp %543 : vector<2x128xf32>
    %cst_126 = arith.constant 1.000000e+00 : f32
    %545 = vector.broadcast %cst_126 : f32 to vector<2x128xf32>
    %546 = arith.addf %545, %544 : vector<2x128xf32>
    %547 = arith.divf %545, %546 : vector<2x128xf32>
    %548 = vector.extract_strided_slice %535 {offsets = [0, 256], sizes = [2, 128], strides = [1, 1]} : vector<2x512xf32> to vector<2x128xf32>
    %549 = math.tanh %548 : vector<2x128xf32>
    %550 = vector.extract_strided_slice %535 {offsets = [0, 384], sizes = [2, 128], strides = [1, 1]} : vector<2x512xf32> to vector<2x128xf32>
    %551 = arith.negf %550 : vector<2x128xf32>
    %552 = math.exp %551 : vector<2x128xf32>
    %cst_127 = arith.constant 1.000000e+00 : f32
    %553 = vector.broadcast %cst_127 : f32 to vector<2x128xf32>
    %554 = arith.addf %553, %552 : vector<2x128xf32>
    %555 = arith.divf %553, %554 : vector<2x128xf32>
    %556 = arith.mulf %547, %495 : vector<2x128xf32>
    %557 = arith.mulf %541, %549 : vector<2x128xf32>
    %558 = arith.addf %556, %557 : vector<2x128xf32>
    %559 = math.tanh %558 : vector<2x128xf32>
    %560 = arith.mulf %555, %559 : vector<2x128xf32>
    %561 = tpu.concatenate %69, %309 in 0 : vector<1x128xf32>, vector<1x128xf32> -> vector<2x128xf32>
    %562 = tpu.concatenate %561, %528 in 1 : vector<2x128xf32>, vector<2x128xf32> -> vector<2x256xf32>
    %563 = arith.truncf %562 : vector<2x256xf32> to vector<2x256xbf16>
    %c0_128 = arith.constant 0 : index
    %c0_129 = arith.constant 0 : index
    %564 = vector.load %arg6[%c0_128, %c0_129] : memref<256x512xbf16, #tpu.memory_space<vmem>>, vector<256x512xbf16>
    %cst_130 = arith.constant dense<0.000000e+00> : vector<2x512xf32>
    %565 = tpu.matmul %563, %564, %cst_130 {dimension_numbers = #tpu.dot_dimension_numbers<[1], [0], [0], [1], [0, 0, 1, 1], [], []>} : vector<2x256xbf16>, vector<256x512xbf16>, vector<2x512xf32> -> vector<2x512xf32>
    %c0_131 = arith.constant 0 : index
    %c0_132 = arith.constant 0 : index
    %566 = vector.load %arg7[%c0_131, %c0_132] : memref<1x512xf32, #tpu.memory_space<vmem>>, vector<1x512xf32>
    %567 = vector.broadcast %566 : vector<1x512xf32> to vector<2x512xf32>
    %568 = arith.addf %565, %567 : vector<2x512xf32>
    %569 = vector.extract_strided_slice %568 {offsets = [0, 0], sizes = [2, 128], strides = [1, 1]} : vector<2x512xf32> to vector<2x128xf32>
    %570 = arith.negf %569 : vector<2x128xf32>
    %571 = math.exp %570 : vector<2x128xf32>
    %cst_133 = arith.constant 1.000000e+00 : f32
    %572 = vector.broadcast %cst_133 : f32 to vector<2x128xf32>
    %573 = arith.addf %572, %571 : vector<2x128xf32>
    %574 = arith.divf %572, %573 : vector<2x128xf32>
    %575 = vector.extract_strided_slice %568 {offsets = [0, 128], sizes = [2, 128], strides = [1, 1]} : vector<2x512xf32> to vector<2x128xf32>
    %576 = arith.negf %575 : vector<2x128xf32>
    %577 = math.exp %576 : vector<2x128xf32>
    %cst_134 = arith.constant 1.000000e+00 : f32
    %578 = vector.broadcast %cst_134 : f32 to vector<2x128xf32>
    %579 = arith.addf %578, %577 : vector<2x128xf32>
    %580 = arith.divf %578, %579 : vector<2x128xf32>
    %581 = vector.extract_strided_slice %568 {offsets = [0, 256], sizes = [2, 128], strides = [1, 1]} : vector<2x512xf32> to vector<2x128xf32>
    %582 = math.tanh %581 : vector<2x128xf32>
    %583 = vector.extract_strided_slice %568 {offsets = [0, 384], sizes = [2, 128], strides = [1, 1]} : vector<2x512xf32> to vector<2x128xf32>
    %584 = arith.negf %583 : vector<2x128xf32>
    %585 = math.exp %584 : vector<2x128xf32>
    %cst_135 = arith.constant 1.000000e+00 : f32
    %586 = vector.broadcast %cst_135 : f32 to vector<2x128xf32>
    %587 = arith.addf %586, %585 : vector<2x128xf32>
    %588 = arith.divf %586, %587 : vector<2x128xf32>
    %589 = arith.mulf %580, %526 : vector<2x128xf32>
    %590 = arith.mulf %574, %582 : vector<2x128xf32>
    %591 = arith.addf %589, %590 : vector<2x128xf32>
    %592 = math.tanh %591 : vector<2x128xf32>
    %593 = arith.mulf %588, %592 : vector<2x128xf32>
    %594 = tpu.concatenate %593, %560 in 1 : vector<2x128xf32>, vector<2x128xf32> -> vector<2x256xf32>
    %595 = arith.truncf %594 : vector<2x256xf32> to vector<2x256xbf16>
    %c0_136 = arith.constant 0 : index
    %c0_137 = arith.constant 0 : index
    %596 = vector.load %arg8[%c0_136, %c0_137] : memref<256x512xbf16, #tpu.memory_space<vmem>>, vector<256x512xbf16>
    %cst_138 = arith.constant dense<0.000000e+00> : vector<2x512xf32>
    %597 = tpu.matmul %595, %596, %cst_138 {dimension_numbers = #tpu.dot_dimension_numbers<[1], [0], [0], [1], [0, 0, 1, 1], [], []>} : vector<2x256xbf16>, vector<256x512xbf16>, vector<2x512xf32> -> vector<2x512xf32>
    %c0_139 = arith.constant 0 : index
    %c0_140 = arith.constant 0 : index
    %598 = vector.load %arg9[%c0_139, %c0_140] : memref<1x512xf32, #tpu.memory_space<vmem>>, vector<1x512xf32>
    %599 = vector.broadcast %598 : vector<1x512xf32> to vector<2x512xf32>
    %600 = arith.addf %597, %599 : vector<2x512xf32>
    %601 = vector.extract_strided_slice %600 {offsets = [0, 0], sizes = [2, 128], strides = [1, 1]} : vector<2x512xf32> to vector<2x128xf32>
    %602 = arith.negf %601 : vector<2x128xf32>
    %603 = math.exp %602 : vector<2x128xf32>
    %cst_141 = arith.constant 1.000000e+00 : f32
    %604 = vector.broadcast %cst_141 : f32 to vector<2x128xf32>
    %605 = arith.addf %604, %603 : vector<2x128xf32>
    %606 = arith.divf %604, %605 : vector<2x128xf32>
    %607 = vector.extract_strided_slice %600 {offsets = [0, 128], sizes = [2, 128], strides = [1, 1]} : vector<2x512xf32> to vector<2x128xf32>
    %608 = arith.negf %607 : vector<2x128xf32>
    %609 = math.exp %608 : vector<2x128xf32>
    %cst_142 = arith.constant 1.000000e+00 : f32
    %610 = vector.broadcast %cst_142 : f32 to vector<2x128xf32>
    %611 = arith.addf %610, %609 : vector<2x128xf32>
    %612 = arith.divf %610, %611 : vector<2x128xf32>
    %613 = vector.extract_strided_slice %600 {offsets = [0, 256], sizes = [2, 128], strides = [1, 1]} : vector<2x512xf32> to vector<2x128xf32>
    %614 = math.tanh %613 : vector<2x128xf32>
    %615 = vector.extract_strided_slice %600 {offsets = [0, 384], sizes = [2, 128], strides = [1, 1]} : vector<2x512xf32> to vector<2x128xf32>
    %616 = arith.negf %615 : vector<2x128xf32>
    %617 = math.exp %616 : vector<2x128xf32>
    %cst_143 = arith.constant 1.000000e+00 : f32
    %618 = vector.broadcast %cst_143 : f32 to vector<2x128xf32>
    %619 = arith.addf %618, %617 : vector<2x128xf32>
    %620 = arith.divf %618, %619 : vector<2x128xf32>
    %621 = arith.mulf %612, %558 : vector<2x128xf32>
    %622 = arith.mulf %606, %614 : vector<2x128xf32>
    %623 = arith.addf %621, %622 : vector<2x128xf32>
    %624 = math.tanh %623 : vector<2x128xf32>
    %625 = arith.mulf %620, %624 : vector<2x128xf32>
    %626 = tpu.concatenate %99, %339 in 0 : vector<1x128xf32>, vector<1x128xf32> -> vector<2x128xf32>
    %627 = tpu.concatenate %626, %593 in 1 : vector<2x128xf32>, vector<2x128xf32> -> vector<2x256xf32>
    %628 = arith.truncf %627 : vector<2x256xf32> to vector<2x256xbf16>
    %c0_144 = arith.constant 0 : index
    %c0_145 = arith.constant 0 : index
    %629 = vector.load %arg6[%c0_144, %c0_145] : memref<256x512xbf16, #tpu.memory_space<vmem>>, vector<256x512xbf16>
    %cst_146 = arith.constant dense<0.000000e+00> : vector<2x512xf32>
    %630 = tpu.matmul %628, %629, %cst_146 {dimension_numbers = #tpu.dot_dimension_numbers<[1], [0], [0], [1], [0, 0, 1, 1], [], []>} : vector<2x256xbf16>, vector<256x512xbf16>, vector<2x512xf32> -> vector<2x512xf32>
    %c0_147 = arith.constant 0 : index
    %c0_148 = arith.constant 0 : index
    %631 = vector.load %arg7[%c0_147, %c0_148] : memref<1x512xf32, #tpu.memory_space<vmem>>, vector<1x512xf32>
    %632 = vector.broadcast %631 : vector<1x512xf32> to vector<2x512xf32>
    %633 = arith.addf %630, %632 : vector<2x512xf32>
    %634 = vector.extract_strided_slice %633 {offsets = [0, 0], sizes = [2, 128], strides = [1, 1]} : vector<2x512xf32> to vector<2x128xf32>
    %635 = arith.negf %634 : vector<2x128xf32>
    %636 = math.exp %635 : vector<2x128xf32>
    %cst_149 = arith.constant 1.000000e+00 : f32
    %637 = vector.broadcast %cst_149 : f32 to vector<2x128xf32>
    %638 = arith.addf %637, %636 : vector<2x128xf32>
    %639 = arith.divf %637, %638 : vector<2x128xf32>
    %640 = vector.extract_strided_slice %633 {offsets = [0, 128], sizes = [2, 128], strides = [1, 1]} : vector<2x512xf32> to vector<2x128xf32>
    %641 = arith.negf %640 : vector<2x128xf32>
    %642 = math.exp %641 : vector<2x128xf32>
    %cst_150 = arith.constant 1.000000e+00 : f32
    %643 = vector.broadcast %cst_150 : f32 to vector<2x128xf32>
    %644 = arith.addf %643, %642 : vector<2x128xf32>
    %645 = arith.divf %643, %644 : vector<2x128xf32>
    %646 = vector.extract_strided_slice %633 {offsets = [0, 256], sizes = [2, 128], strides = [1, 1]} : vector<2x512xf32> to vector<2x128xf32>
    %647 = math.tanh %646 : vector<2x128xf32>
    %648 = vector.extract_strided_slice %633 {offsets = [0, 384], sizes = [2, 128], strides = [1, 1]} : vector<2x512xf32> to vector<2x128xf32>
    %649 = arith.negf %648 : vector<2x128xf32>
    %650 = math.exp %649 : vector<2x128xf32>
    %cst_151 = arith.constant 1.000000e+00 : f32
    %651 = vector.broadcast %cst_151 : f32 to vector<2x128xf32>
    %652 = arith.addf %651, %650 : vector<2x128xf32>
    %653 = arith.divf %651, %652 : vector<2x128xf32>
    %654 = arith.mulf %645, %591 : vector<2x128xf32>
    %655 = arith.mulf %639, %647 : vector<2x128xf32>
    %656 = arith.addf %654, %655 : vector<2x128xf32>
    %657 = math.tanh %656 : vector<2x128xf32>
    %658 = arith.mulf %653, %657 : vector<2x128xf32>
    %659 = tpu.concatenate %658, %625 in 1 : vector<2x128xf32>, vector<2x128xf32> -> vector<2x256xf32>
    %660 = arith.truncf %659 : vector<2x256xf32> to vector<2x256xbf16>
    %c0_152 = arith.constant 0 : index
    %c0_153 = arith.constant 0 : index
    %661 = vector.load %arg8[%c0_152, %c0_153] : memref<256x512xbf16, #tpu.memory_space<vmem>>, vector<256x512xbf16>
    %cst_154 = arith.constant dense<0.000000e+00> : vector<2x512xf32>
    %662 = tpu.matmul %660, %661, %cst_154 {dimension_numbers = #tpu.dot_dimension_numbers<[1], [0], [0], [1], [0, 0, 1, 1], [], []>} : vector<2x256xbf16>, vector<256x512xbf16>, vector<2x512xf32> -> vector<2x512xf32>
    %c0_155 = arith.constant 0 : index
    %c0_156 = arith.constant 0 : index
    %663 = vector.load %arg9[%c0_155, %c0_156] : memref<1x512xf32, #tpu.memory_space<vmem>>, vector<1x512xf32>
    %664 = vector.broadcast %663 : vector<1x512xf32> to vector<2x512xf32>
    %665 = arith.addf %662, %664 : vector<2x512xf32>
    %666 = vector.extract_strided_slice %665 {offsets = [0, 0], sizes = [2, 128], strides = [1, 1]} : vector<2x512xf32> to vector<2x128xf32>
    %667 = arith.negf %666 : vector<2x128xf32>
    %668 = math.exp %667 : vector<2x128xf32>
    %cst_157 = arith.constant 1.000000e+00 : f32
    %669 = vector.broadcast %cst_157 : f32 to vector<2x128xf32>
    %670 = arith.addf %669, %668 : vector<2x128xf32>
    %671 = arith.divf %669, %670 : vector<2x128xf32>
    %672 = vector.extract_strided_slice %665 {offsets = [0, 128], sizes = [2, 128], strides = [1, 1]} : vector<2x512xf32> to vector<2x128xf32>
    %673 = arith.negf %672 : vector<2x128xf32>
    %674 = math.exp %673 : vector<2x128xf32>
    %cst_158 = arith.constant 1.000000e+00 : f32
    %675 = vector.broadcast %cst_158 : f32 to vector<2x128xf32>
    %676 = arith.addf %675, %674 : vector<2x128xf32>
    %677 = arith.divf %675, %676 : vector<2x128xf32>
    %678 = vector.extract_strided_slice %665 {offsets = [0, 256], sizes = [2, 128], strides = [1, 1]} : vector<2x512xf32> to vector<2x128xf32>
    %679 = math.tanh %678 : vector<2x128xf32>
    %680 = vector.extract_strided_slice %665 {offsets = [0, 384], sizes = [2, 128], strides = [1, 1]} : vector<2x512xf32> to vector<2x128xf32>
    %681 = arith.negf %680 : vector<2x128xf32>
    %682 = math.exp %681 : vector<2x128xf32>
    %cst_159 = arith.constant 1.000000e+00 : f32
    %683 = vector.broadcast %cst_159 : f32 to vector<2x128xf32>
    %684 = arith.addf %683, %682 : vector<2x128xf32>
    %685 = arith.divf %683, %684 : vector<2x128xf32>
    %686 = arith.mulf %677, %623 : vector<2x128xf32>
    %687 = arith.mulf %671, %679 : vector<2x128xf32>
    %688 = arith.addf %686, %687 : vector<2x128xf32>
    %689 = math.tanh %688 : vector<2x128xf32>
    %690 = arith.mulf %685, %689 : vector<2x128xf32>
    %691 = tpu.concatenate %129, %369 in 0 : vector<1x128xf32>, vector<1x128xf32> -> vector<2x128xf32>
    %692 = tpu.concatenate %691, %658 in 1 : vector<2x128xf32>, vector<2x128xf32> -> vector<2x256xf32>
    %693 = arith.truncf %692 : vector<2x256xf32> to vector<2x256xbf16>
    %c0_160 = arith.constant 0 : index
    %c0_161 = arith.constant 0 : index
    %694 = vector.load %arg6[%c0_160, %c0_161] : memref<256x512xbf16, #tpu.memory_space<vmem>>, vector<256x512xbf16>
    %cst_162 = arith.constant dense<0.000000e+00> : vector<2x512xf32>
    %695 = tpu.matmul %693, %694, %cst_162 {dimension_numbers = #tpu.dot_dimension_numbers<[1], [0], [0], [1], [0, 0, 1, 1], [], []>} : vector<2x256xbf16>, vector<256x512xbf16>, vector<2x512xf32> -> vector<2x512xf32>
    %c0_163 = arith.constant 0 : index
    %c0_164 = arith.constant 0 : index
    %696 = vector.load %arg7[%c0_163, %c0_164] : memref<1x512xf32, #tpu.memory_space<vmem>>, vector<1x512xf32>
    %697 = vector.broadcast %696 : vector<1x512xf32> to vector<2x512xf32>
    %698 = arith.addf %695, %697 : vector<2x512xf32>
    %699 = vector.extract_strided_slice %698 {offsets = [0, 0], sizes = [2, 128], strides = [1, 1]} : vector<2x512xf32> to vector<2x128xf32>
    %700 = arith.negf %699 : vector<2x128xf32>
    %701 = math.exp %700 : vector<2x128xf32>
    %cst_165 = arith.constant 1.000000e+00 : f32
    %702 = vector.broadcast %cst_165 : f32 to vector<2x128xf32>
    %703 = arith.addf %702, %701 : vector<2x128xf32>
    %704 = arith.divf %702, %703 : vector<2x128xf32>
    %705 = vector.extract_strided_slice %698 {offsets = [0, 128], sizes = [2, 128], strides = [1, 1]} : vector<2x512xf32> to vector<2x128xf32>
    %706 = arith.negf %705 : vector<2x128xf32>
    %707 = math.exp %706 : vector<2x128xf32>
    %cst_166 = arith.constant 1.000000e+00 : f32
    %708 = vector.broadcast %cst_166 : f32 to vector<2x128xf32>
    %709 = arith.addf %708, %707 : vector<2x128xf32>
    %710 = arith.divf %708, %709 : vector<2x128xf32>
    %711 = vector.extract_strided_slice %698 {offsets = [0, 256], sizes = [2, 128], strides = [1, 1]} : vector<2x512xf32> to vector<2x128xf32>
    %712 = math.tanh %711 : vector<2x128xf32>
    %713 = vector.extract_strided_slice %698 {offsets = [0, 384], sizes = [2, 128], strides = [1, 1]} : vector<2x512xf32> to vector<2x128xf32>
    %714 = arith.negf %713 : vector<2x128xf32>
    %715 = math.exp %714 : vector<2x128xf32>
    %cst_167 = arith.constant 1.000000e+00 : f32
    %716 = vector.broadcast %cst_167 : f32 to vector<2x128xf32>
    %717 = arith.addf %716, %715 : vector<2x128xf32>
    %718 = arith.divf %716, %717 : vector<2x128xf32>
    %719 = arith.mulf %710, %656 : vector<2x128xf32>
    %720 = arith.mulf %704, %712 : vector<2x128xf32>
    %721 = arith.addf %719, %720 : vector<2x128xf32>
    %722 = math.tanh %721 : vector<2x128xf32>
    %723 = arith.mulf %718, %722 : vector<2x128xf32>
    %724 = tpu.concatenate %723, %690 in 1 : vector<2x128xf32>, vector<2x128xf32> -> vector<2x256xf32>
    %725 = arith.truncf %724 : vector<2x256xf32> to vector<2x256xbf16>
    %c0_168 = arith.constant 0 : index
    %c0_169 = arith.constant 0 : index
    %726 = vector.load %arg8[%c0_168, %c0_169] : memref<256x512xbf16, #tpu.memory_space<vmem>>, vector<256x512xbf16>
    %cst_170 = arith.constant dense<0.000000e+00> : vector<2x512xf32>
    %727 = tpu.matmul %725, %726, %cst_170 {dimension_numbers = #tpu.dot_dimension_numbers<[1], [0], [0], [1], [0, 0, 1, 1], [], []>} : vector<2x256xbf16>, vector<256x512xbf16>, vector<2x512xf32> -> vector<2x512xf32>
    %c0_171 = arith.constant 0 : index
    %c0_172 = arith.constant 0 : index
    %728 = vector.load %arg9[%c0_171, %c0_172] : memref<1x512xf32, #tpu.memory_space<vmem>>, vector<1x512xf32>
    %729 = vector.broadcast %728 : vector<1x512xf32> to vector<2x512xf32>
    %730 = arith.addf %727, %729 : vector<2x512xf32>
    %731 = vector.extract_strided_slice %730 {offsets = [0, 0], sizes = [2, 128], strides = [1, 1]} : vector<2x512xf32> to vector<2x128xf32>
    %732 = arith.negf %731 : vector<2x128xf32>
    %733 = math.exp %732 : vector<2x128xf32>
    %cst_173 = arith.constant 1.000000e+00 : f32
    %734 = vector.broadcast %cst_173 : f32 to vector<2x128xf32>
    %735 = arith.addf %734, %733 : vector<2x128xf32>
    %736 = arith.divf %734, %735 : vector<2x128xf32>
    %737 = vector.extract_strided_slice %730 {offsets = [0, 128], sizes = [2, 128], strides = [1, 1]} : vector<2x512xf32> to vector<2x128xf32>
    %738 = arith.negf %737 : vector<2x128xf32>
    %739 = math.exp %738 : vector<2x128xf32>
    %cst_174 = arith.constant 1.000000e+00 : f32
    %740 = vector.broadcast %cst_174 : f32 to vector<2x128xf32>
    %741 = arith.addf %740, %739 : vector<2x128xf32>
    %742 = arith.divf %740, %741 : vector<2x128xf32>
    %743 = vector.extract_strided_slice %730 {offsets = [0, 256], sizes = [2, 128], strides = [1, 1]} : vector<2x512xf32> to vector<2x128xf32>
    %744 = math.tanh %743 : vector<2x128xf32>
    %745 = vector.extract_strided_slice %730 {offsets = [0, 384], sizes = [2, 128], strides = [1, 1]} : vector<2x512xf32> to vector<2x128xf32>
    %746 = arith.negf %745 : vector<2x128xf32>
    %747 = math.exp %746 : vector<2x128xf32>
    %cst_175 = arith.constant 1.000000e+00 : f32
    %748 = vector.broadcast %cst_175 : f32 to vector<2x128xf32>
    %749 = arith.addf %748, %747 : vector<2x128xf32>
    %750 = arith.divf %748, %749 : vector<2x128xf32>
    %751 = arith.mulf %742, %688 : vector<2x128xf32>
    %752 = arith.mulf %736, %744 : vector<2x128xf32>
    %753 = arith.addf %751, %752 : vector<2x128xf32>
    %754 = math.tanh %753 : vector<2x128xf32>
    %755 = arith.mulf %750, %754 : vector<2x128xf32>
    %756 = tpu.concatenate %159, %399 in 0 : vector<1x128xf32>, vector<1x128xf32> -> vector<2x128xf32>
    %757 = tpu.concatenate %756, %723 in 1 : vector<2x128xf32>, vector<2x128xf32> -> vector<2x256xf32>
    %758 = arith.truncf %757 : vector<2x256xf32> to vector<2x256xbf16>
    %c0_176 = arith.constant 0 : index
    %c0_177 = arith.constant 0 : index
    %759 = vector.load %arg6[%c0_176, %c0_177] : memref<256x512xbf16, #tpu.memory_space<vmem>>, vector<256x512xbf16>
    %cst_178 = arith.constant dense<0.000000e+00> : vector<2x512xf32>
    %760 = tpu.matmul %758, %759, %cst_178 {dimension_numbers = #tpu.dot_dimension_numbers<[1], [0], [0], [1], [0, 0, 1, 1], [], []>} : vector<2x256xbf16>, vector<256x512xbf16>, vector<2x512xf32> -> vector<2x512xf32>
    %c0_179 = arith.constant 0 : index
    %c0_180 = arith.constant 0 : index
    %761 = vector.load %arg7[%c0_179, %c0_180] : memref<1x512xf32, #tpu.memory_space<vmem>>, vector<1x512xf32>
    %762 = vector.broadcast %761 : vector<1x512xf32> to vector<2x512xf32>
    %763 = arith.addf %760, %762 : vector<2x512xf32>
    %764 = vector.extract_strided_slice %763 {offsets = [0, 0], sizes = [2, 128], strides = [1, 1]} : vector<2x512xf32> to vector<2x128xf32>
    %765 = arith.negf %764 : vector<2x128xf32>
    %766 = math.exp %765 : vector<2x128xf32>
    %cst_181 = arith.constant 1.000000e+00 : f32
    %767 = vector.broadcast %cst_181 : f32 to vector<2x128xf32>
    %768 = arith.addf %767, %766 : vector<2x128xf32>
    %769 = arith.divf %767, %768 : vector<2x128xf32>
    %770 = vector.extract_strided_slice %763 {offsets = [0, 128], sizes = [2, 128], strides = [1, 1]} : vector<2x512xf32> to vector<2x128xf32>
    %771 = arith.negf %770 : vector<2x128xf32>
    %772 = math.exp %771 : vector<2x128xf32>
    %cst_182 = arith.constant 1.000000e+00 : f32
    %773 = vector.broadcast %cst_182 : f32 to vector<2x128xf32>
    %774 = arith.addf %773, %772 : vector<2x128xf32>
    %775 = arith.divf %773, %774 : vector<2x128xf32>
    %776 = vector.extract_strided_slice %763 {offsets = [0, 256], sizes = [2, 128], strides = [1, 1]} : vector<2x512xf32> to vector<2x128xf32>
    %777 = math.tanh %776 : vector<2x128xf32>
    %778 = vector.extract_strided_slice %763 {offsets = [0, 384], sizes = [2, 128], strides = [1, 1]} : vector<2x512xf32> to vector<2x128xf32>
    %779 = arith.negf %778 : vector<2x128xf32>
    %780 = math.exp %779 : vector<2x128xf32>
    %cst_183 = arith.constant 1.000000e+00 : f32
    %781 = vector.broadcast %cst_183 : f32 to vector<2x128xf32>
    %782 = arith.addf %781, %780 : vector<2x128xf32>
    %783 = arith.divf %781, %782 : vector<2x128xf32>
    %784 = arith.mulf %775, %721 : vector<2x128xf32>
    %785 = arith.mulf %769, %777 : vector<2x128xf32>
    %786 = arith.addf %784, %785 : vector<2x128xf32>
    %787 = math.tanh %786 : vector<2x128xf32>
    %788 = arith.mulf %783, %787 : vector<2x128xf32>
    %789 = tpu.concatenate %788, %755 in 1 : vector<2x128xf32>, vector<2x128xf32> -> vector<2x256xf32>
    %790 = arith.truncf %789 : vector<2x256xf32> to vector<2x256xbf16>
    %c0_184 = arith.constant 0 : index
    %c0_185 = arith.constant 0 : index
    %791 = vector.load %arg8[%c0_184, %c0_185] : memref<256x512xbf16, #tpu.memory_space<vmem>>, vector<256x512xbf16>
    %cst_186 = arith.constant dense<0.000000e+00> : vector<2x512xf32>
    %792 = tpu.matmul %790, %791, %cst_186 {dimension_numbers = #tpu.dot_dimension_numbers<[1], [0], [0], [1], [0, 0, 1, 1], [], []>} : vector<2x256xbf16>, vector<256x512xbf16>, vector<2x512xf32> -> vector<2x512xf32>
    %c0_187 = arith.constant 0 : index
    %c0_188 = arith.constant 0 : index
    %793 = vector.load %arg9[%c0_187, %c0_188] : memref<1x512xf32, #tpu.memory_space<vmem>>, vector<1x512xf32>
    %794 = vector.broadcast %793 : vector<1x512xf32> to vector<2x512xf32>
    %795 = arith.addf %792, %794 : vector<2x512xf32>
    %796 = vector.extract_strided_slice %795 {offsets = [0, 0], sizes = [2, 128], strides = [1, 1]} : vector<2x512xf32> to vector<2x128xf32>
    %797 = arith.negf %796 : vector<2x128xf32>
    %798 = math.exp %797 : vector<2x128xf32>
    %cst_189 = arith.constant 1.000000e+00 : f32
    %799 = vector.broadcast %cst_189 : f32 to vector<2x128xf32>
    %800 = arith.addf %799, %798 : vector<2x128xf32>
    %801 = arith.divf %799, %800 : vector<2x128xf32>
    %802 = vector.extract_strided_slice %795 {offsets = [0, 128], sizes = [2, 128], strides = [1, 1]} : vector<2x512xf32> to vector<2x128xf32>
    %803 = arith.negf %802 : vector<2x128xf32>
    %804 = math.exp %803 : vector<2x128xf32>
    %cst_190 = arith.constant 1.000000e+00 : f32
    %805 = vector.broadcast %cst_190 : f32 to vector<2x128xf32>
    %806 = arith.addf %805, %804 : vector<2x128xf32>
    %807 = arith.divf %805, %806 : vector<2x128xf32>
    %808 = vector.extract_strided_slice %795 {offsets = [0, 256], sizes = [2, 128], strides = [1, 1]} : vector<2x512xf32> to vector<2x128xf32>
    %809 = math.tanh %808 : vector<2x128xf32>
    %810 = vector.extract_strided_slice %795 {offsets = [0, 384], sizes = [2, 128], strides = [1, 1]} : vector<2x512xf32> to vector<2x128xf32>
    %811 = arith.negf %810 : vector<2x128xf32>
    %812 = math.exp %811 : vector<2x128xf32>
    %cst_191 = arith.constant 1.000000e+00 : f32
    %813 = vector.broadcast %cst_191 : f32 to vector<2x128xf32>
    %814 = arith.addf %813, %812 : vector<2x128xf32>
    %815 = arith.divf %813, %814 : vector<2x128xf32>
    %816 = arith.mulf %807, %753 : vector<2x128xf32>
    %817 = arith.mulf %801, %809 : vector<2x128xf32>
    %818 = arith.addf %816, %817 : vector<2x128xf32>
    %819 = math.tanh %818 : vector<2x128xf32>
    %820 = arith.mulf %815, %819 : vector<2x128xf32>
    %821 = tpu.concatenate %189, %429 in 0 : vector<1x128xf32>, vector<1x128xf32> -> vector<2x128xf32>
    %822 = tpu.concatenate %821, %788 in 1 : vector<2x128xf32>, vector<2x128xf32> -> vector<2x256xf32>
    %823 = arith.truncf %822 : vector<2x256xf32> to vector<2x256xbf16>
    %c0_192 = arith.constant 0 : index
    %c0_193 = arith.constant 0 : index
    %824 = vector.load %arg6[%c0_192, %c0_193] : memref<256x512xbf16, #tpu.memory_space<vmem>>, vector<256x512xbf16>
    %cst_194 = arith.constant dense<0.000000e+00> : vector<2x512xf32>
    %825 = tpu.matmul %823, %824, %cst_194 {dimension_numbers = #tpu.dot_dimension_numbers<[1], [0], [0], [1], [0, 0, 1, 1], [], []>} : vector<2x256xbf16>, vector<256x512xbf16>, vector<2x512xf32> -> vector<2x512xf32>
    %c0_195 = arith.constant 0 : index
    %c0_196 = arith.constant 0 : index
    %826 = vector.load %arg7[%c0_195, %c0_196] : memref<1x512xf32, #tpu.memory_space<vmem>>, vector<1x512xf32>
    %827 = vector.broadcast %826 : vector<1x512xf32> to vector<2x512xf32>
    %828 = arith.addf %825, %827 : vector<2x512xf32>
    %829 = vector.extract_strided_slice %828 {offsets = [0, 0], sizes = [2, 128], strides = [1, 1]} : vector<2x512xf32> to vector<2x128xf32>
    %830 = arith.negf %829 : vector<2x128xf32>
    %831 = math.exp %830 : vector<2x128xf32>
    %cst_197 = arith.constant 1.000000e+00 : f32
    %832 = vector.broadcast %cst_197 : f32 to vector<2x128xf32>
    %833 = arith.addf %832, %831 : vector<2x128xf32>
    %834 = arith.divf %832, %833 : vector<2x128xf32>
    %835 = vector.extract_strided_slice %828 {offsets = [0, 128], sizes = [2, 128], strides = [1, 1]} : vector<2x512xf32> to vector<2x128xf32>
    %836 = arith.negf %835 : vector<2x128xf32>
    %837 = math.exp %836 : vector<2x128xf32>
    %cst_198 = arith.constant 1.000000e+00 : f32
    %838 = vector.broadcast %cst_198 : f32 to vector<2x128xf32>
    %839 = arith.addf %838, %837 : vector<2x128xf32>
    %840 = arith.divf %838, %839 : vector<2x128xf32>
    %841 = vector.extract_strided_slice %828 {offsets = [0, 256], sizes = [2, 128], strides = [1, 1]} : vector<2x512xf32> to vector<2x128xf32>
    %842 = math.tanh %841 : vector<2x128xf32>
    %843 = vector.extract_strided_slice %828 {offsets = [0, 384], sizes = [2, 128], strides = [1, 1]} : vector<2x512xf32> to vector<2x128xf32>
    %844 = arith.negf %843 : vector<2x128xf32>
    %845 = math.exp %844 : vector<2x128xf32>
    %cst_199 = arith.constant 1.000000e+00 : f32
    %846 = vector.broadcast %cst_199 : f32 to vector<2x128xf32>
    %847 = arith.addf %846, %845 : vector<2x128xf32>
    %848 = arith.divf %846, %847 : vector<2x128xf32>
    %849 = arith.mulf %840, %786 : vector<2x128xf32>
    %850 = arith.mulf %834, %842 : vector<2x128xf32>
    %851 = arith.addf %849, %850 : vector<2x128xf32>
    %852 = math.tanh %851 : vector<2x128xf32>
    %853 = arith.mulf %848, %852 : vector<2x128xf32>
    %854 = tpu.concatenate %853, %820 in 1 : vector<2x128xf32>, vector<2x128xf32> -> vector<2x256xf32>
    %855 = arith.truncf %854 : vector<2x256xf32> to vector<2x256xbf16>
    %c0_200 = arith.constant 0 : index
    %c0_201 = arith.constant 0 : index
    %856 = vector.load %arg8[%c0_200, %c0_201] : memref<256x512xbf16, #tpu.memory_space<vmem>>, vector<256x512xbf16>
    %cst_202 = arith.constant dense<0.000000e+00> : vector<2x512xf32>
    %857 = tpu.matmul %855, %856, %cst_202 {dimension_numbers = #tpu.dot_dimension_numbers<[1], [0], [0], [1], [0, 0, 1, 1], [], []>} : vector<2x256xbf16>, vector<256x512xbf16>, vector<2x512xf32> -> vector<2x512xf32>
    %c0_203 = arith.constant 0 : index
    %c0_204 = arith.constant 0 : index
    %858 = vector.load %arg9[%c0_203, %c0_204] : memref<1x512xf32, #tpu.memory_space<vmem>>, vector<1x512xf32>
    %859 = vector.broadcast %858 : vector<1x512xf32> to vector<2x512xf32>
    %860 = arith.addf %857, %859 : vector<2x512xf32>
    %861 = vector.extract_strided_slice %860 {offsets = [0, 0], sizes = [2, 128], strides = [1, 1]} : vector<2x512xf32> to vector<2x128xf32>
    %862 = arith.negf %861 : vector<2x128xf32>
    %863 = math.exp %862 : vector<2x128xf32>
    %cst_205 = arith.constant 1.000000e+00 : f32
    %864 = vector.broadcast %cst_205 : f32 to vector<2x128xf32>
    %865 = arith.addf %864, %863 : vector<2x128xf32>
    %866 = arith.divf %864, %865 : vector<2x128xf32>
    %867 = vector.extract_strided_slice %860 {offsets = [0, 128], sizes = [2, 128], strides = [1, 1]} : vector<2x512xf32> to vector<2x128xf32>
    %868 = arith.negf %867 : vector<2x128xf32>
    %869 = math.exp %868 : vector<2x128xf32>
    %cst_206 = arith.constant 1.000000e+00 : f32
    %870 = vector.broadcast %cst_206 : f32 to vector<2x128xf32>
    %871 = arith.addf %870, %869 : vector<2x128xf32>
    %872 = arith.divf %870, %871 : vector<2x128xf32>
    %873 = vector.extract_strided_slice %860 {offsets = [0, 256], sizes = [2, 128], strides = [1, 1]} : vector<2x512xf32> to vector<2x128xf32>
    %874 = math.tanh %873 : vector<2x128xf32>
    %875 = vector.extract_strided_slice %860 {offsets = [0, 384], sizes = [2, 128], strides = [1, 1]} : vector<2x512xf32> to vector<2x128xf32>
    %876 = arith.negf %875 : vector<2x128xf32>
    %877 = math.exp %876 : vector<2x128xf32>
    %cst_207 = arith.constant 1.000000e+00 : f32
    %878 = vector.broadcast %cst_207 : f32 to vector<2x128xf32>
    %879 = arith.addf %878, %877 : vector<2x128xf32>
    %880 = arith.divf %878, %879 : vector<2x128xf32>
    %881 = arith.mulf %872, %818 : vector<2x128xf32>
    %882 = arith.mulf %866, %874 : vector<2x128xf32>
    %883 = arith.addf %881, %882 : vector<2x128xf32>
    %884 = math.tanh %883 : vector<2x128xf32>
    %885 = arith.mulf %880, %884 : vector<2x128xf32>
    %886 = tpu.concatenate %219, %459 in 0 : vector<1x128xf32>, vector<1x128xf32> -> vector<2x128xf32>
    %887 = tpu.concatenate %886, %853 in 1 : vector<2x128xf32>, vector<2x128xf32> -> vector<2x256xf32>
    %888 = arith.truncf %887 : vector<2x256xf32> to vector<2x256xbf16>
    %c0_208 = arith.constant 0 : index
    %c0_209 = arith.constant 0 : index
    %889 = vector.load %arg6[%c0_208, %c0_209] : memref<256x512xbf16, #tpu.memory_space<vmem>>, vector<256x512xbf16>
    %cst_210 = arith.constant dense<0.000000e+00> : vector<2x512xf32>
    %890 = tpu.matmul %888, %889, %cst_210 {dimension_numbers = #tpu.dot_dimension_numbers<[1], [0], [0], [1], [0, 0, 1, 1], [], []>} : vector<2x256xbf16>, vector<256x512xbf16>, vector<2x512xf32> -> vector<2x512xf32>
    %c0_211 = arith.constant 0 : index
    %c0_212 = arith.constant 0 : index
    %891 = vector.load %arg7[%c0_211, %c0_212] : memref<1x512xf32, #tpu.memory_space<vmem>>, vector<1x512xf32>
    %892 = vector.broadcast %891 : vector<1x512xf32> to vector<2x512xf32>
    %893 = arith.addf %890, %892 : vector<2x512xf32>
    %894 = vector.extract_strided_slice %893 {offsets = [0, 0], sizes = [2, 128], strides = [1, 1]} : vector<2x512xf32> to vector<2x128xf32>
    %895 = arith.negf %894 : vector<2x128xf32>
    %896 = math.exp %895 : vector<2x128xf32>
    %cst_213 = arith.constant 1.000000e+00 : f32
    %897 = vector.broadcast %cst_213 : f32 to vector<2x128xf32>
    %898 = arith.addf %897, %896 : vector<2x128xf32>
    %899 = arith.divf %897, %898 : vector<2x128xf32>
    %900 = vector.extract_strided_slice %893 {offsets = [0, 128], sizes = [2, 128], strides = [1, 1]} : vector<2x512xf32> to vector<2x128xf32>
    %901 = arith.negf %900 : vector<2x128xf32>
    %902 = math.exp %901 : vector<2x128xf32>
    %cst_214 = arith.constant 1.000000e+00 : f32
    %903 = vector.broadcast %cst_214 : f32 to vector<2x128xf32>
    %904 = arith.addf %903, %902 : vector<2x128xf32>
    %905 = arith.divf %903, %904 : vector<2x128xf32>
    %906 = vector.extract_strided_slice %893 {offsets = [0, 256], sizes = [2, 128], strides = [1, 1]} : vector<2x512xf32> to vector<2x128xf32>
    %907 = math.tanh %906 : vector<2x128xf32>
    %908 = vector.extract_strided_slice %893 {offsets = [0, 384], sizes = [2, 128], strides = [1, 1]} : vector<2x512xf32> to vector<2x128xf32>
    %909 = arith.negf %908 : vector<2x128xf32>
    %910 = math.exp %909 : vector<2x128xf32>
    %cst_215 = arith.constant 1.000000e+00 : f32
    %911 = vector.broadcast %cst_215 : f32 to vector<2x128xf32>
    %912 = arith.addf %911, %910 : vector<2x128xf32>
    %913 = arith.divf %911, %912 : vector<2x128xf32>
    %914 = arith.mulf %905, %851 : vector<2x128xf32>
    %915 = arith.mulf %899, %907 : vector<2x128xf32>
    %916 = arith.addf %914, %915 : vector<2x128xf32>
    %917 = math.tanh %916 : vector<2x128xf32>
    %918 = arith.mulf %913, %917 : vector<2x128xf32>
    %919 = tpu.concatenate %918, %885 in 1 : vector<2x128xf32>, vector<2x128xf32> -> vector<2x256xf32>
    %920 = arith.truncf %919 : vector<2x256xf32> to vector<2x256xbf16>
    %c0_216 = arith.constant 0 : index
    %c0_217 = arith.constant 0 : index
    %921 = vector.load %arg8[%c0_216, %c0_217] : memref<256x512xbf16, #tpu.memory_space<vmem>>, vector<256x512xbf16>
    %cst_218 = arith.constant dense<0.000000e+00> : vector<2x512xf32>
    %922 = tpu.matmul %920, %921, %cst_218 {dimension_numbers = #tpu.dot_dimension_numbers<[1], [0], [0], [1], [0, 0, 1, 1], [], []>} : vector<2x256xbf16>, vector<256x512xbf16>, vector<2x512xf32> -> vector<2x512xf32>
    %c0_219 = arith.constant 0 : index
    %c0_220 = arith.constant 0 : index
    %923 = vector.load %arg9[%c0_219, %c0_220] : memref<1x512xf32, #tpu.memory_space<vmem>>, vector<1x512xf32>
    %924 = vector.broadcast %923 : vector<1x512xf32> to vector<2x512xf32>
    %925 = arith.addf %922, %924 : vector<2x512xf32>
    %926 = vector.extract_strided_slice %925 {offsets = [0, 0], sizes = [2, 128], strides = [1, 1]} : vector<2x512xf32> to vector<2x128xf32>
    %927 = arith.negf %926 : vector<2x128xf32>
    %928 = math.exp %927 : vector<2x128xf32>
    %cst_221 = arith.constant 1.000000e+00 : f32
    %929 = vector.broadcast %cst_221 : f32 to vector<2x128xf32>
    %930 = arith.addf %929, %928 : vector<2x128xf32>
    %931 = arith.divf %929, %930 : vector<2x128xf32>
    %932 = vector.extract_strided_slice %925 {offsets = [0, 128], sizes = [2, 128], strides = [1, 1]} : vector<2x512xf32> to vector<2x128xf32>
    %933 = arith.negf %932 : vector<2x128xf32>
    %934 = math.exp %933 : vector<2x128xf32>
    %cst_222 = arith.constant 1.000000e+00 : f32
    %935 = vector.broadcast %cst_222 : f32 to vector<2x128xf32>
    %936 = arith.addf %935, %934 : vector<2x128xf32>
    %937 = arith.divf %935, %936 : vector<2x128xf32>
    %938 = vector.extract_strided_slice %925 {offsets = [0, 256], sizes = [2, 128], strides = [1, 1]} : vector<2x512xf32> to vector<2x128xf32>
    %939 = math.tanh %938 : vector<2x128xf32>
    %940 = vector.extract_strided_slice %925 {offsets = [0, 384], sizes = [2, 128], strides = [1, 1]} : vector<2x512xf32> to vector<2x128xf32>
    %941 = arith.negf %940 : vector<2x128xf32>
    %942 = math.exp %941 : vector<2x128xf32>
    %cst_223 = arith.constant 1.000000e+00 : f32
    %943 = vector.broadcast %cst_223 : f32 to vector<2x128xf32>
    %944 = arith.addf %943, %942 : vector<2x128xf32>
    %945 = arith.divf %943, %944 : vector<2x128xf32>
    %946 = arith.mulf %937, %883 : vector<2x128xf32>
    %947 = arith.mulf %931, %939 : vector<2x128xf32>
    %948 = arith.addf %946, %947 : vector<2x128xf32>
    %949 = math.tanh %948 : vector<2x128xf32>
    %950 = arith.mulf %945, %949 : vector<2x128xf32>
    %951 = tpu.concatenate %249, %489 in 0 : vector<1x128xf32>, vector<1x128xf32> -> vector<2x128xf32>
    %952 = tpu.concatenate %951, %918 in 1 : vector<2x128xf32>, vector<2x128xf32> -> vector<2x256xf32>
    %953 = arith.truncf %952 : vector<2x256xf32> to vector<2x256xbf16>
    %c0_224 = arith.constant 0 : index
    %c0_225 = arith.constant 0 : index
    %954 = vector.load %arg6[%c0_224, %c0_225] : memref<256x512xbf16, #tpu.memory_space<vmem>>, vector<256x512xbf16>
    %cst_226 = arith.constant dense<0.000000e+00> : vector<2x512xf32>
    %955 = tpu.matmul %953, %954, %cst_226 {dimension_numbers = #tpu.dot_dimension_numbers<[1], [0], [0], [1], [0, 0, 1, 1], [], []>} : vector<2x256xbf16>, vector<256x512xbf16>, vector<2x512xf32> -> vector<2x512xf32>
    %c0_227 = arith.constant 0 : index
    %c0_228 = arith.constant 0 : index
    %956 = vector.load %arg7[%c0_227, %c0_228] : memref<1x512xf32, #tpu.memory_space<vmem>>, vector<1x512xf32>
    %957 = vector.broadcast %956 : vector<1x512xf32> to vector<2x512xf32>
    %958 = arith.addf %955, %957 : vector<2x512xf32>
    %959 = vector.extract_strided_slice %958 {offsets = [0, 0], sizes = [2, 128], strides = [1, 1]} : vector<2x512xf32> to vector<2x128xf32>
    %960 = arith.negf %959 : vector<2x128xf32>
    %961 = math.exp %960 : vector<2x128xf32>
    %cst_229 = arith.constant 1.000000e+00 : f32
    %962 = vector.broadcast %cst_229 : f32 to vector<2x128xf32>
    %963 = arith.addf %962, %961 : vector<2x128xf32>
    %964 = arith.divf %962, %963 : vector<2x128xf32>
    %965 = vector.extract_strided_slice %958 {offsets = [0, 128], sizes = [2, 128], strides = [1, 1]} : vector<2x512xf32> to vector<2x128xf32>
    %966 = arith.negf %965 : vector<2x128xf32>
    %967 = math.exp %966 : vector<2x128xf32>
    %cst_230 = arith.constant 1.000000e+00 : f32
    %968 = vector.broadcast %cst_230 : f32 to vector<2x128xf32>
    %969 = arith.addf %968, %967 : vector<2x128xf32>
    %970 = arith.divf %968, %969 : vector<2x128xf32>
    %971 = vector.extract_strided_slice %958 {offsets = [0, 256], sizes = [2, 128], strides = [1, 1]} : vector<2x512xf32> to vector<2x128xf32>
    %972 = math.tanh %971 : vector<2x128xf32>
    %973 = vector.extract_strided_slice %958 {offsets = [0, 384], sizes = [2, 128], strides = [1, 1]} : vector<2x512xf32> to vector<2x128xf32>
    %974 = arith.negf %973 : vector<2x128xf32>
    %975 = math.exp %974 : vector<2x128xf32>
    %cst_231 = arith.constant 1.000000e+00 : f32
    %976 = vector.broadcast %cst_231 : f32 to vector<2x128xf32>
    %977 = arith.addf %976, %975 : vector<2x128xf32>
    %978 = arith.divf %976, %977 : vector<2x128xf32>
    %979 = arith.mulf %970, %916 : vector<2x128xf32>
    %980 = arith.mulf %964, %972 : vector<2x128xf32>
    %981 = arith.addf %979, %980 : vector<2x128xf32>
    %982 = math.tanh %981 : vector<2x128xf32>
    %983 = arith.mulf %978, %982 : vector<2x128xf32>
    %984 = tpu.concatenate %983, %950 in 1 : vector<2x128xf32>, vector<2x128xf32> -> vector<2x256xf32>
    %985 = arith.truncf %984 : vector<2x256xf32> to vector<2x256xbf16>
    %c0_232 = arith.constant 0 : index
    %c0_233 = arith.constant 0 : index
    %986 = vector.load %arg8[%c0_232, %c0_233] : memref<256x512xbf16, #tpu.memory_space<vmem>>, vector<256x512xbf16>
    %cst_234 = arith.constant dense<0.000000e+00> : vector<2x512xf32>
    %987 = tpu.matmul %985, %986, %cst_234 {dimension_numbers = #tpu.dot_dimension_numbers<[1], [0], [0], [1], [0, 0, 1, 1], [], []>} : vector<2x256xbf16>, vector<256x512xbf16>, vector<2x512xf32> -> vector<2x512xf32>
    %c0_235 = arith.constant 0 : index
    %c0_236 = arith.constant 0 : index
    %988 = vector.load %arg9[%c0_235, %c0_236] : memref<1x512xf32, #tpu.memory_space<vmem>>, vector<1x512xf32>
    %989 = vector.broadcast %988 : vector<1x512xf32> to vector<2x512xf32>
    %990 = arith.addf %987, %989 : vector<2x512xf32>
    %991 = vector.extract_strided_slice %990 {offsets = [0, 0], sizes = [2, 128], strides = [1, 1]} : vector<2x512xf32> to vector<2x128xf32>
    %992 = arith.negf %991 : vector<2x128xf32>
    %993 = math.exp %992 : vector<2x128xf32>
    %cst_237 = arith.constant 1.000000e+00 : f32
    %994 = vector.broadcast %cst_237 : f32 to vector<2x128xf32>
    %995 = arith.addf %994, %993 : vector<2x128xf32>
    %996 = arith.divf %994, %995 : vector<2x128xf32>
    %997 = vector.extract_strided_slice %990 {offsets = [0, 128], sizes = [2, 128], strides = [1, 1]} : vector<2x512xf32> to vector<2x128xf32>
    %998 = arith.negf %997 : vector<2x128xf32>
    %999 = math.exp %998 : vector<2x128xf32>
    %cst_238 = arith.constant 1.000000e+00 : f32
    %1000 = vector.broadcast %cst_238 : f32 to vector<2x128xf32>
    %1001 = arith.addf %1000, %999 : vector<2x128xf32>
    %1002 = arith.divf %1000, %1001 : vector<2x128xf32>
    %1003 = vector.extract_strided_slice %990 {offsets = [0, 256], sizes = [2, 128], strides = [1, 1]} : vector<2x512xf32> to vector<2x128xf32>
    %1004 = math.tanh %1003 : vector<2x128xf32>
    %1005 = vector.extract_strided_slice %990 {offsets = [0, 384], sizes = [2, 128], strides = [1, 1]} : vector<2x512xf32> to vector<2x128xf32>
    %1006 = arith.negf %1005 : vector<2x128xf32>
    %1007 = math.exp %1006 : vector<2x128xf32>
    %cst_239 = arith.constant 1.000000e+00 : f32
    %1008 = vector.broadcast %cst_239 : f32 to vector<2x128xf32>
    %1009 = arith.addf %1008, %1007 : vector<2x128xf32>
    %1010 = arith.divf %1008, %1009 : vector<2x128xf32>
    %1011 = arith.mulf %1002, %948 : vector<2x128xf32>
    %1012 = arith.mulf %996, %1004 : vector<2x128xf32>
    %1013 = arith.addf %1011, %1012 : vector<2x128xf32>
    %1014 = math.tanh %1013 : vector<2x128xf32>
    %1015 = arith.mulf %1010, %1014 : vector<2x128xf32>
    %1016 = arith.truncf %1015 : vector<2x128xf32> to vector<2x128xbf16>
    %c0_240 = arith.constant 0 : index
    %c0_241 = arith.constant 0 : index
    %1017 = vector.load %arg10[%c0_240, %c0_241] : memref<128x128xbf16, #tpu.memory_space<vmem>>, vector<128x128xbf16>
    %cst_242 = arith.constant dense<0.000000e+00> : vector<2x128xf32>
    %1018 = tpu.matmul %1016, %1017, %cst_242 {dimension_numbers = #tpu.dot_dimension_numbers<[1], [0], [0], [1], [0, 0, 1, 1], [], []>} : vector<2x128xbf16>, vector<128x128xbf16>, vector<2x128xf32> -> vector<2x128xf32>
    %c0_243 = arith.constant 0 : index
    %c0_244 = arith.constant 0 : index
    %1019 = vector.load %arg11[%c0_243, %c0_244] : memref<1x128xf32, #tpu.memory_space<vmem>>, vector<1x128xf32>
    %1020 = vector.broadcast %1019 : vector<1x128xf32> to vector<2x128xf32>
    %1021 = arith.addf %1018, %1020 : vector<2x128xf32>
    %c0_245 = arith.constant 0 : index
    %c0_246 = arith.constant 0 : index
    %1022 = vector.load %arg12[%c0_245, %c0_246] : memref<2x128xf32, #tpu.memory_space<vmem>>, vector<2x128xf32>
    tpu.vector_store %arg12[%c0_245, %c0_246], %1021 {strides = array<i32>} : memref<2x128xf32, #tpu.memory_space<vmem>>, vector<2x128xf32>,
    return
  }
}

</mosaic_0001>

<bundles_post_ra>
// kernel: _lambda_.1
= control target key start
LH: loop header
LB: loop body
LE: loop exit
PB: predicated region body
PF: predicated region fallthrough
CT: control target
= control target key end

     0   :  { %20 = vsyncpa [#allocation3], 0  ;;  %v11082_v2 = vmov 0   ;;  %s11067_s0 = inlined_call_operand.vmem [shape: f32[16,1], index: 0, kind: input, shape index: {}]   ;;  %s11068_s1 = inlined_call_operand.vmem [shape: f32[1,128], index: 1, kind: input, shape index: {}, may-alias: {1,2,11}]   ;;  %s11069_s2 = inlined_call_operand.vmem [shape: f32[1,128], index: 2, kind: input, shape index: {}, may-alias: {1,2,11}]   ;;  %s11070_s3 = inlined_call_operand.vmem [shape: f32[1,512], index: 3, kind: input, shape index: {}]   ;;  %s11071_s4 = inlined_call_operand.vmem [shape: bf16[128,512], index: 4, kind: input, shape index: {}]   ;;  %s11072_s5 = inlined_call_operand.vmem [shape: f32[1,512], index: 5, kind: input, shape index: {}]   ;;  %s11073_s6 = inlined_call_operand.vmem [shape: bf16[256,512], index: 6, kind: input, shape index: {}]   ;;  %s11074_s7 = inlined_call_operand.vmem [shape: f32[1,512], index: 7, kind: input, shape index: {}, may-alias: {7,9}]   ;;  %s11075_s8 = inlined_call_operand.vmem [shape: bf16[256,512], index: 8, kind: input, shape index: {}]   ;;  %s11076_s9 = inlined_call_operand.vmem [shape: f32[1,512], index: 9, kind: input, shape index: {}, may-alias: {7,9}]   ;;  %s11077_s10 = inlined_call_operand.vmem [shape: bf16[128,128], index: 10, kind: input, shape index: {}]   ;;  %s11078_s11 = inlined_call_operand.vmem [shape: f32[1,128], index: 11, kind: input, shape index: {}, may-alias: {1,2,11}]   ;;  %s11079_s12 = inlined_call_operand.hbm [shape: f32[2,128], index: 12, kind: output, shape index: {0}]   ;;  %s11080_s13 = inlined_call_operand.hbm [shape: f32[1,128], index: 13, kind: output, shape index: {1}]   ;;  %s11081_s14 = inlined_call_operand.hbm [shape: f32[1,128], index: 14, kind: output, shape index: {2}]  }
   0x1   :  { %v6629_v0 = vld [vmem:[%s11071_s4 + $0x4] ss:$16 sps:$4 sm:$0xff]   ;;  %v6634_v1 = vld [vmem:[%s11071_s4 + $0xc] ss:$16 sps:$4 sm:$0xff]   ;;  %346 = vmatprep.mubr.bf16.mxu0 %v11082_v2  ;;  %387 = vmatprep.mubr.bf16.mxu1 %v11082_v2  ;;  %v6642_v3 = vld [vmem:[%s11071_s4] ss:$16 sps:$4 sm:$0xff]  }
   0x2   :  { %314 = vmatprep.subr.bf16.mxu0 %v6629_v0  ;;  %v6647_v4 = vld [vmem:[%s11071_s4 + $0x8] ss:$16 sps:$4 sm:$0xff]   ;;  %5393 = vset.pattern.permute.xlu0 %v11082_v2  ;;  %v6654_v5 = vld [vmem:[%s11071_s4 + $0x24] ss:$16 sps:$4 sm:$0xff]   ;;  %v6661_v6 = vld [vmem:[%s11071_s4 + $0x2c] ss:$16 sps:$4 sm:$0xff]  }
   0x3   :  { %355 = vmatprep.subr.bf16.mxu1 %v6634_v1  ;;  %315 = vmatpush1.bf16.msra.mxu0 %v6642_v3  ;;  %v6666_v7 = vld [vmem:[%s11071_s4 + $0x20] ss:$16 sps:$4 sm:$0xff]   ;;  %v6672_v8 = vld [vmem:[%s11071_s4 + $0x28] ss:$16 sps:$4 sm:$0xff]   ;;  %v6678_v9 = vld [vmem:[%s11071_s4 + $0x44] ss:$16 sps:$4 sm:$0xff]  }
   0x4   :  { %356 = vmatpush1.bf16.msra.mxu1 %v6647_v4  ;;  %316 = vmatprep.subr.bf16.mxu0 %v6654_v5  ;;  %v6683_v10 = vld [vmem:[%s11071_s4 + $0x4c] ss:$16 sps:$4 sm:$0xff]   ;;  %v6688_v11 = vld [vmem:[%s11071_s4 + $0x40] ss:$16 sps:$4 sm:$0xff]   ;;  %v6693_v12 = vld [vmem:[%s11071_s4 + $0x48] ss:$16 sps:$4 sm:$0xff]  }
   0x5   :  { %357 = vmatprep.subr.bf16.mxu1 %v6661_v6  ;;  %v6700_v13 = vld [vmem:[%s11071_s4 + $0x64] ss:$16 sps:$4 sm:$0xff]   ;;  %v6707_v14 = vld [vmem:[%s11071_s4 + $0x6c] ss:$16 sps:$4 sm:$0xff]   ;;  %v6712_v15 = vld [vmem:[%s11071_s4 + $0x60] ss:$16 sps:$4 sm:$0xff]  }
   0x6   :  { %v6719_v16 = vld [vmem:[%s11071_s4 + $0x68] ss:$16 sps:$4 sm:$0xff]   ;;  %v6724_v17 = vld [vmem:[%s11071_s4 + $0x84] ss:$16 sps:$4 sm:$0xff]   ;;  %v6731_v18 = vld [vmem:[%s11071_s4 + $0x8c] ss:$16 sps:$4 sm:$0xff]  }
   0x7   :  { %317 = vmatpush1.bf16.msra.mxu0 %v6666_v7  ;;  %v6736_v19 = vld [vmem:[%s11071_s4 + $0x80] ss:$16 sps:$4 sm:$0xff]   ;;  %v6741_v20 = vld [vmem:[%s11071_s4 + $0x88] ss:$16 sps:$4 sm:$0xff]   ;;  %v6748_v21 = vld [vmem:[%s11071_s4 + $0xa4] ss:$16 sps:$4 sm:$0xff]  }
   0x8   :  { %358 = vmatpush1.bf16.msra.mxu1 %v6672_v8  ;;  %318 = vmatprep.subr.bf16.mxu0 %v6678_v9  ;;  %v6755_v22 = vld [vmem:[%s11071_s4 + $0xac] ss:$16 sps:$4 sm:$0xff]   ;;  %v6762_v23 = vld [vmem:[%s11071_s4 + $0xa0] ss:$16 sps:$4 sm:$0xff]   ;;  %v6767_v24 = vld [vmem:[%s11071_s4 + $0xa8] ss:$16 sps:$4 sm:$0xff]  }
   0x9   :  { %359 = vmatprep.subr.bf16.mxu1 %v6683_v10  ;;  %v6774_v25 = vld [vmem:[%s11071_s4 + $0xc4] ss:$16 sps:$4 sm:$0xff]   ;;  %v6779_v26 = vld [vmem:[%s11071_s4 + $0xcc] ss:$16 sps:$4 sm:$0xff]   ;;  %v6787_v28 = vld [vmem:[%s11071_s4 + $0xc0] ss:$16 sps:$4 sm:$0xff]  }
   0xa   :  { %v47_v27 = vld [vmem:[%s11067_s0] sm:$0xff]  ;;  %v48_v29 = vld [vmem:[%s11067_s0 + $0x8] sm:$0xff] }
   0xb   :  { %319 = vmatpush1.bf16.msra.mxu0 %v6688_v11  ;;  %52 = vperm.xlu0 %5393, %v47_v27   ;;  %v6797_v30 = vld [vmem:[%s11071_s4 + $0xc8] ss:$16 sps:$4 sm:$0xff]   ;;  %v6802_v31 = vld [vmem:[%s11071_s4 + $0xe4] ss:$16 sps:$4 sm:$0xff]   ;;  %v6809_v32 = vld [vmem:[%s11071_s4 + $0xec] ss:$16 sps:$4 sm:$0xff]  }
   0xc   :  { %360 = vmatpush1.bf16.msra.mxu1 %v6693_v12  ;;  %320 = vmatprep.subr.bf16.mxu0 %v6700_v13  ;;  %v6814_v33 = vld [vmem:[%s11071_s4 + $0xe0] ss:$16 sps:$4 sm:$0xff]   ;;  %v6819_v34 = vld [vmem:[%s11071_s4 + $0xe8] ss:$16 sps:$4 sm:$0xff]  }
   0xd   :  { %361 = vmatprep.subr.bf16.mxu1 %v6707_v14  ;;  %v119_v35 = vld [vmem:[%s11068_s1] sm:$0x1] }
   0xe   :  { %v121_v36 = vpack.c.bf16 %v119_v35, %v119_v35 }
   0xf   :  { %321 = vmatpush1.bf16.msra.mxu0 %v6712_v15  ;;  %57 = vperm.xlu0 %5393, %v48_v29  }
  0x10   :  { %362 = vmatpush1.bf16.msra.mxu1 %v6719_v16  ;;  %322 = vmatprep.subr.bf16.mxu0 %v6724_v17 }
  0x11   :  { %363 = vmatprep.subr.bf16.mxu1 %v6731_v18 }
  0x13   :  { %323 = vmatpush1.bf16.msra.mxu0 %v6736_v19 }
  0x14   :  { %364 = vmatpush1.bf16.msra.mxu1 %v6741_v20  ;;  %324 = vmatprep.subr.bf16.mxu0 %v6748_v21 }
  0x15   :  { %365 = vmatprep.subr.bf16.mxu1 %v6755_v22 }
  0x17   :  { %325 = vmatpush1.bf16.msra.mxu0 %v6762_v23 }
  0x18   :  { %366 = vmatpush1.bf16.msra.mxu1 %v6767_v24  ;;  %326 = vmatprep.subr.bf16.mxu0 %v6774_v25 }
  0x19   :  { %367 = vmatprep.subr.bf16.mxu1 %v6779_v26 }
  0x1b   :  { %327 = vmatpush1.bf16.msra.mxu0 %v6787_v28 }
  0x1c   :  { %368 = vmatpush1.bf16.msra.mxu1 %v6797_v30  ;;  %328 = vmatprep.subr.bf16.mxu0 %v6802_v31 }
  0x1d   :  { %369 = vmatprep.subr.bf16.mxu1 %v6809_v32 }
  0x1f   :  { %329 = vmatpush1.bf16.msra.mxu0 %v6814_v33 }
  0x20   :  { %370 = vmatpush1.bf16.msra.mxu1 %v6819_v34  ;;  %425 = vmatprep.subr.bf16.mxu0 %v6629_v0 }
  0x21   :  { %466 = vmatprep.subr.bf16.mxu1 %v6634_v1 }
  0x22   :  { %347 = vmatmul.mubr.bf16.vlgmr.msra.gmra.mrb[0].mxu0 %v121_v36 }
  0x23   :  { %388 = vmatmul.mubr.bf16.vlgmr.msra.gmra.mrb[0].mxu1 %v121_v36  ;;  %426 = vmatpush1.bf16.msra.mxu0 %v6642_v3 }
  0x24   :  { %467 = vmatpush1.bf16.msra.mxu1 %v6647_v4  ;;  %427 = vmatprep.subr.bf16.mxu0 %v6654_v5 }
  0x25   :  { %468 = vmatprep.subr.bf16.mxu1 %v6661_v6  ;;  %457 = vmatprep.mubr.bf16.mxu0 %v11082_v2 }
  0x26   :  { %498 = vmatprep.mubr.bf16.mxu1 %v11082_v2 }
  0x27   :  { %428 = vmatpush1.bf16.msra.mxu0 %v6666_v7 }
  0x28   :  { %469 = vmatpush1.bf16.msra.mxu1 %v6672_v8  ;;  %429 = vmatprep.subr.bf16.mxu0 %v6678_v9 }
  0x29   :  { %470 = vmatprep.subr.bf16.mxu1 %v6683_v10 }
  0x2b   :  { %430 = vmatpush1.bf16.msra.mxu0 %v6688_v11 }
  0x2c   :  { %471 = vmatpush1.bf16.msra.mxu1 %v6693_v12  ;;  %431 = vmatprep.subr.bf16.mxu0 %v6700_v13 }
  0x2d   :  { %472 = vmatprep.subr.bf16.mxu1 %v6707_v14 }
  0x2f   :  { %432 = vmatpush1.bf16.msra.mxu0 %v6712_v15 }
  0x30   :  { %473 = vmatpush1.bf16.msra.mxu1 %v6719_v16  ;;  %433 = vmatprep.subr.bf16.mxu0 %v6724_v17 }
  0x31   :  { %474 = vmatprep.subr.bf16.mxu1 %v6731_v18 }
  0x33   :  { %434 = vmatpush1.bf16.msra.mxu0 %v6736_v19 }
  0x34   :  { %475 = vmatpush1.bf16.msra.mxu1 %v6741_v20  ;;  %435 = vmatprep.subr.bf16.mxu0 %v6748_v21 }
  0x35   :  { %476 = vmatprep.subr.bf16.mxu1 %v6755_v22 }
  0x37   :  { %436 = vmatpush1.bf16.msra.mxu0 %v6762_v23 }
  0x38   :  { %477 = vmatpush1.bf16.msra.mxu1 %v6767_v24  ;;  %437 = vmatprep.subr.bf16.mxu0 %v6774_v25 }
  0x39   :  { %478 = vmatprep.subr.bf16.mxu1 %v6779_v26 }
  0x3b   :  { %438 = vmatpush1.bf16.msra.mxu0 %v6787_v28 }
  0x3c   :  { %479 = vmatpush1.bf16.msra.mxu1 %v6797_v30  ;;  %439 = vmatprep.subr.bf16.mxu0 %v6802_v31 }
  0x3d   :  { %480 = vmatprep.subr.bf16.mxu1 %v6809_v32 }
  0x3f   :  { %440 = vmatpush1.bf16.msra.mxu0 %v6814_v33 }
  0x40   :  { %481 = vmatpush1.bf16.msra.mxu1 %v6819_v34  ;;  %555 = vmatprep.subr.bf16.mxu0 %v6629_v0 }
  0x41   :  { %596 = vmatprep.subr.bf16.mxu1 %v6634_v1 }
  0x42   :  { %21 = vsyncpa [#allocation5], 0  ;;  %v61_v37 = vlaneseq  ;;  %v49_v43 = vld [vmem:[%s11070_s3] sm:$0xf]  ;;  %vm2358_vm0 = vcmask 1040384   ;;  %vm6547_vm1 = vmmov 0  }
  0x43   :  { %v89_v45 = vld [vmem:[%s11072_s5] sm:$0xf] }
  0x44   :  { %v62_v38 = vshrl.u32 %v61_v37, 7 }
  0x46   :  { %v6866_v39 = vsub.s32 0, %v62_v38  ;;  %v6868_v40 = vsub.s32 1, %v62_v38  ;;  %v6870_v41 = vsub.s32 2, %v62_v38  ;;  %v6872_v42 = vsub.s32 3, %v62_v38 }
  0x48   :  { %11644 = vst [vmem:[#allocation9_spill] sm:$0xff] %v6866_v39  ;;  %11645 = vst [vmem:[#allocation10_spill] sm:$0xff] %v6868_v40  ;;  %v64_v46 = vrot.slane %v49_v43, %v6866_v39  ;;  %v68_v47 = vrot.slane %v49_v43, %v6868_v40  ;;  %v72_v48 = vrot.slane %v49_v43, %v6870_v41 }
  0x49   :  { %11646 = vst [vmem:[#allocation11_spill] sm:$0xff] %v6870_v41  ;;  %11647 = vst [vmem:[#allocation12_spill] sm:$0xff] %v6872_v42  ;;  %v76_v49 = vrot.slane %v49_v43, %v6872_v42  ;;  %v94_v50 = vrot.slane %v89_v45, %v6866_v39  ;;  %v98_v51 = vrot.slane %v89_v45, %v6868_v40 }
  0x4a   :  { %v102_v52 = vrot.slane %v89_v45, %v6870_v41  ;;  %v106_v53 = vrot.slane %v89_v45, %v6872_v42 }
  0x8a   :  { %v53_v44 = vpop.permute.xlu0 %52 }
  0x8b   :  { %v81_v63 = vmul.f32 %v64_v46, %v53_v44  ;;  %v82_v27 = vmul.f32 %v68_v47, %v53_v44  ;;  %v84_v36 = vmul.f32 %v76_v49, %v53_v44 }
  0x8d   :  { %v6896_v29 = vadd.f32 %v94_v50, %v81_v63  ;;  %v6898_v35 = vadd.f32 %v98_v51, %v82_v27 }
  0x8e   :  { %v58_v54 = vpop.permute.xlu0 %57 }
  0x8f   :  { %v85_v55 = vmul.f32 %v64_v46, %v58_v54  ;;  %v86_v56 = vmul.f32 %v68_v47, %v58_v54  ;;  %v87_v57 = vmul.f32 %v72_v48, %v58_v54  ;;  %v88_v58 = vmul.f32 %v76_v49, %v58_v54 }
  0x90   :  { %v6902_v46 = vadd.f32 %v106_v53, %v84_v36 }
  0x91   :  { %v6888_v59 = vadd.f32 %v94_v50, %v85_v55  ;;  %v6890_v60 = vadd.f32 %v98_v51, %v86_v56  ;;  %v6892_v61 = vadd.f32 %v102_v52, %v87_v57  ;;  %v6894_v62 = vadd.f32 %v106_v53, %v88_v58 }
  0x92   :  { %v83_v50 = vmul.f32 %v72_v48, %v53_v44 }
  0x94   :  { %v6905_v51 = vadd.f32 %v102_v52, %v83_v50  ;;  %v11649_v50 = vmov 0  }
  0xf5   :  { %v348_v37 = vpop.f32.mrb[0].mxu0 }
  0xf6   :  { %v389_v38 = vpop.f32.mrb[0].mxu1  ;;  %v396_v43 = vadd.f32 %v348_v37, %v6896_v29  ;;  %v350_v45 = vpop.f32.mrb[1].mxu0 }
  0xf7   :  { %v391_v54 = vpop.f32.mrb[1].mxu1  ;;  %v397_v55 = vadd.f32 %v350_v45, %v6898_v35  ;;  %v352_v56 = vpop.f32.mrb[2].mxu0  ;;  %v398_v27 = vadd.f32 %v389_v38, %v6905_v51 }
  0xf8   :  { %v393_v57 = vpop.f32.mrb[2].mxu1  ;;  %v5124_v2 = vmul.f32 -1.442695, %v396_v43  ;;  %v353_v58 = vpop.f32.mrb[3].mxu0  ;;  %v399_v49 = vadd.f32 %v391_v54, %v6902_v46 }
  0xf9   :  { %v394_v41 = vpop.f32.mrb[3].mxu1  ;;  %v5125_v47 = vmul.f32 -1.442695, %v397_v55 }
  0xfa   :  { %5642 = vpow2.f32 %v5124_v2  ;;  %v5126_v63 = vmul.f32 -1.442695, %v399_v49  ;;  %v120_v2 = vld [vmem:[%s11069_s2] sm:$0x1] }
  0xfb   :  { %5644 = vpow2.f32 %v5125_v47 }
  0xfc   :  { %5646 = vpow2.f32 %v5126_v63 }
  0xfd   :  { %5648 = vtanh.f32 %v398_v27 }
 0x104   :  { %v5643_v37 = vpop.eup %5642 }
 0x105   :  { %v5645_v45 = vpop.eup %5644  ;;  %v403_v56 = vadd.f32 1.0, %v5643_v37 }
 0x106   :  { %v409_v43 = vadd.f32 1.0, %v5645_v45  ;;  %v5647_v41 = vpop.eup %5646 }
 0x107   :  { %5650 = vrcp.f32 %v403_v56  ;;  %v5649_v53 = vpop.eup %5648  ;;  %v416_v36 = vadd.f32 1.0, %v5647_v41 }
 0x108   :  { %5652 = vrcp.f32 %v409_v43 }
 0x109   :  { %5654 = vrcp.f32 %v416_v36 }
 0x111   :  { %v5651_v44 = vpop.eup %5650 }
 0x112   :  { %v5653_v48 = vpop.eup %5652  ;;  %v420_v52 = vmul.f32 %v5651_v44, %v5649_v53 }
 0x113   :  { %v419_v54 = vmul.f32 %v5653_v48, %v120_v2  ;;  %v5655_v55 = vpop.eup %5654 }
 0x115   :  { %v6911_v38 = vadd.f32 %v420_v52, %v419_v54 }
 0x117   :  { %5656 = vtanh.f32 %v6911_v38 }
 0x121   :  { %v5657_v57 = vpop.eup %5656 }
 0x122   :  { %v6914_v58 = vmul.f32 %v5657_v57, %v5655_v55 }
 0x124   :  { %11648 = vst [vmem:[#allocation13_spill] sm:$0xff] %v6914_v58  ;;  %v424_v47 = vpack.c.bf16 %v6914_v58, %v6914_v58 }
 0x126   :  { %458 = vmatmul.mubr.bf16.vlgmr.msra.gmra.mrb[4].mxu0 %v424_v47  ;;  %499 = vmatmul.mubr.bf16.vlgmr.msra.gmra.mrb[4].mxu1 %v424_v47 }
 0x127   :  { %556 = vmatpush1.bf16.msra.mxu0 %v6642_v3  ;;  %597 = vmatpush1.bf16.msra.mxu1 %v6647_v4 }
 0x128   :  { %557 = vmatprep.subr.bf16.mxu0 %v6654_v5  ;;  %598 = vmatprep.subr.bf16.mxu1 %v6661_v6 }
 0x129   :  { %587 = vmatprep.mubr.bf16.mxu0 %v11649_v50  ;;  %628 = vmatprep.mubr.bf16.mxu1 %v11649_v50 }
 0x12b   :  { %558 = vmatpush1.bf16.msra.mxu0 %v6666_v7  ;;  %599 = vmatpush1.bf16.msra.mxu1 %v6672_v8 }
 0x12c   :  { %559 = vmatprep.subr.bf16.mxu0 %v6678_v9  ;;  %600 = vmatprep.subr.bf16.mxu1 %v6683_v10 }
 0x12f   :  { %560 = vmatpush1.bf16.msra.mxu0 %v6688_v11  ;;  %601 = vmatpush1.bf16.msra.mxu1 %v6693_v12 }
 0x130   :  { %561 = vmatprep.subr.bf16.mxu0 %v6700_v13  ;;  %602 = vmatprep.subr.bf16.mxu1 %v6707_v14 }
 0x133   :  { %562 = vmatpush1.bf16.msra.mxu0 %v6712_v15  ;;  %603 = vmatpush1.bf16.msra.mxu1 %v6719_v16 }
 0x134   :  { %563 = vmatprep.subr.bf16.mxu0 %v6724_v17  ;;  %604 = vmatprep.subr.bf16.mxu1 %v6731_v18 }
 0x137   :  { %564 = vmatpush1.bf16.msra.mxu0 %v6736_v19  ;;  %605 = vmatpush1.bf16.msra.mxu1 %v6741_v20 }
 0x138   :  { %565 = vmatprep.subr.bf16.mxu0 %v6748_v21  ;;  %606 = vmatprep.subr.bf16.mxu1 %v6755_v22 }
 0x13b   :  { %566 = vmatpush1.bf16.msra.mxu0 %v6762_v23  ;;  %607 = vmatpush1.bf16.msra.mxu1 %v6767_v24 }
 0x13c   :  { %567 = vmatprep.subr.bf16.mxu0 %v6774_v25  ;;  %608 = vmatprep.subr.bf16.mxu1 %v6779_v26 }
 0x13f   :  { %568 = vmatpush1.bf16.msra.mxu0 %v6787_v28  ;;  %609 = vmatpush1.bf16.msra.mxu1 %v6797_v30 }
 0x140   :  { %569 = vmatprep.subr.bf16.mxu0 %v6802_v31  ;;  %610 = vmatprep.subr.bf16.mxu1 %v6809_v32 }
 0x143   :  { %570 = vmatpush1.bf16.msra.mxu0 %v6814_v33  ;;  %611 = vmatpush1.bf16.msra.mxu1 %v6819_v34 }
 0x144   :  { %684 = vmatprep.subr.bf16.mxu0 %v6629_v0  ;;  %725 = vmatprep.subr.bf16.mxu1 %v6634_v1 }
 0x1f9   :  { %v459_v49 = vpop.f32.mrb[4].mxu0  ;;  %v500_v63 = vpop.f32.mrb[4].mxu1 }
 0x1fa   :  { %v511_v27 = vrot.slane %v459_v49, 7  ;;  %v461_v37 = vpop.f32.mrb[5].mxu0  ;;  %v502_v45 = vpop.f32.mrb[5].mxu1  ;;  %v513_v57 = vrot.slane %v500_v63, 7 }
 0x1fb   :  { %v512_v56 = vrot.slane %v461_v37, 7  ;;  %v463_v43 = vpop.f32.mrb[6].mxu0  ;;  %v504_v41 = vpop.f32.mrb[6].mxu1  ;;  %v514_v54 = vrot.slane %v502_v45, 7  ;;  %v543_v45 = vrot.slane %v6911_v38, 7 }
 0x1fc   :  { %v519_v53 = vadd.f32 %v511_v27, %v6896_v29  ;;  %v464_v2 = vpop.f32.mrb[7].mxu0  ;;  %v505_v44 = vpop.f32.mrb[7].mxu1  ;;  %v521_v49 = vadd.f32 %v513_v57, %v6905_v51 }
 0x1fd   :  { %v520_v48 = vadd.f32 %v512_v56, %v6898_v35  ;;  %v522_v55 = vadd.f32 %v514_v54, %v6902_v46 }
 0x1fe   :  { %v5127_v52 = vmul.f32 -1.442695, %v519_v53 }
 0x1ff   :  { %v5128_v36 = vmul.f32 -1.442695, %v520_v48  ;;  %v5129_v47 = vmul.f32 -1.442695, %v522_v55 }
 0x200   :  { %5658 = vpow2.f32 %v5127_v52 }
 0x201   :  { %5660 = vpow2.f32 %v5128_v36 }
 0x202   :  { %5662 = vpow2.f32 %v5129_v47 }
 0x203   :  { %5664 = vtanh.f32 %v521_v49 }
 0x20a   :  { %v5659_v37 = vpop.eup %5658 }
 0x20b   :  { %v5661_v43 = vpop.eup %5660  ;;  %v526_v41 = vadd.f32 1.0, %v5659_v37 }
 0x20c   :  { %v532_v27 = vadd.f32 1.0, %v5661_v43  ;;  %v5663_v56 = vpop.eup %5662 }
 0x20d   :  { %5666 = vrcp.f32 %v526_v41  ;;  %v5665_v53 = vpop.eup %5664  ;;  %v539_v52 = vadd.f32 1.0, %v5663_v56 }
 0x20e   :  { %5668 = vrcp.f32 %v532_v27 }
 0x20f   :  { %5670 = vrcp.f32 %v539_v52 }
 0x217   :  { %v5667_v2 = vpop.eup %5666 }
 0x218   :  { %v5669_v44 = vpop.eup %5668  ;;  %v546_v48 = vmul.f32 %v5667_v2, %v5665_v53 }
 0x219   :  { %v545_v63 = vmul.f32 %v5669_v44, %v543_v45  ;;  %v5671_v54 = vpop.eup %5670 }
 0x21b   :  { %v6957_v36 = vadd.f32 %v546_v48, %v545_v63 }
 0x21d   :  { %5672 = vtanh.f32 %v6957_v36 }
 0x227   :  { %v5673_v55 = vpop.eup %5672 }
 0x228   :  { %v6960_v57 = vmul.f32 %v5673_v55, %v5671_v54 }
 0x22a   :  { %v550_v47 = vpack.c.bf16 %v6960_v57, %v6960_v57 }
 0x22c   :  { %v552_v49 = vshrl.u32 %v550_v47, 16 }
 0x22e   :  { %588 = vmatmul.mubr.bf16.vlgmr.msra.gmra.mrb[8].mxu0 %v552_v49  ;;  %629 = vmatmul.mubr.bf16.vlgmr.msra.gmra.mrb[8].mxu1 %v552_v49 }
 0x22f   :  { %685 = vmatpush1.bf16.msra.mxu0 %v6642_v3  ;;  %726 = vmatpush1.bf16.msra.mxu1 %v6647_v4 }
 0x230   :  { %686 = vmatprep.subr.bf16.mxu0 %v6654_v5  ;;  %727 = vmatprep.subr.bf16.mxu1 %v6661_v6 }
 0x231   :  { %716 = vmatprep.mubr.bf16.mxu0 %v11649_v50  ;;  %757 = vmatprep.mubr.bf16.mxu1 %v11649_v50 }
 0x233   :  { %687 = vmatpush1.bf16.msra.mxu0 %v6666_v7  ;;  %728 = vmatpush1.bf16.msra.mxu1 %v6672_v8 }
 0x234   :  { %688 = vmatprep.subr.bf16.mxu0 %v6678_v9  ;;  %729 = vmatprep.subr.bf16.mxu1 %v6683_v10 }
 0x237   :  { %689 = vmatpush1.bf16.msra.mxu0 %v6688_v11  ;;  %730 = vmatpush1.bf16.msra.mxu1 %v6693_v12 }
 0x238   :  { %690 = vmatprep.subr.bf16.mxu0 %v6700_v13  ;;  %731 = vmatprep.subr.bf16.mxu1 %v6707_v14 }
 0x23b   :  { %691 = vmatpush1.bf16.msra.mxu0 %v6712_v15  ;;  %732 = vmatpush1.bf16.msra.mxu1 %v6719_v16 }
 0x23c   :  { %692 = vmatprep.subr.bf16.mxu0 %v6724_v17  ;;  %733 = vmatprep.subr.bf16.mxu1 %v6731_v18 }
 0x23f   :  { %693 = vmatpush1.bf16.msra.mxu0 %v6736_v19  ;;  %734 = vmatpush1.bf16.msra.mxu1 %v6741_v20 }
 0x240   :  { %694 = vmatprep.subr.bf16.mxu0 %v6748_v21  ;;  %735 = vmatprep.subr.bf16.mxu1 %v6755_v22 }
 0x243   :  { %695 = vmatpush1.bf16.msra.mxu0 %v6762_v23  ;;  %736 = vmatpush1.bf16.msra.mxu1 %v6767_v24 }
 0x244   :  { %696 = vmatprep.subr.bf16.mxu0 %v6774_v25  ;;  %737 = vmatprep.subr.bf16.mxu1 %v6779_v26 }
 0x247   :  { %697 = vmatpush1.bf16.msra.mxu0 %v6787_v28  ;;  %738 = vmatpush1.bf16.msra.mxu1 %v6797_v30 }
 0x248   :  { %698 = vmatprep.subr.bf16.mxu0 %v6802_v31  ;;  %739 = vmatprep.subr.bf16.mxu1 %v6809_v32 }
 0x24b   :  { %699 = vmatpush1.bf16.msra.mxu0 %v6814_v33  ;;  %740 = vmatpush1.bf16.msra.mxu1 %v6819_v34 }
 0x24c   :  { %815 = vmatprep.subr.bf16.mxu0 %v6629_v0  ;;  %856 = vmatprep.subr.bf16.mxu1 %v6634_v1 }
 0x301   :  { %v589_v3 = vpop.f32.mrb[8].mxu0  ;;  %v630_v4 = vpop.f32.mrb[8].mxu1 }
 0x302   :  { %v641_v5 = vrot.slane %v589_v3, 6  ;;  %v591_v38 = vpop.f32.mrb[9].mxu0  ;;  %v632_v37 = vpop.f32.mrb[9].mxu1  ;;  %v643_v1 = vrot.slane %v630_v4, 6 }
 0x303   :  { %v642_v43 = vrot.slane %v591_v38, 6  ;;  %v593_v41 = vpop.f32.mrb[10].mxu0  ;;  %v634_v27 = vpop.f32.mrb[10].mxu1  ;;  %v644_v52 = vrot.slane %v632_v37, 6  ;;  %v673_v37 = vrot.slane %v6957_v36, 7 }
 0x304   :  { %v649_v56 = vadd.f32 %v641_v5, %v6896_v29  ;;  %v594_v53 = vpop.f32.mrb[11].mxu0  ;;  %v635_v2 = vpop.f32.mrb[11].mxu1  ;;  %v651_v54 = vadd.f32 %v643_v1, %v6905_v51  ;;  %v7013_v36 = vld [vmem:[%s11071_s4] ss:$16 sps:$4 sm:$0xff]   ;;  %v7025_v1 = vld [vmem:[%s11071_s4 + $0x24] ss:$16 sps:$4 sm:$0xff]  }
 0x305   :  { %v650_v45 = vadd.f32 %v642_v43, %v6898_v35  ;;  %v652_v0 = vadd.f32 %v644_v52, %v6902_v46 }
 0x306   :  { %v5130_v44 = vmul.f32 -1.442695, %v649_v56 }
 0x307   :  { %v5131_v48 = vmul.f32 -1.442695, %v650_v45  ;;  %v5132_v63 = vmul.f32 -1.442695, %v652_v0  ;;  %v7019_v0 = vld [vmem:[%s11071_s4 + $0x8] ss:$16 sps:$4 sm:$0xff]  }
 0x308   :  { %5674 = vpow2.f32 %v5130_v44 }
 0x309   :  { %5676 = vpow2.f32 %v5131_v48 }
 0x30a   :  { %5678 = vpow2.f32 %v5132_v63 }
 0x30b   :  { %5680 = vtanh.f32 %v651_v54 }
 0x312   :  { %v5675_v55 = vpop.eup %5674 }
 0x313   :  { %v5677_v47 = vpop.eup %5676  ;;  %v656_v49 = vadd.f32 1.0, %v5675_v55 }
 0x314   :  { %v662_v3 = vadd.f32 1.0, %v5677_v47  ;;  %v5679_v5 = vpop.eup %5678 }
 0x315   :  { %5682 = vrcp.f32 %v656_v49  ;;  %v5681_v38 = vpop.eup %5680  ;;  %v669_v56 = vadd.f32 1.0, %v5679_v5 }
 0x316   :  { %5684 = vrcp.f32 %v662_v3 }
 0x317   :  { %5686 = vrcp.f32 %v669_v56 }
 0x31f   :  { %v5683_v43 = vpop.eup %5682 }
 0x320   :  { %v5685_v41 = vpop.eup %5684  ;;  %v676_v27 = vmul.f32 %v5683_v43, %v5681_v38 }
 0x321   :  { %v675_v4 = vmul.f32 %v5685_v41, %v673_v37  ;;  %v5687_v2 = vpop.eup %5686 }
 0x323   :  { %v7003_v53 = vadd.f32 %v676_v27, %v675_v4  ;;  %v7087_v4 = vld [vmem:[%s11071_s4 + $0x2c] ss:$16 sps:$4 sm:$0xff]  }
 0x325   :  { %5688 = vtanh.f32 %v7003_v53  ;;  %v802_v54 = vrot.slane %v7003_v53, 7  ;;  %v7095_v53 = vld [vmem:[%s11071_s4 + $0x20] ss:$16 sps:$4 sm:$0xff]  }
 0x32f   :  { %v5689_v45 = vpop.eup %5688 }
 0x330   :  { %v7006_v44 = vmul.f32 %v5689_v45, %v5687_v2  ;;  %v7101_v2 = vld [vmem:[%s11071_s4 + $0x28] ss:$16 sps:$4 sm:$0xff]   ;;  %v7107_v45 = vld [vmem:[%s11071_s4 + $0x44] ss:$16 sps:$4 sm:$0xff]  }
 0x332   :  { %v680_v48 = vpack.c.bf16 %v7006_v44, %v7006_v44 }
 0x334   :  { %v682_v52 = vrot.slane %v680_v48, 1  ;;  %v7113_v48 = vld [vmem:[%s11071_s4 + $0x4c] ss:$16 sps:$4 sm:$0xff]  }
 0x336   :  { %717 = vmatmul.mubr.bf16.vlgmr.msra.gmra.mrb[12].mxu0 %v682_v52  ;;  %758 = vmatmul.mubr.bf16.vlgmr.msra.gmra.mrb[12].mxu1 %v682_v52  ;;  %v7119_v52 = vld [vmem:[%s11071_s4 + $0x40] ss:$16 sps:$4 sm:$0xff]  }
 0x337   :  { %816 = vmatpush1.bf16.msra.mxu0 %v7013_v36  ;;  %857 = vmatpush1.bf16.msra.mxu1 %v7019_v0 }
 0x338   :  { %817 = vmatprep.subr.bf16.mxu0 %v7025_v1  ;;  %858 = vmatprep.subr.bf16.mxu1 %v6661_v6  ;;  %v7060_v6 = vld [vmem:[%s11071_s4 + $0x4] ss:$16 sps:$4 sm:$0xff]  }
 0x339   :  { %847 = vmatprep.mubr.bf16.mxu0 %v11649_v50  ;;  %888 = vmatprep.mubr.bf16.mxu1 %v11649_v50 }
 0x33b   :  { %818 = vmatpush1.bf16.msra.mxu0 %v6666_v7  ;;  %859 = vmatpush1.bf16.msra.mxu1 %v6672_v8  ;;  %v7066_v7 = vld [vmem:[%s11071_s4 + $0xc] ss:$16 sps:$4 sm:$0xff]  }
 0x33c   :  { %819 = vmatprep.subr.bf16.mxu0 %v6678_v9  ;;  %860 = vmatprep.subr.bf16.mxu1 %v6683_v10 }
 0x33f   :  { %820 = vmatpush1.bf16.msra.mxu0 %v6688_v11  ;;  %861 = vmatpush1.bf16.msra.mxu1 %v6693_v12 }
 0x340   :  { %821 = vmatprep.subr.bf16.mxu0 %v6700_v13  ;;  %862 = vmatprep.subr.bf16.mxu1 %v6707_v14 }
 0x343   :  { %822 = vmatpush1.bf16.msra.mxu0 %v6712_v15  ;;  %863 = vmatpush1.bf16.msra.mxu1 %v6719_v16 }
 0x344   :  { %823 = vmatprep.subr.bf16.mxu0 %v6724_v17  ;;  %864 = vmatprep.subr.bf16.mxu1 %v6731_v18 }
 0x347   :  { %824 = vmatpush1.bf16.msra.mxu0 %v6736_v19  ;;  %865 = vmatpush1.bf16.msra.mxu1 %v6741_v20 }
 0x348   :  { %825 = vmatprep.subr.bf16.mxu0 %v6748_v21  ;;  %866 = vmatprep.subr.bf16.mxu1 %v6755_v22 }
 0x34b   :  { %826 = vmatpush1.bf16.msra.mxu0 %v6762_v23  ;;  %867 = vmatpush1.bf16.msra.mxu1 %v6767_v24 }
 0x34c   :  { %827 = vmatprep.subr.bf16.mxu0 %v6774_v25  ;;  %868 = vmatprep.subr.bf16.mxu1 %v6779_v26 }
 0x34f   :  { %828 = vmatpush1.bf16.msra.mxu0 %v6787_v28  ;;  %869 = vmatpush1.bf16.msra.mxu1 %v6797_v30 }
 0x350   :  { %829 = vmatprep.subr.bf16.mxu0 %v6802_v31  ;;  %870 = vmatprep.subr.bf16.mxu1 %v6809_v32 }
 0x353   :  { %830 = vmatpush1.bf16.msra.mxu0 %v6814_v33  ;;  %871 = vmatpush1.bf16.msra.mxu1 %v6819_v34 }
 0x354   :  { %944 = vmatprep.subr.bf16.mxu0 %v7060_v6  ;;  %985 = vmatprep.subr.bf16.mxu1 %v7066_v7 }
 0x409   :  { %v718_v8 = vpop.f32.mrb[12].mxu0  ;;  %v759_v9 = vpop.f32.mrb[12].mxu1 }
 0x40a   :  { %v770_v10 = vrot.slane %v718_v8, 5  ;;  %v720_v11 = vpop.f32.mrb[13].mxu0  ;;  %v761_v12 = vpop.f32.mrb[13].mxu1  ;;  %v772_v24 = vrot.slane %v759_v9, 5  ;;  %v7125_v8 = vld [vmem:[%s11071_s4 + $0x48] ss:$16 sps:$4 sm:$0xff]  }
 0x40b   :  { %v771_v13 = vrot.slane %v720_v11, 5  ;;  %v722_v14 = vpop.f32.mrb[14].mxu0  ;;  %v763_v15 = vpop.f32.mrb[14].mxu1  ;;  %v773_v22 = vrot.slane %v761_v12, 5  ;;  %v7131_v9 = vld [vmem:[%s11071_s4 + $0x64] ss:$16 sps:$4 sm:$0xff]  }
 0x40c   :  { %v778_v16 = vadd.f32 %v770_v10, %v6896_v29  ;;  %v723_v17 = vpop.f32.mrb[15].mxu0  ;;  %v764_v18 = vpop.f32.mrb[15].mxu1  ;;  %v780_v26 = vadd.f32 %v772_v24, %v6905_v51  ;;  %v7137_v10 = vld [vmem:[%s11071_s4 + $0x6c] ss:$16 sps:$4 sm:$0xff]   ;;  %v7143_v11 = vld [vmem:[%s11071_s4 + $0x60] ss:$16 sps:$4 sm:$0xff]  }
 0x40d   :  { %v779_v19 = vadd.f32 %v771_v13, %v6898_v35  ;;  %v781_v23 = vadd.f32 %v773_v22, %v6902_v46  ;;  %v7149_v12 = vld [vmem:[%s11071_s4 + $0x68] ss:$16 sps:$4 sm:$0xff]   ;;  %v7155_v13 = vld [vmem:[%s11071_s4 + $0x84] ss:$16 sps:$4 sm:$0xff]   ;;  %v7161_v14 = vld [vmem:[%s11071_s4 + $0x8c] ss:$16 sps:$4 sm:$0xff]  }
 0x40e   :  { %v5133_v20 = vmul.f32 -1.442695, %v778_v16  ;;  %v7167_v15 = vld [vmem:[%s11071_s4 + $0x80] ss:$16 sps:$4 sm:$0xff]   ;;  %v7173_v16 = vld [vmem:[%s11071_s4 + $0x88] ss:$16 sps:$4 sm:$0xff]  }
 0x40f   :  { %v5134_v21 = vmul.f32 -1.442695, %v779_v19  ;;  %v5135_v25 = vmul.f32 -1.442695, %v781_v23  ;;  %v7179_v17 = vld [vmem:[%s11071_s4 + $0xa4] ss:$16 sps:$4 sm:$0xff]  }
 0x410   :  { %5690 = vpow2.f32 %v5133_v20  ;;  %v7185_v18 = vld [vmem:[%s11071_s4 + $0xac] ss:$16 sps:$4 sm:$0xff]   ;;  %v7191_v19 = vld [vmem:[%s11071_s4 + $0xa0] ss:$16 sps:$4 sm:$0xff]   ;;  %v7197_v20 = vld [vmem:[%s11071_s4 + $0xa8] ss:$16 sps:$4 sm:$0xff]  }
 0x411   :  { %5692 = vpow2.f32 %v5134_v21  ;;  %v7203_v21 = vld [vmem:[%s11071_s4 + $0xc4] ss:$16 sps:$4 sm:$0xff]   ;;  %v7209_v22 = vld [vmem:[%s11071_s4 + $0xcc] ss:$16 sps:$4 sm:$0xff]   ;;  %v7215_v23 = vld [vmem:[%s11071_s4 + $0xc0] ss:$16 sps:$4 sm:$0xff]  }
 0x412   :  { %5694 = vpow2.f32 %v5135_v25  ;;  %v7221_v24 = vld [vmem:[%s11071_s4 + $0xc8] ss:$16 sps:$4 sm:$0xff]   ;;  %v7227_v25 = vld [vmem:[%s11071_s4 + $0xe4] ss:$16 sps:$4 sm:$0xff]  }
 0x413   :  { %5696 = vtanh.f32 %v780_v26  ;;  %v7233_v26 = vld [vmem:[%s11071_s4 + $0xec] ss:$16 sps:$4 sm:$0xff]  }
 0x41a   :  { %v5691_v28 = vpop.eup %5690 }
 0x41b   :  { %v5693_v30 = vpop.eup %5692  ;;  %v785_v31 = vadd.f32 1.0, %v5691_v28  ;;  %v7239_v28 = vld [vmem:[%s11071_s4 + $0xe0] ss:$16 sps:$4 sm:$0xff]  }
 0x41c   :  { %v791_v32 = vadd.f32 1.0, %v5693_v30  ;;  %v5695_v33 = vpop.eup %5694  ;;  %v7245_v30 = vld [vmem:[%s11071_s4 + $0xe8] ss:$16 sps:$4 sm:$0xff]  }
 0x41d   :  { %5698 = vrcp.f32 %v785_v31  ;;  %v5697_v34 = vpop.eup %5696  ;;  %v798_v49 = vadd.f32 1.0, %v5695_v33 }
 0x41e   :  { %5700 = vrcp.f32 %v791_v32 }
 0x41f   :  { %5702 = vrcp.f32 %v798_v49 }
 0x427   :  { %v5699_v63 = vpop.eup %5698 }
 0x428   :  { %v5701_v55 = vpop.eup %5700  ;;  %v805_v47 = vmul.f32 %v5699_v63, %v5697_v34 }
 0x429   :  { %v804_v3 = vmul.f32 %v5701_v55, %v802_v54  ;;  %v5703_v38 = vpop.eup %5702 }
 0x42b   :  { %v7074_v5 = vadd.f32 %v805_v47, %v804_v3 }
 0x42d   :  { %5704 = vtanh.f32 %v7074_v5 }
 0x437   :  { %v5705_v43 = vpop.eup %5704 }
 0x438   :  { %v7077_v37 = vmul.f32 %v5705_v43, %v5703_v38 }
 0x43a   :  { %v809_v41 = vpack.c.bf16 %v7077_v37, %v7077_v37 }
 0x43c   :  { %v811_v27 = vshrl.u32 %v809_v41, 16 }
 0x43e   :  { %v813_v56 = vrot.slane %v811_v27, 1 }
 0x440   :  { %848 = vmatmul.mubr.bf16.vlgmr.msra.gmra.mrb[16].mxu0 %v813_v56  ;;  %889 = vmatmul.mubr.bf16.vlgmr.msra.gmra.mrb[16].mxu1 %v813_v56 }
 0x441   :  { %945 = vmatpush1.bf16.msra.mxu0 %v7013_v36  ;;  %986 = vmatpush1.bf16.msra.mxu1 %v7019_v0 }
 0x442   :  { %946 = vmatprep.subr.bf16.mxu0 %v7025_v1  ;;  %987 = vmatprep.subr.bf16.mxu1 %v7087_v4 }
 0x443   :  { %976 = vmatprep.mubr.bf16.mxu0 %v11649_v50  ;;  %1017 = vmatprep.mubr.bf16.mxu1 %v11649_v50 }
 0x445   :  { %947 = vmatpush1.bf16.msra.mxu0 %v7095_v53  ;;  %988 = vmatpush1.bf16.msra.mxu1 %v7101_v2 }
 0x446   :  { %948 = vmatprep.subr.bf16.mxu0 %v7107_v45  ;;  %989 = vmatprep.subr.bf16.mxu1 %v7113_v48 }
 0x449   :  { %949 = vmatpush1.bf16.msra.mxu0 %v7119_v52  ;;  %990 = vmatpush1.bf16.msra.mxu1 %v7125_v8 }
 0x44a   :  { %950 = vmatprep.subr.bf16.mxu0 %v7131_v9  ;;  %991 = vmatprep.subr.bf16.mxu1 %v7137_v10 }
 0x44d   :  { %951 = vmatpush1.bf16.msra.mxu0 %v7143_v11  ;;  %992 = vmatpush1.bf16.msra.mxu1 %v7149_v12 }
 0x44e   :  { %952 = vmatprep.subr.bf16.mxu0 %v7155_v13  ;;  %993 = vmatprep.subr.bf16.mxu1 %v7161_v14 }
 0x451   :  { %953 = vmatpush1.bf16.msra.mxu0 %v7167_v15  ;;  %994 = vmatpush1.bf16.msra.mxu1 %v7173_v16 }
 0x452   :  { %954 = vmatprep.subr.bf16.mxu0 %v7179_v17  ;;  %995 = vmatprep.subr.bf16.mxu1 %v7185_v18 }
 0x455   :  { %955 = vmatpush1.bf16.msra.mxu0 %v7191_v19  ;;  %996 = vmatpush1.bf16.msra.mxu1 %v7197_v20 }
 0x456   :  { %956 = vmatprep.subr.bf16.mxu0 %v7203_v21  ;;  %997 = vmatprep.subr.bf16.mxu1 %v7209_v22 }
 0x459   :  { %957 = vmatpush1.bf16.msra.mxu0 %v7215_v23  ;;  %998 = vmatpush1.bf16.msra.mxu1 %v7221_v24 }
 0x45a   :  { %958 = vmatprep.subr.bf16.mxu0 %v7227_v25  ;;  %999 = vmatprep.subr.bf16.mxu1 %v7233_v26 }
 0x45d   :  { %959 = vmatpush1.bf16.msra.mxu0 %v7239_v28  ;;  %1000 = vmatpush1.bf16.msra.mxu1 %v7245_v30 }
 0x45e   :  { %1075 = vmatprep.subr.bf16.mxu0 %v7060_v6  ;;  %1116 = vmatprep.subr.bf16.mxu1 %v7066_v7 }
 0x513   :  { %v849_v31 = vpop.f32.mrb[16].mxu0  ;;  %v890_v32 = vpop.f32.mrb[16].mxu1 }
 0x514   :  { %v901_v33 = vrot.slane %v849_v31, 4  ;;  %v851_v34 = vpop.f32.mrb[17].mxu0  ;;  %v892_v63 = vpop.f32.mrb[17].mxu1  ;;  %v903_v40 = vrot.slane %v890_v32, 4 }
 0x515   :  { %v902_v54 = vrot.slane %v851_v34, 4  ;;  %v853_v55 = vpop.f32.mrb[18].mxu0  ;;  %v894_v47 = vpop.f32.mrb[18].mxu1  ;;  %v904_v56 = vrot.slane %v892_v63, 4  ;;  %v933_v63 = vrot.slane %v7074_v5, 7 }
 0x516   :  { %v909_v49 = vadd.f32 %v901_v33, %v6896_v29  ;;  %v854_v3 = vpop.f32.mrb[19].mxu0  ;;  %v895_v38 = vpop.f32.mrb[19].mxu1  ;;  %v911_v39 = vadd.f32 %v903_v40, %v6905_v51 }
 0x517   :  { %v910_v43 = vadd.f32 %v902_v54, %v6898_v35  ;;  %v912_v42 = vadd.f32 %v904_v56, %v6902_v46 }
 0x518   :  { %v5136_v41 = vmul.f32 -1.442695, %v909_v49 }
 0x519   :  { %v5137_v27 = vmul.f32 -1.442695, %v910_v43  ;;  %v5138_v31 = vmul.f32 -1.442695, %v912_v42 }
 0x51a   :  { %5706 = vpow2.f32 %v5136_v41 }
 0x51b   :  { %5708 = vpow2.f32 %v5137_v27 }
 0x51c   :  { %5710 = vpow2.f32 %v5138_v31 }
 0x51d   :  { %5712 = vtanh.f32 %v911_v39 }
 0x524   :  { %v5707_v34 = vpop.eup %5706 }
 0x525   :  { %v5709_v55 = vpop.eup %5708  ;;  %v916_v47 = vadd.f32 1.0, %v5707_v34 }
 0x526   :  { %v922_v33 = vadd.f32 1.0, %v5709_v55  ;;  %v5711_v54 = vpop.eup %5710 }
 0x527   :  { %5714 = vrcp.f32 %v916_v47  ;;  %v5713_v49 = vpop.eup %5712  ;;  %v929_v41 = vadd.f32 1.0, %v5711_v54 }
 0x528   :  { %5716 = vrcp.f32 %v922_v33 }
 0x529   :  { %5718 = vrcp.f32 %v929_v41 }
 0x531   :  { %v5715_v3 = vpop.eup %5714 }
 0x532   :  { %v5717_v38 = vpop.eup %5716  ;;  %v936_v43 = vmul.f32 %v5715_v3, %v5713_v49 }
 0x533   :  { %v935_v32 = vmul.f32 %v5717_v38, %v933_v63  ;;  %v5719_v40 = vpop.eup %5718 }
 0x535   :  { %v7255_v42 = vadd.f32 %v936_v43, %v935_v32 }
 0x537   :  { %5720 = vtanh.f32 %v7255_v42 }
 0x541   :  { %v5721_v27 = vpop.eup %5720 }
 0x542   :  { %v7258_v39 = vmul.f32 %v5721_v27, %v5719_v40 }
 0x544   :  { %v940_v56 = vpack.c.bf16 %v7258_v39, %v7258_v39 }
 0x546   :  { %v942_v31 = vrot.slane %v940_v56, 2 }
 0x548   :  { %977 = vmatmul.mubr.bf16.vlgmr.msra.gmra.mrb[20].mxu0 %v942_v31  ;;  %1018 = vmatmul.mubr.bf16.vlgmr.msra.gmra.mrb[20].mxu1 %v942_v31 }
 0x549   :  { %1076 = vmatpush1.bf16.msra.mxu0 %v7013_v36  ;;  %1117 = vmatpush1.bf16.msra.mxu1 %v7019_v0 }
 0x54a   :  { %1077 = vmatprep.subr.bf16.mxu0 %v7025_v1  ;;  %1118 = vmatprep.subr.bf16.mxu1 %v7087_v4 }
 0x54b   :  { %1107 = vmatprep.mubr.bf16.mxu0 %v11649_v50  ;;  %1148 = vmatprep.mubr.bf16.mxu1 %v11649_v50 }
 0x54d   :  { %1078 = vmatpush1.bf16.msra.mxu0 %v7095_v53  ;;  %1119 = vmatpush1.bf16.msra.mxu1 %v7101_v2 }
 0x54e   :  { %1079 = vmatprep.subr.bf16.mxu0 %v7107_v45  ;;  %1120 = vmatprep.subr.bf16.mxu1 %v7113_v48 }
 0x551   :  { %1080 = vmatpush1.bf16.msra.mxu0 %v7119_v52  ;;  %1121 = vmatpush1.bf16.msra.mxu1 %v7125_v8 }
 0x552   :  { %1081 = vmatprep.subr.bf16.mxu0 %v7131_v9  ;;  %1122 = vmatprep.subr.bf16.mxu1 %v7137_v10 }
 0x555   :  { %1082 = vmatpush1.bf16.msra.mxu0 %v7143_v11  ;;  %1123 = vmatpush1.bf16.msra.mxu1 %v7149_v12 }
 0x556   :  { %1083 = vmatprep.subr.bf16.mxu0 %v7155_v13  ;;  %1124 = vmatprep.subr.bf16.mxu1 %v7161_v14 }
 0x559   :  { %1084 = vmatpush1.bf16.msra.mxu0 %v7167_v15  ;;  %1125 = vmatpush1.bf16.msra.mxu1 %v7173_v16 }
 0x55a   :  { %1085 = vmatprep.subr.bf16.mxu0 %v7179_v17  ;;  %1126 = vmatprep.subr.bf16.mxu1 %v7185_v18 }
 0x55d   :  { %1086 = vmatpush1.bf16.msra.mxu0 %v7191_v19  ;;  %1127 = vmatpush1.bf16.msra.mxu1 %v7197_v20 }
 0x55e   :  { %1087 = vmatprep.subr.bf16.mxu0 %v7203_v21  ;;  %1128 = vmatprep.subr.bf16.mxu1 %v7209_v22 }
 0x561   :  { %1088 = vmatpush1.bf16.msra.mxu0 %v7215_v23  ;;  %1129 = vmatpush1.bf16.msra.mxu1 %v7221_v24 }
 0x562   :  { %1089 = vmatprep.subr.bf16.mxu0 %v7227_v25  ;;  %1130 = vmatprep.subr.bf16.mxu1 %v7233_v26 }
 0x565   :  { %1090 = vmatpush1.bf16.msra.mxu0 %v7239_v28  ;;  %1131 = vmatpush1.bf16.msra.mxu1 %v7245_v30 }
 0x566   :  { %1204 = vmatprep.subr.bf16.mxu0 %v7060_v6  ;;  %1245 = vmatprep.subr.bf16.mxu1 %v7066_v7 }
 0x61b   :  { %v978_v5 = vpop.f32.mrb[20].mxu0  ;;  %v1019_v34 = vpop.f32.mrb[20].mxu1 }
 0x61c   :  { %v1030_v55 = vrot.slane %v978_v5, 3  ;;  %v980_v47 = vpop.f32.mrb[21].mxu0  ;;  %v1021_v33 = vpop.f32.mrb[21].mxu1  ;;  %v1032_v31 = vrot.slane %v1019_v34, 3 }
 0x61d   :  { %v1031_v54 = vrot.slane %v980_v47, 3  ;;  %v982_v49 = vpop.f32.mrb[22].mxu0  ;;  %v1023_v3 = vpop.f32.mrb[22].mxu1  ;;  %v1033_v27 = vrot.slane %v1021_v33, 3  ;;  %v1062_v33 = vrot.slane %v7255_v42, 7 }
 0x61e   :  { %v1038_v63 = vadd.f32 %v1030_v55, %v6896_v29  ;;  %v983_v38 = vpop.f32.mrb[23].mxu0  ;;  %v1024_v43 = vpop.f32.mrb[23].mxu1  ;;  %v1040_v58 = vadd.f32 %v1032_v31, %v6905_v51 }
 0x61f   :  { %v1039_v41 = vadd.f32 %v1031_v54, %v6898_v35  ;;  %v1041_v56 = vadd.f32 %v1033_v27, %v6902_v46 }
 0x620   :  { %v5139_v32 = vmul.f32 -1.442695, %v1038_v63 }
 0x621   :  { %v5140_v40 = vmul.f32 -1.442695, %v1039_v41  ;;  %v5141_v5 = vmul.f32 -1.442695, %v1041_v56 }
 0x622   :  { %5722 = vpow2.f32 %v5139_v32 }
 0x623   :  { %5724 = vpow2.f32 %v5140_v40 }
 0x624   :  { %5726 = vpow2.f32 %v5141_v5 }
 0x625   :  { %5728 = vtanh.f32 %v1040_v58 }
 0x62c   :  { %v5723_v47 = vpop.eup %5722 }
 0x62d   :  { %v5725_v49 = vpop.eup %5724  ;;  %v1045_v3 = vadd.f32 1.0, %v5723_v47 }
 0x62e   :  { %v1051_v55 = vadd.f32 1.0, %v5725_v49  ;;  %v5727_v54 = vpop.eup %5726 }
 0x62f   :  { %5730 = vrcp.f32 %v1045_v3  ;;  %v5729_v63 = vpop.eup %5728  ;;  %v1058_v32 = vadd.f32 1.0, %v5727_v54 }
 0x630   :  { %5732 = vrcp.f32 %v1051_v55 }
 0x631   :  { %5734 = vrcp.f32 %v1058_v32 }
 0x639   :  { %v5731_v38 = vpop.eup %5730 }
 0x63a   :  { %v5733_v43 = vpop.eup %5732  ;;  %v1065_v41 = vmul.f32 %v5731_v38, %v5729_v63 }
 0x63b   :  { %v1064_v34 = vmul.f32 %v5733_v43, %v1062_v33  ;;  %v5735_v27 = vpop.eup %5734 }
 0x63d   :  { %v7301_v40 = vadd.f32 %v1065_v41, %v1064_v34 }
 0x63f   :  { %5736 = vtanh.f32 %v7301_v40 }
 0x649   :  { %v5737_v56 = vpop.eup %5736 }
 0x64a   :  { %v7304_v58 = vmul.f32 %v5737_v56, %v5735_v27 }
 0x64c   :  { %11650 = vst [vmem:[#allocation14_spill] sm:$0xff] %v7304_v58  ;;  %v1069_v31 = vpack.c.bf16 %v7304_v58, %v7304_v58 }
 0x64e   :  { %v1071_v5 = vshrl.u32 %v1069_v31, 16 }
 0x650   :  { %v1073_v47 = vrot.slane %v1071_v5, 2 }
 0x652   :  { %1108 = vmatmul.mubr.bf16.vlgmr.msra.gmra.mrb[24].mxu0 %v1073_v47  ;;  %1149 = vmatmul.mubr.bf16.vlgmr.msra.gmra.mrb[24].mxu1 %v1073_v47 }
 0x653   :  { %1205 = vmatpush1.bf16.msra.mxu0 %v7013_v36  ;;  %1246 = vmatpush1.bf16.msra.mxu1 %v7019_v0 }
 0x654   :  { %1206 = vmatprep.subr.bf16.mxu0 %v7025_v1  ;;  %1247 = vmatprep.subr.bf16.mxu1 %v7087_v4 }
 0x655   :  { %1236 = vmatprep.mubr.bf16.mxu0 %v11649_v50  ;;  %1277 = vmatprep.mubr.bf16.mxu1 %v11649_v50 }
 0x657   :  { %1207 = vmatpush1.bf16.msra.mxu0 %v7095_v53  ;;  %1248 = vmatpush1.bf16.msra.mxu1 %v7101_v2 }
 0x658   :  { %1208 = vmatprep.subr.bf16.mxu0 %v7107_v45  ;;  %1249 = vmatprep.subr.bf16.mxu1 %v7113_v48 }
 0x65b   :  { %1209 = vmatpush1.bf16.msra.mxu0 %v7119_v52  ;;  %1250 = vmatpush1.bf16.msra.mxu1 %v7125_v8 }
 0x65c   :  { %1210 = vmatprep.subr.bf16.mxu0 %v7131_v9  ;;  %1251 = vmatprep.subr.bf16.mxu1 %v7137_v10 }
 0x65f   :  { %1211 = vmatpush1.bf16.msra.mxu0 %v7143_v11  ;;  %1252 = vmatpush1.bf16.msra.mxu1 %v7149_v12 }
 0x660   :  { %1212 = vmatprep.subr.bf16.mxu0 %v7155_v13  ;;  %1253 = vmatprep.subr.bf16.mxu1 %v7161_v14 }
 0x663   :  { %1213 = vmatpush1.bf16.msra.mxu0 %v7167_v15  ;;  %1254 = vmatpush1.bf16.msra.mxu1 %v7173_v16 }
 0x664   :  { %1214 = vmatprep.subr.bf16.mxu0 %v7179_v17  ;;  %1255 = vmatprep.subr.bf16.mxu1 %v7185_v18 }
 0x667   :  { %1215 = vmatpush1.bf16.msra.mxu0 %v7191_v19  ;;  %1256 = vmatpush1.bf16.msra.mxu1 %v7197_v20 }
 0x668   :  { %1216 = vmatprep.subr.bf16.mxu0 %v7203_v21  ;;  %1257 = vmatprep.subr.bf16.mxu1 %v7209_v22 }
 0x66b   :  { %1217 = vmatpush1.bf16.msra.mxu0 %v7215_v23  ;;  %1258 = vmatpush1.bf16.msra.mxu1 %v7221_v24 }
 0x66c   :  { %1218 = vmatprep.subr.bf16.mxu0 %v7227_v25  ;;  %1259 = vmatprep.subr.bf16.mxu1 %v7233_v26 }
 0x66f   :  { %1219 = vmatpush1.bf16.msra.mxu0 %v7239_v28  ;;  %1260 = vmatpush1.bf16.msra.mxu1 %v7245_v30 }
 0x670   :  { %1335 = vmatprep.subr.bf16.mxu0 %v7060_v6  ;;  %1376 = vmatprep.subr.bf16.mxu1 %v7066_v7 }
 0x725   :  { %v1109_v42 = vpop.f32.mrb[24].mxu0  ;;  %v1150_v49 = vpop.f32.mrb[24].mxu1 }
 0x726   :  { %v1161_v3 = vrot.slane %v1109_v42, 2  ;;  %v1111_v55 = vpop.f32.mrb[25].mxu0  ;;  %v1152_v54 = vpop.f32.mrb[25].mxu1  ;;  %v1163_v47 = vrot.slane %v1150_v49, 2 }
 0x727   :  { %v1162_v63 = vrot.slane %v1111_v55, 2  ;;  %v1113_v38 = vpop.f32.mrb[26].mxu0  ;;  %v1154_v33 = vpop.f32.mrb[26].mxu1  ;;  %v1164_v31 = vrot.slane %v1152_v54, 2  ;;  %v1193_v54 = vrot.slane %v7301_v40, 7 }
 0x728   :  { %v1169_v43 = vadd.f32 %v1161_v3, %v6896_v29  ;;  %v1114_v41 = vpop.f32.mrb[27].mxu0  ;;  %v1155_v32 = vpop.f32.mrb[27].mxu1  ;;  %v1171_v58 = vadd.f32 %v1163_v47, %v6905_v51 }
 0x729   :  { %v1170_v34 = vadd.f32 %v1162_v63, %v6898_v35  ;;  %v1172_v5 = vadd.f32 %v1164_v31, %v6902_v46 }
 0x72a   :  { %v5142_v27 = vmul.f32 -1.442695, %v1169_v43 }
 0x72b   :  { %v5143_v56 = vmul.f32 -1.442695, %v1170_v34  ;;  %v5144_v42 = vmul.f32 -1.442695, %v1172_v5 }
 0x72c   :  { %5738 = vpow2.f32 %v5142_v27 }
 0x72d   :  { %5740 = vpow2.f32 %v5143_v56 }
 0x72e   :  { %5742 = vpow2.f32 %v5144_v42 }
 0x72f   :  { %5744 = vtanh.f32 %v1171_v58 }
 0x736   :  { %v5739_v55 = vpop.eup %5738 }
 0x737   :  { %v5741_v38 = vpop.eup %5740  ;;  %v1176_v33 = vadd.f32 1.0, %v5739_v55 }
 0x738   :  { %v1182_v3 = vadd.f32 1.0, %v5741_v38  ;;  %v5743_v63 = vpop.eup %5742 }
 0x739   :  { %5746 = vrcp.f32 %v1176_v33  ;;  %v5745_v43 = vpop.eup %5744  ;;  %v1189_v27 = vadd.f32 1.0, %v5743_v63 }
 0x73a   :  { %5748 = vrcp.f32 %v1182_v3 }
 0x73b   :  { %5750 = vrcp.f32 %v1189_v27 }
 0x743   :  { %v5747_v41 = vpop.eup %5746 }
 0x744   :  { %v5749_v32 = vpop.eup %5748  ;;  %v1196_v34 = vmul.f32 %v5747_v41, %v5745_v43 }
 0x745   :  { %v1195_v49 = vmul.f32 %v5749_v32, %v1193_v54  ;;  %v5751_v31 = vpop.eup %5750 }
 0x747   :  { %v7347_v56 = vadd.f32 %v1196_v34, %v1195_v49 }
 0x749   :  { %5752 = vtanh.f32 %v7347_v56 }
 0x753   :  { %v5753_v5 = vpop.eup %5752 }
 0x754   :  { %v7350_v58 = vmul.f32 %v5753_v5, %v5751_v31 }
 0x756   :  { %11651 = vst [vmem:[#allocation15_spill] sm:$0xff] %v7350_v58  ;;  %v1200_v47 = vpack.c.bf16 %v7350_v58, %v7350_v58 }
 0x758   :  { %v1202_v42 = vrot.slane %v1200_v47, 3 }
 0x75a   :  { %1237 = vmatmul.mubr.bf16.vlgmr.msra.gmra.mrb[28].mxu0 %v1202_v42  ;;  %1278 = vmatmul.mubr.bf16.vlgmr.msra.gmra.mrb[28].mxu1 %v1202_v42 }
 0x75b   :  { %1336 = vmatpush1.bf16.msra.mxu0 %v7013_v36  ;;  %1377 = vmatpush1.bf16.msra.mxu1 %v7019_v0 }
 0x75c   :  { %1337 = vmatprep.subr.bf16.mxu0 %v7025_v1  ;;  %1378 = vmatprep.subr.bf16.mxu1 %v7087_v4 }
 0x75d   :  { %1367 = vmatprep.mubr.bf16.mxu0 %v11649_v50  ;;  %1408 = vmatprep.mubr.bf16.mxu1 %v11649_v50 }
 0x75f   :  { %1338 = vmatpush1.bf16.msra.mxu0 %v7095_v53  ;;  %1379 = vmatpush1.bf16.msra.mxu1 %v7101_v2 }
 0x760   :  { %1339 = vmatprep.subr.bf16.mxu0 %v7107_v45  ;;  %1380 = vmatprep.subr.bf16.mxu1 %v7113_v48 }
 0x763   :  { %1340 = vmatpush1.bf16.msra.mxu0 %v7119_v52  ;;  %1381 = vmatpush1.bf16.msra.mxu1 %v7125_v8 }
 0x764   :  { %1341 = vmatprep.subr.bf16.mxu0 %v7131_v9  ;;  %1382 = vmatprep.subr.bf16.mxu1 %v7137_v10 }
 0x767   :  { %1342 = vmatpush1.bf16.msra.mxu0 %v7143_v11  ;;  %1383 = vmatpush1.bf16.msra.mxu1 %v7149_v12 }
 0x768   :  { %1343 = vmatprep.subr.bf16.mxu0 %v7155_v13  ;;  %1384 = vmatprep.subr.bf16.mxu1 %v7161_v14 }
 0x76b   :  { %1344 = vmatpush1.bf16.msra.mxu0 %v7167_v15  ;;  %1385 = vmatpush1.bf16.msra.mxu1 %v7173_v16 }
 0x76c   :  { %1345 = vmatprep.subr.bf16.mxu0 %v7179_v17  ;;  %1386 = vmatprep.subr.bf16.mxu1 %v7185_v18 }
 0x76f   :  { %1346 = vmatpush1.bf16.msra.mxu0 %v7191_v19  ;;  %1387 = vmatpush1.bf16.msra.mxu1 %v7197_v20 }
 0x770   :  { %1347 = vmatprep.subr.bf16.mxu0 %v7203_v21  ;;  %1388 = vmatprep.subr.bf16.mxu1 %v7209_v22 }
 0x773   :  { %1348 = vmatpush1.bf16.msra.mxu0 %v7215_v23  ;;  %1389 = vmatpush1.bf16.msra.mxu1 %v7221_v24 }
 0x774   :  { %1349 = vmatprep.subr.bf16.mxu0 %v7227_v25  ;;  %1390 = vmatprep.subr.bf16.mxu1 %v7233_v26 }
 0x777   :  { %1350 = vmatpush1.bf16.msra.mxu0 %v7239_v28  ;;  %1391 = vmatpush1.bf16.msra.mxu1 %v7245_v30 }
 0x778   :  { %1449 = vmatprep.subr.bf16.mxu0 %v7060_v6  ;;  %1490 = vmatprep.subr.bf16.mxu1 %v7066_v7 }
 0x82d   :  { %v1238_v40 = vpop.f32.mrb[28].mxu0  ;;  %v1279_v55 = vpop.f32.mrb[28].mxu1 }
 0x82e   :  { %v1290_v38 = vrot.slane %v1238_v40, 1  ;;  %v1240_v33 = vpop.f32.mrb[29].mxu0  ;;  %v1281_v3 = vpop.f32.mrb[29].mxu1  ;;  %v1292_v42 = vrot.slane %v1279_v55, 1 }
 0x82f   :  { %v1291_v63 = vrot.slane %v1240_v33, 1  ;;  %v1242_v43 = vpop.f32.mrb[30].mxu0  ;;  %v1283_v41 = vpop.f32.mrb[30].mxu1  ;;  %v1293_v5 = vrot.slane %v1281_v3, 1  ;;  %v1322_v3 = vrot.slane %v7347_v56, 7 }
 0x830   :  { %v1298_v54 = vadd.f32 %v1290_v38, %v6896_v29  ;;  %v1243_v32 = vpop.f32.mrb[31].mxu0  ;;  %v1284_v34 = vpop.f32.mrb[31].mxu1  ;;  %v1300_v58 = vadd.f32 %v1292_v42, %v6905_v51 }
 0x831   :  { %v1299_v27 = vadd.f32 %v1291_v63, %v6898_v35  ;;  %v1301_v47 = vadd.f32 %v1293_v5, %v6902_v46 }
 0x832   :  { %v5145_v49 = vmul.f32 -1.442695, %v1298_v54 }
 0x833   :  { %v5146_v31 = vmul.f32 -1.442695, %v1299_v27  ;;  %v5147_v40 = vmul.f32 -1.442695, %v1301_v47 }
 0x834   :  { %5754 = vpow2.f32 %v5145_v49 }
 0x835   :  { %5756 = vpow2.f32 %v5146_v31 }
 0x836   :  { %5758 = vpow2.f32 %v5147_v40 }
 0x837   :  { %5760 = vtanh.f32 %v1300_v58 }
 0x83e   :  { %v5755_v33 = vpop.eup %5754 }
 0x83f   :  { %v5757_v43 = vpop.eup %5756  ;;  %v1305_v41 = vadd.f32 1.0, %v5755_v33 }
 0x840   :  { %v1311_v29 = vadd.f32 1.0, %v5757_v43  ;;  %v5759_v35 = vpop.eup %5758 }
 0x841   :  { %5762 = vrcp.f32 %v1305_v41  ;;  %v5761_v38 = vpop.eup %5760  ;;  %v1318_v46 = vadd.f32 1.0, %v5759_v35 }
 0x842   :  { %5764 = vrcp.f32 %v1311_v29 }
 0x843   :  { %5766 = vrcp.f32 %v1318_v46 }
 0x84b   :  { %v5763_v63 = vpop.eup %5762 }
 0x84c   :  { %v5765_v54 = vpop.eup %5764  ;;  %v1325_v32 = vmul.f32 %v5763_v63, %v5761_v38 }
 0x84d   :  { %v1324_v55 = vmul.f32 %v5765_v54, %v1322_v3  ;;  %v5767_v51 = vpop.eup %5766 }
 0x84f   :  { %v7393_v34 = vadd.f32 %v1325_v32, %v1324_v55 }
 0x851   :  { %5768 = vtanh.f32 %v7393_v34 }
 0x85b   :  { %v5769_v27 = vpop.eup %5768 }
 0x85c   :  { %v7396_v58 = vmul.f32 %v5769_v27, %v5767_v51 }
 0x85e   :  { %v1329_v49 = vpack.c.bf16 %v7396_v58, %v7396_v58 }
 0x860   :  { %v1331_v31 = vshrl.u32 %v1329_v49, 16 }
 0x862   :  { %v1333_v5 = vrot.slane %v1331_v31, 3 }
 0x864   :  { %1368 = vmatmul.mubr.bf16.vlgmr.msra.gmra.mrb[32].mxu0 %v1333_v5  ;;  %1409 = vmatmul.mubr.bf16.vlgmr.msra.gmra.mrb[32].mxu1 %v1333_v5 }
 0x865   :  { %1450 = vmatpush1.bf16.msra.mxu0 %v7013_v36  ;;  %1491 = vmatpush1.bf16.msra.mxu1 %v7019_v0 }
 0x866   :  { %1451 = vmatprep.subr.bf16.mxu0 %v7025_v1  ;;  %1492 = vmatprep.subr.bf16.mxu1 %v7087_v4 }
 0x867   :  { %1481 = vmatprep.mubr.bf16.mxu0 %v11649_v50  ;;  %1522 = vmatprep.mubr.bf16.mxu1 %v11649_v50 }
 0x869   :  { %1452 = vmatpush1.bf16.msra.mxu0 %v7095_v53  ;;  %1493 = vmatpush1.bf16.msra.mxu1 %v7101_v2 }
 0x86a   :  { %1453 = vmatprep.subr.bf16.mxu0 %v7107_v45  ;;  %1494 = vmatprep.subr.bf16.mxu1 %v7113_v48 }
 0x86d   :  { %1454 = vmatpush1.bf16.msra.mxu0 %v7119_v52  ;;  %1495 = vmatpush1.bf16.msra.mxu1 %v7125_v8 }
 0x86e   :  { %1455 = vmatprep.subr.bf16.mxu0 %v7131_v9  ;;  %1496 = vmatprep.subr.bf16.mxu1 %v7137_v10 }
 0x871   :  { %1456 = vmatpush1.bf16.msra.mxu0 %v7143_v11  ;;  %1497 = vmatpush1.bf16.msra.mxu1 %v7149_v12 }
 0x872   :  { %1457 = vmatprep.subr.bf16.mxu0 %v7155_v13  ;;  %1498 = vmatprep.subr.bf16.mxu1 %v7161_v14 }
 0x875   :  { %1458 = vmatpush1.bf16.msra.mxu0 %v7167_v15  ;;  %1499 = vmatpush1.bf16.msra.mxu1 %v7173_v16 }
 0x876   :  { %1459 = vmatprep.subr.bf16.mxu0 %v7179_v17  ;;  %1500 = vmatprep.subr.bf16.mxu1 %v7185_v18 }
 0x879   :  { %1460 = vmatpush1.bf16.msra.mxu0 %v7191_v19  ;;  %1501 = vmatpush1.bf16.msra.mxu1 %v7197_v20 }
 0x87a   :  { %1461 = vmatprep.subr.bf16.mxu0 %v7203_v21  ;;  %1502 = vmatprep.subr.bf16.mxu1 %v7209_v22 }
 0x87d   :  { %1462 = vmatpush1.bf16.msra.mxu0 %v7215_v23  ;;  %1503 = vmatpush1.bf16.msra.mxu1 %v7221_v24 }
 0x87e   :  { %1463 = vmatprep.subr.bf16.mxu0 %v7227_v25  ;;  %1504 = vmatprep.subr.bf16.mxu1 %v7233_v26 }
 0x881   :  { %1464 = vmatpush1.bf16.msra.mxu0 %v7239_v28  ;;  %1505 = vmatpush1.bf16.msra.mxu1 %v7245_v30 }
 0x882   :  { %1579 = vmatprep.subr.bf16.mxu0 %v7060_v6  ;;  %1620 = vmatprep.subr.bf16.mxu1 %v7066_v7 }
 0x937   :  { %v1369_v56 = vpop.f32.mrb[32].mxu0  ;;  %v1410_v47 = vpop.f32.mrb[32].mxu1 }
 0x938   :  { %v1417_v42 = vadd.f32 %v1369_v56, %v6888_v59  ;;  %v1371_v40 = vpop.f32.mrb[33].mxu0  ;;  %v1412_v33 = vpop.f32.mrb[33].mxu1  ;;  %v1419_v46 = vadd.f32 %v1410_v47, %v6892_v61 }
 0x939   :  { %v1418_v43 = vadd.f32 %v1371_v40, %v6890_v60  ;;  %v1373_v41 = vpop.f32.mrb[34].mxu0  ;;  %v1414_v29 = vpop.f32.mrb[34].mxu1  ;;  %v1420_v54 = vadd.f32 %v1412_v33, %v6894_v62 }
 0x93a   :  { %v5148_v35 = vmul.f32 -1.442695, %v1417_v42  ;;  %v1374_v38 = vpop.f32.mrb[35].mxu0  ;;  %v1415_v63 = vpop.f32.mrb[35].mxu1  ;;  %v1441_v42 = vrot.slane %v7393_v34, 7 }
 0x93b   :  { %v5149_v3 = vmul.f32 -1.442695, %v1418_v43  ;;  %v5150_v32 = vmul.f32 -1.442695, %v1420_v54 }
 0x93c   :  { %5770 = vpow2.f32 %v5148_v35 }
 0x93d   :  { %5772 = vpow2.f32 %v5149_v3 }
 0x93e   :  { %5774 = vpow2.f32 %v5150_v32 }
 0x93f   :  { %5776 = vtanh.f32 %v1419_v46 }
 0x946   :  { %v5771_v55 = vpop.eup %5770 }
 0x947   :  { %v5773_v51 = vpop.eup %5772  ;;  %v1424_v27 = vadd.f32 1.0, %v5771_v55 }
 0x948   :  { %v1430_v49 = vadd.f32 1.0, %v5773_v51  ;;  %v5775_v31 = vpop.eup %5774 }
 0x949   :  { %5778 = vrcp.f32 %v1424_v27  ;;  %v5777_v5 = vpop.eup %5776  ;;  %v1437_v41 = vadd.f32 1.0, %v5775_v31 }
 0x94a   :  { %5780 = vrcp.f32 %v1430_v49 }
 0x94b   :  { %5782 = vrcp.f32 %v1437_v41 }
 0x953   :  { %v5779_v56 = vpop.eup %5778 }
 0x954   :  { %v5781_v40 = vpop.eup %5780  ;;  %v1444_v43 = vmul.f32 %v5779_v56, %v5777_v5 }
 0x955   :  { %v1443_v33 = vmul.f32 %v5781_v40, %v1441_v42  ;;  %v5783_v47 = vpop.eup %5782 }
 0x957   :  { %v7439_v29 = vadd.f32 %v1444_v43, %v1443_v33 }
 0x959   :  { %5784 = vtanh.f32 %v7439_v29 }
 0x963   :  { %v5785_v35 = vpop.eup %5784 }
 0x964   :  { %v7442_v38 = vmul.f32 %v5785_v35, %v5783_v47 }
 0x966   :  { %v1448_v63 = vpack.c.bf16 %v7442_v38, %v7442_v38 }
 0x968   :  { %1482 = vmatmul.mubr.bf16.vlgmr.msra.gmra.mrb[36].mxu0 %v1448_v63  ;;  %1523 = vmatmul.mubr.bf16.vlgmr.msra.gmra.mrb[36].mxu1 %v1448_v63 }
 0x969   :  { %1580 = vmatpush1.bf16.msra.mxu0 %v7013_v36  ;;  %1621 = vmatpush1.bf16.msra.mxu1 %v7019_v0 }
 0x96a   :  { %1581 = vmatprep.subr.bf16.mxu0 %v7025_v1  ;;  %1622 = vmatprep.subr.bf16.mxu1 %v7087_v4 }
 0x96b   :  { %1611 = vmatprep.mubr.bf16.mxu0 %v11649_v50  ;;  %1652 = vmatprep.mubr.bf16.mxu1 %v11649_v50 }
 0x96d   :  { %1582 = vmatpush1.bf16.msra.mxu0 %v7095_v53  ;;  %1623 = vmatpush1.bf16.msra.mxu1 %v7101_v2 }
 0x96e   :  { %1583 = vmatprep.subr.bf16.mxu0 %v7107_v45  ;;  %1624 = vmatprep.subr.bf16.mxu1 %v7113_v48 }
 0x971   :  { %1584 = vmatpush1.bf16.msra.mxu0 %v7119_v52  ;;  %1625 = vmatpush1.bf16.msra.mxu1 %v7125_v8 }
 0x972   :  { %1585 = vmatprep.subr.bf16.mxu0 %v7131_v9  ;;  %1626 = vmatprep.subr.bf16.mxu1 %v7137_v10 }
 0x975   :  { %1586 = vmatpush1.bf16.msra.mxu0 %v7143_v11  ;;  %1627 = vmatpush1.bf16.msra.mxu1 %v7149_v12 }
 0x976   :  { %1587 = vmatprep.subr.bf16.mxu0 %v7155_v13  ;;  %1628 = vmatprep.subr.bf16.mxu1 %v7161_v14 }
 0x979   :  { %1588 = vmatpush1.bf16.msra.mxu0 %v7167_v15  ;;  %1629 = vmatpush1.bf16.msra.mxu1 %v7173_v16 }
 0x97a   :  { %1589 = vmatprep.subr.bf16.mxu0 %v7179_v17  ;;  %1630 = vmatprep.subr.bf16.mxu1 %v7185_v18 }
 0x97d   :  { %1590 = vmatpush1.bf16.msra.mxu0 %v7191_v19  ;;  %1631 = vmatpush1.bf16.msra.mxu1 %v7197_v20 }
 0x97e   :  { %1591 = vmatprep.subr.bf16.mxu0 %v7203_v21  ;;  %1632 = vmatprep.subr.bf16.mxu1 %v7209_v22 }
 0x981   :  { %1592 = vmatpush1.bf16.msra.mxu0 %v7215_v23  ;;  %1633 = vmatpush1.bf16.msra.mxu1 %v7221_v24 }
 0x982   :  { %1593 = vmatprep.subr.bf16.mxu0 %v7227_v25  ;;  %1634 = vmatprep.subr.bf16.mxu1 %v7233_v26 }
 0x985   :  { %1594 = vmatpush1.bf16.msra.mxu0 %v7239_v28  ;;  %1635 = vmatpush1.bf16.msra.mxu1 %v7245_v30 }
 0x986   :  { %1708 = vmatprep.subr.bf16.mxu0 %v7060_v6  ;;  %1749 = vmatprep.subr.bf16.mxu1 %v7066_v7 }
 0xa3b   :  { %v1483_v36 = vpop.f32.mrb[36].mxu0  ;;  %v1524_v0 = vpop.f32.mrb[36].mxu1 }
 0xa3c   :  { %v1535_v1 = vrot.slane %v1483_v36, 7  ;;  %v1485_v34 = vpop.f32.mrb[37].mxu0  ;;  %v1526_v3 = vpop.f32.mrb[37].mxu1  ;;  %v1537_v7 = vrot.slane %v1524_v0, 7 }
 0xa3d   :  { %v1536_v54 = vrot.slane %v1485_v34, 7  ;;  %v1487_v32 = vpop.f32.mrb[38].mxu0  ;;  %v1528_v46 = vpop.f32.mrb[38].mxu1  ;;  %v1538_v56 = vrot.slane %v1526_v3, 7 }
 0xa3e   :  { %v1543_v55 = vadd.f32 %v1535_v1, %v6888_v59  ;;  %v1488_v51 = vpop.f32.mrb[39].mxu0  ;;  %v1529_v27 = vpop.f32.mrb[39].mxu1  ;;  %v1545_v40 = vadd.f32 %v1537_v7, %v6892_v61  ;;  %v1567_v1 = vrot.slane %v7439_v29, 7 }
 0xa3f   :  { %v1544_v49 = vadd.f32 %v1536_v54, %v6890_v60  ;;  %v1546_v6 = vadd.f32 %v1538_v56, %v6894_v62  ;;  %v3388_v51 = vrot.slane %v6960_v57, 1  ;;  %v7501_v57 = vld [vmem:[%s11071_s4 + $0x8] ss:$16 sps:$4 sm:$0xff]   ;;  %v7507_v56 = vld [vmem:[%s11071_s4 + $0x24] ss:$16 sps:$4 sm:$0xff]  }
 0xa40   :  { %v5151_v31 = vmul.f32 -1.442695, %v1543_v55 }
 0xa41   :  { %v5152_v5 = vmul.f32 -1.442695, %v1544_v49  ;;  %v5153_v42 = vmul.f32 -1.442695, %v1546_v6 }
 0xa42   :  { %5786 = vpow2.f32 %v5151_v31 }
 0xa43   :  { %5788 = vpow2.f32 %v5152_v5  ;;  %v7495_v5 = vld [vmem:[%s11071_s4] ss:$16 sps:$4 sm:$0xff]  }
 0xa44   :  { %5790 = vpow2.f32 %v5153_v42 }
 0xa45   :  { %5792 = vtanh.f32 %v1545_v40 }
 0xa4c   :  { %v5787_v43 = vpop.eup %5786 }
 0xa4d   :  { %v5789_v41 = vpop.eup %5788  ;;  %v1550_v33 = vadd.f32 1.0, %v5787_v43 }
 0xa4e   :  { %v1556_v47 = vadd.f32 1.0, %v5789_v41  ;;  %v5791_v35 = vpop.eup %5790 }
 0xa4f   :  { %5794 = vrcp.f32 %v1550_v33  ;;  %v5793_v63 = vpop.eup %5792  ;;  %v1563_v54 = vadd.f32 1.0, %v5791_v35 }
 0xa50   :  { %5796 = vrcp.f32 %v1556_v47 }
 0xa51   :  { %5798 = vrcp.f32 %v1563_v54 }
 0xa59   :  { %v5795_v36 = vpop.eup %5794 }
 0xa5a   :  { %v5797_v34 = vpop.eup %5796  ;;  %v1570_v3 = vmul.f32 %v5795_v36, %v5793_v63  ;;  %v3607_v36 = vrot.slane %v7006_v44, 2  ;;  %v7577_v44 = vld [vmem:[%s11071_s4 + $0x20] ss:$16 sps:$4 sm:$0xff]  }
 0xa5b   :  { %v1569_v0 = vmul.f32 %v5797_v34, %v1567_v1  ;;  %v5799_v46 = vpop.eup %5798 }
 0xa5d   :  { %v7485_v32 = vadd.f32 %v1570_v3, %v1569_v0  ;;  %v7569_v0 = vld [vmem:[%s11071_s4 + $0x2c] ss:$16 sps:$4 sm:$0xff]  }
 0xa5f   :  { %5800 = vtanh.f32 %v7485_v32  ;;  %v1697_v7 = vrot.slane %v7485_v32, 7  ;;  %v7583_v32 = vld [vmem:[%s11071_s4 + $0x28] ss:$16 sps:$4 sm:$0xff]  }
 0xa69   :  { %v5801_v55 = vpop.eup %5800 }
 0xa6a   :  { %v1573_v27 = vmul.f32 %v5801_v55, %v5799_v46  ;;  %v7589_v46 = vld [vmem:[%s11071_s4 + $0x44] ss:$16 sps:$4 sm:$0xff]   ;;  %v7595_v55 = vld [vmem:[%s11071_s4 + $0x4c] ss:$16 sps:$4 sm:$0xff]  }
 0xa6c   :  { %v1574_v49 = vpack.c.bf16 %v1573_v27, %v1573_v27  ;;  %v7490_v31 = vsel %vm2358_vm0, %v3388_v51, %v1573_v27  ;;  %v7601_v51 = vld [vmem:[%s11071_s4 + $0x40] ss:$16 sps:$4 sm:$0xff]   ;;  %v7607_v27 = vld [vmem:[%s11071_s4 + $0x48] ss:$16 sps:$4 sm:$0xff]  }
 0xa6d   :  { %11652 = vst [vmem:[#allocation16_spill] sm:$0xff] %v7490_v31  ;;  %v8219_v31 = vld [vmem:[%s11073_s6 + $0x1c4] ss:$16 sps:$4 sm:$0xff]  }
 0xa6e   :  { %v1576_v29 = vshrl.u32 %v1574_v49, 16  ;;  %v7613_v49 = vld [vmem:[%s11071_s4 + $0x64] ss:$16 sps:$4 sm:$0xff]   ;;  %11674 = vst [vmem:[#allocation34_spill] sm:$0xff] %v8219_v31 }
 0xa70   :  { %1612 = vmatmul.mubr.bf16.vlgmr.msra.gmra.mrb[40].mxu0 %v1576_v29  ;;  %1653 = vmatmul.mubr.bf16.vlgmr.msra.gmra.mrb[40].mxu1 %v1576_v29  ;;  %v7619_v29 = vld [vmem:[%s11071_s4 + $0x6c] ss:$16 sps:$4 sm:$0xff]  }
 0xa71   :  { %1709 = vmatpush1.bf16.msra.mxu0 %v7495_v5  ;;  %1750 = vmatpush1.bf16.msra.mxu1 %v7501_v57 }
 0xa72   :  { %1710 = vmatprep.subr.bf16.mxu0 %v7507_v56  ;;  %1751 = vmatprep.subr.bf16.mxu1 %v7087_v4  ;;  %v7542_v4 = vld [vmem:[%s11071_s4 + $0x4] ss:$16 sps:$4 sm:$0xff]  }
 0xa73   :  { %1740 = vmatprep.mubr.bf16.mxu0 %v11649_v50  ;;  %1781 = vmatprep.mubr.bf16.mxu1 %v11649_v50 }
 0xa75   :  { %1711 = vmatpush1.bf16.msra.mxu0 %v7095_v53  ;;  %1752 = vmatpush1.bf16.msra.mxu1 %v7101_v2  ;;  %v7548_v53 = vld [vmem:[%s11071_s4 + $0xc] ss:$16 sps:$4 sm:$0xff]  }
 0xa76   :  { %1712 = vmatprep.subr.bf16.mxu0 %v7107_v45  ;;  %1753 = vmatprep.subr.bf16.mxu1 %v7113_v48 }
 0xa79   :  { %1713 = vmatpush1.bf16.msra.mxu0 %v7119_v52  ;;  %1754 = vmatpush1.bf16.msra.mxu1 %v7125_v8 }
 0xa7a   :  { %1714 = vmatprep.subr.bf16.mxu0 %v7131_v9  ;;  %1755 = vmatprep.subr.bf16.mxu1 %v7137_v10 }
 0xa7d   :  { %1715 = vmatpush1.bf16.msra.mxu0 %v7143_v11  ;;  %1756 = vmatpush1.bf16.msra.mxu1 %v7149_v12 }
 0xa7e   :  { %1716 = vmatprep.subr.bf16.mxu0 %v7155_v13  ;;  %1757 = vmatprep.subr.bf16.mxu1 %v7161_v14 }
 0xa81   :  { %1717 = vmatpush1.bf16.msra.mxu0 %v7167_v15  ;;  %1758 = vmatpush1.bf16.msra.mxu1 %v7173_v16 }
 0xa82   :  { %1718 = vmatprep.subr.bf16.mxu0 %v7179_v17  ;;  %1759 = vmatprep.subr.bf16.mxu1 %v7185_v18 }
 0xa85   :  { %1719 = vmatpush1.bf16.msra.mxu0 %v7191_v19  ;;  %1760 = vmatpush1.bf16.msra.mxu1 %v7197_v20 }
 0xa86   :  { %1720 = vmatprep.subr.bf16.mxu0 %v7203_v21  ;;  %1761 = vmatprep.subr.bf16.mxu1 %v7209_v22 }
 0xa89   :  { %1721 = vmatpush1.bf16.msra.mxu0 %v7215_v23  ;;  %1762 = vmatpush1.bf16.msra.mxu1 %v7221_v24 }
 0xa8a   :  { %1722 = vmatprep.subr.bf16.mxu0 %v7227_v25  ;;  %1763 = vmatprep.subr.bf16.mxu1 %v7233_v26 }
 0xa8d   :  { %1723 = vmatpush1.bf16.msra.mxu0 %v7239_v28  ;;  %1764 = vmatpush1.bf16.msra.mxu1 %v7245_v30 }
 0xa8e   :  { %1839 = vmatprep.subr.bf16.mxu0 %v7542_v4  ;;  %1880 = vmatprep.subr.bf16.mxu1 %v7548_v53 }
 0xb43   :  { %v1613_v2 = vpop.f32.mrb[40].mxu0  ;;  %v1654_v45 = vpop.f32.mrb[40].mxu1 }
 0xb44   :  { %v1665_v48 = vrot.slane %v1613_v2, 6  ;;  %v1615_v52 = vpop.f32.mrb[41].mxu0  ;;  %v1656_v8 = vpop.f32.mrb[41].mxu1  ;;  %v1667_v20 = vrot.slane %v1654_v45, 6  ;;  %v7625_v2 = vld [vmem:[%s11071_s4 + $0x60] ss:$16 sps:$4 sm:$0xff]  }
 0xb45   :  { %v1666_v9 = vrot.slane %v1615_v52, 6  ;;  %v1617_v10 = vpop.f32.mrb[42].mxu0  ;;  %v1658_v11 = vpop.f32.mrb[42].mxu1  ;;  %v1668_v18 = vrot.slane %v1656_v8, 6  ;;  %v7631_v45 = vld [vmem:[%s11071_s4 + $0x68] ss:$16 sps:$4 sm:$0xff]  }
 0xb46   :  { %v1673_v12 = vadd.f32 %v1665_v48, %v6888_v59  ;;  %v1618_v13 = vpop.f32.mrb[43].mxu0  ;;  %v1659_v14 = vpop.f32.mrb[43].mxu1  ;;  %v1675_v22 = vadd.f32 %v1667_v20, %v6892_v61  ;;  %v7637_v48 = vld [vmem:[%s11071_s4 + $0x84] ss:$16 sps:$4 sm:$0xff]   ;;  %v7643_v52 = vld [vmem:[%s11071_s4 + $0x8c] ss:$16 sps:$4 sm:$0xff]  }
 0xb47   :  { %v1674_v15 = vadd.f32 %v1666_v9, %v6890_v60  ;;  %v1676_v19 = vadd.f32 %v1668_v18, %v6894_v62  ;;  %v7649_v8 = vld [vmem:[%s11071_s4 + $0x80] ss:$16 sps:$4 sm:$0xff]   ;;  %v7655_v9 = vld [vmem:[%s11071_s4 + $0x88] ss:$16 sps:$4 sm:$0xff]   ;;  %v7661_v10 = vld [vmem:[%s11071_s4 + $0xa4] ss:$16 sps:$4 sm:$0xff]  }
 0xb48   :  { %v5154_v16 = vmul.f32 -1.442695, %v1673_v12  ;;  %v7667_v11 = vld [vmem:[%s11071_s4 + $0xac] ss:$16 sps:$4 sm:$0xff]   ;;  %v7673_v12 = vld [vmem:[%s11071_s4 + $0xa0] ss:$16 sps:$4 sm:$0xff]  }
 0xb49   :  { %v5155_v17 = vmul.f32 -1.442695, %v1674_v15  ;;  %v5156_v21 = vmul.f32 -1.442695, %v1676_v19  ;;  %v7679_v13 = vld [vmem:[%s11071_s4 + $0xa8] ss:$16 sps:$4 sm:$0xff]  }
 0xb4a   :  { %5802 = vpow2.f32 %v5154_v16  ;;  %v7685_v14 = vld [vmem:[%s11071_s4 + $0xc4] ss:$16 sps:$4 sm:$0xff]   ;;  %v7691_v15 = vld [vmem:[%s11071_s4 + $0xcc] ss:$16 sps:$4 sm:$0xff]   ;;  %v7697_v16 = vld [vmem:[%s11071_s4 + $0xc0] ss:$16 sps:$4 sm:$0xff]  }
 0xb4b   :  { %5804 = vpow2.f32 %v5155_v17  ;;  %v7703_v17 = vld [vmem:[%s11071_s4 + $0xc8] ss:$16 sps:$4 sm:$0xff]   ;;  %v7709_v18 = vld [vmem:[%s11071_s4 + $0xe4] ss:$16 sps:$4 sm:$0xff]   ;;  %v7715_v19 = vld [vmem:[%s11071_s4 + $0xec] ss:$16 sps:$4 sm:$0xff]  }
 0xb4c   :  { %5806 = vpow2.f32 %v5156_v21  ;;  %v7721_v20 = vld [vmem:[%s11071_s4 + $0xe0] ss:$16 sps:$4 sm:$0xff]   ;;  %v7727_v21 = vld [vmem:[%s11071_s4 + $0xe8] ss:$16 sps:$4 sm:$0xff]  }
 0xb4d   :  { %5808 = vtanh.f32 %v1675_v22 }
 0xb54   :  { %v5803_v23 = vpop.eup %5802 }
 0xb55   :  { %v5805_v24 = vpop.eup %5804  ;;  %v1680_v25 = vadd.f32 1.0, %v5803_v23 }
 0xb56   :  { %v1686_v26 = vadd.f32 1.0, %v5805_v24  ;;  %v5807_v28 = vpop.eup %5806 }
 0xb57   :  { %5810 = vrcp.f32 %v1680_v25  ;;  %v5809_v30 = vpop.eup %5808  ;;  %v1693_v43 = vadd.f32 1.0, %v5807_v28 }
 0xb58   :  { %5812 = vrcp.f32 %v1686_v26 }
 0xb59   :  { %5814 = vrcp.f32 %v1693_v43 }
 0xb61   :  { %v5811_v6 = vpop.eup %5810 }
 0xb62   :  { %v5813_v42 = vpop.eup %5812  ;;  %v1700_v40 = vmul.f32 %v5811_v6, %v5809_v30 }
 0xb63   :  { %v1699_v41 = vmul.f32 %v5813_v42, %v1697_v7  ;;  %v5815_v47 = vpop.eup %5814 }
 0xb65   :  { %v7556_v33 = vadd.f32 %v1700_v40, %v1699_v41 }
 0xb67   :  { %5816 = vtanh.f32 %v7556_v33 }
 0xb71   :  { %v5817_v35 = vpop.eup %5816 }
 0xb72   :  { %v1703_v63 = vmul.f32 %v5817_v35, %v5815_v47 }
 0xb74   :  { %v1704_v1 = vpack.c.bf16 %v1703_v63, %v1703_v63  ;;  %v3610_v34 = vrot.slane %v1703_v63, 1 }
 0xb76   :  { %v1706_v3 = vrot.slane %v1704_v1, 1  ;;  %v7561_v54 = vsel %vm2358_vm0, %v3607_v36, %v3610_v34 }
 0xb77   :  { %11653 = vst [vmem:[#allocation17_spill] sm:$0xff] %v7561_v54  ;;  %v8212_v54 = vld [vmem:[%s11073_s6 + $0x1a8] ss:$16 sps:$4 sm:$0xff]  }
 0xb78   :  { %1741 = vmatmul.mubr.bf16.vlgmr.msra.gmra.mrb[44].mxu0 %v1706_v3  ;;  %1782 = vmatmul.mubr.bf16.vlgmr.msra.gmra.mrb[44].mxu1 %v1706_v3  ;;  %11673 = vst [vmem:[#allocation33_spill] sm:$0xff] %v8212_v54 }
 0xb79   :  { %1840 = vmatpush1.bf16.msra.mxu0 %v7495_v5  ;;  %1881 = vmatpush1.bf16.msra.mxu1 %v7501_v57 }
 0xb7a   :  { %1841 = vmatprep.subr.bf16.mxu0 %v7507_v56  ;;  %1882 = vmatprep.subr.bf16.mxu1 %v7569_v0 }
 0xb7b   :  { %1871 = vmatprep.mubr.bf16.mxu0 %v11649_v50  ;;  %1912 = vmatprep.mubr.bf16.mxu1 %v11649_v50 }
 0xb7d   :  { %1842 = vmatpush1.bf16.msra.mxu0 %v7577_v44  ;;  %1883 = vmatpush1.bf16.msra.mxu1 %v7583_v32 }
 0xb7e   :  { %1843 = vmatprep.subr.bf16.mxu0 %v7589_v46  ;;  %1884 = vmatprep.subr.bf16.mxu1 %v7595_v55 }
 0xb81   :  { %1844 = vmatpush1.bf16.msra.mxu0 %v7601_v51  ;;  %1885 = vmatpush1.bf16.msra.mxu1 %v7607_v27 }
 0xb82   :  { %1845 = vmatprep.subr.bf16.mxu0 %v7613_v49  ;;  %1886 = vmatprep.subr.bf16.mxu1 %v7619_v29 }
 0xb85   :  { %1846 = vmatpush1.bf16.msra.mxu0 %v7625_v2  ;;  %1887 = vmatpush1.bf16.msra.mxu1 %v7631_v45 }
 0xb86   :  { %1847 = vmatprep.subr.bf16.mxu0 %v7637_v48  ;;  %1888 = vmatprep.subr.bf16.mxu1 %v7643_v52 }
 0xb89   :  { %1848 = vmatpush1.bf16.msra.mxu0 %v7649_v8  ;;  %1889 = vmatpush1.bf16.msra.mxu1 %v7655_v9 }
 0xb8a   :  { %1849 = vmatprep.subr.bf16.mxu0 %v7661_v10  ;;  %1890 = vmatprep.subr.bf16.mxu1 %v7667_v11 }
 0xb8d   :  { %1850 = vmatpush1.bf16.msra.mxu0 %v7673_v12  ;;  %1891 = vmatpush1.bf16.msra.mxu1 %v7679_v13 }
 0xb8e   :  { %1851 = vmatprep.subr.bf16.mxu0 %v7685_v14  ;;  %1892 = vmatprep.subr.bf16.mxu1 %v7691_v15 }
 0xb91   :  { %1852 = vmatpush1.bf16.msra.mxu0 %v7697_v16  ;;  %1893 = vmatpush1.bf16.msra.mxu1 %v7703_v17 }
 0xb92   :  { %1853 = vmatprep.subr.bf16.mxu0 %v7709_v18  ;;  %1894 = vmatprep.subr.bf16.mxu1 %v7715_v19 }
 0xb95   :  { %1854 = vmatpush1.bf16.msra.mxu0 %v7721_v20  ;;  %1895 = vmatpush1.bf16.msra.mxu1 %v7727_v21 }
 0xb96   :  { %1968 = vmatprep.subr.bf16.mxu0 %v7542_v4  ;;  %2009 = vmatprep.subr.bf16.mxu1 %v7548_v53 }
 0xc4b   :  { %v1742_v22 = vpop.f32.mrb[44].mxu0  ;;  %v1783_v23 = vpop.f32.mrb[44].mxu1 }
 0xc4c   :  { %v1794_v24 = vrot.slane %v1742_v22, 5  ;;  %v1744_v25 = vpop.f32.mrb[45].mxu0  ;;  %v1785_v26 = vpop.f32.mrb[45].mxu1  ;;  %v1796_v36 = vrot.slane %v1783_v23, 5 }
 0xc4d   :  { %v1795_v28 = vrot.slane %v1744_v25, 5  ;;  %v1746_v30 = vpop.f32.mrb[46].mxu0  ;;  %v1787_v6 = vpop.f32.mrb[46].mxu1  ;;  %v1797_v35 = vrot.slane %v1785_v26, 5  ;;  %v1826_v26 = vrot.slane %v7556_v33, 7 }
 0xc4e   :  { %v1802_v7 = vadd.f32 %v1794_v24, %v6888_v59  ;;  %v1747_v42 = vpop.f32.mrb[47].mxu0  ;;  %v1788_v40 = vpop.f32.mrb[47].mxu1  ;;  %v1804_v34 = vadd.f32 %v1796_v36, %v6892_v61  ;;  %v3829_v36 = vrot.slane %v7077_v37, 3 }
 0xc4f   :  { %v1803_v43 = vadd.f32 %v1795_v28, %v6890_v60  ;;  %v1805_v63 = vadd.f32 %v1797_v35, %v6894_v62 }
 0xc50   :  { %v5157_v41 = vmul.f32 -1.442695, %v1802_v7 }
 0xc51   :  { %v5158_v47 = vmul.f32 -1.442695, %v1803_v43  ;;  %v5159_v1 = vmul.f32 -1.442695, %v1805_v63 }
 0xc52   :  { %5818 = vpow2.f32 %v5157_v41 }
 0xc53   :  { %5820 = vpow2.f32 %v5158_v47 }
 0xc54   :  { %5822 = vpow2.f32 %v5159_v1 }
 0xc55   :  { %5824 = vtanh.f32 %v1804_v34 }
 0xc5c   :  { %v5819_v3 = vpop.eup %5818 }
 0xc5d   :  { %v5821_v22 = vpop.eup %5820  ;;  %v1809_v25 = vadd.f32 1.0, %v5819_v3 }
 0xc5e   :  { %v1815_v24 = vadd.f32 1.0, %v5821_v22  ;;  %v5823_v28 = vpop.eup %5822 }
 0xc5f   :  { %5826 = vrcp.f32 %v1809_v25  ;;  %v5825_v30 = vpop.eup %5824  ;;  %v1822_v40 = vadd.f32 1.0, %v5823_v28 }
 0xc60   :  { %5828 = vrcp.f32 %v1815_v24 }
 0xc61   :  { %5830 = vrcp.f32 %v1822_v40 }
 0xc69   :  { %v5827_v6 = vpop.eup %5826 }
 0xc6a   :  { %v5829_v7 = vpop.eup %5828  ;;  %v1829_v42 = vmul.f32 %v5827_v6, %v5825_v30 }
 0xc6b   :  { %v1828_v23 = vmul.f32 %v5829_v7, %v1826_v26  ;;  %v5831_v41 = vpop.eup %5830 }
 0xc6d   :  { %v7737_v43 = vadd.f32 %v1829_v42, %v1828_v23 }
 0xc6f   :  { %5832 = vtanh.f32 %v7737_v43 }
 0xc79   :  { %v5833_v47 = vpop.eup %5832 }
 0xc7a   :  { %v1832_v35 = vmul.f32 %v5833_v47, %v5831_v41 }
 0xc7c   :  { %v1833_v63 = vpack.c.bf16 %v1832_v35, %v1832_v35  ;;  %v3832_v1 = vrot.slane %v1832_v35, 2 }
 0xc7e   :  { %v1835_v34 = vshrl.u32 %v1833_v63, 16  ;;  %v7742_v3 = vsel %vm2358_vm0, %v3829_v36, %v3832_v1 }
 0xc7f   :  { %11654 = vst [vmem:[#allocation18_spill] sm:$0xff] %v7742_v3  ;;  %v8207_v3 = vld [vmem:[%s11073_s6 + $0x1a0] ss:$16 sps:$4 sm:$0xff]  }
 0xc80   :  { %v1837_v33 = vrot.slane %v1835_v34, 1  ;;  %11672 = vst [vmem:[#allocation32_spill] sm:$0xff] %v8207_v3 }
 0xc82   :  { %1872 = vmatmul.mubr.bf16.vlgmr.msra.gmra.mrb[48].mxu0 %v1837_v33  ;;  %1913 = vmatmul.mubr.bf16.vlgmr.msra.gmra.mrb[48].mxu1 %v1837_v33 }
 0xc83   :  { %1969 = vmatpush1.bf16.msra.mxu0 %v7495_v5  ;;  %2010 = vmatpush1.bf16.msra.mxu1 %v7501_v57 }
 0xc84   :  { %1970 = vmatprep.subr.bf16.mxu0 %v7507_v56  ;;  %2011 = vmatprep.subr.bf16.mxu1 %v7569_v0 }
 0xc85   :  { %2000 = vmatprep.mubr.bf16.mxu0 %v11649_v50  ;;  %2041 = vmatprep.mubr.bf16.mxu1 %v11649_v50 }
 0xc87   :  { %1971 = vmatpush1.bf16.msra.mxu0 %v7577_v44  ;;  %2012 = vmatpush1.bf16.msra.mxu1 %v7583_v32 }
 0xc88   :  { %1972 = vmatprep.subr.bf16.mxu0 %v7589_v46  ;;  %2013 = vmatprep.subr.bf16.mxu1 %v7595_v55 }
 0xc8b   :  { %1973 = vmatpush1.bf16.msra.mxu0 %v7601_v51  ;;  %2014 = vmatpush1.bf16.msra.mxu1 %v7607_v27 }
 0xc8c   :  { %1974 = vmatprep.subr.bf16.mxu0 %v7613_v49  ;;  %2015 = vmatprep.subr.bf16.mxu1 %v7619_v29 }
 0xc8f   :  { %1975 = vmatpush1.bf16.msra.mxu0 %v7625_v2  ;;  %2016 = vmatpush1.bf16.msra.mxu1 %v7631_v45 }
 0xc90   :  { %1976 = vmatprep.subr.bf16.mxu0 %v7637_v48  ;;  %2017 = vmatprep.subr.bf16.mxu1 %v7643_v52 }
 0xc93   :  { %1977 = vmatpush1.bf16.msra.mxu0 %v7649_v8  ;;  %2018 = vmatpush1.bf16.msra.mxu1 %v7655_v9 }
 0xc94   :  { %1978 = vmatprep.subr.bf16.mxu0 %v7661_v10  ;;  %2019 = vmatprep.subr.bf16.mxu1 %v7667_v11 }
 0xc97   :  { %1979 = vmatpush1.bf16.msra.mxu0 %v7673_v12  ;;  %2020 = vmatpush1.bf16.msra.mxu1 %v7679_v13 }
 0xc98   :  { %1980 = vmatprep.subr.bf16.mxu0 %v7685_v14  ;;  %2021 = vmatprep.subr.bf16.mxu1 %v7691_v15 }
 0xc9b   :  { %1981 = vmatpush1.bf16.msra.mxu0 %v7697_v16  ;;  %2022 = vmatpush1.bf16.msra.mxu1 %v7703_v17 }
 0xc9c   :  { %1982 = vmatprep.subr.bf16.mxu0 %v7709_v18  ;;  %2023 = vmatprep.subr.bf16.mxu1 %v7715_v19 }
 0xc9f   :  { %1983 = vmatpush1.bf16.msra.mxu0 %v7721_v20  ;;  %2024 = vmatpush1.bf16.msra.mxu1 %v7727_v21 }
 0xca0   :  { %2099 = vmatprep.subr.bf16.mxu0 %v7542_v4  ;;  %2140 = vmatprep.subr.bf16.mxu1 %v7548_v53 }
 0xd55   :  { %v1873_v37 = vpop.f32.mrb[48].mxu0  ;;  %v1914_v22 = vpop.f32.mrb[48].mxu1 }
 0xd56   :  { %v1925_v25 = vrot.slane %v1873_v37, 4  ;;  %v1875_v24 = vpop.f32.mrb[49].mxu0  ;;  %v1916_v28 = vpop.f32.mrb[49].mxu1  ;;  %v1927_v36 = vrot.slane %v1914_v22, 4 }
 0xd57   :  { %v1926_v30 = vrot.slane %v1875_v24, 4  ;;  %v1877_v6 = vpop.f32.mrb[50].mxu0  ;;  %v1918_v26 = vpop.f32.mrb[50].mxu1  ;;  %v1928_v35 = vrot.slane %v1916_v28, 4  ;;  %v1957_v28 = vrot.slane %v7737_v43, 7 }
 0xd58   :  { %v1933_v7 = vadd.f32 %v1925_v25, %v6888_v59  ;;  %v1878_v42 = vpop.f32.mrb[51].mxu0  ;;  %v1919_v40 = vpop.f32.mrb[51].mxu1  ;;  %v1935_v34 = vadd.f32 %v1927_v36, %v6892_v61 }
 0xd59   :  { %v1934_v23 = vadd.f32 %v1926_v30, %v6890_v60  ;;  %v1936_v63 = vadd.f32 %v1928_v35, %v6894_v62 }
 0xd5a   :  { %v5160_v41 = vmul.f32 -1.442695, %v1933_v7 }
 0xd5b   :  { %v5161_v47 = vmul.f32 -1.442695, %v1934_v23  ;;  %v5162_v1 = vmul.f32 -1.442695, %v1936_v63  ;;  %v4051_v63 = vrot.slane %v7258_v39, 4 }
 0xd5c   :  { %5834 = vpow2.f32 %v5160_v41 }
 0xd5d   :  { %5836 = vpow2.f32 %v5161_v47 }
 0xd5e   :  { %5838 = vpow2.f32 %v5162_v1 }
 0xd5f   :  { %5840 = vtanh.f32 %v1935_v34 }
 0xd66   :  { %v5835_v33 = vpop.eup %5834 }
 0xd67   :  { %v5837_v37 = vpop.eup %5836  ;;  %v1940_v24 = vadd.f32 1.0, %v5835_v33 }
 0xd68   :  { %v1946_v25 = vadd.f32 1.0, %v5837_v37  ;;  %v5839_v30 = vpop.eup %5838 }
 0xd69   :  { %5842 = vrcp.f32 %v1940_v24  ;;  %v5841_v6 = vpop.eup %5840  ;;  %v1953_v40 = vadd.f32 1.0, %v5839_v30 }
 0xd6a   :  { %5844 = vrcp.f32 %v1946_v25 }
 0xd6b   :  { %5846 = vrcp.f32 %v1953_v40 }
 0xd73   :  { %v5843_v26 = vpop.eup %5842 }
 0xd74   :  { %v5845_v7 = vpop.eup %5844  ;;  %v1960_v42 = vmul.f32 %v5843_v26, %v5841_v6 }
 0xd75   :  { %v1959_v22 = vmul.f32 %v5845_v7, %v1957_v28  ;;  %v5847_v41 = vpop.eup %5846 }
 0xd77   :  { %v7783_v23 = vadd.f32 %v1960_v42, %v1959_v22 }
 0xd79   :  { %5848 = vtanh.f32 %v7783_v23 }
 0xd83   :  { %v5849_v47 = vpop.eup %5848 }
 0xd84   :  { %v1963_v35 = vmul.f32 %v5849_v47, %v5847_v41 }
 0xd86   :  { %v1964_v36 = vpack.c.bf16 %v1963_v35, %v1963_v35  ;;  %v4054_v1 = vrot.slane %v1963_v35, 3 }
 0xd88   :  { %v1966_v34 = vrot.slane %v1964_v36, 2  ;;  %v7788_v33 = vsel %vm2358_vm0, %v4051_v63, %v4054_v1 }
 0xd89   :  { %11655 = vst [vmem:[#allocation19_spill] sm:$0xff] %v7788_v33  ;;  %v8200_v33 = vld [vmem:[%s11073_s6 + $0x1ac] ss:$16 sps:$4 sm:$0xff]  }
 0xd8a   :  { %2001 = vmatmul.mubr.bf16.vlgmr.msra.gmra.mrb[52].mxu0 %v1966_v34  ;;  %2042 = vmatmul.mubr.bf16.vlgmr.msra.gmra.mrb[52].mxu1 %v1966_v34  ;;  %11671 = vst [vmem:[#allocation31_spill] sm:$0xff] %v8200_v33 }
 0xd8b   :  { %2100 = vmatpush1.bf16.msra.mxu0 %v7495_v5  ;;  %2141 = vmatpush1.bf16.msra.mxu1 %v7501_v57 }
 0xd8c   :  { %2101 = vmatprep.subr.bf16.mxu0 %v7507_v56  ;;  %2142 = vmatprep.subr.bf16.mxu1 %v7569_v0 }
 0xd8d   :  { %2131 = vmatprep.mubr.bf16.mxu0 %v11649_v50  ;;  %2172 = vmatprep.mubr.bf16.mxu1 %v11649_v50 }
 0xd8f   :  { %2102 = vmatpush1.bf16.msra.mxu0 %v7577_v44  ;;  %2143 = vmatpush1.bf16.msra.mxu1 %v7583_v32 }
 0xd90   :  { %2103 = vmatprep.subr.bf16.mxu0 %v7589_v46  ;;  %2144 = vmatprep.subr.bf16.mxu1 %v7595_v55 }
 0xd93   :  { %2104 = vmatpush1.bf16.msra.mxu0 %v7601_v51  ;;  %2145 = vmatpush1.bf16.msra.mxu1 %v7607_v27 }
 0xd94   :  { %2105 = vmatprep.subr.bf16.mxu0 %v7613_v49  ;;  %2146 = vmatprep.subr.bf16.mxu1 %v7619_v29 }
 0xd97   :  { %2106 = vmatpush1.bf16.msra.mxu0 %v7625_v2  ;;  %2147 = vmatpush1.bf16.msra.mxu1 %v7631_v45 }
 0xd98   :  { %2107 = vmatprep.subr.bf16.mxu0 %v7637_v48  ;;  %2148 = vmatprep.subr.bf16.mxu1 %v7643_v52 }
 0xd9b   :  { %2108 = vmatpush1.bf16.msra.mxu0 %v7649_v8  ;;  %2149 = vmatpush1.bf16.msra.mxu1 %v7655_v9 }
 0xd9c   :  { %2109 = vmatprep.subr.bf16.mxu0 %v7661_v10  ;;  %2150 = vmatprep.subr.bf16.mxu1 %v7667_v11 }
 0xd9f   :  { %2110 = vmatpush1.bf16.msra.mxu0 %v7673_v12  ;;  %2151 = vmatpush1.bf16.msra.mxu1 %v7679_v13 }
 0xda0   :  { %2111 = vmatprep.subr.bf16.mxu0 %v7685_v14  ;;  %2152 = vmatprep.subr.bf16.mxu1 %v7691_v15 }
 0xda3   :  { %2112 = vmatpush1.bf16.msra.mxu0 %v7697_v16  ;;  %2153 = vmatpush1.bf16.msra.mxu1 %v7703_v17 }
 0xda4   :  { %2113 = vmatprep.subr.bf16.mxu0 %v7709_v18  ;;  %2154 = vmatprep.subr.bf16.mxu1 %v7715_v19 }
 0xda7   :  { %2114 = vmatpush1.bf16.msra.mxu0 %v7721_v20  ;;  %2155 = vmatpush1.bf16.msra.mxu1 %v7727_v21 }
 0xda8   :  { %2228 = vmatprep.subr.bf16.mxu0 %v7542_v4  ;;  %2269 = vmatprep.subr.bf16.mxu1 %v7548_v53 }
 0xe5d   :  { %v2002_v39 = vpop.f32.mrb[52].mxu0  ;;  %v2043_v43 = vpop.f32.mrb[52].mxu1 }
 0xe5e   :  { %v2054_v37 = vrot.slane %v2002_v39, 3  ;;  %v2004_v24 = vpop.f32.mrb[53].mxu0  ;;  %v2045_v25 = vpop.f32.mrb[53].mxu1  ;;  %v2056_v53 = vrot.slane %v2043_v43, 3 }
 0xe5f   :  { %v2055_v30 = vrot.slane %v2004_v24, 3  ;;  %v2006_v6 = vpop.f32.mrb[54].mxu0  ;;  %v2047_v26 = vpop.f32.mrb[54].mxu1  ;;  %v2057_v47 = vrot.slane %v2045_v25, 3  ;;  %v2086_v25 = vrot.slane %v7783_v23, 7 }
 0xe60   :  { %v2062_v28 = vadd.f32 %v2054_v37, %v6888_v59  ;;  %v2007_v7 = vpop.f32.mrb[55].mxu0  ;;  %v2048_v42 = vpop.f32.mrb[55].mxu1  ;;  %v2064_v63 = vadd.f32 %v2056_v53, %v6892_v61 }
 0xe61   :  { %v2063_v40 = vadd.f32 %v2055_v30, %v6890_v60  ;;  %v2065_v4 = vadd.f32 %v2057_v47, %v6894_v62  ;;  %v11656_v47 = vld [vmem:[#allocation14_spill] sm:$0xff] }
 0xe62   :  { %v5163_v22 = vmul.f32 -1.442695, %v2062_v28 }
 0xe63   :  { %v5164_v41 = vmul.f32 -1.442695, %v2063_v40  ;;  %v5165_v35 = vmul.f32 -1.442695, %v2065_v4  ;;  %v4273_v4 = vrot.slane %v11656_v47, 5 }
 0xe64   :  { %5850 = vpow2.f32 %v5163_v22  ;;  %v7922_v47 = vld [vmem:[%s11073_s6 + $0x28] ss:$16 sps:$4 sm:$0xff]  }
 0xe65   :  { %5852 = vpow2.f32 %v5164_v41 }
 0xe66   :  { %5854 = vpow2.f32 %v5165_v35 }
 0xe67   :  { %5856 = vtanh.f32 %v2064_v63 }
 0xe6e   :  { %v5851_v36 = vpop.eup %5850 }
 0xe6f   :  { %v5853_v1 = vpop.eup %5852  ;;  %v2069_v34 = vadd.f32 1.0, %v5851_v36 }
 0xe70   :  { %v2075_v39 = vadd.f32 1.0, %v5853_v1  ;;  %v5855_v37 = vpop.eup %5854 }
 0xe71   :  { %5858 = vrcp.f32 %v2069_v34  ;;  %v5857_v24 = vpop.eup %5856  ;;  %v2082_v28 = vadd.f32 1.0, %v5855_v37 }
 0xe72   :  { %5860 = vrcp.f32 %v2075_v39 }
 0xe73   :  { %5862 = vrcp.f32 %v2082_v28  ;;  %v7892_v28 = vld [vmem:[%s11073_s6] ss:$16 sps:$4 sm:$0xff]  }
 0xe7b   :  { %v5859_v30 = vpop.eup %5858 }
 0xe7c   :  { %v5861_v6 = vpop.eup %5860  ;;  %v2089_v26 = vmul.f32 %v5859_v30, %v5857_v24  ;;  %v11658_v30 = vld [vmem:[#allocation15_spill] sm:$0xff] }
 0xe7d   :  { %v2088_v43 = vmul.f32 %v5861_v6, %v2086_v25  ;;  %v5863_v42 = vpop.eup %5862  ;;  %v4495_v25 = vrot.slane %v11658_v30, 6  ;;  %v8152_v30 = vld [vmem:[%s11073_s6 + $0x16c] ss:$16 sps:$4 sm:$0xff]  }
 0xe7e   :  { %11663 = vst [vmem:[#allocation23_spill] sm:$0xff] %v8152_v30 }
 0xe7f   :  { %v7829_v7 = vadd.f32 %v2089_v26, %v2088_v43  ;;  %v7897_v43 = vld [vmem:[%s11073_s6 + $0x8] ss:$16 sps:$4 sm:$0xff]  }
 0xe81   :  { %5864 = vtanh.f32 %v7829_v7 }
 0xe8b   :  { %v5865_v40 = vpop.eup %5864 }
 0xe8c   :  { %v2092_v22 = vmul.f32 %v5865_v40, %v5863_v42  ;;  %v7902_v42 = vld [vmem:[%s11073_s6 + $0x24] ss:$16 sps:$4 sm:$0xff]   ;;  %v7907_v40 = vld [vmem:[%s11073_s6 + $0x2c] ss:$16 sps:$4 sm:$0xff]  }
 0xe8e   :  { %v2093_v41 = vpack.c.bf16 %v2092_v22, %v2092_v22  ;;  %v4276_v53 = vrot.slane %v2092_v22, 4 }
 0xe90   :  { %v2095_v35 = vshrl.u32 %v2093_v41, 16  ;;  %v7834_v63 = vsel %vm2358_vm0, %v4273_v4, %v4276_v53  ;;  %v7917_v41 = vld [vmem:[%s11073_s6 + $0x20] ss:$16 sps:$4 sm:$0xff]   ;;  %v7929_v4 = vld [vmem:[%s11073_s6 + $0x44] ss:$16 sps:$4 sm:$0xff]  }
 0xe91   :  { %11657 = vst [vmem:[#allocation14_spill] sm:$0xff] %v7834_v63  ;;  %v7934_v53 = vld [vmem:[%s11073_s6 + $0x4c] ss:$16 sps:$4 sm:$0xff]   ;;  %v8195_v63 = vld [vmem:[%s11073_s6 + $0x1a4] ss:$16 sps:$4 sm:$0xff]  }
 0xe92   :  { %v2097_v23 = vrot.slane %v2095_v35, 2  ;;  %v11095_v35 = vmov 0.0|0.0   ;;  %11670 = vst [vmem:[#allocation30_spill] sm:$0xff] %v8195_v63 }
 0xe94   :  { %2132 = vmatmul.mubr.bf16.vlgmr.msra.gmra.mrb[56].mxu0 %v2097_v23  ;;  %2173 = vmatmul.mubr.bf16.vlgmr.msra.gmra.mrb[56].mxu1 %v2097_v23  ;;  %v7943_v23 = vld [vmem:[%s11073_s6 + $0x40] ss:$16 sps:$4 sm:$0xff]  }
 0xe95   :  { %2229 = vmatpush1.bf16.msra.mxu0 %v7495_v5  ;;  %2270 = vmatpush1.bf16.msra.mxu1 %v7501_v57  ;;  %v7876_v5 = vld [vmem:[%s11073_s6 + $0xc] ss:$16 sps:$4 sm:$0xff]  }
 0xe96   :  { %2230 = vmatprep.subr.bf16.mxu0 %v7507_v56  ;;  %2271 = vmatprep.subr.bf16.mxu1 %v7569_v0 }
 0xe97   :  { %2260 = vmatprep.mubr.bf16.mxu0 %v11649_v50  ;;  %2301 = vmatprep.mubr.bf16.mxu1 %v11649_v50  ;;  %v7871_v50 = vld [vmem:[%s11073_s6 + $0x4] ss:$16 sps:$4 sm:$0xff]  }
 0xe99   :  { %2231 = vmatpush1.bf16.msra.mxu0 %v7577_v44  ;;  %2272 = vmatpush1.bf16.msra.mxu1 %v7583_v32 }
 0xe9a   :  { %2232 = vmatprep.subr.bf16.mxu0 %v7589_v46  ;;  %2273 = vmatprep.subr.bf16.mxu1 %v7595_v55 }
 0xe9d   :  { %2233 = vmatpush1.bf16.msra.mxu0 %v7601_v51  ;;  %2274 = vmatpush1.bf16.msra.mxu1 %v7607_v27 }
 0xe9e   :  { %2234 = vmatprep.subr.bf16.mxu0 %v7613_v49  ;;  %2275 = vmatprep.subr.bf16.mxu1 %v7619_v29 }
 0xea1   :  { %2235 = vmatpush1.bf16.msra.mxu0 %v7625_v2  ;;  %2276 = vmatpush1.bf16.msra.mxu1 %v7631_v45 }
 0xea2   :  { %2236 = vmatprep.subr.bf16.mxu0 %v7637_v48  ;;  %2277 = vmatprep.subr.bf16.mxu1 %v7643_v52 }
 0xea5   :  { %2237 = vmatpush1.bf16.msra.mxu0 %v7649_v8  ;;  %2278 = vmatpush1.bf16.msra.mxu1 %v7655_v9 }
 0xea6   :  { %2238 = vmatprep.subr.bf16.mxu0 %v7661_v10  ;;  %2279 = vmatprep.subr.bf16.mxu1 %v7667_v11 }
 0xea9   :  { %2239 = vmatpush1.bf16.msra.mxu0 %v7673_v12  ;;  %2280 = vmatpush1.bf16.msra.mxu1 %v7679_v13 }
 0xeaa   :  { %2240 = vmatprep.subr.bf16.mxu0 %v7685_v14  ;;  %2281 = vmatprep.subr.bf16.mxu1 %v7691_v15 }
 0xead   :  { %2241 = vmatpush1.bf16.msra.mxu0 %v7697_v16  ;;  %2282 = vmatpush1.bf16.msra.mxu1 %v7703_v17 }
 0xeae   :  { %2242 = vmatprep.subr.bf16.mxu0 %v7709_v18  ;;  %2283 = vmatprep.subr.bf16.mxu1 %v7715_v19  ;;  %v2217_v19 = vrot.slane %v7829_v7, 7 }
 0xeb1   :  { %2243 = vmatpush1.bf16.msra.mxu0 %v7721_v20  ;;  %2284 = vmatpush1.bf16.msra.mxu1 %v7727_v21 }
 0xeb2   :  { %2768 = vmatprep.subr.bf16.mxu0 %v7871_v50  ;;  %2809 = vmatprep.subr.bf16.mxu1 %v7876_v5 }
 0xf67   :  { %v2133_v57 = vpop.f32.mrb[56].mxu0  ;;  %v2174_v56 = vpop.f32.mrb[56].mxu1 }
 0xf68   :  { %v2185_v0 = vrot.slane %v2133_v57, 2  ;;  %v2135_v44 = vpop.f32.mrb[57].mxu0  ;;  %v2176_v32 = vpop.f32.mrb[57].mxu1  ;;  %v2187_v9 = vrot.slane %v2174_v56, 2  ;;  %v7948_v57 = vld [vmem:[%s11073_s6 + $0x48] ss:$16 sps:$4 sm:$0xff]  }
 0xf69   :  { %v2186_v46 = vrot.slane %v2135_v44, 2  ;;  %v2137_v55 = vpop.f32.mrb[58].mxu0  ;;  %v2178_v51 = vpop.f32.mrb[58].mxu1  ;;  %v2188_v52 = vrot.slane %v2176_v32, 2  ;;  %v7955_v56 = vld [vmem:[%s11073_s6 + $0x64] ss:$16 sps:$4 sm:$0xff]  }
 0xf6a   :  { %v2193_v27 = vadd.f32 %v2185_v0, %v6888_v59  ;;  %v2138_v49 = vpop.f32.mrb[59].mxu0  ;;  %v2179_v29 = vpop.f32.mrb[59].mxu1  ;;  %v2195_v11 = vadd.f32 %v2187_v9, %v6892_v61  ;;  %v7960_v0 = vld [vmem:[%s11073_s6 + $0x6c] ss:$16 sps:$4 sm:$0xff]   ;;  %v7967_v44 = vld [vmem:[%s11073_s6 + $0x60] ss:$16 sps:$4 sm:$0xff]  }
 0xf6b   :  { %v2194_v2 = vadd.f32 %v2186_v46, %v6890_v60  ;;  %v2196_v8 = vadd.f32 %v2188_v52, %v6894_v62  ;;  %v7972_v32 = vld [vmem:[%s11073_s6 + $0x68] ss:$16 sps:$4 sm:$0xff]   ;;  %v7979_v46 = vld [vmem:[%s11073_s6 + $0x84] ss:$16 sps:$4 sm:$0xff]   ;;  %v7984_v55 = vld [vmem:[%s11073_s6 + $0x8c] ss:$16 sps:$4 sm:$0xff]  }
 0xf6c   :  { %v5166_v45 = vmul.f32 -1.442695, %v2193_v27  ;;  %v7991_v51 = vld [vmem:[%s11073_s6 + $0x80] ss:$16 sps:$4 sm:$0xff]   ;;  %v7996_v27 = vld [vmem:[%s11073_s6 + $0x88] ss:$16 sps:$4 sm:$0xff]  }
 0xf6d   :  { %v5167_v48 = vmul.f32 -1.442695, %v2194_v2  ;;  %v5168_v10 = vmul.f32 -1.442695, %v2196_v8  ;;  %v8003_v49 = vld [vmem:[%s11073_s6 + $0xa4] ss:$16 sps:$4 sm:$0xff]  }
 0xf6e   :  { %5866 = vpow2.f32 %v5166_v45  ;;  %v8008_v29 = vld [vmem:[%s11073_s6 + $0xac] ss:$16 sps:$4 sm:$0xff]   ;;  %v8015_v2 = vld [vmem:[%s11073_s6 + $0xa0] ss:$16 sps:$4 sm:$0xff]   ;;  %v8020_v45 = vld [vmem:[%s11073_s6 + $0xa8] ss:$16 sps:$4 sm:$0xff]  }
 0xf6f   :  { %5868 = vpow2.f32 %v5167_v48  ;;  %v8027_v48 = vld [vmem:[%s11073_s6 + $0xc4] ss:$16 sps:$4 sm:$0xff]   ;;  %v8032_v52 = vld [vmem:[%s11073_s6 + $0xcc] ss:$16 sps:$4 sm:$0xff]   ;;  %v8039_v8 = vld [vmem:[%s11073_s6 + $0xc0] ss:$16 sps:$4 sm:$0xff]  }
 0xf70   :  { %5870 = vpow2.f32 %v5168_v10  ;;  %v8044_v9 = vld [vmem:[%s11073_s6 + $0xc8] ss:$16 sps:$4 sm:$0xff]   ;;  %v8051_v10 = vld [vmem:[%s11073_s6 + $0xe4] ss:$16 sps:$4 sm:$0xff]  }
 0xf71   :  { %5872 = vtanh.f32 %v2195_v11  ;;  %v8056_v11 = vld [vmem:[%s11073_s6 + $0xec] ss:$16 sps:$4 sm:$0xff]  }
 0xf78   :  { %v5867_v12 = vpop.eup %5866 }
 0xf79   :  { %v5869_v13 = vpop.eup %5868  ;;  %v2200_v14 = vadd.f32 1.0, %v5867_v12  ;;  %v8063_v12 = vld [vmem:[%s11073_s6 + $0xe0] ss:$16 sps:$4 sm:$0xff]  }
 0xf7a   :  { %v2206_v15 = vadd.f32 1.0, %v5869_v13  ;;  %v5871_v16 = vpop.eup %5870  ;;  %v8068_v13 = vld [vmem:[%s11073_s6 + $0xe8] ss:$16 sps:$4 sm:$0xff]  }
 0xf7b   :  { %5874 = vrcp.f32 %v2200_v14  ;;  %v5873_v17 = vpop.eup %5872  ;;  %v2213_v36 = vadd.f32 1.0, %v5871_v16  ;;  %v8075_v14 = vld [vmem:[%s11073_s6 + $0x104] ss:$16 sps:$4 sm:$0xff]   ;;  %v8087_v16 = vld [vmem:[%s11073_s6 + $0x100] ss:$16 sps:$4 sm:$0xff]  }
 0xf7c   :  { %5876 = vrcp.f32 %v2206_v15  ;;  %v8080_v15 = vld [vmem:[%s11073_s6 + $0x10c] ss:$16 sps:$4 sm:$0xff]  }
 0xf7d   :  { %5878 = vrcp.f32 %v2213_v36  ;;  %v8123_v36 = vld [vmem:[%s11073_s6 + $0x144] ss:$16 sps:$4 sm:$0xff]  }
 0xf85   :  { %v5875_v18 = vpop.eup %5874 }
 0xf86   :  { %v5877_v20 = vpop.eup %5876  ;;  %v2220_v21 = vmul.f32 %v5875_v18, %v5873_v17  ;;  %v8092_v17 = vld [vmem:[%s11073_s6 + $0x108] ss:$16 sps:$4 sm:$0xff]   ;;  %v8099_v18 = vld [vmem:[%s11073_s6 + $0x124] ss:$16 sps:$4 sm:$0xff]  }
 0xf87   :  { %v2219_v1 = vmul.f32 %v5877_v20, %v2217_v19  ;;  %v5879_v39 = vpop.eup %5878  ;;  %v8104_v19 = vld [vmem:[%s11073_s6 + $0x12c] ss:$16 sps:$4 sm:$0xff]   ;;  %v8111_v20 = vld [vmem:[%s11073_s6 + $0x120] ss:$16 sps:$4 sm:$0xff]  }
 0xf89   :  { %v7885_v34 = vadd.f32 %v2220_v21, %v2219_v1  ;;  %v8116_v21 = vld [vmem:[%s11073_s6 + $0x128] ss:$16 sps:$4 sm:$0xff]   ;;  %v8128_v1 = vld [vmem:[%s11073_s6 + $0x14c] ss:$16 sps:$4 sm:$0xff]  }
 0xf8b   :  { %5880 = vtanh.f32 %v7885_v34 }
 0xf95   :  { %v5881_v37 = vpop.eup %5880 }
 0xf96   :  { %v2223_v24 = vmul.f32 %v5881_v37, %v5879_v39  ;;  %v8135_v39 = vld [vmem:[%s11073_s6 + $0x140] ss:$16 sps:$4 sm:$0xff]   ;;  %v8140_v37 = vld [vmem:[%s11073_s6 + $0x148] ss:$16 sps:$4 sm:$0xff]  }
 0xf97   :  { %11660 = vst [vmem:[#allocation20_spill] sm:$0xff] %v8135_v39  ;;  %11661 = vst [vmem:[#allocation21_spill] sm:$0xff] %v8140_v37 }
 0xf98   :  { %v2224_v6 = vpack.c.bf16 %v2223_v24, %v2223_v24  ;;  %v4498_v26 = vrot.slane %v2223_v24, 5  ;;  %v8147_v24 = vld [vmem:[%s11073_s6 + $0x164] ss:$16 sps:$4 sm:$0xff]  }
 0xf99   :  { %11662 = vst [vmem:[#allocation22_spill] sm:$0xff] %v8147_v24 }
 0xf9a   :  { %v2226_v7 = vrot.slane %v2224_v6, 3  ;;  %v7910_v22 = vsel %vm2358_vm0, %v4495_v25, %v4498_v26  ;;  %v8159_v25 = vld [vmem:[%s11073_s6 + $0x160] ss:$16 sps:$4 sm:$0xff]   ;;  %v8164_v6 = vld [vmem:[%s11073_s6 + $0x168] ss:$16 sps:$4 sm:$0xff]  }
 0xf9b   :  { %11659 = vst [vmem:[#allocation15_spill] sm:$0xff] %v7910_v22  ;;  %11664 = vst [vmem:[#allocation24_spill] sm:$0xff] %v8159_v25  ;;  %v8171_v26 = vld [vmem:[%s11073_s6 + $0x184] ss:$16 sps:$4 sm:$0xff]   ;;  %v8188_v22 = vld [vmem:[%s11073_s6 + $0x188] ss:$16 sps:$4 sm:$0xff]  }
 0xf9c   :  { %2261 = vmatmul.mubr.bf16.vlgmr.msra.gmra.mrb[60].mxu0 %v2226_v7  ;;  %2302 = vmatmul.mubr.bf16.vlgmr.msra.gmra.mrb[60].mxu1 %v2226_v7  ;;  %11665 = vst [vmem:[#allocation25_spill] sm:$0xff] %v8164_v6  ;;  %11666 = vst [vmem:[#allocation26_spill] sm:$0xff] %v8171_v26  ;;  %v8176_v7 = vld [vmem:[%s11073_s6 + $0x18c] ss:$16 sps:$4 sm:$0xff]  }
 0xf9d   :  { %2769 = vmatpush1.bf16.msra.mxu0 %v7892_v28  ;;  %2810 = vmatpush1.bf16.msra.mxu1 %v7897_v43  ;;  %11667 = vst [vmem:[#allocation27_spill] sm:$0xff] %v8176_v7  ;;  %11669 = vst [vmem:[#allocation29_spill] sm:$0xff] %v8188_v22 }
 0xf9e   :  { %2770 = vmatprep.subr.bf16.mxu0 %v7902_v42  ;;  %2811 = vmatprep.subr.bf16.mxu1 %v7907_v40 }
 0xf9f   :  { %2800 = vmatprep.mubr.bf16.mxu0 %v11095_v35  ;;  %2841 = vmatprep.mubr.bf16.mxu1 %v11095_v35  ;;  %v8183_v35 = vld [vmem:[%s11073_s6 + $0x180] ss:$16 sps:$4 sm:$0xff]  }
 0xfa0   :  { %11668 = vst [vmem:[#allocation28_spill] sm:$0xff] %v8183_v35 }
 0xfa1   :  { %2771 = vmatpush1.bf16.msra.mxu0 %v7917_v41  ;;  %2812 = vmatpush1.bf16.msra.mxu1 %v7922_v47 }
 0xfa2   :  { %2772 = vmatprep.subr.bf16.mxu0 %v7929_v4  ;;  %2813 = vmatprep.subr.bf16.mxu1 %v7934_v53 }
 0xfa5   :  { %2773 = vmatpush1.bf16.msra.mxu0 %v7943_v23  ;;  %2814 = vmatpush1.bf16.msra.mxu1 %v7948_v57 }
 0xfa6   :  { %2774 = vmatprep.subr.bf16.mxu0 %v7955_v56  ;;  %2815 = vmatprep.subr.bf16.mxu1 %v7960_v0 }
 0xfa9   :  { %2775 = vmatpush1.bf16.msra.mxu0 %v7967_v44  ;;  %2816 = vmatpush1.bf16.msra.mxu1 %v7972_v32 }
 0xfaa   :  { %2776 = vmatprep.subr.bf16.mxu0 %v7979_v46  ;;  %2817 = vmatprep.subr.bf16.mxu1 %v7984_v55 }
 0xfad   :  { %2777 = vmatpush1.bf16.msra.mxu0 %v7991_v51  ;;  %2818 = vmatpush1.bf16.msra.mxu1 %v7996_v27 }
 0xfae   :  { %2778 = vmatprep.subr.bf16.mxu0 %v8003_v49  ;;  %2819 = vmatprep.subr.bf16.mxu1 %v8008_v29 }
 0xfb1   :  { %2779 = vmatpush1.bf16.msra.mxu0 %v8015_v2  ;;  %2820 = vmatpush1.bf16.msra.mxu1 %v8020_v45 }
 0xfb2   :  { %2780 = vmatprep.subr.bf16.mxu0 %v8027_v48  ;;  %2821 = vmatprep.subr.bf16.mxu1 %v8032_v52 }
 0xfb5   :  { %2781 = vmatpush1.bf16.msra.mxu0 %v8039_v8  ;;  %2822 = vmatpush1.bf16.msra.mxu1 %v8044_v9 }
 0xfb6   :  { %2782 = vmatprep.subr.bf16.mxu0 %v8051_v10  ;;  %2823 = vmatprep.subr.bf16.mxu1 %v8056_v11 }
 0xfb9   :  { %2783 = vmatpush1.bf16.msra.mxu0 %v8063_v12  ;;  %2824 = vmatpush1.bf16.msra.mxu1 %v8068_v13 }
 0xfba   :  { %2784 = vmatprep.subr.bf16.mxu0 %v8075_v14  ;;  %2825 = vmatprep.subr.bf16.mxu1 %v8080_v15 }
 0xfbd   :  { %2785 = vmatpush1.bf16.msra.mxu0 %v8087_v16  ;;  %2826 = vmatpush1.bf16.msra.mxu1 %v8092_v17 }
 0xfbe   :  { %2786 = vmatprep.subr.bf16.mxu0 %v8099_v18  ;;  %2827 = vmatprep.subr.bf16.mxu1 %v8104_v19 }
 0xfc1   :  { %2787 = vmatpush1.bf16.msra.mxu0 %v8111_v20  ;;  %2828 = vmatpush1.bf16.msra.mxu1 %v8116_v21 }
 0xfc2   :  { %2788 = vmatprep.subr.bf16.mxu0 %v8123_v36  ;;  %2829 = vmatprep.subr.bf16.mxu1 %v8128_v1 }
 0xfc5   :  { %2789 = vmatpush1.bf16.msra.mxu0 %v8135_v39  ;;  %2830 = vmatpush1.bf16.msra.mxu1 %v8140_v37 }
 0xfc6   :  { %2790 = vmatprep.subr.bf16.mxu0 %v8147_v24  ;;  %2831 = vmatprep.subr.bf16.mxu1 %v8152_v30 }
 0xfc9   :  { %2791 = vmatpush1.bf16.msra.mxu0 %v8159_v25  ;;  %2832 = vmatpush1.bf16.msra.mxu1 %v8164_v6 }
 0xfca   :  { %2792 = vmatprep.subr.bf16.mxu0 %v8171_v26  ;;  %2833 = vmatprep.subr.bf16.mxu1 %v8176_v7  ;;  %v11682_v7 = vld [vmem:[#allocation13_spill] sm:$0xff] }
 0xfcd   :  { %2793 = vmatpush1.bf16.msra.mxu0 %v8183_v35  ;;  %2834 = vmatpush1.bf16.msra.mxu1 %v8188_v22  ;;  %v8224_v22 = vld [vmem:[%s11073_s6 + $0x1cc] ss:$16 sps:$4 sm:$0xff]   ;;  %v2356_v35 = vrot.slane %v7442_v38, 7 }
 0xfce   :  { %2794 = vmatprep.subr.bf16.mxu0 %v8195_v63  ;;  %2835 = vmatprep.subr.bf16.mxu1 %v8200_v33  ;;  %11675 = vst [vmem:[#allocation35_spill] sm:$0xff] %v8224_v22  ;;  %v8231_v63 = vld [vmem:[%s11073_s6 + $0x1c0] ss:$16 sps:$4 sm:$0xff]   ;;  %v8236_v33 = vld [vmem:[%s11073_s6 + $0x1c8] ss:$16 sps:$4 sm:$0xff]  }
 0xfcf   :  { %11676 = vst [vmem:[#allocation36_spill] sm:$0xff] %v8231_v63  ;;  %11677 = vst [vmem:[#allocation37_spill] sm:$0xff] %v8236_v33  ;;  %v2359_v38 = vsel %vm2358_vm0, %v11682_v7, %v2356_v35  ;;  %v8279_v35 = vld [vmem:[%s11075_s8 + $0xc] ss:$16 sps:$4 sm:$0xff]   ;;  %v8284_v7 = vld [vmem:[%s11075_s8] ss:$16 sps:$4 sm:$0xff]  }
 0xfd0   :  { %11685 = vst [vmem:[#allocation42_spill] sm:$0xff] %v8279_v35  ;;  %11686 = vst [vmem:[#allocation43_spill] sm:$0xff] %v8284_v7 }
 0xfd1   :  { %2795 = vmatpush1.bf16.msra.mxu0 %v8207_v3  ;;  %2836 = vmatpush1.bf16.msra.mxu1 %v8212_v54  ;;  %v8243_v3 = vld [vmem:[%s11073_s6 + $0x1e4] ss:$16 sps:$4 sm:$0xff]   ;;  %v8248_v54 = vld [vmem:[%s11073_s6 + $0x1ec] ss:$16 sps:$4 sm:$0xff]  }
 0xfd2   :  { %2796 = vmatprep.subr.bf16.mxu0 %v8219_v31  ;;  %2837 = vmatprep.subr.bf16.mxu1 %v8224_v22  ;;  %11678 = vst [vmem:[#allocation38_spill] sm:$0xff] %v8243_v3  ;;  %11679 = vst [vmem:[#allocation39_spill] sm:$0xff] %v8248_v54  ;;  %v8256_v22 = vld [vmem:[%s11073_s6 + $0x1e0] ss:$16 sps:$4 sm:$0xff]   ;;  %v8261_v31 = vld [vmem:[%s11073_s6 + $0x1e8] ss:$16 sps:$4 sm:$0xff]  }
 0xfd3   :  { %11680 = vst [vmem:[#allocation40_spill] sm:$0xff] %v8256_v22  ;;  %11681 = vst [vmem:[#allocation41_spill] sm:$0xff] %v8261_v31 }
 0xfd5   :  { %2797 = vmatpush1.bf16.msra.mxu0 %v8231_v63  ;;  %2838 = vmatpush1.bf16.msra.mxu1 %v8236_v33  ;;  %v2360_v33 = vpack.c.bf16 %v2359_v38, %v2359_v38  ;;  %v11683_v63 = vmov 0.0|0.0   ;;  %v8299_v38 = vld [vmem:[%s11075_s8 + $0x2c] ss:$16 sps:$4 sm:$0xff]  }
 0xfd6   :  { %2798 = vmatprep.subr.bf16.mxu0 %v8243_v3  ;;  %2839 = vmatprep.subr.bf16.mxu1 %v8248_v54  ;;  %v8274_v3 = vld [vmem:[%s11075_s8 + $0x4] ss:$16 sps:$4 sm:$0xff]   ;;  %11689 = vst [vmem:[#allocation46_spill] sm:$0xff] %v8299_v38 }
 0xfd7   :  { %11684 = vst [vmem:[#allocation13_spill] sm:$0xff] %v8274_v3 }
 0xfd9   :  { %2799 = vmatpush1.bf16.msra.mxu0 %v8256_v22  ;;  %2840 = vmatpush1.bf16.msra.mxu1 %v8261_v31  ;;  %v8308_v31 = vld [vmem:[%s11075_s8 + $0x20] ss:$16 sps:$4 sm:$0xff]   ;;  %v8313_v22 = vld [vmem:[%s11075_s8 + $0x28] ss:$16 sps:$4 sm:$0xff]  }
 0xfda   :  { %3281 = vmatprep.subr.bf16.mxu0 %v8274_v3  ;;  %3322 = vmatprep.subr.bf16.mxu1 %v8279_v35  ;;  %11690 = vst [vmem:[#allocation47_spill] sm:$0xff] %v8308_v31  ;;  %11691 = vst [vmem:[#allocation48_spill] sm:$0xff] %v8313_v22  ;;  %v8620_v35 = vld [vmem:[%s11075_s8 + $0x1c0] ss:$16 sps:$4 sm:$0xff]   ;;  %v8625_v3 = vld [vmem:[%s11075_s8 + $0x1c8] ss:$16 sps:$4 sm:$0xff]  }
 0xfdb   :  { %11742 = vst [vmem:[#allocation99_spill] sm:$0xff] %v8620_v35  ;;  %11743 = vst [vmem:[#allocation100_spill] sm:$0xff] %v8625_v3 }
 0xfdc   :  { %2801 = vmatmul.mubr.bf16.vlgmr.msra.gmra.mrb[64].mxu0 %v2360_v33  ;;  %2842 = vmatmul.mubr.bf16.vlgmr.msra.gmra.mrb[64].mxu1 %v2360_v33  ;;  %v8289_v33 = vld [vmem:[%s11075_s8 + $0x8] ss:$16 sps:$4 sm:$0xff]  }
 0xfdd   :  { %3313 = vmatprep.mubr.bf16.mxu0 %v11683_v63  ;;  %3354 = vmatprep.mubr.bf16.mxu1 %v11683_v63  ;;  %11687 = vst [vmem:[#allocation44_spill] sm:$0xff] %v8289_v33  ;;  %v8294_v63 = vld [vmem:[%s11075_s8 + $0x24] ss:$16 sps:$4 sm:$0xff]  }
 0xfde   :  { %11688 = vst [vmem:[#allocation45_spill] sm:$0xff] %v8294_v63  ;;  %3282 = vmatpush1.bf16.msra.mxu0 %v8284_v7  ;;  %3323 = vmatpush1.bf16.msra.mxu1 %v8289_v33  ;;  %v8320_v7 = vld [vmem:[%s11075_s8 + $0x44] ss:$16 sps:$4 sm:$0xff]   ;;  %v8325_v33 = vld [vmem:[%s11075_s8 + $0x4c] ss:$16 sps:$4 sm:$0xff]  }
 0xfdf   :  { %3283 = vmatprep.subr.bf16.mxu0 %v8294_v63  ;;  %3324 = vmatprep.subr.bf16.mxu1 %v8299_v38  ;;  %11692 = vst [vmem:[#allocation49_spill] sm:$0xff] %v8320_v7  ;;  %11693 = vst [vmem:[#allocation50_spill] sm:$0xff] %v8325_v33  ;;  %v8332_v63 = vld [vmem:[%s11075_s8 + $0x40] ss:$16 sps:$4 sm:$0xff]   ;;  %v8337_v38 = vld [vmem:[%s11075_s8 + $0x48] ss:$16 sps:$4 sm:$0xff]  }
 0xfe0   :  { %11694 = vst [vmem:[#allocation51_spill] sm:$0xff] %v8332_v63  ;;  %11695 = vst [vmem:[#allocation52_spill] sm:$0xff] %v8337_v38 }
 0xfe2   :  { %3284 = vmatpush1.bf16.msra.mxu0 %v8308_v31  ;;  %3325 = vmatpush1.bf16.msra.mxu1 %v8313_v22  ;;  %v8344_v31 = vld [vmem:[%s11075_s8 + $0x64] ss:$16 sps:$4 sm:$0xff]   ;;  %v8349_v22 = vld [vmem:[%s11075_s8 + $0x6c] ss:$16 sps:$4 sm:$0xff]  }
 0xfe3   :  { %3285 = vmatprep.subr.bf16.mxu0 %v8320_v7  ;;  %3326 = vmatprep.subr.bf16.mxu1 %v8325_v33  ;;  %11696 = vst [vmem:[#allocation53_spill] sm:$0xff] %v8344_v31  ;;  %11697 = vst [vmem:[#allocation54_spill] sm:$0xff] %v8349_v22  ;;  %v8356_v7 = vld [vmem:[%s11075_s8 + $0x60] ss:$16 sps:$4 sm:$0xff]   ;;  %v8361_v33 = vld [vmem:[%s11075_s8 + $0x68] ss:$16 sps:$4 sm:$0xff]  }
 0xfe4   :  { %11698 = vst [vmem:[#allocation55_spill] sm:$0xff] %v8356_v7  ;;  %11699 = vst [vmem:[#allocation56_spill] sm:$0xff] %v8361_v33 }
 0xfe6   :  { %3286 = vmatpush1.bf16.msra.mxu0 %v8332_v63  ;;  %3327 = vmatpush1.bf16.msra.mxu1 %v8337_v38  ;;  %v8370_v38 = vld [vmem:[%s11075_s8 + $0x84] ss:$16 sps:$4 sm:$0xff]   ;;  %v8375_v63 = vld [vmem:[%s11075_s8 + $0x8c] ss:$16 sps:$4 sm:$0xff]  }
 0xfe7   :  { %3287 = vmatprep.subr.bf16.mxu0 %v8344_v31  ;;  %3328 = vmatprep.subr.bf16.mxu1 %v8349_v22  ;;  %11700 = vst [vmem:[#allocation57_spill] sm:$0xff] %v8370_v38  ;;  %11701 = vst [vmem:[#allocation58_spill] sm:$0xff] %v8375_v63  ;;  %v8404_v22 = vld [vmem:[%s11075_s8 + $0xa0] ss:$16 sps:$4 sm:$0xff]   ;;  %v8423_v31 = vld [vmem:[%s11075_s8 + $0xcc] ss:$16 sps:$4 sm:$0xff]  }
 0xfe8   :  { %11706 = vst [vmem:[#allocation63_spill] sm:$0xff] %v8404_v22  ;;  %11709 = vst [vmem:[#allocation66_spill] sm:$0xff] %v8423_v31 }
 0xfea   :  { %3288 = vmatpush1.bf16.msra.mxu0 %v8356_v7  ;;  %3329 = vmatpush1.bf16.msra.mxu1 %v8361_v33  ;;  %v8382_v7 = vld [vmem:[%s11075_s8 + $0x80] ss:$16 sps:$4 sm:$0xff]   ;;  %v8387_v33 = vld [vmem:[%s11075_s8 + $0x88] ss:$16 sps:$4 sm:$0xff]  }
 0xfeb   :  { %3289 = vmatprep.subr.bf16.mxu0 %v8370_v38  ;;  %3330 = vmatprep.subr.bf16.mxu1 %v8375_v63  ;;  %11702 = vst [vmem:[#allocation59_spill] sm:$0xff] %v8382_v7  ;;  %11703 = vst [vmem:[#allocation60_spill] sm:$0xff] %v8387_v33  ;;  %v8394_v38 = vld [vmem:[%s11075_s8 + $0xa4] ss:$16 sps:$4 sm:$0xff]   ;;  %v8399_v63 = vld [vmem:[%s11075_s8 + $0xac] ss:$16 sps:$4 sm:$0xff]  }
 0xfec   :  { %11704 = vst [vmem:[#allocation61_spill] sm:$0xff] %v8394_v38  ;;  %11705 = vst [vmem:[#allocation62_spill] sm:$0xff] %v8399_v63 }
 0xfee   :  { %3290 = vmatpush1.bf16.msra.mxu0 %v8382_v7  ;;  %3331 = vmatpush1.bf16.msra.mxu1 %v8387_v33  ;;  %v8409_v7 = vld [vmem:[%s11075_s8 + $0xa8] ss:$16 sps:$4 sm:$0xff]   ;;  %v8418_v33 = vld [vmem:[%s11075_s8 + $0xc4] ss:$16 sps:$4 sm:$0xff]  }
 0xfef   :  { %11707 = vst [vmem:[#allocation64_spill] sm:$0xff] %v8409_v7  ;;  %3291 = vmatprep.subr.bf16.mxu0 %v8394_v38  ;;  %3332 = vmatprep.subr.bf16.mxu1 %v8399_v63  ;;  %11708 = vst [vmem:[#allocation65_spill] sm:$0xff] %v8418_v33  ;;  %v8428_v38 = vld [vmem:[%s11075_s8 + $0xc0] ss:$16 sps:$4 sm:$0xff]   ;;  %v8447_v63 = vld [vmem:[%s11075_s8 + $0xec] ss:$16 sps:$4 sm:$0xff]  }
 0xff0   :  { %11710 = vst [vmem:[#allocation67_spill] sm:$0xff] %v8428_v38  ;;  %11713 = vst [vmem:[#allocation70_spill] sm:$0xff] %v8447_v63 }
 0xff2   :  { %3292 = vmatpush1.bf16.msra.mxu0 %v8404_v22  ;;  %3333 = vmatpush1.bf16.msra.mxu1 %v8409_v7  ;;  %v8433_v22 = vld [vmem:[%s11075_s8 + $0xc8] ss:$16 sps:$4 sm:$0xff]   ;;  %v8442_v7 = vld [vmem:[%s11075_s8 + $0xe4] ss:$16 sps:$4 sm:$0xff]  }
 0xff3   :  { %11711 = vst [vmem:[#allocation68_spill] sm:$0xff] %v8433_v22  ;;  %3293 = vmatprep.subr.bf16.mxu0 %v8418_v33  ;;  %3334 = vmatprep.subr.bf16.mxu1 %v8423_v31  ;;  %11712 = vst [vmem:[#allocation69_spill] sm:$0xff] %v8442_v7  ;;  %v8452_v33 = vld [vmem:[%s11075_s8 + $0xe0] ss:$16 sps:$4 sm:$0xff]   ;;  %v8471_v31 = vld [vmem:[%s11075_s8 + $0x10c] ss:$16 sps:$4 sm:$0xff]  }
 0xff4   :  { %11714 = vst [vmem:[#allocation71_spill] sm:$0xff] %v8452_v33  ;;  %11717 = vst [vmem:[#allocation74_spill] sm:$0xff] %v8471_v31 }
 0xff6   :  { %3294 = vmatpush1.bf16.msra.mxu0 %v8428_v38  ;;  %3335 = vmatpush1.bf16.msra.mxu1 %v8433_v22  ;;  %v8457_v38 = vld [vmem:[%s11075_s8 + $0xe8] ss:$16 sps:$4 sm:$0xff]   ;;  %v8466_v22 = vld [vmem:[%s11075_s8 + $0x104] ss:$16 sps:$4 sm:$0xff]  }
 0xff7   :  { %11715 = vst [vmem:[#allocation72_spill] sm:$0xff] %v8457_v38  ;;  %3295 = vmatprep.subr.bf16.mxu0 %v8442_v7  ;;  %3336 = vmatprep.subr.bf16.mxu1 %v8447_v63  ;;  %11716 = vst [vmem:[#allocation73_spill] sm:$0xff] %v8466_v22  ;;  %v8476_v7 = vld [vmem:[%s11075_s8 + $0x100] ss:$16 sps:$4 sm:$0xff]   ;;  %v8495_v63 = vld [vmem:[%s11075_s8 + $0x12c] ss:$16 sps:$4 sm:$0xff]  }
 0xff8   :  { %11718 = vst [vmem:[#allocation75_spill] sm:$0xff] %v8476_v7  ;;  %11721 = vst [vmem:[#allocation78_spill] sm:$0xff] %v8495_v63 }
 0xffa   :  { %3296 = vmatpush1.bf16.msra.mxu0 %v8452_v33  ;;  %3337 = vmatpush1.bf16.msra.mxu1 %v8457_v38  ;;  %v8481_v33 = vld [vmem:[%s11075_s8 + $0x108] ss:$16 sps:$4 sm:$0xff]   ;;  %v8490_v38 = vld [vmem:[%s11075_s8 + $0x124] ss:$16 sps:$4 sm:$0xff]  }
 0xffb   :  { %11719 = vst [vmem:[#allocation76_spill] sm:$0xff] %v8481_v33  ;;  %3297 = vmatprep.subr.bf16.mxu0 %v8466_v22  ;;  %3338 = vmatprep.subr.bf16.mxu1 %v8471_v31  ;;  %11720 = vst [vmem:[#allocation77_spill] sm:$0xff] %v8490_v38  ;;  %v8500_v22 = vld [vmem:[%s11075_s8 + $0x120] ss:$16 sps:$4 sm:$0xff]   ;;  %v8519_v31 = vld [vmem:[%s11075_s8 + $0x14c] ss:$16 sps:$4 sm:$0xff]  }
 0xffc   :  { %11722 = vst [vmem:[#allocation79_spill] sm:$0xff] %v8500_v22  ;;  %11725 = vst [vmem:[#allocation82_spill] sm:$0xff] %v8519_v31 }
 0xffe   :  { %3298 = vmatpush1.bf16.msra.mxu0 %v8476_v7  ;;  %3339 = vmatpush1.bf16.msra.mxu1 %v8481_v33  ;;  %v8505_v7 = vld [vmem:[%s11075_s8 + $0x128] ss:$16 sps:$4 sm:$0xff]   ;;  %v8514_v33 = vld [vmem:[%s11075_s8 + $0x144] ss:$16 sps:$4 sm:$0xff]  }
 0xfff   :  { %11723 = vst [vmem:[#allocation80_spill] sm:$0xff] %v8505_v7  ;;  %3299 = vmatprep.subr.bf16.mxu0 %v8490_v38  ;;  %3340 = vmatprep.subr.bf16.mxu1 %v8495_v63  ;;  %11724 = vst [vmem:[#allocation81_spill] sm:$0xff] %v8514_v33  ;;  %v8524_v38 = vld [vmem:[%s11075_s8 + $0x140] ss:$16 sps:$4 sm:$0xff]   ;;  %v8543_v63 = vld [vmem:[%s11075_s8 + $0x16c] ss:$16 sps:$4 sm:$0xff]  }
0x1000   :  { %11726 = vst [vmem:[#allocation83_spill] sm:$0xff] %v8524_v38  ;;  %11729 = vst [vmem:[#allocation86_spill] sm:$0xff] %v8543_v63 }
0x1002   :  { %3300 = vmatpush1.bf16.msra.mxu0 %v8500_v22  ;;  %3341 = vmatpush1.bf16.msra.mxu1 %v8505_v7  ;;  %v8529_v22 = vld [vmem:[%s11075_s8 + $0x148] ss:$16 sps:$4 sm:$0xff]   ;;  %v8538_v7 = vld [vmem:[%s11075_s8 + $0x164] ss:$16 sps:$4 sm:$0xff]  }
0x1003   :  { %11727 = vst [vmem:[#allocation84_spill] sm:$0xff] %v8529_v22  ;;  %3301 = vmatprep.subr.bf16.mxu0 %v8514_v33  ;;  %3342 = vmatprep.subr.bf16.mxu1 %v8519_v31  ;;  %11728 = vst [vmem:[#allocation85_spill] sm:$0xff] %v8538_v7  ;;  %v8548_v33 = vld [vmem:[%s11075_s8 + $0x160] ss:$16 sps:$4 sm:$0xff]   ;;  %v8567_v31 = vld [vmem:[%s11075_s8 + $0x18c] ss:$16 sps:$4 sm:$0xff]  }
0x1004   :  { %11730 = vst [vmem:[#allocation87_spill] sm:$0xff] %v8548_v33  ;;  %11733 = vst [vmem:[#allocation90_spill] sm:$0xff] %v8567_v31 }
0x1006   :  { %3302 = vmatpush1.bf16.msra.mxu0 %v8524_v38  ;;  %3343 = vmatpush1.bf16.msra.mxu1 %v8529_v22  ;;  %v8553_v38 = vld [vmem:[%s11075_s8 + $0x168] ss:$16 sps:$4 sm:$0xff]   ;;  %v8562_v22 = vld [vmem:[%s11075_s8 + $0x184] ss:$16 sps:$4 sm:$0xff]  }
0x1007   :  { %11731 = vst [vmem:[#allocation88_spill] sm:$0xff] %v8553_v38  ;;  %3303 = vmatprep.subr.bf16.mxu0 %v8538_v7  ;;  %3344 = vmatprep.subr.bf16.mxu1 %v8543_v63  ;;  %11732 = vst [vmem:[#allocation89_spill] sm:$0xff] %v8562_v22  ;;  %v8572_v7 = vld [vmem:[%s11075_s8 + $0x180] ss:$16 sps:$4 sm:$0xff]   ;;  %v8591_v63 = vld [vmem:[%s11075_s8 + $0x1ac] ss:$16 sps:$4 sm:$0xff]  }
0x1008   :  { %11734 = vst [vmem:[#allocation91_spill] sm:$0xff] %v8572_v7  ;;  %11737 = vst [vmem:[#allocation94_spill] sm:$0xff] %v8591_v63 }
0x100a   :  { %3304 = vmatpush1.bf16.msra.mxu0 %v8548_v33  ;;  %3345 = vmatpush1.bf16.msra.mxu1 %v8553_v38  ;;  %v8577_v33 = vld [vmem:[%s11075_s8 + $0x188] ss:$16 sps:$4 sm:$0xff]   ;;  %v8586_v38 = vld [vmem:[%s11075_s8 + $0x1a4] ss:$16 sps:$4 sm:$0xff]  }
0x100b   :  { %11735 = vst [vmem:[#allocation92_spill] sm:$0xff] %v8577_v33  ;;  %3305 = vmatprep.subr.bf16.mxu0 %v8562_v22  ;;  %3346 = vmatprep.subr.bf16.mxu1 %v8567_v31  ;;  %11736 = vst [vmem:[#allocation93_spill] sm:$0xff] %v8586_v38  ;;  %v8596_v22 = vld [vmem:[%s11075_s8 + $0x1a0] ss:$16 sps:$4 sm:$0xff]   ;;  %v8611_v31 = vld [vmem:[%s11075_s8 + $0x1cc] ss:$16 sps:$4 sm:$0xff]  }
0x100c   :  { %11738 = vst [vmem:[#allocation95_spill] sm:$0xff] %v8596_v22  ;;  %11741 = vst [vmem:[#allocation98_spill] sm:$0xff] %v8611_v31 }
0x100e   :  { %3306 = vmatpush1.bf16.msra.mxu0 %v8572_v7  ;;  %3347 = vmatpush1.bf16.msra.mxu1 %v8577_v33  ;;  %v8601_v7 = vld [vmem:[%s11075_s8 + $0x1a8] ss:$16 sps:$4 sm:$0xff]   ;;  %v8606_v33 = vld [vmem:[%s11075_s8 + $0x1c4] ss:$16 sps:$4 sm:$0xff]  }
0x100f   :  { %11739 = vst [vmem:[#allocation96_spill] sm:$0xff] %v8601_v7  ;;  %11740 = vst [vmem:[#allocation97_spill] sm:$0xff] %v8606_v33  ;;  %3307 = vmatprep.subr.bf16.mxu0 %v8586_v38  ;;  %3348 = vmatprep.subr.bf16.mxu1 %v8591_v63 }
0x1012   :  { %3308 = vmatpush1.bf16.msra.mxu0 %v8596_v22  ;;  %3349 = vmatpush1.bf16.msra.mxu1 %v8601_v7  ;;  %v8632_v22 = vld [vmem:[%s11075_s8 + $0x1e4] ss:$16 sps:$4 sm:$0xff]   ;;  %v8637_v7 = vld [vmem:[%s11075_s8 + $0x1ec] ss:$16 sps:$4 sm:$0xff]  }
0x1013   :  { %3309 = vmatprep.subr.bf16.mxu0 %v8606_v33  ;;  %3350 = vmatprep.subr.bf16.mxu1 %v8611_v31  ;;  %11744 = vst [vmem:[#allocation101_spill] sm:$0xff] %v8632_v22  ;;  %11745 = vst [vmem:[#allocation102_spill] sm:$0xff] %v8637_v7  ;;  %v8644_v33 = vld [vmem:[%s11075_s8 + $0x1e0] ss:$16 sps:$4 sm:$0xff]   ;;  %v8649_v31 = vld [vmem:[%s11075_s8 + $0x1e8] ss:$16 sps:$4 sm:$0xff]  }
0x1014   :  { %11746 = vst [vmem:[#allocation103_spill] sm:$0xff] %v8644_v33  ;;  %11747 = vst [vmem:[#allocation104_spill] sm:$0xff] %v8649_v31 }
0x1016   :  { %3310 = vmatpush1.bf16.msra.mxu0 %v8620_v35  ;;  %3351 = vmatpush1.bf16.msra.mxu1 %v8625_v3 }
0x1017   :  { %3311 = vmatprep.subr.bf16.mxu0 %v8632_v22  ;;  %3352 = vmatprep.subr.bf16.mxu1 %v8637_v7 }
0x101a   :  { %3312 = vmatpush1.bf16.msra.mxu0 %v8644_v33  ;;  %3353 = vmatpush1.bf16.msra.mxu1 %v8649_v31 }
0x101b   :  { %3392 = vmatprep.subr.bf16.mxu0 %v7871_v50  ;;  %3433 = vmatprep.subr.bf16.mxu1 %v7876_v5 }
0x106f   :  { %v2262_v3 = vpop.f32.mrb[60].mxu0  ;;  %v2303_v35 = vpop.f32.mrb[60].mxu1 }
0x1070   :  { %v2314_v63 = vrot.slane %v2262_v3, 1  ;;  %v2264_v38 = vpop.f32.mrb[61].mxu0  ;;  %v2305_v54 = vpop.f32.mrb[61].mxu1  ;;  %v2316_v5 = vrot.slane %v2303_v35, 1 }
0x1071   :  { %v2315_v26 = vrot.slane %v2264_v38, 1  ;;  %v2266_v6 = vpop.f32.mrb[62].mxu0  ;;  %v2307_v25 = vpop.f32.mrb[62].mxu1  ;;  %v2317_v37 = vrot.slane %v2305_v54, 1  ;;  %v2346_v54 = vrot.slane %v7885_v34, 7 }
0x1072   :  { %v2322_v22 = vadd.f32 %v2314_v63, %v6888_v59  ;;  %v2267_v30 = vpop.f32.mrb[63].mxu0  ;;  %v2308_v7 = vpop.f32.mrb[63].mxu1  ;;  %v2324_v39 = vadd.f32 %v2316_v5, %v6892_v61  ;;  %v2426_v34 = vld [vmem:[%s11074_s7] sm:$0xf] }
0x1073   :  { %v2323_v33 = vadd.f32 %v2315_v26, %v6890_v60  ;;  %v2325_v50 = vadd.f32 %v2317_v37, %v6894_v62 }
0x1074   :  { %v5169_v24 = vmul.f32 -1.442695, %v2322_v22 }
0x1075   :  { %v5170_v31 = vmul.f32 -1.442695, %v2323_v33  ;;  %v5171_v3 = vmul.f32 -1.442695, %v2325_v50  ;;  %v11749_v50 = vld [vmem:[#allocation9_spill] sm:$0xff] }
0x1076   :  { %5882 = vpow2.f32 %v5169_v24  ;;  %v8670_v5 = vrot.slane %v2426_v34, %v11749_v50 }
0x1077   :  { %5884 = vpow2.f32 %v5170_v31 }
0x1078   :  { %5886 = vpow2.f32 %v5171_v3  ;;  %11750 = vst [vmem:[#allocation9_spill] sm:$0xff] %v8670_v5  ;;  %v11751_v3 = vld [vmem:[#allocation10_spill] sm:$0xff] }
0x1079   :  { %5888 = vtanh.f32 %v2324_v39  ;;  %v4717_v39 = vrot.slane %v7396_v58, 7 }
0x1080   :  { %v5883_v38 = vpop.eup %5882 }
0x1081   :  { %v5885_v6 = vpop.eup %5884  ;;  %v2329_v25 = vadd.f32 1.0, %v5883_v38  ;;  %v8673_v38 = vrot.slane %v2426_v34, %v11751_v3 }
0x1082   :  { %v2335_v59 = vadd.f32 1.0, %v5885_v6  ;;  %v5887_v60 = vpop.eup %5886 }
0x1083   :  { %5890 = vrcp.f32 %v2329_v25  ;;  %v5889_v22 = vpop.eup %5888  ;;  %v2342_v62 = vadd.f32 1.0, %v5887_v60 }
0x1084   :  { %5892 = vrcp.f32 %v2335_v59 }
0x1085   :  { %5894 = vrcp.f32 %v2342_v62 }
0x108d   :  { %v5891_v30 = vpop.eup %5890 }
0x108e   :  { %v5893_v31 = vpop.eup %5892  ;;  %v2349_v24 = vmul.f32 %v5891_v30, %v5889_v22 }
0x108f   :  { %v2348_v37 = vmul.f32 %v5893_v31, %v2346_v54  ;;  %v5895_v61 = vpop.eup %5894 }
0x1091   :  { %v2350_v26 = vadd.f32 %v2349_v24, %v2348_v37  ;;  %v11752_v37 = vld [vmem:[#allocation12_spill] sm:$0xff] }
0x1093   :  { %5896 = vtanh.f32 %v2350_v26  ;;  %2354 = vst [vmem:[#allocation6 - $0x7] sm:$0x80] %v2350_v26  ;;  %v8678_v26 = vrot.slane %v2426_v34, %v11752_v37 }
0x109d   :  { %v5897_v35 = vpop.eup %5896 }
0x109e   :  { %v2352_v7 = vmul.f32 %v5897_v35, %v5895_v61 }
0x10a0   :  { %v4720_v33 = vrot.slane %v2352_v7, 6  ;;  %2353 = vst [vmem:[#allocation4 - $0x7] sm:$0x80] %v2352_v7  ;;  %v11753_v7 = vld [vmem:[#allocation11_spill] sm:$0xff] }
0x10a2   :  { %v8664_v63 = vsel %vm2358_vm0, %v4717_v39, %v4720_v33  ;;  %v8682_v39 = vrot.slane %v2426_v34, %v11753_v7 }
0x10a3   :  { %11748 = vst [vmem:[#allocation105_spill] sm:$0xff] %v8664_v63 }
0x10af   :  { %v2802_v6 = vpop.f32.mrb[64].mxu0  ;;  %v2843_v25 = vpop.f32.mrb[64].mxu1 }
0x10b0   :  { %v2803_v59 = vadd.f32 %v2802_v6, %v8670_v5  ;;  %v2804_v58 = vpop.f32.mrb[65].mxu0  ;;  %v2845_v60 = vpop.f32.mrb[65].mxu1  ;;  %v2844_v6 = vadd.f32 %v2843_v25, %v8682_v39 }
0x10b1   :  { %v2805_v22 = vadd.f32 %v2804_v58, %v8673_v38  ;;  %v2806_v30 = vpop.f32.mrb[66].mxu0  ;;  %v2847_v54 = vpop.f32.mrb[66].mxu1  ;;  %v2846_v35 = vadd.f32 %v2845_v60, %v8678_v26 }
0x10b2   :  { %v5236_v31 = vmul.f32 -1.442695, %v2803_v59  ;;  %v2807_v24 = vpop.f32.mrb[67].mxu0  ;;  %v2848_v62 = vpop.f32.mrb[67].mxu1 }
0x10b3   :  { %v5237_v61 = vmul.f32 -1.442695, %v2805_v22  ;;  %v5238_v33 = vmul.f32 -1.442695, %v2846_v35 }
0x10b4   :  { %5898 = vpow2.f32 %v5236_v31 }
0x10b5   :  { %5900 = vpow2.f32 %v5237_v61 }
0x10b6   :  { %5902 = vpow2.f32 %v5238_v33 }
0x10b7   :  { %5904 = vtanh.f32 %v2844_v6  ;;  %v11794_v6 = vld [vmem:[#allocation58_spill] sm:$0xff] }
0x10be   :  { %v5899_v58 = vpop.eup %5898 }
0x10bf   :  { %v5901_v30 = vpop.eup %5900  ;;  %v2853_v54 = vadd.f32 1.0, %v5899_v58 }
0x10c0   :  { %v2859_v59 = vadd.f32 1.0, %v5901_v30  ;;  %v5903_v24 = vpop.eup %5902  ;;  %v11795_v30 = vld [vmem:[#allocation59_spill] sm:$0xff] }
0x10c1   :  { %5906 = vrcp.f32 %v2853_v54  ;;  %v5905_v22 = vpop.eup %5904  ;;  %v2866_v60 = vadd.f32 1.0, %v5903_v24  ;;  %v11796_v54 = vld [vmem:[#allocation60_spill] sm:$0xff]  ;;  %v11798_v24 = vld [vmem:[#allocation62_spill] sm:$0xff] }
0x10c2   :  { %5908 = vrcp.f32 %v2859_v59  ;;  %v11797_v59 = vld [vmem:[#allocation61_spill] sm:$0xff] }
0x10c3   :  { %5910 = vrcp.f32 %v2866_v60  ;;  %v11803_v60 = vld [vmem:[#allocation67_spill] sm:$0xff] }
0x10cb   :  { %v5907_v31 = vpop.eup %5906 }
0x10cc   :  { %v5909_v62 = vpop.eup %5908  ;;  %v2870_v61 = vmul.f32 %v5907_v31, %v5905_v22  ;;  %v11799_v22 = vld [vmem:[#allocation63_spill] sm:$0xff]  ;;  %v11800_v31 = vld [vmem:[#allocation64_spill] sm:$0xff] }
0x10cd   :  { %v2869_v63 = vmul.f32 0.0, %v5909_v62  ;;  %v5911_v25 = vpop.eup %5910  ;;  %v11801_v62 = vld [vmem:[#allocation65_spill] sm:$0xff] }
0x10cf   :  { %v8685_v34 = vadd.f32 %v2870_v61, %v2869_v63  ;;  %v11793_v63 = vld [vmem:[#allocation57_spill] sm:$0xff]  ;;  %v11802_v61 = vld [vmem:[#allocation66_spill] sm:$0xff] }
0x10d1   :  { %5912 = vtanh.f32 %v8685_v34 }
0x10db   :  { %v5913_v35 = vpop.eup %5912 }
0x10dc   :  { %v2873_v58 = vmul.f32 %v5913_v35, %v5911_v25  ;;  %v11804_v25 = vld [vmem:[#allocation68_spill] sm:$0xff]  ;;  %v11805_v35 = vld [vmem:[#allocation69_spill] sm:$0xff] }
0x10de   :  { %v2874_v33 = vpack.c.bf16 %v2873_v58, %v2873_v58  ;;  %v11806_v58 = vld [vmem:[#allocation70_spill] sm:$0xff] }
0x10e0   :  { %3314 = vmatmul.mubr.bf16.vlgmr.msra.gmra.mrb[68].mxu0 %v2874_v33  ;;  %3355 = vmatmul.mubr.bf16.vlgmr.msra.gmra.mrb[68].mxu1 %v2874_v33 }
0x10e1   :  { %3393 = vmatpush1.bf16.msra.mxu0 %v7892_v28  ;;  %3434 = vmatpush1.bf16.msra.mxu1 %v7897_v43  ;;  %v11754_v28 = vld [vmem:[#allocation20_spill] sm:$0xff]  ;;  %v11755_v43 = vld [vmem:[#allocation21_spill] sm:$0xff] }
0x10e2   :  { %3424 = vmatprep.mubr.bf16.mxu0 %v2874_v33  ;;  %3465 = vmatprep.mubr.bf16.mxu1 %v2874_v33  ;;  %v11807_v33 = vld [vmem:[#allocation71_spill] sm:$0xff] }
0x10e3   :  { %3394 = vmatprep.subr.bf16.mxu0 %v7902_v42  ;;  %3435 = vmatprep.subr.bf16.mxu1 %v7907_v40  ;;  %v11756_v42 = vld [vmem:[#allocation22_spill] sm:$0xff]  ;;  %v11757_v40 = vld [vmem:[#allocation23_spill] sm:$0xff] }
0x10e5   :  { %3395 = vmatpush1.bf16.msra.mxu0 %v7917_v41  ;;  %3436 = vmatpush1.bf16.msra.mxu1 %v7922_v47  ;;  %v11758_v41 = vld [vmem:[#allocation24_spill] sm:$0xff]  ;;  %v11759_v47 = vld [vmem:[#allocation25_spill] sm:$0xff] }
0x10e6   :  { %3396 = vmatprep.subr.bf16.mxu0 %v7929_v4  ;;  %3437 = vmatprep.subr.bf16.mxu1 %v7934_v53  ;;  %v11760_v4 = vld [vmem:[#allocation26_spill] sm:$0xff]  ;;  %v11761_v53 = vld [vmem:[#allocation27_spill] sm:$0xff] }
0x10e9   :  { %3397 = vmatpush1.bf16.msra.mxu0 %v7943_v23  ;;  %3438 = vmatpush1.bf16.msra.mxu1 %v7948_v57  ;;  %v11762_v23 = vld [vmem:[#allocation28_spill] sm:$0xff]  ;;  %v11763_v57 = vld [vmem:[#allocation29_spill] sm:$0xff] }
0x10ea   :  { %3398 = vmatprep.subr.bf16.mxu0 %v7955_v56  ;;  %3439 = vmatprep.subr.bf16.mxu1 %v7960_v0  ;;  %v11764_v56 = vld [vmem:[#allocation30_spill] sm:$0xff]  ;;  %v11765_v0 = vld [vmem:[#allocation31_spill] sm:$0xff] }
0x10ed   :  { %3399 = vmatpush1.bf16.msra.mxu0 %v7967_v44  ;;  %3440 = vmatpush1.bf16.msra.mxu1 %v7972_v32  ;;  %v11766_v44 = vld [vmem:[#allocation32_spill] sm:$0xff]  ;;  %v11767_v32 = vld [vmem:[#allocation33_spill] sm:$0xff] }
0x10ee   :  { %3400 = vmatprep.subr.bf16.mxu0 %v7979_v46  ;;  %3441 = vmatprep.subr.bf16.mxu1 %v7984_v55  ;;  %v11768_v46 = vld [vmem:[#allocation34_spill] sm:$0xff]  ;;  %v11769_v55 = vld [vmem:[#allocation35_spill] sm:$0xff] }
0x10f1   :  { %3401 = vmatpush1.bf16.msra.mxu0 %v7991_v51  ;;  %3442 = vmatpush1.bf16.msra.mxu1 %v7996_v27  ;;  %v11770_v51 = vld [vmem:[#allocation36_spill] sm:$0xff]  ;;  %v11771_v27 = vld [vmem:[#allocation37_spill] sm:$0xff] }
0x10f2   :  { %3402 = vmatprep.subr.bf16.mxu0 %v8003_v49  ;;  %3443 = vmatprep.subr.bf16.mxu1 %v8008_v29  ;;  %v11772_v49 = vld [vmem:[#allocation38_spill] sm:$0xff]  ;;  %v11773_v29 = vld [vmem:[#allocation39_spill] sm:$0xff] }
0x10f5   :  { %3403 = vmatpush1.bf16.msra.mxu0 %v8015_v2  ;;  %3444 = vmatpush1.bf16.msra.mxu1 %v8020_v45  ;;  %v11774_v2 = vld [vmem:[#allocation40_spill] sm:$0xff]  ;;  %v11775_v45 = vld [vmem:[#allocation41_spill] sm:$0xff] }
0x10f6   :  { %3404 = vmatprep.subr.bf16.mxu0 %v8027_v48  ;;  %3445 = vmatprep.subr.bf16.mxu1 %v8032_v52  ;;  %v11776_v48 = vld [vmem:[#allocation16_spill] sm:$0xff] }
0x10f7   :  { %v3391_v52 = vpack.c.bf16 %v11776_v48, %v11776_v48  ;;  %v11830_v48 = vld [vmem:[#allocation94_spill] sm:$0xff] }
0x10f9   :  { %3405 = vmatpush1.bf16.msra.mxu0 %v8039_v8  ;;  %3446 = vmatpush1.bf16.msra.mxu1 %v8044_v9  ;;  %v11777_v8 = vld [vmem:[#allocation13_spill] sm:$0xff]  ;;  %v11778_v9 = vld [vmem:[#allocation42_spill] sm:$0xff] }
0x10fa   :  { %3406 = vmatprep.subr.bf16.mxu0 %v8051_v10  ;;  %3447 = vmatprep.subr.bf16.mxu1 %v8056_v11  ;;  %v11779_v10 = vld [vmem:[#allocation43_spill] sm:$0xff]  ;;  %v11780_v11 = vld [vmem:[#allocation44_spill] sm:$0xff] }
0x10fd   :  { %3407 = vmatpush1.bf16.msra.mxu0 %v8063_v12  ;;  %3448 = vmatpush1.bf16.msra.mxu1 %v8068_v13  ;;  %v11781_v12 = vld [vmem:[#allocation45_spill] sm:$0xff]  ;;  %v11782_v13 = vld [vmem:[#allocation46_spill] sm:$0xff] }
0x10fe   :  { %3408 = vmatprep.subr.bf16.mxu0 %v8075_v14  ;;  %3449 = vmatprep.subr.bf16.mxu1 %v8080_v15  ;;  %v11783_v14 = vld [vmem:[#allocation47_spill] sm:$0xff]  ;;  %v11784_v15 = vld [vmem:[#allocation48_spill] sm:$0xff] }
0x1101   :  { %3409 = vmatpush1.bf16.msra.mxu0 %v8087_v16  ;;  %3450 = vmatpush1.bf16.msra.mxu1 %v8092_v17  ;;  %v11785_v16 = vld [vmem:[#allocation49_spill] sm:$0xff]  ;;  %v11786_v17 = vld [vmem:[#allocation50_spill] sm:$0xff] }
0x1102   :  { %3410 = vmatprep.subr.bf16.mxu0 %v8099_v18  ;;  %3451 = vmatprep.subr.bf16.mxu1 %v8104_v19  ;;  %v11787_v18 = vld [vmem:[#allocation51_spill] sm:$0xff]  ;;  %v11788_v19 = vld [vmem:[#allocation52_spill] sm:$0xff] }
0x1105   :  { %3411 = vmatpush1.bf16.msra.mxu0 %v8111_v20  ;;  %3452 = vmatpush1.bf16.msra.mxu1 %v8116_v21  ;;  %v11789_v20 = vld [vmem:[#allocation53_spill] sm:$0xff]  ;;  %v11790_v21 = vld [vmem:[#allocation54_spill] sm:$0xff] }
0x1106   :  { %3412 = vmatprep.subr.bf16.mxu0 %v8123_v36  ;;  %3453 = vmatprep.subr.bf16.mxu1 %v8128_v1  ;;  %v11791_v36 = vld [vmem:[#allocation55_spill] sm:$0xff]  ;;  %v11792_v1 = vld [vmem:[#allocation56_spill] sm:$0xff] }
0x1109   :  { %3413 = vmatpush1.bf16.msra.mxu0 %v11754_v28  ;;  %3454 = vmatpush1.bf16.msra.mxu1 %v11755_v43  ;;  %v11808_v28 = vld [vmem:[#allocation72_spill] sm:$0xff]  ;;  %v11809_v43 = vld [vmem:[#allocation73_spill] sm:$0xff] }
0x110a   :  { %3414 = vmatprep.subr.bf16.mxu0 %v11756_v42  ;;  %3455 = vmatprep.subr.bf16.mxu1 %v11757_v40  ;;  %v11810_v42 = vld [vmem:[#allocation74_spill] sm:$0xff]  ;;  %v11811_v40 = vld [vmem:[#allocation75_spill] sm:$0xff] }
0x110d   :  { %3415 = vmatpush1.bf16.msra.mxu0 %v11758_v41  ;;  %3456 = vmatpush1.bf16.msra.mxu1 %v11759_v47  ;;  %v11812_v41 = vld [vmem:[#allocation76_spill] sm:$0xff]  ;;  %v11813_v47 = vld [vmem:[#allocation77_spill] sm:$0xff] }
0x110e   :  { %3416 = vmatprep.subr.bf16.mxu0 %v11760_v4  ;;  %3457 = vmatprep.subr.bf16.mxu1 %v11761_v53  ;;  %v11814_v4 = vld [vmem:[#allocation78_spill] sm:$0xff]  ;;  %v11815_v53 = vld [vmem:[#allocation79_spill] sm:$0xff] }
0x1111   :  { %3417 = vmatpush1.bf16.msra.mxu0 %v11762_v23  ;;  %3458 = vmatpush1.bf16.msra.mxu1 %v11763_v57  ;;  %v11816_v23 = vld [vmem:[#allocation80_spill] sm:$0xff]  ;;  %v11817_v57 = vld [vmem:[#allocation81_spill] sm:$0xff] }
0x1112   :  { %3418 = vmatprep.subr.bf16.mxu0 %v11764_v56  ;;  %3459 = vmatprep.subr.bf16.mxu1 %v11765_v0  ;;  %v11818_v56 = vld [vmem:[#allocation82_spill] sm:$0xff]  ;;  %v11819_v0 = vld [vmem:[#allocation83_spill] sm:$0xff] }
0x1115   :  { %3419 = vmatpush1.bf16.msra.mxu0 %v11766_v44  ;;  %3460 = vmatpush1.bf16.msra.mxu1 %v11767_v32  ;;  %v11820_v44 = vld [vmem:[#allocation84_spill] sm:$0xff]  ;;  %v11821_v32 = vld [vmem:[#allocation85_spill] sm:$0xff] }
0x1116   :  { %3420 = vmatprep.subr.bf16.mxu0 %v11768_v46  ;;  %3461 = vmatprep.subr.bf16.mxu1 %v11769_v55  ;;  %v11822_v46 = vld [vmem:[#allocation86_spill] sm:$0xff]  ;;  %v11823_v55 = vld [vmem:[#allocation87_spill] sm:$0xff] }
0x1119   :  { %3421 = vmatpush1.bf16.msra.mxu0 %v11770_v51  ;;  %3462 = vmatpush1.bf16.msra.mxu1 %v11771_v27  ;;  %v11824_v51 = vld [vmem:[#allocation88_spill] sm:$0xff]  ;;  %v11825_v27 = vld [vmem:[#allocation89_spill] sm:$0xff] }
0x111a   :  { %3422 = vmatprep.subr.bf16.mxu0 %v11772_v49  ;;  %3463 = vmatprep.subr.bf16.mxu1 %v11773_v29  ;;  %v11826_v49 = vld [vmem:[#allocation90_spill] sm:$0xff]  ;;  %v11827_v29 = vld [vmem:[#allocation91_spill] sm:$0xff] }
0x111d   :  { %3423 = vmatpush1.bf16.msra.mxu0 %v11774_v2  ;;  %3464 = vmatpush1.bf16.msra.mxu1 %v11775_v45  ;;  %v11828_v2 = vld [vmem:[#allocation92_spill] sm:$0xff]  ;;  %v11829_v45 = vld [vmem:[#allocation93_spill] sm:$0xff] }
0x111e   :  { %3500 = vmatprep.subr.bf16.mxu0 %v11777_v8  ;;  %3541 = vmatprep.subr.bf16.mxu1 %v11778_v9 }
0x1120   :  { %3425 = vmatmul.mubr.bf16.vlgmr.msra.gmra.mrb[72].mxu0 %v3391_v52  ;;  %3466 = vmatmul.mubr.bf16.vlgmr.msra.gmra.mrb[72].mxu1 %v3391_v52  ;;  %v11831_v52 = vld [vmem:[#allocation95_spill] sm:$0xff] }
0x1121   :  { %3501 = vmatpush1.bf16.msra.mxu0 %v11779_v10  ;;  %3542 = vmatpush1.bf16.msra.mxu1 %v11780_v11 }
0x1122   :  { %3502 = vmatprep.subr.bf16.mxu0 %v11781_v12  ;;  %3543 = vmatprep.subr.bf16.mxu1 %v11782_v13 }
0x1125   :  { %3503 = vmatpush1.bf16.msra.mxu0 %v11783_v14  ;;  %3544 = vmatpush1.bf16.msra.mxu1 %v11784_v15 }
0x1126   :  { %3504 = vmatprep.subr.bf16.mxu0 %v11785_v16  ;;  %3545 = vmatprep.subr.bf16.mxu1 %v11786_v17 }
0x1129   :  { %3505 = vmatpush1.bf16.msra.mxu0 %v11787_v18  ;;  %3546 = vmatpush1.bf16.msra.mxu1 %v11788_v19 }
0x112a   :  { %3506 = vmatprep.subr.bf16.mxu0 %v11789_v20  ;;  %3547 = vmatprep.subr.bf16.mxu1 %v11790_v21 }
0x112d   :  { %3507 = vmatpush1.bf16.msra.mxu0 %v11791_v36  ;;  %3548 = vmatpush1.bf16.msra.mxu1 %v11792_v1 }
0x112e   :  { %3508 = vmatprep.subr.bf16.mxu0 %v11793_v63  ;;  %3549 = vmatprep.subr.bf16.mxu1 %v11794_v6 }
0x1131   :  { %3509 = vmatpush1.bf16.msra.mxu0 %v11795_v30  ;;  %3550 = vmatpush1.bf16.msra.mxu1 %v11796_v54 }
0x1132   :  { %3510 = vmatprep.subr.bf16.mxu0 %v11797_v59  ;;  %3551 = vmatprep.subr.bf16.mxu1 %v11798_v24 }
0x1135   :  { %3511 = vmatpush1.bf16.msra.mxu0 %v11799_v22  ;;  %3552 = vmatpush1.bf16.msra.mxu1 %v11800_v31 }
0x1136   :  { %3512 = vmatprep.subr.bf16.mxu0 %v11801_v62  ;;  %3553 = vmatprep.subr.bf16.mxu1 %v11802_v61 }
0x1139   :  { %3513 = vmatpush1.bf16.msra.mxu0 %v11803_v60  ;;  %3554 = vmatpush1.bf16.msra.mxu1 %v11804_v25 }
0x113a   :  { %3514 = vmatprep.subr.bf16.mxu0 %v11805_v35  ;;  %3555 = vmatprep.subr.bf16.mxu1 %v11806_v58 }
0x113d   :  { %3515 = vmatpush1.bf16.msra.mxu0 %v11807_v33  ;;  %3556 = vmatpush1.bf16.msra.mxu1 %v11808_v28 }
0x113e   :  { %3516 = vmatprep.subr.bf16.mxu0 %v11809_v43  ;;  %3557 = vmatprep.subr.bf16.mxu1 %v11810_v42 }
0x1141   :  { %3517 = vmatpush1.bf16.msra.mxu0 %v11811_v40  ;;  %3558 = vmatpush1.bf16.msra.mxu1 %v11812_v41 }
0x1142   :  { %3518 = vmatprep.subr.bf16.mxu0 %v11813_v47  ;;  %3559 = vmatprep.subr.bf16.mxu1 %v11814_v4 }
0x1145   :  { %3519 = vmatpush1.bf16.msra.mxu0 %v11815_v53  ;;  %3560 = vmatpush1.bf16.msra.mxu1 %v11816_v23 }
0x1146   :  { %3520 = vmatprep.subr.bf16.mxu0 %v11817_v57  ;;  %3561 = vmatprep.subr.bf16.mxu1 %v11818_v56 }
0x1149   :  { %3521 = vmatpush1.bf16.msra.mxu0 %v11819_v0  ;;  %3562 = vmatpush1.bf16.msra.mxu1 %v11820_v44 }
0x114a   :  { %3522 = vmatprep.subr.bf16.mxu0 %v11821_v32  ;;  %3563 = vmatprep.subr.bf16.mxu1 %v11822_v46  ;;  %v11832_v32 = vld [vmem:[#allocation96_spill] sm:$0xff]  ;;  %v11833_v46 = vld [vmem:[#allocation97_spill] sm:$0xff] }
0x114d   :  { %3523 = vmatpush1.bf16.msra.mxu0 %v11823_v55  ;;  %3564 = vmatpush1.bf16.msra.mxu1 %v11824_v51  ;;  %v11834_v55 = vld [vmem:[#allocation98_spill] sm:$0xff]  ;;  %v11835_v51 = vld [vmem:[#allocation99_spill] sm:$0xff] }
0x114e   :  { %3524 = vmatprep.subr.bf16.mxu0 %v11825_v27  ;;  %3565 = vmatprep.subr.bf16.mxu1 %v11826_v49  ;;  %v11836_v27 = vld [vmem:[#allocation100_spill] sm:$0xff]  ;;  %v11837_v49 = vld [vmem:[#allocation101_spill] sm:$0xff] }
0x1151   :  { %3525 = vmatpush1.bf16.msra.mxu0 %v11827_v29  ;;  %3566 = vmatpush1.bf16.msra.mxu1 %v11828_v2  ;;  %v11838_v29 = vld [vmem:[#allocation102_spill] sm:$0xff]  ;;  %v11839_v2 = vld [vmem:[#allocation103_spill] sm:$0xff] }
0x1152   :  { %3526 = vmatprep.subr.bf16.mxu0 %v11829_v45  ;;  %3567 = vmatprep.subr.bf16.mxu1 %v11830_v48  ;;  %v11840_v45 = vld [vmem:[#allocation104_spill] sm:$0xff] }
0x1155   :  { %3527 = vmatpush1.bf16.msra.mxu0 %v11831_v52  ;;  %3568 = vmatpush1.bf16.msra.mxu1 %v11832_v32  ;;  %v8819_v32 = vld [vmem:[%s11073_s6 + $0x4] ss:$16 sps:$4 sm:$0xff]  }
0x1156   :  { %3528 = vmatprep.subr.bf16.mxu0 %v11833_v46  ;;  %3569 = vmatprep.subr.bf16.mxu1 %v11834_v55  ;;  %11841 = vst [vmem:[#allocation10_spill] sm:$0xff] %v8819_v32 }
0x1159   :  { %3529 = vmatpush1.bf16.msra.mxu0 %v11835_v51  ;;  %3570 = vmatpush1.bf16.msra.mxu1 %v11836_v27  ;;  %v8825_v51 = vld [vmem:[%s11073_s6 + $0xc] ss:$16 sps:$4 sm:$0xff]  }
0x115a   :  { %3530 = vmatprep.subr.bf16.mxu0 %v11837_v49  ;;  %3571 = vmatprep.subr.bf16.mxu1 %v11838_v29  ;;  %11842 = vst [vmem:[#allocation12_spill] sm:$0xff] %v8825_v51 }
0x115d   :  { %3531 = vmatpush1.bf16.msra.mxu0 %v11839_v2  ;;  %3572 = vmatpush1.bf16.msra.mxu1 %v11840_v45  ;;  %v2939_v2 = vld [vmem:[%s11076_s9] sm:$0xf] }
0x115e   :  { %3614 = vmatprep.subr.bf16.mxu0 %v8819_v32  ;;  %3655 = vmatprep.subr.bf16.mxu1 %v8825_v51  ;;  %v8832_v45 = vrot.slane %v2939_v2, %v11749_v50  ;;  %v8835_v29 = vrot.slane %v2939_v2, %v11751_v3  ;;  %v8840_v57 = vrot.slane %v2939_v2, %v11752_v37 }
0x115f   :  { %v8844_v23 = vrot.slane %v2939_v2, %v11753_v7 }
0x1160   :  { %11843 = vst [vmem:[#allocation11_spill] sm:$0xff] %v8832_v45 }
0x11b3   :  { %v3315_v49 = vpop.f32.mrb[68].mxu0  ;;  %v3356_v27 = vpop.f32.mrb[68].mxu1 }
0x11b4   :  { %v3316_v32 = vadd.f32 %v3315_v49, %v8832_v45  ;;  %v3317_v55 = vpop.f32.mrb[69].mxu0  ;;  %v3358_v46 = vpop.f32.mrb[69].mxu1  ;;  %v3357_v45 = vadd.f32 %v3356_v27, %v8844_v23 }
0x11b5   :  { %v3318_v52 = vadd.f32 %v3317_v55, %v8835_v29  ;;  %v3319_v48 = vpop.f32.mrb[70].mxu0  ;;  %v3360_v51 = vpop.f32.mrb[70].mxu1  ;;  %v3359_v3 = vadd.f32 %v3358_v46, %v8840_v57 }
0x11b6   :  { %v5303_v44 = vmul.f32 -1.442695, %v3316_v32  ;;  %v3320_v0 = vpop.f32.mrb[71].mxu0  ;;  %v3361_v56 = vpop.f32.mrb[71].mxu1 }
0x11b7   :  { %v5304_v50 = vmul.f32 -1.442695, %v3318_v52  ;;  %v5305_v49 = vmul.f32 -1.442695, %v3359_v3 }
0x11b8   :  { %5914 = vpow2.f32 %v5303_v44 }
0x11b9   :  { %5916 = vpow2.f32 %v5304_v50 }
0x11ba   :  { %5918 = vpow2.f32 %v5305_v49 }
0x11bb   :  { %5920 = vtanh.f32 %v3357_v45 }
0x11c2   :  { %v5915_v55 = vpop.eup %5914 }
0x11c3   :  { %v5917_v48 = vpop.eup %5916  ;;  %v3366_v51 = vadd.f32 1.0, %v5915_v55 }
0x11c4   :  { %v3372_v56 = vadd.f32 1.0, %v5917_v48  ;;  %v5919_v37 = vpop.eup %5918 }
0x11c5   :  { %5922 = vrcp.f32 %v3366_v51  ;;  %v5921_v0 = vpop.eup %5920  ;;  %v3379_v46 = vadd.f32 1.0, %v5919_v37 }
0x11c6   :  { %5924 = vrcp.f32 %v3372_v56 }
0x11c7   :  { %5926 = vrcp.f32 %v3379_v46 }
0x11cf   :  { %v5923_v44 = vpop.eup %5922 }
0x11d0   :  { %v5925_v32 = vpop.eup %5924  ;;  %v3383_v52 = vmul.f32 %v5923_v44, %v5921_v0 }
0x11d1   :  { %v3382_v50 = vmul.f32 0.0, %v5925_v32  ;;  %v5927_v27 = vpop.eup %5926 }
0x11d3   :  { %v8847_v7 = vadd.f32 %v3383_v52, %v3382_v50 }
0x11d5   :  { %11844 = vst [vmem:[#allocation20_spill] sm:$0xff] %v8847_v7  ;;  %5928 = vtanh.f32 %v8847_v7 }
0x11df   :  { %v5929_v2 = vpop.eup %5928 }
0x11e0   :  { %v3386_v3 = vmul.f32 %v5929_v2, %v5927_v27 }
0x11e2   :  { %v3499_v49 = vpack.c.bf16 %v3386_v3, %v3386_v3 }
0x11e4   :  { %3532 = vmatprep.mubr.bf16.mxu0 %v3499_v49  ;;  %3573 = vmatprep.mubr.bf16.mxu1 %v3499_v49 }
0x11f3   :  { %v3426_v45 = vpop.f32.mrb[72].mxu0  ;;  %v3467_v55 = vpop.f32.mrb[72].mxu1 }
0x11f4   :  { %v3427_v48 = vadd.f32 %v3426_v45, %v8670_v5  ;;  %v3428_v51 = vpop.f32.mrb[73].mxu0  ;;  %v3469_v56 = vpop.f32.mrb[73].mxu1  ;;  %v3468_v3 = vadd.f32 %v3467_v55, %v8682_v39 }
0x11f5   :  { %v3429_v37 = vadd.f32 %v3428_v51, %v8673_v38  ;;  %v3430_v0 = vpop.f32.mrb[74].mxu0  ;;  %v3471_v44 = vpop.f32.mrb[74].mxu1  ;;  %v3470_v27 = vadd.f32 %v3469_v56, %v8678_v26 }
0x11f6   :  { %v5306_v32 = vmul.f32 -1.442695, %v3427_v48  ;;  %v3431_v52 = vpop.f32.mrb[75].mxu0  ;;  %v3472_v46 = vpop.f32.mrb[75].mxu1 }
0x11f7   :  { %v5307_v50 = vmul.f32 -1.442695, %v3429_v37  ;;  %v5308_v2 = vmul.f32 -1.442695, %v3470_v27 }
0x11f8   :  { %5930 = vpow2.f32 %v5306_v32 }
0x11f9   :  { %5932 = vpow2.f32 %v5307_v50 }
0x11fa   :  { %5934 = vpow2.f32 %v5308_v2  ;;  %v8879_v2 = vld [vmem:[%s11073_s6 + $0x2c] ss:$16 sps:$4 sm:$0xff]  }
0x11fb   :  { %5936 = vtanh.f32 %v3468_v3  ;;  %v8885_v3 = vld [vmem:[%s11073_s6 + $0x20] ss:$16 sps:$4 sm:$0xff]  }
0x1202   :  { %v5931_v49 = vpop.eup %5930 }
0x1203   :  { %v5933_v7 = vpop.eup %5932  ;;  %v3477_v45 = vadd.f32 1.0, %v5931_v49  ;;  %v8891_v49 = vld [vmem:[%s11073_s6 + $0x28] ss:$16 sps:$4 sm:$0xff]  }
0x1204   :  { %v3483_v5 = vadd.f32 1.0, %v5933_v7  ;;  %v5935_v51 = vpop.eup %5934  ;;  %v8873_v7 = vld [vmem:[%s11073_s6 + $0x24] ss:$16 sps:$4 sm:$0xff]  }
0x1205   :  { %5938 = vrcp.f32 %v3477_v45  ;;  %v5937_v48 = vpop.eup %5936  ;;  %v3490_v32 = vadd.f32 1.0, %v5935_v51  ;;  %v8897_v45 = vld [vmem:[%s11073_s6 + $0x44] ss:$16 sps:$4 sm:$0xff]   ;;  %v8903_v51 = vld [vmem:[%s11073_s6 + $0x4c] ss:$16 sps:$4 sm:$0xff]  }
0x1206   :  { %5940 = vrcp.f32 %v3483_v5  ;;  %v8861_v5 = vld [vmem:[%s11073_s6] ss:$16 sps:$4 sm:$0xff]  }
0x1207   :  { %5942 = vrcp.f32 %v3490_v32  ;;  %v8933_v32 = vld [vmem:[%s11073_s6 + $0x60] ss:$16 sps:$4 sm:$0xff]  }
0x120f   :  { %v5939_v0 = vpop.eup %5938 }
0x1210   :  { %v5941_v44 = vpop.eup %5940  ;;  %v3494_v37 = vmul.f32 %v5939_v0, %v5937_v48  ;;  %v8909_v48 = vld [vmem:[%s11073_s6 + $0x40] ss:$16 sps:$4 sm:$0xff]   ;;  %v8915_v0 = vld [vmem:[%s11073_s6 + $0x48] ss:$16 sps:$4 sm:$0xff]  }
0x1211   :  { %v3493_v52 = vmul.f32 %v5941_v44, %v8685_v34  ;;  %v5943_v55 = vpop.eup %5942  ;;  %v8867_v34 = vld [vmem:[%s11073_s6 + $0x8] ss:$16 sps:$4 sm:$0xff]   ;;  %v8921_v44 = vld [vmem:[%s11073_s6 + $0x64] ss:$16 sps:$4 sm:$0xff]  }
0x1213   :  { %v8855_v56 = vadd.f32 %v3494_v37, %v3493_v52  ;;  %v8927_v37 = vld [vmem:[%s11073_s6 + $0x6c] ss:$16 sps:$4 sm:$0xff]   ;;  %v8939_v52 = vld [vmem:[%s11073_s6 + $0x68] ss:$16 sps:$4 sm:$0xff]  }
0x1214   :  { %11845 = vst [vmem:[#allocation21_spill] sm:$0xff] %v8939_v52 }
0x1215   :  { %5944 = vtanh.f32 %v8855_v56 }
0x121f   :  { %v5945_v46 = vpop.eup %5944 }
0x1220   :  { %v3497_v50 = vmul.f32 %v5945_v46, %v5943_v55  ;;  %v8945_v55 = vld [vmem:[%s11073_s6 + $0x84] ss:$16 sps:$4 sm:$0xff]   ;;  %v8951_v46 = vld [vmem:[%s11073_s6 + $0x8c] ss:$16 sps:$4 sm:$0xff]  }
0x1221   :  { %11846 = vst [vmem:[#allocation22_spill] sm:$0xff] %v8945_v55  ;;  %11847 = vst [vmem:[#allocation23_spill] sm:$0xff] %v8951_v46 }
0x1222   :  { %v3498_v27 = vpack.c.bf16 %v3497_v50, %v3497_v50  ;;  %v8957_v50 = vld [vmem:[%s11073_s6 + $0x80] ss:$16 sps:$4 sm:$0xff]  }
0x1223   :  { %11848 = vst [vmem:[#allocation24_spill] sm:$0xff] %v8957_v50 }
0x1224   :  { %3533 = vmatmul.mubr.bf16.vlgmr.msra.gmra.mrb[76].mxu0 %v3498_v27  ;;  %3574 = vmatmul.mubr.bf16.vlgmr.msra.gmra.mrb[76].mxu1 %v3498_v27 }
0x1225   :  { %3615 = vmatpush1.bf16.msra.mxu0 %v8861_v5  ;;  %3656 = vmatpush1.bf16.msra.mxu1 %v8867_v34 }
0x1226   :  { %3646 = vmatprep.mubr.bf16.mxu0 %v3498_v27  ;;  %3687 = vmatprep.mubr.bf16.mxu1 %v3498_v27  ;;  %v8963_v27 = vld [vmem:[%s11073_s6 + $0x88] ss:$16 sps:$4 sm:$0xff]  }
0x1227   :  { %3616 = vmatprep.subr.bf16.mxu0 %v8873_v7  ;;  %3657 = vmatprep.subr.bf16.mxu1 %v8879_v2  ;;  %11849 = vst [vmem:[#allocation25_spill] sm:$0xff] %v8963_v27 }
0x1229   :  { %3617 = vmatpush1.bf16.msra.mxu0 %v8885_v3  ;;  %3658 = vmatpush1.bf16.msra.mxu1 %v8891_v49 }
0x122a   :  { %3618 = vmatprep.subr.bf16.mxu0 %v8897_v45  ;;  %3659 = vmatprep.subr.bf16.mxu1 %v8903_v51 }
0x122d   :  { %3619 = vmatpush1.bf16.msra.mxu0 %v8909_v48  ;;  %3660 = vmatpush1.bf16.msra.mxu1 %v8915_v0 }
0x122e   :  { %3620 = vmatprep.subr.bf16.mxu0 %v8921_v44  ;;  %3661 = vmatprep.subr.bf16.mxu1 %v8927_v37 }
0x1231   :  { %3621 = vmatpush1.bf16.msra.mxu0 %v8933_v32  ;;  %3662 = vmatpush1.bf16.msra.mxu1 %v8939_v52 }
0x1232   :  { %3622 = vmatprep.subr.bf16.mxu0 %v8945_v55  ;;  %3663 = vmatprep.subr.bf16.mxu1 %v8951_v46  ;;  %v8969_v55 = vld [vmem:[%s11073_s6 + $0xa4] ss:$16 sps:$4 sm:$0xff]   ;;  %v8975_v46 = vld [vmem:[%s11073_s6 + $0xac] ss:$16 sps:$4 sm:$0xff]  }
0x1233   :  { %11850 = vst [vmem:[#allocation26_spill] sm:$0xff] %v8969_v55  ;;  %11851 = vst [vmem:[#allocation27_spill] sm:$0xff] %v8975_v46 }
0x1235   :  { %3623 = vmatpush1.bf16.msra.mxu0 %v8957_v50  ;;  %3664 = vmatpush1.bf16.msra.mxu1 %v8963_v27  ;;  %v8981_v50 = vld [vmem:[%s11073_s6 + $0xa0] ss:$16 sps:$4 sm:$0xff]   ;;  %v8987_v27 = vld [vmem:[%s11073_s6 + $0xa8] ss:$16 sps:$4 sm:$0xff]  }
0x1236   :  { %3624 = vmatprep.subr.bf16.mxu0 %v8969_v55  ;;  %3665 = vmatprep.subr.bf16.mxu1 %v8975_v46  ;;  %11852 = vst [vmem:[#allocation28_spill] sm:$0xff] %v8981_v50  ;;  %11853 = vst [vmem:[#allocation29_spill] sm:$0xff] %v8987_v27  ;;  %v8993_v55 = vld [vmem:[%s11073_s6 + $0xc4] ss:$16 sps:$4 sm:$0xff]   ;;  %v8999_v46 = vld [vmem:[%s11073_s6 + $0xcc] ss:$16 sps:$4 sm:$0xff]  }
0x1237   :  { %11854 = vst [vmem:[#allocation30_spill] sm:$0xff] %v8993_v55  ;;  %11855 = vst [vmem:[#allocation31_spill] sm:$0xff] %v8999_v46 }
0x1239   :  { %3625 = vmatpush1.bf16.msra.mxu0 %v8981_v50  ;;  %3666 = vmatpush1.bf16.msra.mxu1 %v8987_v27  ;;  %v9005_v50 = vld [vmem:[%s11073_s6 + $0xc0] ss:$16 sps:$4 sm:$0xff]   ;;  %v9011_v27 = vld [vmem:[%s11073_s6 + $0xc8] ss:$16 sps:$4 sm:$0xff]  }
0x123a   :  { %3626 = vmatprep.subr.bf16.mxu0 %v8993_v55  ;;  %3667 = vmatprep.subr.bf16.mxu1 %v8999_v46  ;;  %11856 = vst [vmem:[#allocation32_spill] sm:$0xff] %v9005_v50  ;;  %11857 = vst [vmem:[#allocation33_spill] sm:$0xff] %v9011_v27  ;;  %v9017_v55 = vld [vmem:[%s11073_s6 + $0xe4] ss:$16 sps:$4 sm:$0xff]   ;;  %v9023_v46 = vld [vmem:[%s11073_s6 + $0xec] ss:$16 sps:$4 sm:$0xff]  }
0x123b   :  { %11858 = vst [vmem:[#allocation34_spill] sm:$0xff] %v9017_v55  ;;  %11859 = vst [vmem:[#allocation35_spill] sm:$0xff] %v9023_v46 }
0x123d   :  { %3627 = vmatpush1.bf16.msra.mxu0 %v9005_v50  ;;  %3668 = vmatpush1.bf16.msra.mxu1 %v9011_v27  ;;  %v9029_v50 = vld [vmem:[%s11073_s6 + $0xe0] ss:$16 sps:$4 sm:$0xff]   ;;  %v9035_v27 = vld [vmem:[%s11073_s6 + $0xe8] ss:$16 sps:$4 sm:$0xff]  }
0x123e   :  { %3628 = vmatprep.subr.bf16.mxu0 %v9017_v55  ;;  %3669 = vmatprep.subr.bf16.mxu1 %v9023_v46  ;;  %11860 = vst [vmem:[#allocation36_spill] sm:$0xff] %v9029_v50  ;;  %11861 = vst [vmem:[#allocation37_spill] sm:$0xff] %v9035_v27  ;;  %v9041_v55 = vld [vmem:[%s11073_s6 + $0x104] ss:$16 sps:$4 sm:$0xff]   ;;  %v9047_v46 = vld [vmem:[%s11073_s6 + $0x10c] ss:$16 sps:$4 sm:$0xff]  }
0x123f   :  { %11862 = vst [vmem:[#allocation38_spill] sm:$0xff] %v9041_v55  ;;  %11863 = vst [vmem:[#allocation39_spill] sm:$0xff] %v9047_v46 }
0x1241   :  { %3629 = vmatpush1.bf16.msra.mxu0 %v9029_v50  ;;  %3670 = vmatpush1.bf16.msra.mxu1 %v9035_v27  ;;  %v9053_v50 = vld [vmem:[%s11073_s6 + $0x100] ss:$16 sps:$4 sm:$0xff]   ;;  %v9059_v27 = vld [vmem:[%s11073_s6 + $0x108] ss:$16 sps:$4 sm:$0xff]  }
0x1242   :  { %3630 = vmatprep.subr.bf16.mxu0 %v9041_v55  ;;  %3671 = vmatprep.subr.bf16.mxu1 %v9047_v46  ;;  %11864 = vst [vmem:[#allocation40_spill] sm:$0xff] %v9053_v50  ;;  %11865 = vst [vmem:[#allocation41_spill] sm:$0xff] %v9059_v27  ;;  %v9065_v55 = vld [vmem:[%s11073_s6 + $0x124] ss:$16 sps:$4 sm:$0xff]   ;;  %v9071_v46 = vld [vmem:[%s11073_s6 + $0x12c] ss:$16 sps:$4 sm:$0xff]  }
0x1243   :  { %11866 = vst [vmem:[#allocation16_spill] sm:$0xff] %v9065_v55  ;;  %11867 = vst [vmem:[#allocation13_spill] sm:$0xff] %v9071_v46 }
0x1245   :  { %3631 = vmatpush1.bf16.msra.mxu0 %v9053_v50  ;;  %3672 = vmatpush1.bf16.msra.mxu1 %v9059_v27  ;;  %v9077_v50 = vld [vmem:[%s11073_s6 + $0x120] ss:$16 sps:$4 sm:$0xff]   ;;  %v9083_v27 = vld [vmem:[%s11073_s6 + $0x128] ss:$16 sps:$4 sm:$0xff]  }
0x1246   :  { %3632 = vmatprep.subr.bf16.mxu0 %v9065_v55  ;;  %3673 = vmatprep.subr.bf16.mxu1 %v9071_v46  ;;  %11868 = vst [vmem:[#allocation42_spill] sm:$0xff] %v9077_v50  ;;  %11869 = vst [vmem:[#allocation43_spill] sm:$0xff] %v9083_v27  ;;  %v9089_v55 = vld [vmem:[%s11073_s6 + $0x144] ss:$16 sps:$4 sm:$0xff]   ;;  %v9095_v46 = vld [vmem:[%s11073_s6 + $0x14c] ss:$16 sps:$4 sm:$0xff]  }
0x1247   :  { %11870 = vst [vmem:[#allocation44_spill] sm:$0xff] %v9089_v55  ;;  %11871 = vst [vmem:[#allocation45_spill] sm:$0xff] %v9095_v46 }
0x1249   :  { %3633 = vmatpush1.bf16.msra.mxu0 %v9077_v50  ;;  %3674 = vmatpush1.bf16.msra.mxu1 %v9083_v27  ;;  %v9101_v50 = vld [vmem:[%s11073_s6 + $0x140] ss:$16 sps:$4 sm:$0xff]   ;;  %v9107_v27 = vld [vmem:[%s11073_s6 + $0x148] ss:$16 sps:$4 sm:$0xff]  }
0x124a   :  { %3634 = vmatprep.subr.bf16.mxu0 %v9089_v55  ;;  %3675 = vmatprep.subr.bf16.mxu1 %v9095_v46  ;;  %11872 = vst [vmem:[#allocation46_spill] sm:$0xff] %v9101_v50  ;;  %11873 = vst [vmem:[#allocation47_spill] sm:$0xff] %v9107_v27  ;;  %v9113_v55 = vld [vmem:[%s11073_s6 + $0x164] ss:$16 sps:$4 sm:$0xff]   ;;  %v9119_v46 = vld [vmem:[%s11073_s6 + $0x16c] ss:$16 sps:$4 sm:$0xff]  }
0x124b   :  { %11874 = vst [vmem:[#allocation48_spill] sm:$0xff] %v9113_v55  ;;  %11875 = vst [vmem:[#allocation49_spill] sm:$0xff] %v9119_v46 }
0x124d   :  { %3635 = vmatpush1.bf16.msra.mxu0 %v9101_v50  ;;  %3676 = vmatpush1.bf16.msra.mxu1 %v9107_v27  ;;  %v9125_v50 = vld [vmem:[%s11073_s6 + $0x160] ss:$16 sps:$4 sm:$0xff]   ;;  %v9131_v27 = vld [vmem:[%s11073_s6 + $0x168] ss:$16 sps:$4 sm:$0xff]  }
0x124e   :  { %3636 = vmatprep.subr.bf16.mxu0 %v9113_v55  ;;  %3677 = vmatprep.subr.bf16.mxu1 %v9119_v46  ;;  %11876 = vst [vmem:[#allocation50_spill] sm:$0xff] %v9125_v50  ;;  %11877 = vst [vmem:[#allocation51_spill] sm:$0xff] %v9131_v27  ;;  %v9137_v55 = vld [vmem:[%s11073_s6 + $0x184] ss:$16 sps:$4 sm:$0xff]   ;;  %v9143_v46 = vld [vmem:[%s11073_s6 + $0x18c] ss:$16 sps:$4 sm:$0xff]  }
0x124f   :  { %11878 = vst [vmem:[#allocation52_spill] sm:$0xff] %v9137_v55  ;;  %11879 = vst [vmem:[#allocation53_spill] sm:$0xff] %v9143_v46 }
0x1251   :  { %3637 = vmatpush1.bf16.msra.mxu0 %v9125_v50  ;;  %3678 = vmatpush1.bf16.msra.mxu1 %v9131_v27  ;;  %v9149_v50 = vld [vmem:[%s11073_s6 + $0x180] ss:$16 sps:$4 sm:$0xff]   ;;  %v9155_v27 = vld [vmem:[%s11073_s6 + $0x188] ss:$16 sps:$4 sm:$0xff]  }
0x1252   :  { %3638 = vmatprep.subr.bf16.mxu0 %v9137_v55  ;;  %3679 = vmatprep.subr.bf16.mxu1 %v9143_v46  ;;  %11880 = vst [vmem:[#allocation54_spill] sm:$0xff] %v9149_v50  ;;  %11881 = vst [vmem:[#allocation55_spill] sm:$0xff] %v9155_v27  ;;  %v9161_v55 = vld [vmem:[%s11073_s6 + $0x1a4] ss:$16 sps:$4 sm:$0xff]   ;;  %v9167_v46 = vld [vmem:[%s11073_s6 + $0x1ac] ss:$16 sps:$4 sm:$0xff]  }
0x1253   :  { %11882 = vst [vmem:[#allocation56_spill] sm:$0xff] %v9161_v55  ;;  %11883 = vst [vmem:[#allocation57_spill] sm:$0xff] %v9167_v46 }
0x1255   :  { %3639 = vmatpush1.bf16.msra.mxu0 %v9149_v50  ;;  %3680 = vmatpush1.bf16.msra.mxu1 %v9155_v27  ;;  %v9173_v50 = vld [vmem:[%s11073_s6 + $0x1a0] ss:$16 sps:$4 sm:$0xff]   ;;  %v9179_v27 = vld [vmem:[%s11073_s6 + $0x1a8] ss:$16 sps:$4 sm:$0xff]  }
0x1256   :  { %3640 = vmatprep.subr.bf16.mxu0 %v9161_v55  ;;  %3681 = vmatprep.subr.bf16.mxu1 %v9167_v46  ;;  %11884 = vst [vmem:[#allocation58_spill] sm:$0xff] %v9173_v50  ;;  %11885 = vst [vmem:[#allocation59_spill] sm:$0xff] %v9179_v27  ;;  %v9185_v55 = vld [vmem:[%s11073_s6 + $0x1c4] ss:$16 sps:$4 sm:$0xff]   ;;  %v9191_v46 = vld [vmem:[%s11073_s6 + $0x1cc] ss:$16 sps:$4 sm:$0xff]  }
0x1257   :  { %11886 = vst [vmem:[#allocation60_spill] sm:$0xff] %v9185_v55  ;;  %11887 = vst [vmem:[#allocation61_spill] sm:$0xff] %v9191_v46 }
0x1259   :  { %3641 = vmatpush1.bf16.msra.mxu0 %v9173_v50  ;;  %3682 = vmatpush1.bf16.msra.mxu1 %v9179_v27  ;;  %v9197_v50 = vld [vmem:[%s11073_s6 + $0x1c0] ss:$16 sps:$4 sm:$0xff]   ;;  %v9203_v27 = vld [vmem:[%s11073_s6 + $0x1c8] ss:$16 sps:$4 sm:$0xff]  }
0x125a   :  { %3642 = vmatprep.subr.bf16.mxu0 %v9185_v55  ;;  %3683 = vmatprep.subr.bf16.mxu1 %v9191_v46  ;;  %11888 = vst [vmem:[#allocation62_spill] sm:$0xff] %v9197_v50  ;;  %11889 = vst [vmem:[#allocation63_spill] sm:$0xff] %v9203_v27  ;;  %v9209_v55 = vld [vmem:[%s11073_s6 + $0x1e4] ss:$16 sps:$4 sm:$0xff]   ;;  %v9215_v46 = vld [vmem:[%s11073_s6 + $0x1ec] ss:$16 sps:$4 sm:$0xff]  }
0x125b   :  { %11890 = vst [vmem:[#allocation64_spill] sm:$0xff] %v9209_v55  ;;  %11891 = vst [vmem:[#allocation65_spill] sm:$0xff] %v9215_v46 }
0x125d   :  { %3643 = vmatpush1.bf16.msra.mxu0 %v9197_v50  ;;  %3684 = vmatpush1.bf16.msra.mxu1 %v9203_v27  ;;  %v9221_v50 = vld [vmem:[%s11073_s6 + $0x1e0] ss:$16 sps:$4 sm:$0xff]   ;;  %v9227_v27 = vld [vmem:[%s11073_s6 + $0x1e8] ss:$16 sps:$4 sm:$0xff]  }
0x125e   :  { %3644 = vmatprep.subr.bf16.mxu0 %v9209_v55  ;;  %3685 = vmatprep.subr.bf16.mxu1 %v9215_v46  ;;  %11892 = vst [vmem:[#allocation66_spill] sm:$0xff] %v9221_v50  ;;  %11893 = vst [vmem:[#allocation67_spill] sm:$0xff] %v9227_v27  ;;  %v11894_v55 = vld [vmem:[#allocation17_spill] sm:$0xff] }
0x125f   :  { %v3613_v52 = vpack.c.bf16 %v11894_v55, %v11894_v55 }
0x1261   :  { %3645 = vmatpush1.bf16.msra.mxu0 %v9221_v50  ;;  %3686 = vmatpush1.bf16.msra.mxu1 %v9227_v27 }
0x1262   :  { %3722 = vmatprep.subr.bf16.mxu0 %v11777_v8  ;;  %3763 = vmatprep.subr.bf16.mxu1 %v11778_v9  ;;  %v11895_v8 = vld [vmem:[#allocation80_spill] sm:$0xff]  ;;  %v11896_v9 = vld [vmem:[#allocation81_spill] sm:$0xff] }
0x1264   :  { %3647 = vmatmul.mubr.bf16.vlgmr.msra.gmra.mrb[80].mxu0 %v3613_v52  ;;  %3688 = vmatmul.mubr.bf16.vlgmr.msra.gmra.mrb[80].mxu1 %v3613_v52 }
0x1265   :  { %3723 = vmatpush1.bf16.msra.mxu0 %v11779_v10  ;;  %3764 = vmatpush1.bf16.msra.mxu1 %v11780_v11  ;;  %v11897_v10 = vld [vmem:[#allocation82_spill] sm:$0xff]  ;;  %v11898_v11 = vld [vmem:[#allocation83_spill] sm:$0xff] }
0x1266   :  { %3724 = vmatprep.subr.bf16.mxu0 %v11781_v12  ;;  %3765 = vmatprep.subr.bf16.mxu1 %v11782_v13  ;;  %v11899_v12 = vld [vmem:[#allocation84_spill] sm:$0xff]  ;;  %v11900_v13 = vld [vmem:[#allocation85_spill] sm:$0xff] }
0x1269   :  { %3725 = vmatpush1.bf16.msra.mxu0 %v11783_v14  ;;  %3766 = vmatpush1.bf16.msra.mxu1 %v11784_v15  ;;  %v11901_v14 = vld [vmem:[#allocation86_spill] sm:$0xff]  ;;  %v11902_v15 = vld [vmem:[#allocation87_spill] sm:$0xff] }
0x126a   :  { %3726 = vmatprep.subr.bf16.mxu0 %v11785_v16  ;;  %3767 = vmatprep.subr.bf16.mxu1 %v11786_v17  ;;  %v11903_v16 = vld [vmem:[#allocation88_spill] sm:$0xff]  ;;  %v11904_v17 = vld [vmem:[#allocation89_spill] sm:$0xff] }
0x126d   :  { %3727 = vmatpush1.bf16.msra.mxu0 %v11787_v18  ;;  %3768 = vmatpush1.bf16.msra.mxu1 %v11788_v19  ;;  %v11905_v18 = vld [vmem:[#allocation90_spill] sm:$0xff]  ;;  %v11906_v19 = vld [vmem:[#allocation91_spill] sm:$0xff] }
0x126e   :  { %3728 = vmatprep.subr.bf16.mxu0 %v11789_v20  ;;  %3769 = vmatprep.subr.bf16.mxu1 %v11790_v21  ;;  %v11907_v20 = vld [vmem:[#allocation92_spill] sm:$0xff]  ;;  %v11908_v21 = vld [vmem:[#allocation93_spill] sm:$0xff] }
0x1271   :  { %3729 = vmatpush1.bf16.msra.mxu0 %v11791_v36  ;;  %3770 = vmatpush1.bf16.msra.mxu1 %v11792_v1  ;;  %v11909_v36 = vld [vmem:[#allocation94_spill] sm:$0xff]  ;;  %v11910_v1 = vld [vmem:[#allocation95_spill] sm:$0xff] }
0x1272   :  { %3730 = vmatprep.subr.bf16.mxu0 %v11793_v63  ;;  %3771 = vmatprep.subr.bf16.mxu1 %v11794_v6  ;;  %v11911_v63 = vld [vmem:[#allocation96_spill] sm:$0xff]  ;;  %v11912_v6 = vld [vmem:[#allocation97_spill] sm:$0xff] }
0x1275   :  { %3731 = vmatpush1.bf16.msra.mxu0 %v11795_v30  ;;  %3772 = vmatpush1.bf16.msra.mxu1 %v11796_v54  ;;  %v11913_v30 = vld [vmem:[#allocation98_spill] sm:$0xff]  ;;  %v11914_v54 = vld [vmem:[#allocation99_spill] sm:$0xff] }
0x1276   :  { %3732 = vmatprep.subr.bf16.mxu0 %v11797_v59  ;;  %3773 = vmatprep.subr.bf16.mxu1 %v11798_v24  ;;  %v11915_v59 = vld [vmem:[#allocation100_spill] sm:$0xff]  ;;  %v11916_v24 = vld [vmem:[#allocation101_spill] sm:$0xff] }
0x1279   :  { %3733 = vmatpush1.bf16.msra.mxu0 %v11799_v22  ;;  %3774 = vmatpush1.bf16.msra.mxu1 %v11800_v31  ;;  %v11917_v22 = vld [vmem:[#allocation102_spill] sm:$0xff]  ;;  %v11918_v31 = vld [vmem:[#allocation103_spill] sm:$0xff] }
0x127a   :  { %3734 = vmatprep.subr.bf16.mxu0 %v11801_v62  ;;  %3775 = vmatprep.subr.bf16.mxu1 %v11802_v61  ;;  %v11919_v62 = vld [vmem:[#allocation104_spill] sm:$0xff]  ;;  %v11920_v61 = vld [vmem:[#allocation10_spill] sm:$0xff] }
0x127d   :  { %3735 = vmatpush1.bf16.msra.mxu0 %v11803_v60  ;;  %3776 = vmatpush1.bf16.msra.mxu1 %v11804_v25  ;;  %v11921_v60 = vld [vmem:[#allocation12_spill] sm:$0xff] }
0x127e   :  { %3736 = vmatprep.subr.bf16.mxu0 %v11805_v35  ;;  %3777 = vmatprep.subr.bf16.mxu1 %v11806_v58  ;;  %v11922_v58 = vld [vmem:[#allocation11_spill] sm:$0xff] }
0x1281   :  { %3737 = vmatpush1.bf16.msra.mxu0 %v11807_v33  ;;  %3778 = vmatpush1.bf16.msra.mxu1 %v11808_v28 }
0x1282   :  { %3738 = vmatprep.subr.bf16.mxu0 %v11809_v43  ;;  %3779 = vmatprep.subr.bf16.mxu1 %v11810_v42 }
0x1285   :  { %3739 = vmatpush1.bf16.msra.mxu0 %v11811_v40  ;;  %3780 = vmatpush1.bf16.msra.mxu1 %v11812_v41 }
0x1286   :  { %3740 = vmatprep.subr.bf16.mxu0 %v11813_v47  ;;  %3781 = vmatprep.subr.bf16.mxu1 %v11814_v4 }
0x1289   :  { %3741 = vmatpush1.bf16.msra.mxu0 %v11815_v53  ;;  %3782 = vmatpush1.bf16.msra.mxu1 %v11895_v8 }
0x128a   :  { %3742 = vmatprep.subr.bf16.mxu0 %v11896_v9  ;;  %3783 = vmatprep.subr.bf16.mxu1 %v11897_v10 }
0x128d   :  { %3743 = vmatpush1.bf16.msra.mxu0 %v11898_v11  ;;  %3784 = vmatpush1.bf16.msra.mxu1 %v11899_v12 }
0x128e   :  { %3744 = vmatprep.subr.bf16.mxu0 %v11900_v13  ;;  %3785 = vmatprep.subr.bf16.mxu1 %v11901_v14 }
0x1291   :  { %3745 = vmatpush1.bf16.msra.mxu0 %v11902_v15  ;;  %3786 = vmatpush1.bf16.msra.mxu1 %v11903_v16 }
0x1292   :  { %3746 = vmatprep.subr.bf16.mxu0 %v11904_v17  ;;  %3787 = vmatprep.subr.bf16.mxu1 %v11905_v18 }
0x1295   :  { %3747 = vmatpush1.bf16.msra.mxu0 %v11906_v19  ;;  %3788 = vmatpush1.bf16.msra.mxu1 %v11907_v20  ;;  %v11923_v20 = vld [vmem:[#allocation20_spill] sm:$0xff] }
0x1296   :  { %3748 = vmatprep.subr.bf16.mxu0 %v11908_v21  ;;  %3789 = vmatprep.subr.bf16.mxu1 %v11909_v36 }
0x1299   :  { %3749 = vmatpush1.bf16.msra.mxu0 %v11910_v1  ;;  %3790 = vmatpush1.bf16.msra.mxu1 %v11911_v63 }
0x129a   :  { %3750 = vmatprep.subr.bf16.mxu0 %v11912_v6  ;;  %3791 = vmatprep.subr.bf16.mxu1 %v11913_v30 }
0x129d   :  { %3751 = vmatpush1.bf16.msra.mxu0 %v11914_v54  ;;  %3792 = vmatpush1.bf16.msra.mxu1 %v11915_v59 }
0x129e   :  { %3752 = vmatprep.subr.bf16.mxu0 %v11916_v24  ;;  %3793 = vmatprep.subr.bf16.mxu1 %v11917_v22  ;;  %v11924_v24 = vld [vmem:[#allocation9_spill] sm:$0xff] }
0x12a1   :  { %3753 = vmatpush1.bf16.msra.mxu0 %v11918_v31  ;;  %3794 = vmatpush1.bf16.msra.mxu1 %v11919_v62 }
0x12a2   :  { %3836 = vmatprep.subr.bf16.mxu0 %v11920_v61  ;;  %3877 = vmatprep.subr.bf16.mxu1 %v11921_v60 }
0x12f7   :  { %v3534_v25 = vpop.f32.mrb[76].mxu0  ;;  %v3575_v35 = vpop.f32.mrb[76].mxu1 }
0x12f8   :  { %v3535_v33 = vadd.f32 %v3534_v25, %v11922_v58  ;;  %v3536_v28 = vpop.f32.mrb[77].mxu0  ;;  %v3577_v43 = vpop.f32.mrb[77].mxu1  ;;  %v3576_v9 = vadd.f32 %v3575_v35, %v8844_v23 }
0x12f9   :  { %v3537_v42 = vadd.f32 %v3536_v28, %v8835_v29  ;;  %v3538_v40 = vpop.f32.mrb[78].mxu0  ;;  %v3579_v41 = vpop.f32.mrb[78].mxu1  ;;  %v3578_v55 = vadd.f32 %v3577_v43, %v8840_v57 }
0x12fa   :  { %v5309_v47 = vmul.f32 -1.442695, %v3535_v33  ;;  %v3539_v4 = vpop.f32.mrb[79].mxu0  ;;  %v3580_v53 = vpop.f32.mrb[79].mxu1 }
0x12fb   :  { %v5310_v52 = vmul.f32 -1.442695, %v3537_v42  ;;  %v5311_v8 = vmul.f32 -1.442695, %v3578_v55 }
0x12fc   :  { %5946 = vpow2.f32 %v5309_v47 }
0x12fd   :  { %5948 = vpow2.f32 %v5310_v52 }
0x12fe   :  { %5950 = vpow2.f32 %v5311_v8 }
0x12ff   :  { %5952 = vtanh.f32 %v3576_v9 }
0x1306   :  { %v5947_v10 = vpop.eup %5946 }
0x1307   :  { %v5949_v11 = vpop.eup %5948  ;;  %v3585_v12 = vadd.f32 1.0, %v5947_v10 }
0x1308   :  { %v3591_v13 = vadd.f32 1.0, %v5949_v11  ;;  %v5951_v14 = vpop.eup %5950 }
0x1309   :  { %5954 = vrcp.f32 %v3585_v12  ;;  %v5953_v15 = vpop.eup %5952  ;;  %v3598_v19 = vadd.f32 1.0, %v5951_v14 }
0x130a   :  { %5956 = vrcp.f32 %v3591_v13 }
0x130b   :  { %5958 = vrcp.f32 %v3598_v19 }
0x1313   :  { %v5955_v16 = vpop.eup %5954 }
0x1314   :  { %v5957_v17 = vpop.eup %5956  ;;  %v3602_v18 = vmul.f32 %v5955_v16, %v5953_v15 }
0x1315   :  { %v3601_v21 = vmul.f32 %v5957_v17, %v11923_v20  ;;  %v5959_v1 = vpop.eup %5958 }
0x1317   :  { %v9303_v36 = vadd.f32 %v3602_v18, %v3601_v21  ;;  %v11926_v21 = vld [vmem:[#allocation22_spill] sm:$0xff] }
0x1319   :  { %5960 = vtanh.f32 %v9303_v36 }
0x1323   :  { %v5961_v63 = vpop.eup %5960 }
0x1324   :  { %v3605_v6 = vmul.f32 %v5961_v63, %v5959_v1  ;;  %v11927_v1 = vld [vmem:[#allocation23_spill] sm:$0xff]  ;;  %v11928_v63 = vld [vmem:[#allocation24_spill] sm:$0xff] }
0x1326   :  { %v3721_v30 = vpack.c.bf16 %v3605_v6, %v3605_v6  ;;  %v11929_v6 = vld [vmem:[#allocation25_spill] sm:$0xff] }
0x1328   :  { %3754 = vmatprep.mubr.bf16.mxu0 %v3721_v30  ;;  %3795 = vmatprep.mubr.bf16.mxu1 %v3721_v30  ;;  %v11930_v30 = vld [vmem:[#allocation26_spill] sm:$0xff] }
0x1337   :  { %v3648_v54 = vpop.f32.mrb[80].mxu0  ;;  %v3689_v59 = vpop.f32.mrb[80].mxu1 }
0x1338   :  { %v3649_v22 = vadd.f32 %v3648_v54, %v11924_v24  ;;  %v3650_v31 = vpop.f32.mrb[81].mxu0  ;;  %v3691_v62 = vpop.f32.mrb[81].mxu1  ;;  %v3690_v4 = vadd.f32 %v3689_v59, %v8682_v39  ;;  %v11931_v54 = vld [vmem:[#allocation27_spill] sm:$0xff]  ;;  %v11932_v59 = vld [vmem:[#allocation28_spill] sm:$0xff] }
0x1339   :  { %v3651_v25 = vadd.f32 %v3650_v31, %v8673_v38  ;;  %v3652_v35 = vpop.f32.mrb[82].mxu0  ;;  %v3693_v33 = vpop.f32.mrb[82].mxu1  ;;  %v3692_v41 = vadd.f32 %v3691_v62, %v8678_v26  ;;  %v11934_v31 = vld [vmem:[#allocation30_spill] sm:$0xff]  ;;  %v11935_v62 = vld [vmem:[#allocation31_spill] sm:$0xff] }
0x133a   :  { %v5312_v28 = vmul.f32 -1.442695, %v3649_v22  ;;  %v3653_v43 = vpop.f32.mrb[83].mxu0  ;;  %v3694_v42 = vpop.f32.mrb[83].mxu1  ;;  %v11933_v22 = vld [vmem:[#allocation29_spill] sm:$0xff]  ;;  %v11938_v33 = vld [vmem:[#allocation34_spill] sm:$0xff] }
0x133b   :  { %v5313_v40 = vmul.f32 -1.442695, %v3651_v25  ;;  %v5314_v47 = vmul.f32 -1.442695, %v3692_v41  ;;  %v11936_v25 = vld [vmem:[#allocation32_spill] sm:$0xff]  ;;  %v11937_v35 = vld [vmem:[#allocation33_spill] sm:$0xff] }
0x133c   :  { %5962 = vpow2.f32 %v5312_v28  ;;  %v11939_v28 = vld [vmem:[#allocation35_spill] sm:$0xff]  ;;  %v11940_v43 = vld [vmem:[#allocation36_spill] sm:$0xff]  ;;  %v11941_v42 = vld [vmem:[#allocation37_spill] sm:$0xff] }
0x133d   :  { %5964 = vpow2.f32 %v5313_v40  ;;  %v11942_v40 = vld [vmem:[#allocation38_spill] sm:$0xff]  ;;  %v11943_v41 = vld [vmem:[#allocation39_spill] sm:$0xff] }
0x133e   :  { %5966 = vpow2.f32 %v5314_v47  ;;  %v11944_v47 = vld [vmem:[#allocation40_spill] sm:$0xff] }
0x133f   :  { %5968 = vtanh.f32 %v3690_v4  ;;  %v11945_v4 = vld [vmem:[#allocation41_spill] sm:$0xff] }
0x1346   :  { %v5963_v53 = vpop.eup %5962 }
0x1347   :  { %v5965_v52 = vpop.eup %5964  ;;  %v3699_v55 = vadd.f32 1.0, %v5963_v53  ;;  %v11946_v53 = vld [vmem:[#allocation16_spill] sm:$0xff] }
0x1348   :  { %v3705_v8 = vadd.f32 1.0, %v5965_v52  ;;  %v5967_v9 = vpop.eup %5966  ;;  %v11947_v52 = vld [vmem:[#allocation13_spill] sm:$0xff] }
0x1349   :  { %5970 = vrcp.f32 %v3699_v55  ;;  %v5969_v10 = vpop.eup %5968  ;;  %v3712_v14 = vadd.f32 1.0, %v5967_v9  ;;  %v11948_v55 = vld [vmem:[#allocation42_spill] sm:$0xff]  ;;  %v11950_v9 = vld [vmem:[#allocation44_spill] sm:$0xff] }
0x134a   :  { %5972 = vrcp.f32 %v3705_v8  ;;  %v11949_v8 = vld [vmem:[#allocation43_spill] sm:$0xff] }
0x134b   :  { %5974 = vrcp.f32 %v3712_v14  ;;  %v11955_v14 = vld [vmem:[#allocation49_spill] sm:$0xff] }
0x1353   :  { %v5971_v11 = vpop.eup %5970 }
0x1354   :  { %v5973_v12 = vpop.eup %5972  ;;  %v3716_v13 = vmul.f32 %v5971_v11, %v5969_v10  ;;  %v11951_v10 = vld [vmem:[#allocation45_spill] sm:$0xff]  ;;  %v11952_v11 = vld [vmem:[#allocation46_spill] sm:$0xff] }
0x1355   :  { %v3715_v15 = vmul.f32 %v5973_v12, %v8855_v56  ;;  %v5975_v17 = vpop.eup %5974  ;;  %v11925_v56 = vld [vmem:[#allocation21_spill] sm:$0xff]  ;;  %v11953_v12 = vld [vmem:[#allocation47_spill] sm:$0xff] }
0x1357   :  { %v9311_v16 = vadd.f32 %v3716_v13, %v3715_v15  ;;  %v11954_v13 = vld [vmem:[#allocation48_spill] sm:$0xff]  ;;  %v11956_v15 = vld [vmem:[#allocation50_spill] sm:$0xff] }
0x1359   :  { %5976 = vtanh.f32 %v9311_v16 }
0x1363   :  { %v5977_v18 = vpop.eup %5976 }
0x1364   :  { %v3719_v19 = vmul.f32 %v5977_v18, %v5975_v17  ;;  %v11957_v17 = vld [vmem:[#allocation51_spill] sm:$0xff]  ;;  %v11958_v18 = vld [vmem:[#allocation52_spill] sm:$0xff] }
0x1366   :  { %v3720_v20 = vpack.c.bf16 %v3719_v19, %v3719_v19  ;;  %v11959_v19 = vld [vmem:[#allocation53_spill] sm:$0xff] }
0x1368   :  { %3755 = vmatmul.mubr.bf16.vlgmr.msra.gmra.mrb[84].mxu0 %v3720_v20  ;;  %3796 = vmatmul.mubr.bf16.vlgmr.msra.gmra.mrb[84].mxu1 %v3720_v20 }
0x1369   :  { %3837 = vmatpush1.bf16.msra.mxu0 %v8861_v5  ;;  %3878 = vmatpush1.bf16.msra.mxu1 %v8867_v34 }
0x136a   :  { %3868 = vmatprep.mubr.bf16.mxu0 %v3720_v20  ;;  %3909 = vmatprep.mubr.bf16.mxu1 %v3720_v20  ;;  %v11960_v20 = vld [vmem:[#allocation54_spill] sm:$0xff] }
0x136b   :  { %3838 = vmatprep.subr.bf16.mxu0 %v8873_v7  ;;  %3879 = vmatprep.subr.bf16.mxu1 %v8879_v2 }
0x136d   :  { %3839 = vmatpush1.bf16.msra.mxu0 %v8885_v3  ;;  %3880 = vmatpush1.bf16.msra.mxu1 %v8891_v49 }
0x136e   :  { %3840 = vmatprep.subr.bf16.mxu0 %v8897_v45  ;;  %3881 = vmatprep.subr.bf16.mxu1 %v8903_v51 }
0x1371   :  { %3841 = vmatpush1.bf16.msra.mxu0 %v8909_v48  ;;  %3882 = vmatpush1.bf16.msra.mxu1 %v8915_v0 }
0x1372   :  { %3842 = vmatprep.subr.bf16.mxu0 %v8921_v44  ;;  %3883 = vmatprep.subr.bf16.mxu1 %v8927_v37 }
0x1375   :  { %3843 = vmatpush1.bf16.msra.mxu0 %v8933_v32  ;;  %3884 = vmatpush1.bf16.msra.mxu1 %v11925_v56 }
0x1376   :  { %3844 = vmatprep.subr.bf16.mxu0 %v11926_v21  ;;  %3885 = vmatprep.subr.bf16.mxu1 %v11927_v1 }
0x1379   :  { %3845 = vmatpush1.bf16.msra.mxu0 %v11928_v63  ;;  %3886 = vmatpush1.bf16.msra.mxu1 %v11929_v6 }
0x137a   :  { %3846 = vmatprep.subr.bf16.mxu0 %v11930_v30  ;;  %3887 = vmatprep.subr.bf16.mxu1 %v11931_v54 }
0x137d   :  { %3847 = vmatpush1.bf16.msra.mxu0 %v11932_v59  ;;  %3888 = vmatpush1.bf16.msra.mxu1 %v11933_v22 }
0x137e   :  { %3848 = vmatprep.subr.bf16.mxu0 %v11934_v31  ;;  %3889 = vmatprep.subr.bf16.mxu1 %v11935_v62 }
0x1381   :  { %3849 = vmatpush1.bf16.msra.mxu0 %v11936_v25  ;;  %3890 = vmatpush1.bf16.msra.mxu1 %v11937_v35 }
0x1382   :  { %3850 = vmatprep.subr.bf16.mxu0 %v11938_v33  ;;  %3891 = vmatprep.subr.bf16.mxu1 %v11939_v28 }
0x1385   :  { %3851 = vmatpush1.bf16.msra.mxu0 %v11940_v43  ;;  %3892 = vmatpush1.bf16.msra.mxu1 %v11941_v42 }
0x1386   :  { %3852 = vmatprep.subr.bf16.mxu0 %v11942_v40  ;;  %3893 = vmatprep.subr.bf16.mxu1 %v11943_v41 }
0x1389   :  { %3853 = vmatpush1.bf16.msra.mxu0 %v11944_v47  ;;  %3894 = vmatpush1.bf16.msra.mxu1 %v11945_v4 }
0x138a   :  { %3854 = vmatprep.subr.bf16.mxu0 %v11946_v53  ;;  %3895 = vmatprep.subr.bf16.mxu1 %v11947_v52 }
0x138d   :  { %3855 = vmatpush1.bf16.msra.mxu0 %v11948_v55  ;;  %3896 = vmatpush1.bf16.msra.mxu1 %v11949_v8 }
0x138e   :  { %3856 = vmatprep.subr.bf16.mxu0 %v11950_v9  ;;  %3897 = vmatprep.subr.bf16.mxu1 %v11951_v10  ;;  %v11961_v9 = vld [vmem:[#allocation55_spill] sm:$0xff]  ;;  %v11962_v10 = vld [vmem:[#allocation56_spill] sm:$0xff] }
0x1391   :  { %3857 = vmatpush1.bf16.msra.mxu0 %v11952_v11  ;;  %3898 = vmatpush1.bf16.msra.mxu1 %v11953_v12  ;;  %v11963_v11 = vld [vmem:[#allocation57_spill] sm:$0xff]  ;;  %v11964_v12 = vld [vmem:[#allocation58_spill] sm:$0xff] }
0x1392   :  { %3858 = vmatprep.subr.bf16.mxu0 %v11954_v13  ;;  %3899 = vmatprep.subr.bf16.mxu1 %v11955_v14  ;;  %v11965_v13 = vld [vmem:[#allocation59_spill] sm:$0xff]  ;;  %v11966_v14 = vld [vmem:[#allocation60_spill] sm:$0xff] }
0x1395   :  { %3859 = vmatpush1.bf16.msra.mxu0 %v11956_v15  ;;  %3900 = vmatpush1.bf16.msra.mxu1 %v11957_v17  ;;  %v11967_v15 = vld [vmem:[#allocation61_spill] sm:$0xff]  ;;  %v11968_v17 = vld [vmem:[#allocation62_spill] sm:$0xff] }
0x1396   :  { %3860 = vmatprep.subr.bf16.mxu0 %v11958_v18  ;;  %3901 = vmatprep.subr.bf16.mxu1 %v11959_v19  ;;  %v11969_v18 = vld [vmem:[#allocation63_spill] sm:$0xff]  ;;  %v11970_v19 = vld [vmem:[#allocation64_spill] sm:$0xff] }
0x1399   :  { %3861 = vmatpush1.bf16.msra.mxu0 %v11960_v20  ;;  %3902 = vmatpush1.bf16.msra.mxu1 %v11961_v9 }
0x139a   :  { %3862 = vmatprep.subr.bf16.mxu0 %v11962_v10  ;;  %3903 = vmatprep.subr.bf16.mxu1 %v11963_v11  ;;  %v11971_v11 = vld [vmem:[#allocation18_spill] sm:$0xff] }
0x139d   :  { %3863 = vmatpush1.bf16.msra.mxu0 %v11964_v12  ;;  %3904 = vmatpush1.bf16.msra.mxu1 %v11965_v13  ;;  %v3835_v12 = vpack.c.bf16 %v11971_v11, %v11971_v11  ;;  %v9393_v11 = vld [vmem:[%s11075_s8] ss:$16 sps:$4 sm:$0xff]  }
0x139e   :  { %3864 = vmatprep.subr.bf16.mxu0 %v11966_v14  ;;  %3905 = vmatprep.subr.bf16.mxu1 %v11967_v15  ;;  %v9381_v14 = vld [vmem:[%s11075_s8 + $0x4] ss:$16 sps:$4 sm:$0xff]   ;;  %11974 = vst [vmem:[#allocation70_spill] sm:$0xff] %v9393_v11 }
0x139f   :  { %11972 = vst [vmem:[#allocation68_spill] sm:$0xff] %v9381_v14 }
0x13a1   :  { %3865 = vmatpush1.bf16.msra.mxu0 %v11968_v17  ;;  %3906 = vmatpush1.bf16.msra.mxu1 %v11969_v18 }
0x13a2   :  { %3866 = vmatprep.subr.bf16.mxu0 %v11970_v19  ;;  %3907 = vmatprep.subr.bf16.mxu1 %v9215_v46  ;;  %v9387_v19 = vld [vmem:[%s11075_s8 + $0xc] ss:$16 sps:$4 sm:$0xff]  }
0x13a3   :  { %11973 = vst [vmem:[#allocation69_spill] sm:$0xff] %v9387_v19 }
0x13a5   :  { %3867 = vmatpush1.bf16.msra.mxu0 %v9221_v50  ;;  %3908 = vmatpush1.bf16.msra.mxu1 %v9227_v27 }
0x13a6   :  { %3944 = vmatprep.subr.bf16.mxu0 %v9381_v14  ;;  %3985 = vmatprep.subr.bf16.mxu1 %v9387_v19  ;;  %v9399_v14 = vld [vmem:[%s11075_s8 + $0x8] ss:$16 sps:$4 sm:$0xff]   ;;  %v9405_v19 = vld [vmem:[%s11075_s8 + $0x24] ss:$16 sps:$4 sm:$0xff]  }
0x13a7   :  { %11975 = vst [vmem:[#allocation71_spill] sm:$0xff] %v9399_v14  ;;  %11976 = vst [vmem:[#allocation72_spill] sm:$0xff] %v9405_v19 }
0x13a8   :  { %3869 = vmatmul.mubr.bf16.vlgmr.msra.gmra.mrb[88].mxu0 %v3835_v12  ;;  %3910 = vmatmul.mubr.bf16.vlgmr.msra.gmra.mrb[88].mxu1 %v3835_v12  ;;  %v9411_v12 = vld [vmem:[%s11075_s8 + $0x2c] ss:$16 sps:$4 sm:$0xff]  }
0x13a9   :  { %3945 = vmatpush1.bf16.msra.mxu0 %v9393_v11  ;;  %3986 = vmatpush1.bf16.msra.mxu1 %v9399_v14  ;;  %11977 = vst [vmem:[#allocation73_spill] sm:$0xff] %v9411_v12  ;;  %v9417_v11 = vld [vmem:[%s11075_s8 + $0x20] ss:$16 sps:$4 sm:$0xff]   ;;  %v9423_v14 = vld [vmem:[%s11075_s8 + $0x28] ss:$16 sps:$4 sm:$0xff]  }
0x13aa   :  { %3946 = vmatprep.subr.bf16.mxu0 %v9405_v19  ;;  %3987 = vmatprep.subr.bf16.mxu1 %v9411_v12  ;;  %11978 = vst [vmem:[#allocation74_spill] sm:$0xff] %v9417_v11  ;;  %11979 = vst [vmem:[#allocation75_spill] sm:$0xff] %v9423_v14  ;;  %v9429_v19 = vld [vmem:[%s11075_s8 + $0x44] ss:$16 sps:$4 sm:$0xff]   ;;  %v9435_v12 = vld [vmem:[%s11075_s8 + $0x4c] ss:$16 sps:$4 sm:$0xff]  }
0x13ab   :  { %11980 = vst [vmem:[#allocation76_spill] sm:$0xff] %v9429_v19  ;;  %11981 = vst [vmem:[#allocation77_spill] sm:$0xff] %v9435_v12 }
0x13ad   :  { %3947 = vmatpush1.bf16.msra.mxu0 %v9417_v11  ;;  %3988 = vmatpush1.bf16.msra.mxu1 %v9423_v14  ;;  %v9441_v11 = vld [vmem:[%s11075_s8 + $0x40] ss:$16 sps:$4 sm:$0xff]   ;;  %v9447_v14 = vld [vmem:[%s11075_s8 + $0x48] ss:$16 sps:$4 sm:$0xff]  }
0x13ae   :  { %3948 = vmatprep.subr.bf16.mxu0 %v9429_v19  ;;  %3989 = vmatprep.subr.bf16.mxu1 %v9435_v12  ;;  %11982 = vst [vmem:[#allocation78_spill] sm:$0xff] %v9441_v11  ;;  %11983 = vst [vmem:[#allocation79_spill] sm:$0xff] %v9447_v14  ;;  %v9453_v19 = vld [vmem:[%s11075_s8 + $0x64] ss:$16 sps:$4 sm:$0xff]   ;;  %v9459_v12 = vld [vmem:[%s11075_s8 + $0x6c] ss:$16 sps:$4 sm:$0xff]  }
0x13af   :  { %11984 = vst [vmem:[#allocation17_spill] sm:$0xff] %v9453_v19  ;;  %11985 = vst [vmem:[#allocation80_spill] sm:$0xff] %v9459_v12 }
0x13b1   :  { %3949 = vmatpush1.bf16.msra.mxu0 %v9441_v11  ;;  %3990 = vmatpush1.bf16.msra.mxu1 %v9447_v14  ;;  %v9465_v11 = vld [vmem:[%s11075_s8 + $0x60] ss:$16 sps:$4 sm:$0xff]   ;;  %v9471_v14 = vld [vmem:[%s11075_s8 + $0x68] ss:$16 sps:$4 sm:$0xff]  }
0x13b2   :  { %3950 = vmatprep.subr.bf16.mxu0 %v9453_v19  ;;  %3991 = vmatprep.subr.bf16.mxu1 %v9459_v12  ;;  %11986 = vst [vmem:[#allocation81_spill] sm:$0xff] %v9465_v11  ;;  %11987 = vst [vmem:[#allocation82_spill] sm:$0xff] %v9471_v14  ;;  %v9477_v19 = vld [vmem:[%s11075_s8 + $0x84] ss:$16 sps:$4 sm:$0xff]   ;;  %v9483_v12 = vld [vmem:[%s11075_s8 + $0x8c] ss:$16 sps:$4 sm:$0xff]  }
0x13b3   :  { %11988 = vst [vmem:[#allocation83_spill] sm:$0xff] %v9477_v19  ;;  %11989 = vst [vmem:[#allocation84_spill] sm:$0xff] %v9483_v12 }
0x13b5   :  { %3951 = vmatpush1.bf16.msra.mxu0 %v9465_v11  ;;  %3992 = vmatpush1.bf16.msra.mxu1 %v9471_v14  ;;  %v9489_v11 = vld [vmem:[%s11075_s8 + $0x80] ss:$16 sps:$4 sm:$0xff]   ;;  %v9495_v14 = vld [vmem:[%s11075_s8 + $0x88] ss:$16 sps:$4 sm:$0xff]  }
0x13b6   :  { %3952 = vmatprep.subr.bf16.mxu0 %v9477_v19  ;;  %3993 = vmatprep.subr.bf16.mxu1 %v9483_v12  ;;  %11990 = vst [vmem:[#allocation85_spill] sm:$0xff] %v9489_v11  ;;  %11991 = vst [vmem:[#allocation86_spill] sm:$0xff] %v9495_v14  ;;  %v9501_v19 = vld [vmem:[%s11075_s8 + $0xa4] ss:$16 sps:$4 sm:$0xff]   ;;  %v9507_v12 = vld [vmem:[%s11075_s8 + $0xac] ss:$16 sps:$4 sm:$0xff]  }
0x13b7   :  { %11992 = vst [vmem:[#allocation87_spill] sm:$0xff] %v9501_v19  ;;  %11993 = vst [vmem:[#allocation88_spill] sm:$0xff] %v9507_v12 }
0x13b9   :  { %3953 = vmatpush1.bf16.msra.mxu0 %v9489_v11  ;;  %3994 = vmatpush1.bf16.msra.mxu1 %v9495_v14  ;;  %v9513_v11 = vld [vmem:[%s11075_s8 + $0xa0] ss:$16 sps:$4 sm:$0xff]   ;;  %v9519_v14 = vld [vmem:[%s11075_s8 + $0xa8] ss:$16 sps:$4 sm:$0xff]  }
0x13ba   :  { %3954 = vmatprep.subr.bf16.mxu0 %v9501_v19  ;;  %3995 = vmatprep.subr.bf16.mxu1 %v9507_v12  ;;  %11994 = vst [vmem:[#allocation89_spill] sm:$0xff] %v9513_v11  ;;  %11995 = vst [vmem:[#allocation90_spill] sm:$0xff] %v9519_v14  ;;  %v9525_v19 = vld [vmem:[%s11075_s8 + $0xc4] ss:$16 sps:$4 sm:$0xff]   ;;  %v9531_v12 = vld [vmem:[%s11075_s8 + $0xcc] ss:$16 sps:$4 sm:$0xff]  }
0x13bb   :  { %11996 = vst [vmem:[#allocation91_spill] sm:$0xff] %v9525_v19  ;;  %11997 = vst [vmem:[#allocation92_spill] sm:$0xff] %v9531_v12 }
0x13bd   :  { %3955 = vmatpush1.bf16.msra.mxu0 %v9513_v11  ;;  %3996 = vmatpush1.bf16.msra.mxu1 %v9519_v14  ;;  %v9537_v11 = vld [vmem:[%s11075_s8 + $0xc0] ss:$16 sps:$4 sm:$0xff]   ;;  %v9543_v14 = vld [vmem:[%s11075_s8 + $0xc8] ss:$16 sps:$4 sm:$0xff]  }
0x13be   :  { %3956 = vmatprep.subr.bf16.mxu0 %v9525_v19  ;;  %3997 = vmatprep.subr.bf16.mxu1 %v9531_v12  ;;  %11998 = vst [vmem:[#allocation93_spill] sm:$0xff] %v9537_v11  ;;  %11999 = vst [vmem:[#allocation94_spill] sm:$0xff] %v9543_v14  ;;  %v9549_v19 = vld [vmem:[%s11075_s8 + $0xe4] ss:$16 sps:$4 sm:$0xff]   ;;  %v9555_v12 = vld [vmem:[%s11075_s8 + $0xec] ss:$16 sps:$4 sm:$0xff]  }
0x13bf   :  { %12000 = vst [vmem:[#allocation95_spill] sm:$0xff] %v9549_v19  ;;  %12001 = vst [vmem:[#allocation96_spill] sm:$0xff] %v9555_v12 }
0x13c1   :  { %3957 = vmatpush1.bf16.msra.mxu0 %v9537_v11  ;;  %3998 = vmatpush1.bf16.msra.mxu1 %v9543_v14  ;;  %v9561_v11 = vld [vmem:[%s11075_s8 + $0xe0] ss:$16 sps:$4 sm:$0xff]   ;;  %v9567_v14 = vld [vmem:[%s11075_s8 + $0xe8] ss:$16 sps:$4 sm:$0xff]  }
0x13c2   :  { %3958 = vmatprep.subr.bf16.mxu0 %v9549_v19  ;;  %3999 = vmatprep.subr.bf16.mxu1 %v9555_v12  ;;  %12002 = vst [vmem:[#allocation97_spill] sm:$0xff] %v9561_v11  ;;  %12003 = vst [vmem:[#allocation98_spill] sm:$0xff] %v9567_v14  ;;  %v9573_v19 = vld [vmem:[%s11075_s8 + $0x104] ss:$16 sps:$4 sm:$0xff]   ;;  %v9579_v12 = vld [vmem:[%s11075_s8 + $0x10c] ss:$16 sps:$4 sm:$0xff]  }
0x13c3   :  { %12004 = vst [vmem:[#allocation99_spill] sm:$0xff] %v9573_v19  ;;  %12005 = vst [vmem:[#allocation100_spill] sm:$0xff] %v9579_v12 }
0x13c5   :  { %3959 = vmatpush1.bf16.msra.mxu0 %v9561_v11  ;;  %4000 = vmatpush1.bf16.msra.mxu1 %v9567_v14  ;;  %v9585_v11 = vld [vmem:[%s11075_s8 + $0x100] ss:$16 sps:$4 sm:$0xff]   ;;  %v9591_v14 = vld [vmem:[%s11075_s8 + $0x108] ss:$16 sps:$4 sm:$0xff]  }
0x13c6   :  { %3960 = vmatprep.subr.bf16.mxu0 %v9573_v19  ;;  %4001 = vmatprep.subr.bf16.mxu1 %v9579_v12  ;;  %12006 = vst [vmem:[#allocation101_spill] sm:$0xff] %v9585_v11  ;;  %12007 = vst [vmem:[#allocation102_spill] sm:$0xff] %v9591_v14  ;;  %v9597_v19 = vld [vmem:[%s11075_s8 + $0x124] ss:$16 sps:$4 sm:$0xff]   ;;  %v9603_v12 = vld [vmem:[%s11075_s8 + $0x12c] ss:$16 sps:$4 sm:$0xff]  }
0x13c7   :  { %12008 = vst [vmem:[#allocation103_spill] sm:$0xff] %v9597_v19  ;;  %12009 = vst [vmem:[#allocation104_spill] sm:$0xff] %v9603_v12 }
0x13c9   :  { %3961 = vmatpush1.bf16.msra.mxu0 %v9585_v11  ;;  %4002 = vmatpush1.bf16.msra.mxu1 %v9591_v14  ;;  %v9609_v11 = vld [vmem:[%s11075_s8 + $0x120] ss:$16 sps:$4 sm:$0xff]   ;;  %v9615_v14 = vld [vmem:[%s11075_s8 + $0x128] ss:$16 sps:$4 sm:$0xff]  }
0x13ca   :  { %3962 = vmatprep.subr.bf16.mxu0 %v9597_v19  ;;  %4003 = vmatprep.subr.bf16.mxu1 %v9603_v12  ;;  %12010 = vst [vmem:[#allocation10_spill] sm:$0xff] %v9609_v11  ;;  %12011 = vst [vmem:[#allocation12_spill] sm:$0xff] %v9615_v14  ;;  %v9621_v19 = vld [vmem:[%s11075_s8 + $0x144] ss:$16 sps:$4 sm:$0xff]   ;;  %v9627_v12 = vld [vmem:[%s11075_s8 + $0x14c] ss:$16 sps:$4 sm:$0xff]  }
0x13cb   :  { %12012 = vst [vmem:[#allocation20_spill] sm:$0xff] %v9621_v19  ;;  %12013 = vst [vmem:[#allocation9_spill] sm:$0xff] %v9627_v12 }
0x13cd   :  { %3963 = vmatpush1.bf16.msra.mxu0 %v9609_v11  ;;  %4004 = vmatpush1.bf16.msra.mxu1 %v9615_v14  ;;  %v9633_v11 = vld [vmem:[%s11075_s8 + $0x140] ss:$16 sps:$4 sm:$0xff]   ;;  %v9639_v14 = vld [vmem:[%s11075_s8 + $0x148] ss:$16 sps:$4 sm:$0xff]  }
0x13ce   :  { %3964 = vmatprep.subr.bf16.mxu0 %v9621_v19  ;;  %4005 = vmatprep.subr.bf16.mxu1 %v9627_v12  ;;  %12014 = vst [vmem:[#allocation21_spill] sm:$0xff] %v9633_v11  ;;  %12015 = vst [vmem:[#allocation22_spill] sm:$0xff] %v9639_v14  ;;  %v9645_v19 = vld [vmem:[%s11075_s8 + $0x164] ss:$16 sps:$4 sm:$0xff]   ;;  %v9651_v12 = vld [vmem:[%s11075_s8 + $0x16c] ss:$16 sps:$4 sm:$0xff]  }
0x13cf   :  { %12016 = vst [vmem:[#allocation23_spill] sm:$0xff] %v9645_v19  ;;  %12017 = vst [vmem:[#allocation24_spill] sm:$0xff] %v9651_v12 }
0x13d1   :  { %3965 = vmatpush1.bf16.msra.mxu0 %v9633_v11  ;;  %4006 = vmatpush1.bf16.msra.mxu1 %v9639_v14  ;;  %v9657_v11 = vld [vmem:[%s11075_s8 + $0x160] ss:$16 sps:$4 sm:$0xff]   ;;  %v9663_v14 = vld [vmem:[%s11075_s8 + $0x168] ss:$16 sps:$4 sm:$0xff]  }
0x13d2   :  { %3966 = vmatprep.subr.bf16.mxu0 %v9645_v19  ;;  %4007 = vmatprep.subr.bf16.mxu1 %v9651_v12  ;;  %12018 = vst [vmem:[#allocation25_spill] sm:$0xff] %v9657_v11  ;;  %12019 = vst [vmem:[#allocation26_spill] sm:$0xff] %v9663_v14  ;;  %v9669_v19 = vld [vmem:[%s11075_s8 + $0x184] ss:$16 sps:$4 sm:$0xff]   ;;  %v9675_v12 = vld [vmem:[%s11075_s8 + $0x18c] ss:$16 sps:$4 sm:$0xff]  }
0x13d3   :  { %12020 = vst [vmem:[#allocation27_spill] sm:$0xff] %v9669_v19  ;;  %12021 = vst [vmem:[#allocation28_spill] sm:$0xff] %v9675_v12 }
0x13d5   :  { %3967 = vmatpush1.bf16.msra.mxu0 %v9657_v11  ;;  %4008 = vmatpush1.bf16.msra.mxu1 %v9663_v14  ;;  %v9681_v11 = vld [vmem:[%s11075_s8 + $0x180] ss:$16 sps:$4 sm:$0xff]   ;;  %v9687_v14 = vld [vmem:[%s11075_s8 + $0x188] ss:$16 sps:$4 sm:$0xff]  }
0x13d6   :  { %3968 = vmatprep.subr.bf16.mxu0 %v9669_v19  ;;  %4009 = vmatprep.subr.bf16.mxu1 %v9675_v12  ;;  %12022 = vst [vmem:[#allocation29_spill] sm:$0xff] %v9681_v11  ;;  %12023 = vst [vmem:[#allocation30_spill] sm:$0xff] %v9687_v14  ;;  %v9693_v19 = vld [vmem:[%s11075_s8 + $0x1a4] ss:$16 sps:$4 sm:$0xff]   ;;  %v9699_v12 = vld [vmem:[%s11075_s8 + $0x1ac] ss:$16 sps:$4 sm:$0xff]  }
0x13d7   :  { %12024 = vst [vmem:[#allocation31_spill] sm:$0xff] %v9693_v19  ;;  %12025 = vst [vmem:[#allocation32_spill] sm:$0xff] %v9699_v12 }
0x13d9   :  { %3969 = vmatpush1.bf16.msra.mxu0 %v9681_v11  ;;  %4010 = vmatpush1.bf16.msra.mxu1 %v9687_v14  ;;  %v9705_v11 = vld [vmem:[%s11075_s8 + $0x1a0] ss:$16 sps:$4 sm:$0xff]   ;;  %v9711_v14 = vld [vmem:[%s11075_s8 + $0x1a8] ss:$16 sps:$4 sm:$0xff]  }
0x13da   :  { %3970 = vmatprep.subr.bf16.mxu0 %v9693_v19  ;;  %4011 = vmatprep.subr.bf16.mxu1 %v9699_v12  ;;  %12026 = vst [vmem:[#allocation33_spill] sm:$0xff] %v9705_v11  ;;  %12027 = vst [vmem:[#allocation34_spill] sm:$0xff] %v9711_v14  ;;  %v9717_v19 = vld [vmem:[%s11075_s8 + $0x1c4] ss:$16 sps:$4 sm:$0xff]   ;;  %v9723_v12 = vld [vmem:[%s11075_s8 + $0x1cc] ss:$16 sps:$4 sm:$0xff]  }
0x13db   :  { %12028 = vst [vmem:[#allocation35_spill] sm:$0xff] %v9717_v19  ;;  %12029 = vst [vmem:[#allocation36_spill] sm:$0xff] %v9723_v12 }
0x13dd   :  { %3971 = vmatpush1.bf16.msra.mxu0 %v9705_v11  ;;  %4012 = vmatpush1.bf16.msra.mxu1 %v9711_v14  ;;  %v9729_v11 = vld [vmem:[%s11075_s8 + $0x1c0] ss:$16 sps:$4 sm:$0xff]   ;;  %v9735_v14 = vld [vmem:[%s11075_s8 + $0x1c8] ss:$16 sps:$4 sm:$0xff]  }
0x13de   :  { %3972 = vmatprep.subr.bf16.mxu0 %v9717_v19  ;;  %4013 = vmatprep.subr.bf16.mxu1 %v9723_v12  ;;  %12030 = vst [vmem:[#allocation37_spill] sm:$0xff] %v9729_v11  ;;  %12031 = vst [vmem:[#allocation38_spill] sm:$0xff] %v9735_v14  ;;  %v9741_v19 = vld [vmem:[%s11075_s8 + $0x1e4] ss:$16 sps:$4 sm:$0xff]   ;;  %v9747_v12 = vld [vmem:[%s11075_s8 + $0x1ec] ss:$16 sps:$4 sm:$0xff]  }
0x13df   :  { %12032 = vst [vmem:[#allocation39_spill] sm:$0xff] %v9741_v19  ;;  %12033 = vst [vmem:[#allocation40_spill] sm:$0xff] %v9747_v12 }
0x13e1   :  { %3973 = vmatpush1.bf16.msra.mxu0 %v9729_v11  ;;  %4014 = vmatpush1.bf16.msra.mxu1 %v9735_v14  ;;  %v9753_v11 = vld [vmem:[%s11075_s8 + $0x1e0] ss:$16 sps:$4 sm:$0xff]   ;;  %v9759_v14 = vld [vmem:[%s11075_s8 + $0x1e8] ss:$16 sps:$4 sm:$0xff]  }
0x13e2   :  { %3974 = vmatprep.subr.bf16.mxu0 %v9741_v19  ;;  %4015 = vmatprep.subr.bf16.mxu1 %v9747_v12  ;;  %12034 = vst [vmem:[#allocation41_spill] sm:$0xff] %v9753_v11  ;;  %12035 = vst [vmem:[#allocation16_spill] sm:$0xff] %v9759_v14 }
0x13e5   :  { %3975 = vmatpush1.bf16.msra.mxu0 %v9753_v11  ;;  %4016 = vmatpush1.bf16.msra.mxu1 %v9759_v14 }
0x13e6   :  { %4058 = vmatprep.subr.bf16.mxu0 %v11920_v61  ;;  %4099 = vmatprep.subr.bf16.mxu1 %v11921_v60 }
0x143b   :  { %v3756_v19 = vpop.f32.mrb[84].mxu0  ;;  %v3797_v12 = vpop.f32.mrb[84].mxu1 }
0x143c   :  { %v3757_v27 = vadd.f32 %v3756_v19, %v11922_v58  ;;  %v3758_v50 = vpop.f32.mrb[85].mxu0  ;;  %v3799_v46 = vpop.f32.mrb[85].mxu1  ;;  %v3798_v60 = vadd.f32 %v3797_v12, %v8844_v23 }
0x143d   :  { %v3759_v18 = vadd.f32 %v3758_v50, %v8835_v29  ;;  %v3760_v11 = vpop.f32.mrb[86].mxu0  ;;  %v3801_v17 = vpop.f32.mrb[86].mxu1  ;;  %v3800_v61 = vadd.f32 %v3799_v46, %v8840_v57 }
0x143e   :  { %v5315_v15 = vmul.f32 -1.442695, %v3757_v27  ;;  %v3761_v13 = vpop.f32.mrb[87].mxu0  ;;  %v3802_v10 = vpop.f32.mrb[87].mxu1 }
0x143f   :  { %v5316_v9 = vmul.f32 -1.442695, %v3759_v18  ;;  %v5317_v14 = vmul.f32 -1.442695, %v3800_v61 }
0x1440   :  { %5978 = vpow2.f32 %v5315_v15 }
0x1441   :  { %5980 = vpow2.f32 %v5316_v9 }
0x1442   :  { %5982 = vpow2.f32 %v5317_v14 }
0x1443   :  { %5984 = vtanh.f32 %v3798_v60 }
0x144a   :  { %v5979_v20 = vpop.eup %5978 }
0x144b   :  { %v5981_v8 = vpop.eup %5980  ;;  %v3807_v19 = vadd.f32 1.0, %v5979_v20 }
0x144c   :  { %v3813_v58 = vadd.f32 1.0, %v5981_v8  ;;  %v5983_v50 = vpop.eup %5982 }
0x144d   :  { %5986 = vrcp.f32 %v3807_v19  ;;  %v5985_v27 = vpop.eup %5984  ;;  %v3820_v15 = vadd.f32 1.0, %v5983_v50 }
0x144e   :  { %5988 = vrcp.f32 %v3813_v58 }
0x144f   :  { %5990 = vrcp.f32 %v3820_v15 }
0x1457   :  { %v5987_v13 = vpop.eup %5986 }
0x1458   :  { %v5989_v10 = vpop.eup %5988  ;;  %v3824_v17 = vmul.f32 %v5987_v13, %v5985_v27 }
0x1459   :  { %v3823_v9 = vmul.f32 %v5989_v10, %v9303_v36  ;;  %v5991_v18 = vpop.eup %5990 }
0x145b   :  { %v9769_v46 = vadd.f32 %v3824_v17, %v3823_v9 }
0x145d   :  { %5992 = vtanh.f32 %v9769_v46 }
0x1467   :  { %v5993_v20 = vpop.eup %5992 }
0x1468   :  { %v3827_v14 = vmul.f32 %v5993_v20, %v5991_v18 }
0x146a   :  { %v3943_v11 = vpack.c.bf16 %v3827_v14, %v3827_v14 }
0x146c   :  { %3976 = vmatprep.mubr.bf16.mxu0 %v3943_v11  ;;  %4017 = vmatprep.mubr.bf16.mxu1 %v3943_v11 }
0x147b   :  { %v3870_v58 = vpop.f32.mrb[88].mxu0  ;;  %v3911_v8 = vpop.f32.mrb[88].mxu1 }
0x147c   :  { %v3871_v12 = vadd.f32 %v3870_v58, %v11924_v24  ;;  %v3872_v61 = vpop.f32.mrb[89].mxu0  ;;  %v3913_v60 = vpop.f32.mrb[89].mxu1  ;;  %v3912_v18 = vadd.f32 %v3911_v8, %v8682_v39 }
0x147d   :  { %v3873_v19 = vadd.f32 %v3872_v61, %v8673_v38  ;;  %v3874_v36 = vpop.f32.mrb[90].mxu0  ;;  %v3915_v50 = vpop.f32.mrb[90].mxu1  ;;  %v3914_v15 = vadd.f32 %v3913_v60, %v8678_v26 }
0x147e   :  { %v5318_v27 = vmul.f32 -1.442695, %v3871_v12  ;;  %v3875_v13 = vpop.f32.mrb[91].mxu0  ;;  %v3916_v10 = vpop.f32.mrb[91].mxu1 }
0x147f   :  { %v5319_v17 = vmul.f32 -1.442695, %v3873_v19  ;;  %v5320_v9 = vmul.f32 -1.442695, %v3914_v15 }
0x1480   :  { %5994 = vpow2.f32 %v5318_v27 }
0x1481   :  { %5996 = vpow2.f32 %v5319_v17 }
0x1482   :  { %5998 = vpow2.f32 %v5320_v9  ;;  %v12073_v9 = vld [vmem:[#allocation79_spill] sm:$0xff] }
0x1483   :  { %6000 = vtanh.f32 %v3912_v18  ;;  %v12074_v18 = vld [vmem:[#allocation17_spill] sm:$0xff] }
0x148a   :  { %v5995_v20 = vpop.eup %5994 }
0x148b   :  { %v5997_v14 = vpop.eup %5996  ;;  %v3921_v11 = vadd.f32 1.0, %v5995_v20  ;;  %v12075_v20 = vld [vmem:[#allocation80_spill] sm:$0xff] }
0x148c   :  { %v3927_v58 = vadd.f32 1.0, %v5997_v14  ;;  %v5999_v61 = vpop.eup %5998  ;;  %v12076_v14 = vld [vmem:[#allocation81_spill] sm:$0xff] }
0x148d   :  { %6002 = vrcp.f32 %v3921_v11  ;;  %v6001_v12 = vpop.eup %6000  ;;  %v3934_v27 = vadd.f32 1.0, %v5999_v61  ;;  %v12077_v11 = vld [vmem:[#allocation82_spill] sm:$0xff]  ;;  %v12079_v61 = vld [vmem:[#allocation84_spill] sm:$0xff] }
0x148e   :  { %6004 = vrcp.f32 %v3927_v58  ;;  %v12078_v58 = vld [vmem:[#allocation83_spill] sm:$0xff] }
0x148f   :  { %6006 = vrcp.f32 %v3934_v27  ;;  %v12084_v27 = vld [vmem:[#allocation89_spill] sm:$0xff] }
0x1497   :  { %v6003_v36 = vpop.eup %6002 }
0x1498   :  { %v6005_v50 = vpop.eup %6004  ;;  %v3938_v19 = vmul.f32 %v6003_v36, %v6001_v12  ;;  %v12080_v12 = vld [vmem:[#allocation85_spill] sm:$0xff]  ;;  %v12081_v36 = vld [vmem:[#allocation86_spill] sm:$0xff] }
0x1499   :  { %v3937_v13 = vmul.f32 %v6005_v50, %v9311_v16  ;;  %v6007_v8 = vpop.eup %6006  ;;  %v12049_v16 = vld [vmem:[#allocation56_spill] sm:$0xff]  ;;  %v12082_v50 = vld [vmem:[#allocation87_spill] sm:$0xff] }
0x149b   :  { %v9777_v60 = vadd.f32 %v3938_v19, %v3937_v13  ;;  %v12083_v19 = vld [vmem:[#allocation88_spill] sm:$0xff]  ;;  %v12085_v13 = vld [vmem:[#allocation90_spill] sm:$0xff] }
0x149d   :  { %6008 = vtanh.f32 %v9777_v60 }
0x14a7   :  { %v6009_v10 = vpop.eup %6008 }
0x14a8   :  { %v3941_v17 = vmul.f32 %v6009_v10, %v6007_v8  ;;  %v12086_v8 = vld [vmem:[#allocation91_spill] sm:$0xff]  ;;  %v12087_v10 = vld [vmem:[#allocation92_spill] sm:$0xff] }
0x14aa   :  { %v3942_v15 = vpack.c.bf16 %v3941_v17, %v3941_v17  ;;  %v12088_v17 = vld [vmem:[#allocation93_spill] sm:$0xff] }
0x14ac   :  { %3977 = vmatmul.mubr.bf16.vlgmr.msra.gmra.mrb[92].mxu0 %v3942_v15  ;;  %4018 = vmatmul.mubr.bf16.vlgmr.msra.gmra.mrb[92].mxu1 %v3942_v15 }
0x14ad   :  { %4059 = vmatpush1.bf16.msra.mxu0 %v8861_v5  ;;  %4100 = vmatpush1.bf16.msra.mxu1 %v8867_v34  ;;  %v12036_v5 = vld [vmem:[#allocation43_spill] sm:$0xff]  ;;  %v12037_v34 = vld [vmem:[#allocation44_spill] sm:$0xff] }
0x14ae   :  { %4090 = vmatprep.mubr.bf16.mxu0 %v3942_v15  ;;  %4131 = vmatprep.mubr.bf16.mxu1 %v3942_v15  ;;  %v12089_v15 = vld [vmem:[#allocation94_spill] sm:$0xff] }
0x14af   :  { %4060 = vmatprep.subr.bf16.mxu0 %v8873_v7  ;;  %4101 = vmatprep.subr.bf16.mxu1 %v8879_v2  ;;  %v12038_v7 = vld [vmem:[#allocation45_spill] sm:$0xff]  ;;  %v12039_v2 = vld [vmem:[#allocation46_spill] sm:$0xff] }
0x14b1   :  { %4061 = vmatpush1.bf16.msra.mxu0 %v8885_v3  ;;  %4102 = vmatpush1.bf16.msra.mxu1 %v8891_v49  ;;  %v12040_v3 = vld [vmem:[#allocation47_spill] sm:$0xff]  ;;  %v12041_v49 = vld [vmem:[#allocation48_spill] sm:$0xff] }
0x14b2   :  { %4062 = vmatprep.subr.bf16.mxu0 %v8897_v45  ;;  %4103 = vmatprep.subr.bf16.mxu1 %v8903_v51  ;;  %v12042_v45 = vld [vmem:[#allocation49_spill] sm:$0xff]  ;;  %v12043_v51 = vld [vmem:[#allocation50_spill] sm:$0xff] }
0x14b5   :  { %4063 = vmatpush1.bf16.msra.mxu0 %v8909_v48  ;;  %4104 = vmatpush1.bf16.msra.mxu1 %v8915_v0  ;;  %v12044_v48 = vld [vmem:[#allocation51_spill] sm:$0xff]  ;;  %v12045_v0 = vld [vmem:[#allocation52_spill] sm:$0xff] }
0x14b6   :  { %4064 = vmatprep.subr.bf16.mxu0 %v8921_v44  ;;  %4105 = vmatprep.subr.bf16.mxu1 %v8927_v37  ;;  %v12046_v44 = vld [vmem:[#allocation53_spill] sm:$0xff]  ;;  %v12047_v37 = vld [vmem:[#allocation54_spill] sm:$0xff] }
0x14b9   :  { %4065 = vmatpush1.bf16.msra.mxu0 %v8933_v32  ;;  %4106 = vmatpush1.bf16.msra.mxu1 %v11925_v56  ;;  %v12048_v32 = vld [vmem:[#allocation55_spill] sm:$0xff]  ;;  %v12050_v56 = vld [vmem:[#allocation57_spill] sm:$0xff] }
0x14ba   :  { %4066 = vmatprep.subr.bf16.mxu0 %v11926_v21  ;;  %4107 = vmatprep.subr.bf16.mxu1 %v11927_v1  ;;  %v12051_v21 = vld [vmem:[#allocation58_spill] sm:$0xff]  ;;  %v12052_v1 = vld [vmem:[#allocation59_spill] sm:$0xff] }
0x14bd   :  { %4067 = vmatpush1.bf16.msra.mxu0 %v11928_v63  ;;  %4108 = vmatpush1.bf16.msra.mxu1 %v11929_v6  ;;  %v12053_v63 = vld [vmem:[#allocation60_spill] sm:$0xff]  ;;  %v12054_v6 = vld [vmem:[#allocation61_spill] sm:$0xff] }
0x14be   :  { %4068 = vmatprep.subr.bf16.mxu0 %v11930_v30  ;;  %4109 = vmatprep.subr.bf16.mxu1 %v11931_v54  ;;  %v12055_v30 = vld [vmem:[#allocation62_spill] sm:$0xff]  ;;  %v12056_v54 = vld [vmem:[#allocation63_spill] sm:$0xff] }
0x14c1   :  { %4069 = vmatpush1.bf16.msra.mxu0 %v11932_v59  ;;  %4110 = vmatpush1.bf16.msra.mxu1 %v11933_v22  ;;  %v12057_v59 = vld [vmem:[#allocation64_spill] sm:$0xff]  ;;  %v12058_v22 = vld [vmem:[#allocation65_spill] sm:$0xff] }
0x14c2   :  { %4070 = vmatprep.subr.bf16.mxu0 %v11934_v31  ;;  %4111 = vmatprep.subr.bf16.mxu1 %v11935_v62  ;;  %v12059_v31 = vld [vmem:[#allocation66_spill] sm:$0xff]  ;;  %v12060_v62 = vld [vmem:[#allocation67_spill] sm:$0xff] }
0x14c5   :  { %4071 = vmatpush1.bf16.msra.mxu0 %v11936_v25  ;;  %4112 = vmatpush1.bf16.msra.mxu1 %v11937_v35  ;;  %v12061_v25 = vld [vmem:[#allocation19_spill] sm:$0xff] }
0x14c6   :  { %4072 = vmatprep.subr.bf16.mxu0 %v11938_v33  ;;  %4113 = vmatprep.subr.bf16.mxu1 %v11939_v28  ;;  %v4057_v35 = vpack.c.bf16 %v12061_v25, %v12061_v25  ;;  %v12062_v33 = vld [vmem:[#allocation68_spill] sm:$0xff]  ;;  %v12063_v28 = vld [vmem:[#allocation69_spill] sm:$0xff] }
0x14c7   :  { %v12115_v25 = vld [vmem:[#allocation32_spill] sm:$0xff] }
0x14c9   :  { %4073 = vmatpush1.bf16.msra.mxu0 %v11940_v43  ;;  %4114 = vmatpush1.bf16.msra.mxu1 %v11941_v42  ;;  %v12064_v43 = vld [vmem:[#allocation70_spill] sm:$0xff]  ;;  %v12065_v42 = vld [vmem:[#allocation71_spill] sm:$0xff] }
0x14ca   :  { %4074 = vmatprep.subr.bf16.mxu0 %v11942_v40  ;;  %4115 = vmatprep.subr.bf16.mxu1 %v11943_v41  ;;  %v12066_v40 = vld [vmem:[#allocation72_spill] sm:$0xff]  ;;  %v12067_v41 = vld [vmem:[#allocation73_spill] sm:$0xff] }
0x14cd   :  { %4075 = vmatpush1.bf16.msra.mxu0 %v11944_v47  ;;  %4116 = vmatpush1.bf16.msra.mxu1 %v11945_v4  ;;  %v12068_v47 = vld [vmem:[#allocation74_spill] sm:$0xff]  ;;  %v12069_v4 = vld [vmem:[#allocation75_spill] sm:$0xff] }
0x14ce   :  { %4076 = vmatprep.subr.bf16.mxu0 %v11946_v53  ;;  %4117 = vmatprep.subr.bf16.mxu1 %v11947_v52  ;;  %v12070_v53 = vld [vmem:[#allocation76_spill] sm:$0xff]  ;;  %v12071_v52 = vld [vmem:[#allocation77_spill] sm:$0xff] }
0x14d1   :  { %4077 = vmatpush1.bf16.msra.mxu0 %v11948_v55  ;;  %4118 = vmatpush1.bf16.msra.mxu1 %v12036_v5  ;;  %v12072_v55 = vld [vmem:[#allocation78_spill] sm:$0xff]  ;;  %v12090_v5 = vld [vmem:[#allocation95_spill] sm:$0xff] }
0x14d2   :  { %4078 = vmatprep.subr.bf16.mxu0 %v12037_v34  ;;  %4119 = vmatprep.subr.bf16.mxu1 %v12038_v7  ;;  %v12091_v34 = vld [vmem:[#allocation96_spill] sm:$0xff]  ;;  %v12092_v7 = vld [vmem:[#allocation97_spill] sm:$0xff] }
0x14d5   :  { %4079 = vmatpush1.bf16.msra.mxu0 %v12039_v2  ;;  %4120 = vmatpush1.bf16.msra.mxu1 %v12040_v3  ;;  %v12093_v2 = vld [vmem:[#allocation98_spill] sm:$0xff]  ;;  %v12094_v3 = vld [vmem:[#allocation99_spill] sm:$0xff] }
0x14d6   :  { %4080 = vmatprep.subr.bf16.mxu0 %v12041_v49  ;;  %4121 = vmatprep.subr.bf16.mxu1 %v12042_v45  ;;  %v12095_v49 = vld [vmem:[#allocation100_spill] sm:$0xff]  ;;  %v12096_v45 = vld [vmem:[#allocation101_spill] sm:$0xff] }
0x14d9   :  { %4081 = vmatpush1.bf16.msra.mxu0 %v12043_v51  ;;  %4122 = vmatpush1.bf16.msra.mxu1 %v12044_v48  ;;  %v12097_v51 = vld [vmem:[#allocation102_spill] sm:$0xff]  ;;  %v12098_v48 = vld [vmem:[#allocation103_spill] sm:$0xff] }
0x14da   :  { %4082 = vmatprep.subr.bf16.mxu0 %v12045_v0  ;;  %4123 = vmatprep.subr.bf16.mxu1 %v12046_v44  ;;  %v12099_v0 = vld [vmem:[#allocation104_spill] sm:$0xff]  ;;  %v12100_v44 = vld [vmem:[#allocation10_spill] sm:$0xff] }
0x14dd   :  { %4083 = vmatpush1.bf16.msra.mxu0 %v12047_v37  ;;  %4124 = vmatpush1.bf16.msra.mxu1 %v12048_v32  ;;  %v12101_v37 = vld [vmem:[#allocation12_spill] sm:$0xff] }
0x14de   :  { %4084 = vmatprep.subr.bf16.mxu0 %v12049_v16  ;;  %4125 = vmatprep.subr.bf16.mxu1 %v12050_v56  ;;  %v12102_v32 = vld [vmem:[#allocation20_spill] sm:$0xff]  ;;  %v12103_v16 = vld [vmem:[#allocation9_spill] sm:$0xff] }
0x14df   :  { %v12104_v56 = vld [vmem:[#allocation21_spill] sm:$0xff] }
0x14e1   :  { %4085 = vmatpush1.bf16.msra.mxu0 %v12051_v21  ;;  %4126 = vmatpush1.bf16.msra.mxu1 %v12052_v1  ;;  %v12105_v21 = vld [vmem:[#allocation22_spill] sm:$0xff]  ;;  %v12106_v1 = vld [vmem:[#allocation23_spill] sm:$0xff] }
0x14e2   :  { %4086 = vmatprep.subr.bf16.mxu0 %v12053_v63  ;;  %4127 = vmatprep.subr.bf16.mxu1 %v12054_v6  ;;  %v12107_v63 = vld [vmem:[#allocation24_spill] sm:$0xff]  ;;  %v12108_v6 = vld [vmem:[#allocation25_spill] sm:$0xff] }
0x14e5   :  { %4087 = vmatpush1.bf16.msra.mxu0 %v12055_v30  ;;  %4128 = vmatpush1.bf16.msra.mxu1 %v12056_v54  ;;  %v12109_v30 = vld [vmem:[#allocation26_spill] sm:$0xff]  ;;  %v12110_v54 = vld [vmem:[#allocation27_spill] sm:$0xff] }
0x14e6   :  { %4088 = vmatprep.subr.bf16.mxu0 %v12057_v59  ;;  %4129 = vmatprep.subr.bf16.mxu1 %v12058_v22  ;;  %v12111_v59 = vld [vmem:[#allocation28_spill] sm:$0xff]  ;;  %v12112_v22 = vld [vmem:[#allocation29_spill] sm:$0xff] }
0x14e9   :  { %4089 = vmatpush1.bf16.msra.mxu0 %v12059_v31  ;;  %4130 = vmatpush1.bf16.msra.mxu1 %v12060_v62  ;;  %v12113_v31 = vld [vmem:[#allocation30_spill] sm:$0xff]  ;;  %v12114_v62 = vld [vmem:[#allocation31_spill] sm:$0xff] }
0x14ea   :  { %4166 = vmatprep.subr.bf16.mxu0 %v12062_v33  ;;  %4207 = vmatprep.subr.bf16.mxu1 %v12063_v28 }
0x14ec   :  { %4091 = vmatmul.mubr.bf16.vlgmr.msra.gmra.mrb[96].mxu0 %v4057_v35  ;;  %4132 = vmatmul.mubr.bf16.vlgmr.msra.gmra.mrb[96].mxu1 %v4057_v35  ;;  %v12116_v35 = vld [vmem:[#allocation33_spill] sm:$0xff] }
0x14ed   :  { %4167 = vmatpush1.bf16.msra.mxu0 %v12064_v43  ;;  %4208 = vmatpush1.bf16.msra.mxu1 %v12065_v42 }
0x14ee   :  { %4168 = vmatprep.subr.bf16.mxu0 %v12066_v40  ;;  %4209 = vmatprep.subr.bf16.mxu1 %v12067_v41 }
0x14f1   :  { %4169 = vmatpush1.bf16.msra.mxu0 %v12068_v47  ;;  %4210 = vmatpush1.bf16.msra.mxu1 %v12069_v4 }
0x14f2   :  { %4170 = vmatprep.subr.bf16.mxu0 %v12070_v53  ;;  %4211 = vmatprep.subr.bf16.mxu1 %v12071_v52 }
0x14f5   :  { %4171 = vmatpush1.bf16.msra.mxu0 %v12072_v55  ;;  %4212 = vmatpush1.bf16.msra.mxu1 %v12073_v9 }
0x14f6   :  { %4172 = vmatprep.subr.bf16.mxu0 %v12074_v18  ;;  %4213 = vmatprep.subr.bf16.mxu1 %v12075_v20 }
0x14f9   :  { %4173 = vmatpush1.bf16.msra.mxu0 %v12076_v14  ;;  %4214 = vmatpush1.bf16.msra.mxu1 %v12077_v11 }
0x14fa   :  { %4174 = vmatprep.subr.bf16.mxu0 %v12078_v58  ;;  %4215 = vmatprep.subr.bf16.mxu1 %v12079_v61 }
0x14fd   :  { %4175 = vmatpush1.bf16.msra.mxu0 %v12080_v12  ;;  %4216 = vmatpush1.bf16.msra.mxu1 %v12081_v36 }
0x14fe   :  { %4176 = vmatprep.subr.bf16.mxu0 %v12082_v50  ;;  %4217 = vmatprep.subr.bf16.mxu1 %v12083_v19 }
0x1501   :  { %4177 = vmatpush1.bf16.msra.mxu0 %v12084_v27  ;;  %4218 = vmatpush1.bf16.msra.mxu1 %v12085_v13 }
0x1502   :  { %4178 = vmatprep.subr.bf16.mxu0 %v12086_v8  ;;  %4219 = vmatprep.subr.bf16.mxu1 %v12087_v10 }
0x1505   :  { %4179 = vmatpush1.bf16.msra.mxu0 %v12088_v17  ;;  %4220 = vmatpush1.bf16.msra.mxu1 %v12089_v15 }
0x1506   :  { %4180 = vmatprep.subr.bf16.mxu0 %v12090_v5  ;;  %4221 = vmatprep.subr.bf16.mxu1 %v12091_v34 }
0x1509   :  { %4181 = vmatpush1.bf16.msra.mxu0 %v12092_v7  ;;  %4222 = vmatpush1.bf16.msra.mxu1 %v12093_v2 }
0x150a   :  { %4182 = vmatprep.subr.bf16.mxu0 %v12094_v3  ;;  %4223 = vmatprep.subr.bf16.mxu1 %v12095_v49 }
0x150d   :  { %4183 = vmatpush1.bf16.msra.mxu0 %v12096_v45  ;;  %4224 = vmatpush1.bf16.msra.mxu1 %v12097_v51 }
0x150e   :  { %4184 = vmatprep.subr.bf16.mxu0 %v12098_v48  ;;  %4225 = vmatprep.subr.bf16.mxu1 %v12099_v0 }
0x1511   :  { %4185 = vmatpush1.bf16.msra.mxu0 %v12100_v44  ;;  %4226 = vmatpush1.bf16.msra.mxu1 %v12101_v37 }
0x1512   :  { %4186 = vmatprep.subr.bf16.mxu0 %v12102_v32  ;;  %4227 = vmatprep.subr.bf16.mxu1 %v12103_v16 }
0x1515   :  { %4187 = vmatpush1.bf16.msra.mxu0 %v12104_v56  ;;  %4228 = vmatpush1.bf16.msra.mxu1 %v12105_v21 }
0x1516   :  { %4188 = vmatprep.subr.bf16.mxu0 %v12106_v1  ;;  %4229 = vmatprep.subr.bf16.mxu1 %v12107_v63  ;;  %v12117_v1 = vld [vmem:[#allocation34_spill] sm:$0xff]  ;;  %v12118_v63 = vld [vmem:[#allocation35_spill] sm:$0xff] }
0x1519   :  { %4189 = vmatpush1.bf16.msra.mxu0 %v12108_v6  ;;  %4230 = vmatpush1.bf16.msra.mxu1 %v12109_v30  ;;  %v12119_v6 = vld [vmem:[#allocation36_spill] sm:$0xff]  ;;  %v12120_v30 = vld [vmem:[#allocation37_spill] sm:$0xff] }
0x151a   :  { %4190 = vmatprep.subr.bf16.mxu0 %v12110_v54  ;;  %4231 = vmatprep.subr.bf16.mxu1 %v12111_v59  ;;  %v12121_v54 = vld [vmem:[#allocation38_spill] sm:$0xff]  ;;  %v12122_v59 = vld [vmem:[#allocation39_spill] sm:$0xff] }
0x151d   :  { %4191 = vmatpush1.bf16.msra.mxu0 %v12112_v22  ;;  %4232 = vmatpush1.bf16.msra.mxu1 %v12113_v31  ;;  %v12123_v22 = vld [vmem:[#allocation40_spill] sm:$0xff]  ;;  %v12124_v31 = vld [vmem:[#allocation41_spill] sm:$0xff] }
0x151e   :  { %4192 = vmatprep.subr.bf16.mxu0 %v12114_v62  ;;  %4233 = vmatprep.subr.bf16.mxu1 %v12115_v25  ;;  %v12125_v62 = vld [vmem:[#allocation16_spill] sm:$0xff] }
0x1521   :  { %4193 = vmatpush1.bf16.msra.mxu0 %v12116_v35  ;;  %4234 = vmatpush1.bf16.msra.mxu1 %v12117_v1  ;;  %v9911_v1 = vld [vmem:[%s11073_s6 + $0x4] ss:$16 sps:$4 sm:$0xff]  }
0x1522   :  { %4194 = vmatprep.subr.bf16.mxu0 %v12118_v63  ;;  %4235 = vmatprep.subr.bf16.mxu1 %v12119_v6  ;;  %12126 = vst [vmem:[#allocation13_spill] sm:$0xff] %v9911_v1 }
0x1525   :  { %4195 = vmatpush1.bf16.msra.mxu0 %v12120_v30  ;;  %4236 = vmatpush1.bf16.msra.mxu1 %v12121_v54  ;;  %v9917_v30 = vld [vmem:[%s11073_s6 + $0xc] ss:$16 sps:$4 sm:$0xff]  }
0x1526   :  { %4196 = vmatprep.subr.bf16.mxu0 %v12122_v59  ;;  %4237 = vmatprep.subr.bf16.mxu1 %v12123_v22  ;;  %12127 = vst [vmem:[#allocation42_spill] sm:$0xff] %v9917_v30  ;;  %v12128_v54 = vld [vmem:[#allocation11_spill] sm:$0xff] }
0x1529   :  { %4197 = vmatpush1.bf16.msra.mxu0 %v12124_v31  ;;  %4238 = vmatpush1.bf16.msra.mxu1 %v12125_v62 }
0x152a   :  { %4280 = vmatprep.subr.bf16.mxu0 %v9911_v1  ;;  %4321 = vmatprep.subr.bf16.mxu1 %v9917_v30 }
0x157f   :  { %v3978_v59 = vpop.f32.mrb[92].mxu0  ;;  %v4019_v22 = vpop.f32.mrb[92].mxu1 }
0x1580   :  { %v3979_v31 = vadd.f32 %v3978_v59, %v12128_v54  ;;  %v3980_v6 = vpop.f32.mrb[93].mxu0  ;;  %v4021_v62 = vpop.f32.mrb[93].mxu1  ;;  %v4020_v30 = vadd.f32 %v4019_v22, %v8844_v23 }
0x1581   :  { %v3981_v63 = vadd.f32 %v3980_v6, %v8835_v29  ;;  %v3982_v35 = vpop.f32.mrb[94].mxu0  ;;  %v4023_v25 = vpop.f32.mrb[94].mxu1  ;;  %v4022_v32 = vadd.f32 %v4021_v62, %v8840_v57 }
0x1582   :  { %v5321_v21 = vmul.f32 -1.442695, %v3979_v31  ;;  %v3983_v56 = vpop.f32.mrb[95].mxu0  ;;  %v4024_v1 = vpop.f32.mrb[95].mxu1 }
0x1583   :  { %v5322_v16 = vmul.f32 -1.442695, %v3981_v63  ;;  %v5323_v37 = vmul.f32 -1.442695, %v4022_v32 }
0x1584   :  { %6010 = vpow2.f32 %v5321_v21 }
0x1585   :  { %6012 = vpow2.f32 %v5322_v16 }
0x1586   :  { %6014 = vpow2.f32 %v5323_v37 }
0x1587   :  { %6016 = vtanh.f32 %v4020_v30 }
0x158e   :  { %v6011_v44 = vpop.eup %6010 }
0x158f   :  { %v6013_v0 = vpop.eup %6012  ;;  %v4029_v59 = vadd.f32 1.0, %v6011_v44 }
0x1590   :  { %v4035_v54 = vadd.f32 1.0, %v6013_v0  ;;  %v6015_v6 = vpop.eup %6014 }
0x1591   :  { %6018 = vrcp.f32 %v4029_v59  ;;  %v6017_v31 = vpop.eup %6016  ;;  %v4042_v21 = vadd.f32 1.0, %v6015_v6 }
0x1592   :  { %6020 = vrcp.f32 %v4035_v54 }
0x1593   :  { %6022 = vrcp.f32 %v4042_v21 }
0x159b   :  { %v6019_v56 = vpop.eup %6018 }
0x159c   :  { %v6021_v1 = vpop.eup %6020  ;;  %v4046_v63 = vmul.f32 %v6019_v56, %v6017_v31 }
0x159d   :  { %v4045_v16 = vmul.f32 %v6021_v1, %v9769_v46  ;;  %v6023_v32 = vpop.eup %6022 }
0x159f   :  { %v9925_v62 = vadd.f32 %v4046_v63, %v4045_v16 }
0x15a1   :  { %6024 = vtanh.f32 %v9925_v62 }
0x15ab   :  { %v6025_v44 = vpop.eup %6024 }
0x15ac   :  { %v4049_v37 = vmul.f32 %v6025_v44, %v6023_v32 }
0x15ae   :  { %v4165_v30 = vpack.c.bf16 %v4049_v37, %v4049_v37 }
0x15b0   :  { %4198 = vmatprep.mubr.bf16.mxu0 %v4165_v30  ;;  %4239 = vmatprep.mubr.bf16.mxu1 %v4165_v30 }
0x15bf   :  { %v4092_v0 = vpop.f32.mrb[96].mxu0  ;;  %v4133_v54 = vpop.f32.mrb[96].mxu1 }
0x15c0   :  { %v4093_v22 = vadd.f32 %v4092_v0, %v11924_v24  ;;  %v4094_v25 = vpop.f32.mrb[97].mxu0  ;;  %v4135_v35 = vpop.f32.mrb[97].mxu1  ;;  %v4134_v32 = vadd.f32 %v4133_v54, %v8682_v39 }
0x15c1   :  { %v4095_v59 = vadd.f32 %v4094_v25, %v8673_v38  ;;  %v4096_v46 = vpop.f32.mrb[98].mxu0  ;;  %v4137_v6 = vpop.f32.mrb[98].mxu1  ;;  %v4136_v21 = vadd.f32 %v4135_v35, %v8678_v26 }
0x15c2   :  { %v5324_v31 = vmul.f32 -1.442695, %v4093_v22  ;;  %v4097_v56 = vpop.f32.mrb[99].mxu0  ;;  %v4138_v1 = vpop.f32.mrb[99].mxu1 }
0x15c3   :  { %v5325_v63 = vmul.f32 -1.442695, %v4095_v59  ;;  %v5326_v16 = vmul.f32 -1.442695, %v4136_v21 }
0x15c4   :  { %6026 = vpow2.f32 %v5324_v31 }
0x15c5   :  { %6028 = vpow2.f32 %v5325_v63 }
0x15c6   :  { %6030 = vpow2.f32 %v5326_v16  ;;  %v9939_v16 = vld [vmem:[%s11073_s6] ss:$16 sps:$4 sm:$0xff]  }
0x15c7   :  { %6032 = vtanh.f32 %v4134_v32  ;;  %v9951_v32 = vld [vmem:[%s11073_s6 + $0x24] ss:$16 sps:$4 sm:$0xff]  }
0x15ce   :  { %v6027_v44 = vpop.eup %6026 }
0x15cf   :  { %v6029_v37 = vpop.eup %6028  ;;  %v4143_v30 = vadd.f32 1.0, %v6027_v44  ;;  %v9957_v44 = vld [vmem:[%s11073_s6 + $0x2c] ss:$16 sps:$4 sm:$0xff]  }
0x15d0   :  { %v4149_v0 = vadd.f32 1.0, %v6029_v37  ;;  %v6031_v25 = vpop.eup %6030  ;;  %v9963_v37 = vld [vmem:[%s11073_s6 + $0x20] ss:$16 sps:$4 sm:$0xff]  }
0x15d1   :  { %6034 = vrcp.f32 %v4143_v30  ;;  %v6033_v22 = vpop.eup %6032  ;;  %v4156_v31 = vadd.f32 1.0, %v6031_v25  ;;  %v9969_v30 = vld [vmem:[%s11073_s6 + $0x28] ss:$16 sps:$4 sm:$0xff]   ;;  %v9981_v25 = vld [vmem:[%s11073_s6 + $0x4c] ss:$16 sps:$4 sm:$0xff]  }
0x15d2   :  { %6036 = vrcp.f32 %v4149_v0  ;;  %v9975_v0 = vld [vmem:[%s11073_s6 + $0x44] ss:$16 sps:$4 sm:$0xff]  }
0x15d3   :  { %6038 = vrcp.f32 %v4156_v31  ;;  %v10011_v31 = vld [vmem:[%s11073_s6 + $0x60] ss:$16 sps:$4 sm:$0xff]  }
0x15db   :  { %v6035_v46 = vpop.eup %6034 }
0x15dc   :  { %v6037_v6 = vpop.eup %6036  ;;  %v4160_v59 = vmul.f32 %v6035_v46, %v6033_v22  ;;  %v9987_v22 = vld [vmem:[%s11073_s6 + $0x40] ss:$16 sps:$4 sm:$0xff]   ;;  %v9993_v46 = vld [vmem:[%s11073_s6 + $0x48] ss:$16 sps:$4 sm:$0xff]  }
0x15dd   :  { %v4159_v56 = vmul.f32 %v6037_v6, %v9777_v60  ;;  %v6039_v54 = vpop.eup %6038  ;;  %v9945_v60 = vld [vmem:[%s11073_s6 + $0x8] ss:$16 sps:$4 sm:$0xff]   ;;  %v9999_v6 = vld [vmem:[%s11073_s6 + $0x64] ss:$16 sps:$4 sm:$0xff]  }
0x15df   :  { %v9933_v35 = vadd.f32 %v4160_v59, %v4159_v56  ;;  %v10005_v59 = vld [vmem:[%s11073_s6 + $0x6c] ss:$16 sps:$4 sm:$0xff]   ;;  %v10017_v56 = vld [vmem:[%s11073_s6 + $0x68] ss:$16 sps:$4 sm:$0xff]  }
0x15e0   :  { %12129 = vst [vmem:[#allocation18_spill] sm:$0xff] %v10017_v56 }
0x15e1   :  { %6040 = vtanh.f32 %v9933_v35 }
0x15eb   :  { %v6041_v1 = vpop.eup %6040 }
0x15ec   :  { %v4163_v63 = vmul.f32 %v6041_v1, %v6039_v54  ;;  %v10023_v54 = vld [vmem:[%s11073_s6 + $0x84] ss:$16 sps:$4 sm:$0xff]   ;;  %v10029_v1 = vld [vmem:[%s11073_s6 + $0x8c] ss:$16 sps:$4 sm:$0xff]  }
0x15ed   :  { %12130 = vst [vmem:[#allocation43_spill] sm:$0xff] %v10023_v54  ;;  %12131 = vst [vmem:[#allocation44_spill] sm:$0xff] %v10029_v1 }
0x15ee   :  { %v4164_v21 = vpack.c.bf16 %v4163_v63, %v4163_v63  ;;  %v10035_v63 = vld [vmem:[%s11073_s6 + $0x80] ss:$16 sps:$4 sm:$0xff]  }
0x15ef   :  { %12132 = vst [vmem:[#allocation45_spill] sm:$0xff] %v10035_v63 }
0x15f0   :  { %4199 = vmatmul.mubr.bf16.vlgmr.msra.gmra.mrb[100].mxu0 %v4164_v21  ;;  %4240 = vmatmul.mubr.bf16.vlgmr.msra.gmra.mrb[100].mxu1 %v4164_v21 }
0x15f1   :  { %4281 = vmatpush1.bf16.msra.mxu0 %v9939_v16  ;;  %4322 = vmatpush1.bf16.msra.mxu1 %v9945_v60 }
0x15f2   :  { %4312 = vmatprep.mubr.bf16.mxu0 %v4164_v21  ;;  %4353 = vmatprep.mubr.bf16.mxu1 %v4164_v21  ;;  %v10041_v21 = vld [vmem:[%s11073_s6 + $0x88] ss:$16 sps:$4 sm:$0xff]  }
0x15f3   :  { %4282 = vmatprep.subr.bf16.mxu0 %v9951_v32  ;;  %4323 = vmatprep.subr.bf16.mxu1 %v9957_v44  ;;  %12133 = vst [vmem:[#allocation46_spill] sm:$0xff] %v10041_v21 }
0x15f5   :  { %4283 = vmatpush1.bf16.msra.mxu0 %v9963_v37  ;;  %4324 = vmatpush1.bf16.msra.mxu1 %v9969_v30 }
0x15f6   :  { %4284 = vmatprep.subr.bf16.mxu0 %v9975_v0  ;;  %4325 = vmatprep.subr.bf16.mxu1 %v9981_v25 }
0x15f9   :  { %4285 = vmatpush1.bf16.msra.mxu0 %v9987_v22  ;;  %4326 = vmatpush1.bf16.msra.mxu1 %v9993_v46 }
0x15fa   :  { %4286 = vmatprep.subr.bf16.mxu0 %v9999_v6  ;;  %4327 = vmatprep.subr.bf16.mxu1 %v10005_v59 }
0x15fd   :  { %4287 = vmatpush1.bf16.msra.mxu0 %v10011_v31  ;;  %4328 = vmatpush1.bf16.msra.mxu1 %v10017_v56 }
0x15fe   :  { %4288 = vmatprep.subr.bf16.mxu0 %v10023_v54  ;;  %4329 = vmatprep.subr.bf16.mxu1 %v10029_v1  ;;  %v10047_v54 = vld [vmem:[%s11073_s6 + $0xa4] ss:$16 sps:$4 sm:$0xff]   ;;  %v10053_v1 = vld [vmem:[%s11073_s6 + $0xac] ss:$16 sps:$4 sm:$0xff]  }
0x15ff   :  { %12134 = vst [vmem:[#allocation47_spill] sm:$0xff] %v10047_v54  ;;  %12135 = vst [vmem:[#allocation48_spill] sm:$0xff] %v10053_v1 }
0x1601   :  { %4289 = vmatpush1.bf16.msra.mxu0 %v10035_v63  ;;  %4330 = vmatpush1.bf16.msra.mxu1 %v10041_v21  ;;  %v10059_v63 = vld [vmem:[%s11073_s6 + $0xa0] ss:$16 sps:$4 sm:$0xff]   ;;  %v10065_v21 = vld [vmem:[%s11073_s6 + $0xa8] ss:$16 sps:$4 sm:$0xff]  }
0x1602   :  { %4290 = vmatprep.subr.bf16.mxu0 %v10047_v54  ;;  %4331 = vmatprep.subr.bf16.mxu1 %v10053_v1  ;;  %12136 = vst [vmem:[#allocation49_spill] sm:$0xff] %v10059_v63  ;;  %12137 = vst [vmem:[#allocation50_spill] sm:$0xff] %v10065_v21  ;;  %v10071_v54 = vld [vmem:[%s11073_s6 + $0xc4] ss:$16 sps:$4 sm:$0xff]   ;;  %v10077_v1 = vld [vmem:[%s11073_s6 + $0xcc] ss:$16 sps:$4 sm:$0xff]  }
0x1603   :  { %12138 = vst [vmem:[#allocation51_spill] sm:$0xff] %v10071_v54  ;;  %12139 = vst [vmem:[#allocation52_spill] sm:$0xff] %v10077_v1 }
0x1605   :  { %4291 = vmatpush1.bf16.msra.mxu0 %v10059_v63  ;;  %4332 = vmatpush1.bf16.msra.mxu1 %v10065_v21  ;;  %v10083_v63 = vld [vmem:[%s11073_s6 + $0xc0] ss:$16 sps:$4 sm:$0xff]   ;;  %v10089_v21 = vld [vmem:[%s11073_s6 + $0xc8] ss:$16 sps:$4 sm:$0xff]  }
0x1606   :  { %4292 = vmatprep.subr.bf16.mxu0 %v10071_v54  ;;  %4333 = vmatprep.subr.bf16.mxu1 %v10077_v1  ;;  %12140 = vst [vmem:[#allocation53_spill] sm:$0xff] %v10083_v63  ;;  %12141 = vst [vmem:[#allocation54_spill] sm:$0xff] %v10089_v21  ;;  %v10095_v54 = vld [vmem:[%s11073_s6 + $0xe4] ss:$16 sps:$4 sm:$0xff]   ;;  %v10101_v1 = vld [vmem:[%s11073_s6 + $0xec] ss:$16 sps:$4 sm:$0xff]  }
0x1607   :  { %12142 = vst [vmem:[#allocation55_spill] sm:$0xff] %v10095_v54  ;;  %12143 = vst [vmem:[#allocation56_spill] sm:$0xff] %v10101_v1 }
0x1609   :  { %4293 = vmatpush1.bf16.msra.mxu0 %v10083_v63  ;;  %4334 = vmatpush1.bf16.msra.mxu1 %v10089_v21  ;;  %v10107_v63 = vld [vmem:[%s11073_s6 + $0xe0] ss:$16 sps:$4 sm:$0xff]   ;;  %v10113_v21 = vld [vmem:[%s11073_s6 + $0xe8] ss:$16 sps:$4 sm:$0xff]  }
0x160a   :  { %4294 = vmatprep.subr.bf16.mxu0 %v10095_v54  ;;  %4335 = vmatprep.subr.bf16.mxu1 %v10101_v1  ;;  %12144 = vst [vmem:[#allocation57_spill] sm:$0xff] %v10107_v63  ;;  %12145 = vst [vmem:[#allocation58_spill] sm:$0xff] %v10113_v21  ;;  %v10119_v54 = vld [vmem:[%s11073_s6 + $0x104] ss:$16 sps:$4 sm:$0xff]   ;;  %v10125_v1 = vld [vmem:[%s11073_s6 + $0x10c] ss:$16 sps:$4 sm:$0xff]  }
0x160b   :  { %12146 = vst [vmem:[#allocation59_spill] sm:$0xff] %v10119_v54  ;;  %12147 = vst [vmem:[#allocation60_spill] sm:$0xff] %v10125_v1 }
0x160d   :  { %4295 = vmatpush1.bf16.msra.mxu0 %v10107_v63  ;;  %4336 = vmatpush1.bf16.msra.mxu1 %v10113_v21  ;;  %v10131_v63 = vld [vmem:[%s11073_s6 + $0x100] ss:$16 sps:$4 sm:$0xff]   ;;  %v10137_v21 = vld [vmem:[%s11073_s6 + $0x108] ss:$16 sps:$4 sm:$0xff]  }
0x160e   :  { %4296 = vmatprep.subr.bf16.mxu0 %v10119_v54  ;;  %4337 = vmatprep.subr.bf16.mxu1 %v10125_v1  ;;  %12148 = vst [vmem:[#allocation61_spill] sm:$0xff] %v10131_v63  ;;  %12149 = vst [vmem:[#allocation62_spill] sm:$0xff] %v10137_v21  ;;  %v10143_v54 = vld [vmem:[%s11073_s6 + $0x124] ss:$16 sps:$4 sm:$0xff]   ;;  %v10149_v1 = vld [vmem:[%s11073_s6 + $0x12c] ss:$16 sps:$4 sm:$0xff]  }
0x160f   :  { %12150 = vst [vmem:[#allocation63_spill] sm:$0xff] %v10143_v54  ;;  %12151 = vst [vmem:[#allocation64_spill] sm:$0xff] %v10149_v1 }
0x1611   :  { %4297 = vmatpush1.bf16.msra.mxu0 %v10131_v63  ;;  %4338 = vmatpush1.bf16.msra.mxu1 %v10137_v21  ;;  %v10155_v63 = vld [vmem:[%s11073_s6 + $0x120] ss:$16 sps:$4 sm:$0xff]   ;;  %v10161_v21 = vld [vmem:[%s11073_s6 + $0x128] ss:$16 sps:$4 sm:$0xff]  }
0x1612   :  { %4298 = vmatprep.subr.bf16.mxu0 %v10143_v54  ;;  %4339 = vmatprep.subr.bf16.mxu1 %v10149_v1  ;;  %12152 = vst [vmem:[#allocation65_spill] sm:$0xff] %v10155_v63  ;;  %12153 = vst [vmem:[#allocation66_spill] sm:$0xff] %v10161_v21  ;;  %v10167_v54 = vld [vmem:[%s11073_s6 + $0x144] ss:$16 sps:$4 sm:$0xff]   ;;  %v10173_v1 = vld [vmem:[%s11073_s6 + $0x14c] ss:$16 sps:$4 sm:$0xff]  }
0x1613   :  { %12154 = vst [vmem:[#allocation67_spill] sm:$0xff] %v10167_v54  ;;  %12155 = vst [vmem:[#allocation19_spill] sm:$0xff] %v10173_v1 }
0x1615   :  { %4299 = vmatpush1.bf16.msra.mxu0 %v10155_v63  ;;  %4340 = vmatpush1.bf16.msra.mxu1 %v10161_v21  ;;  %v10179_v63 = vld [vmem:[%s11073_s6 + $0x140] ss:$16 sps:$4 sm:$0xff]   ;;  %v10185_v21 = vld [vmem:[%s11073_s6 + $0x148] ss:$16 sps:$4 sm:$0xff]  }
0x1616   :  { %4300 = vmatprep.subr.bf16.mxu0 %v10167_v54  ;;  %4341 = vmatprep.subr.bf16.mxu1 %v10173_v1  ;;  %12156 = vst [vmem:[#allocation68_spill] sm:$0xff] %v10179_v63  ;;  %12157 = vst [vmem:[#allocation69_spill] sm:$0xff] %v10185_v21  ;;  %v10191_v54 = vld [vmem:[%s11073_s6 + $0x164] ss:$16 sps:$4 sm:$0xff]   ;;  %v10197_v1 = vld [vmem:[%s11073_s6 + $0x16c] ss:$16 sps:$4 sm:$0xff]  }
0x1617   :  { %12158 = vst [vmem:[#allocation70_spill] sm:$0xff] %v10191_v54  ;;  %12159 = vst [vmem:[#allocation71_spill] sm:$0xff] %v10197_v1 }
0x1619   :  { %4301 = vmatpush1.bf16.msra.mxu0 %v10179_v63  ;;  %4342 = vmatpush1.bf16.msra.mxu1 %v10185_v21  ;;  %v10203_v63 = vld [vmem:[%s11073_s6 + $0x160] ss:$16 sps:$4 sm:$0xff]   ;;  %v10209_v21 = vld [vmem:[%s11073_s6 + $0x168] ss:$16 sps:$4 sm:$0xff]  }
0x161a   :  { %4302 = vmatprep.subr.bf16.mxu0 %v10191_v54  ;;  %4343 = vmatprep.subr.bf16.mxu1 %v10197_v1  ;;  %12160 = vst [vmem:[#allocation72_spill] sm:$0xff] %v10203_v63  ;;  %12161 = vst [vmem:[#allocation73_spill] sm:$0xff] %v10209_v21  ;;  %v10215_v54 = vld [vmem:[%s11073_s6 + $0x184] ss:$16 sps:$4 sm:$0xff]   ;;  %v10221_v1 = vld [vmem:[%s11073_s6 + $0x18c] ss:$16 sps:$4 sm:$0xff]  }
0x161b   :  { %12162 = vst [vmem:[#allocation74_spill] sm:$0xff] %v10215_v54  ;;  %12163 = vst [vmem:[#allocation75_spill] sm:$0xff] %v10221_v1 }
0x161d   :  { %4303 = vmatpush1.bf16.msra.mxu0 %v10203_v63  ;;  %4344 = vmatpush1.bf16.msra.mxu1 %v10209_v21  ;;  %v10227_v63 = vld [vmem:[%s11073_s6 + $0x180] ss:$16 sps:$4 sm:$0xff]   ;;  %v10233_v21 = vld [vmem:[%s11073_s6 + $0x188] ss:$16 sps:$4 sm:$0xff]  }
0x161e   :  { %4304 = vmatprep.subr.bf16.mxu0 %v10215_v54  ;;  %4345 = vmatprep.subr.bf16.mxu1 %v10221_v1  ;;  %12164 = vst [vmem:[#allocation76_spill] sm:$0xff] %v10227_v63  ;;  %12165 = vst [vmem:[#allocation77_spill] sm:$0xff] %v10233_v21  ;;  %v10239_v54 = vld [vmem:[%s11073_s6 + $0x1a4] ss:$16 sps:$4 sm:$0xff]   ;;  %v10245_v1 = vld [vmem:[%s11073_s6 + $0x1ac] ss:$16 sps:$4 sm:$0xff]  }
0x161f   :  { %12166 = vst [vmem:[#allocation78_spill] sm:$0xff] %v10239_v54  ;;  %12167 = vst [vmem:[#allocation79_spill] sm:$0xff] %v10245_v1 }
0x1621   :  { %4305 = vmatpush1.bf16.msra.mxu0 %v10227_v63  ;;  %4346 = vmatpush1.bf16.msra.mxu1 %v10233_v21  ;;  %v10251_v63 = vld [vmem:[%s11073_s6 + $0x1a0] ss:$16 sps:$4 sm:$0xff]   ;;  %v10257_v21 = vld [vmem:[%s11073_s6 + $0x1a8] ss:$16 sps:$4 sm:$0xff]  }
0x1622   :  { %4306 = vmatprep.subr.bf16.mxu0 %v10239_v54  ;;  %4347 = vmatprep.subr.bf16.mxu1 %v10245_v1  ;;  %12168 = vst [vmem:[#allocation17_spill] sm:$0xff] %v10251_v63  ;;  %12169 = vst [vmem:[#allocation80_spill] sm:$0xff] %v10257_v21  ;;  %v10263_v54 = vld [vmem:[%s11073_s6 + $0x1c4] ss:$16 sps:$4 sm:$0xff]   ;;  %v10269_v1 = vld [vmem:[%s11073_s6 + $0x1cc] ss:$16 sps:$4 sm:$0xff]  }
0x1623   :  { %12170 = vst [vmem:[#allocation81_spill] sm:$0xff] %v10263_v54  ;;  %12171 = vst [vmem:[#allocation82_spill] sm:$0xff] %v10269_v1 }
0x1625   :  { %4307 = vmatpush1.bf16.msra.mxu0 %v10251_v63  ;;  %4348 = vmatpush1.bf16.msra.mxu1 %v10257_v21  ;;  %v10275_v63 = vld [vmem:[%s11073_s6 + $0x1c0] ss:$16 sps:$4 sm:$0xff]   ;;  %v10281_v21 = vld [vmem:[%s11073_s6 + $0x1c8] ss:$16 sps:$4 sm:$0xff]  }
0x1626   :  { %4308 = vmatprep.subr.bf16.mxu0 %v10263_v54  ;;  %4349 = vmatprep.subr.bf16.mxu1 %v10269_v1  ;;  %12172 = vst [vmem:[#allocation83_spill] sm:$0xff] %v10275_v63  ;;  %12173 = vst [vmem:[#allocation84_spill] sm:$0xff] %v10281_v21  ;;  %v10287_v54 = vld [vmem:[%s11073_s6 + $0x1e4] ss:$16 sps:$4 sm:$0xff]   ;;  %v10293_v1 = vld [vmem:[%s11073_s6 + $0x1ec] ss:$16 sps:$4 sm:$0xff]  }
0x1627   :  { %12174 = vst [vmem:[#allocation85_spill] sm:$0xff] %v10287_v54  ;;  %12175 = vst [vmem:[#allocation86_spill] sm:$0xff] %v10293_v1 }
0x1629   :  { %4309 = vmatpush1.bf16.msra.mxu0 %v10275_v63  ;;  %4350 = vmatpush1.bf16.msra.mxu1 %v10281_v21  ;;  %v10299_v63 = vld [vmem:[%s11073_s6 + $0x1e0] ss:$16 sps:$4 sm:$0xff]   ;;  %v10305_v21 = vld [vmem:[%s11073_s6 + $0x1e8] ss:$16 sps:$4 sm:$0xff]  }
0x162a   :  { %4310 = vmatprep.subr.bf16.mxu0 %v10287_v54  ;;  %4351 = vmatprep.subr.bf16.mxu1 %v10293_v1  ;;  %12176 = vst [vmem:[#allocation87_spill] sm:$0xff] %v10299_v63  ;;  %12177 = vst [vmem:[#allocation88_spill] sm:$0xff] %v10305_v21  ;;  %v12178_v54 = vld [vmem:[#allocation14_spill] sm:$0xff] }
0x162b   :  { %v4279_v56 = vpack.c.bf16 %v12178_v54, %v12178_v54 }
0x162d   :  { %4311 = vmatpush1.bf16.msra.mxu0 %v10299_v63  ;;  %4352 = vmatpush1.bf16.msra.mxu1 %v10305_v21 }
0x162e   :  { %4388 = vmatprep.subr.bf16.mxu0 %v12062_v33  ;;  %4429 = vmatprep.subr.bf16.mxu1 %v12063_v28  ;;  %v12179_v33 = vld [vmem:[#allocation104_spill] sm:$0xff]  ;;  %v12180_v28 = vld [vmem:[#allocation10_spill] sm:$0xff] }
0x1630   :  { %4313 = vmatmul.mubr.bf16.vlgmr.msra.gmra.mrb[104].mxu0 %v4279_v56  ;;  %4354 = vmatmul.mubr.bf16.vlgmr.msra.gmra.mrb[104].mxu1 %v4279_v56 }
0x1631   :  { %4389 = vmatpush1.bf16.msra.mxu0 %v12064_v43  ;;  %4430 = vmatpush1.bf16.msra.mxu1 %v12065_v42  ;;  %v12181_v43 = vld [vmem:[#allocation12_spill] sm:$0xff] }
0x1632   :  { %4390 = vmatprep.subr.bf16.mxu0 %v12066_v40  ;;  %4431 = vmatprep.subr.bf16.mxu1 %v12067_v41  ;;  %v12182_v42 = vld [vmem:[#allocation20_spill] sm:$0xff]  ;;  %v12183_v40 = vld [vmem:[#allocation9_spill] sm:$0xff] }
0x1633   :  { %v12184_v41 = vld [vmem:[#allocation21_spill] sm:$0xff] }
0x1635   :  { %4391 = vmatpush1.bf16.msra.mxu0 %v12068_v47  ;;  %4432 = vmatpush1.bf16.msra.mxu1 %v12069_v4  ;;  %v12185_v47 = vld [vmem:[#allocation22_spill] sm:$0xff]  ;;  %v12186_v4 = vld [vmem:[#allocation23_spill] sm:$0xff] }
0x1636   :  { %4392 = vmatprep.subr.bf16.mxu0 %v12070_v53  ;;  %4433 = vmatprep.subr.bf16.mxu1 %v12071_v52  ;;  %v12187_v53 = vld [vmem:[#allocation24_spill] sm:$0xff]  ;;  %v12188_v52 = vld [vmem:[#allocation25_spill] sm:$0xff] }
0x1639   :  { %4393 = vmatpush1.bf16.msra.mxu0 %v12072_v55  ;;  %4434 = vmatpush1.bf16.msra.mxu1 %v12073_v9  ;;  %v12189_v55 = vld [vmem:[#allocation26_spill] sm:$0xff]  ;;  %v12190_v9 = vld [vmem:[#allocation27_spill] sm:$0xff] }
0x163a   :  { %4394 = vmatprep.subr.bf16.mxu0 %v12074_v18  ;;  %4435 = vmatprep.subr.bf16.mxu1 %v12075_v20  ;;  %v12191_v18 = vld [vmem:[#allocation28_spill] sm:$0xff]  ;;  %v12192_v20 = vld [vmem:[#allocation29_spill] sm:$0xff] }
0x163d   :  { %4395 = vmatpush1.bf16.msra.mxu0 %v12076_v14  ;;  %4436 = vmatpush1.bf16.msra.mxu1 %v12077_v11  ;;  %v12193_v14 = vld [vmem:[#allocation30_spill] sm:$0xff]  ;;  %v12194_v11 = vld [vmem:[#allocation31_spill] sm:$0xff] }
0x163e   :  { %4396 = vmatprep.subr.bf16.mxu0 %v12078_v58  ;;  %4437 = vmatprep.subr.bf16.mxu1 %v12079_v61  ;;  %v12195_v58 = vld [vmem:[#allocation32_spill] sm:$0xff]  ;;  %v12196_v61 = vld [vmem:[#allocation33_spill] sm:$0xff] }
0x1641   :  { %4397 = vmatpush1.bf16.msra.mxu0 %v12080_v12  ;;  %4438 = vmatpush1.bf16.msra.mxu1 %v12081_v36  ;;  %v12197_v12 = vld [vmem:[#allocation34_spill] sm:$0xff]  ;;  %v12198_v36 = vld [vmem:[#allocation35_spill] sm:$0xff] }
0x1642   :  { %4398 = vmatprep.subr.bf16.mxu0 %v12082_v50  ;;  %4439 = vmatprep.subr.bf16.mxu1 %v12083_v19  ;;  %v12199_v50 = vld [vmem:[#allocation36_spill] sm:$0xff]  ;;  %v12200_v19 = vld [vmem:[#allocation37_spill] sm:$0xff] }
0x1645   :  { %4399 = vmatpush1.bf16.msra.mxu0 %v12084_v27  ;;  %4440 = vmatpush1.bf16.msra.mxu1 %v12085_v13  ;;  %v12201_v27 = vld [vmem:[#allocation38_spill] sm:$0xff]  ;;  %v12202_v13 = vld [vmem:[#allocation39_spill] sm:$0xff] }
0x1646   :  { %4400 = vmatprep.subr.bf16.mxu0 %v12086_v8  ;;  %4441 = vmatprep.subr.bf16.mxu1 %v12087_v10  ;;  %v12203_v8 = vld [vmem:[#allocation40_spill] sm:$0xff]  ;;  %v12204_v10 = vld [vmem:[#allocation41_spill] sm:$0xff] }
0x1649   :  { %4401 = vmatpush1.bf16.msra.mxu0 %v12088_v17  ;;  %4442 = vmatpush1.bf16.msra.mxu1 %v12089_v15  ;;  %v12205_v17 = vld [vmem:[#allocation16_spill] sm:$0xff]  ;;  %v12206_v15 = vld [vmem:[#allocation13_spill] sm:$0xff] }
0x164a   :  { %4402 = vmatprep.subr.bf16.mxu0 %v12090_v5  ;;  %4443 = vmatprep.subr.bf16.mxu1 %v12091_v34  ;;  %v12207_v5 = vld [vmem:[#allocation42_spill] sm:$0xff] }
0x164d   :  { %4403 = vmatpush1.bf16.msra.mxu0 %v12092_v7  ;;  %4444 = vmatpush1.bf16.msra.mxu1 %v12093_v2  ;;  %v12208_v2 = vld [vmem:[#allocation11_spill] sm:$0xff] }
0x164e   :  { %4404 = vmatprep.subr.bf16.mxu0 %v12094_v3  ;;  %4445 = vmatprep.subr.bf16.mxu1 %v12095_v49 }
0x1651   :  { %4405 = vmatpush1.bf16.msra.mxu0 %v12096_v45  ;;  %4446 = vmatpush1.bf16.msra.mxu1 %v12097_v51 }
0x1652   :  { %4406 = vmatprep.subr.bf16.mxu0 %v12098_v48  ;;  %4447 = vmatprep.subr.bf16.mxu1 %v12179_v33 }
0x1655   :  { %4407 = vmatpush1.bf16.msra.mxu0 %v12180_v28  ;;  %4448 = vmatpush1.bf16.msra.mxu1 %v12181_v43 }
0x1656   :  { %4408 = vmatprep.subr.bf16.mxu0 %v12182_v42  ;;  %4449 = vmatprep.subr.bf16.mxu1 %v12183_v40 }
0x1659   :  { %4409 = vmatpush1.bf16.msra.mxu0 %v12184_v41  ;;  %4450 = vmatpush1.bf16.msra.mxu1 %v12185_v47 }
0x165a   :  { %4410 = vmatprep.subr.bf16.mxu0 %v12186_v4  ;;  %4451 = vmatprep.subr.bf16.mxu1 %v12187_v53 }
0x165d   :  { %4411 = vmatpush1.bf16.msra.mxu0 %v12188_v52  ;;  %4452 = vmatpush1.bf16.msra.mxu1 %v12189_v55 }
0x165e   :  { %4412 = vmatprep.subr.bf16.mxu0 %v12190_v9  ;;  %4453 = vmatprep.subr.bf16.mxu1 %v12191_v18 }
0x1661   :  { %4413 = vmatpush1.bf16.msra.mxu0 %v12192_v20  ;;  %4454 = vmatpush1.bf16.msra.mxu1 %v12193_v14 }
0x1662   :  { %4414 = vmatprep.subr.bf16.mxu0 %v12194_v11  ;;  %4455 = vmatprep.subr.bf16.mxu1 %v12195_v58 }
0x1665   :  { %4415 = vmatpush1.bf16.msra.mxu0 %v12196_v61  ;;  %4456 = vmatpush1.bf16.msra.mxu1 %v12197_v12 }
0x1666   :  { %4416 = vmatprep.subr.bf16.mxu0 %v12198_v36  ;;  %4457 = vmatprep.subr.bf16.mxu1 %v12199_v50 }
0x1669   :  { %4417 = vmatpush1.bf16.msra.mxu0 %v12200_v19  ;;  %4458 = vmatpush1.bf16.msra.mxu1 %v12201_v27 }
0x166a   :  { %4418 = vmatprep.subr.bf16.mxu0 %v12202_v13  ;;  %4459 = vmatprep.subr.bf16.mxu1 %v12203_v8 }
0x166d   :  { %4419 = vmatpush1.bf16.msra.mxu0 %v12204_v10  ;;  %4460 = vmatpush1.bf16.msra.mxu1 %v12205_v17 }
0x166e   :  { %4502 = vmatprep.subr.bf16.mxu0 %v12206_v15  ;;  %4543 = vmatprep.subr.bf16.mxu1 %v12207_v5 }
0x16c3   :  { %v4200_v34 = vpop.f32.mrb[100].mxu0  ;;  %v4241_v7 = vpop.f32.mrb[100].mxu1 }
0x16c4   :  { %v4201_v3 = vadd.f32 %v4200_v34, %v12208_v2  ;;  %v4202_v49 = vpop.f32.mrb[101].mxu0  ;;  %v4243_v45 = vpop.f32.mrb[101].mxu1  ;;  %v4242_v41 = vadd.f32 %v4241_v7, %v8844_v23 }
0x16c5   :  { %v4203_v51 = vadd.f32 %v4202_v49, %v8835_v29  ;;  %v4204_v48 = vpop.f32.mrb[102].mxu0  ;;  %v4245_v56 = vpop.f32.mrb[102].mxu1  ;;  %v4244_v42 = vadd.f32 %v4243_v45, %v8840_v57 }
0x16c6   :  { %v5327_v54 = vmul.f32 -1.442695, %v4201_v3  ;;  %v4205_v33 = vpop.f32.mrb[103].mxu0  ;;  %v4246_v28 = vpop.f32.mrb[103].mxu1 }
0x16c7   :  { %v5328_v43 = vmul.f32 -1.442695, %v4203_v51  ;;  %v5329_v40 = vmul.f32 -1.442695, %v4244_v42 }
0x16c8   :  { %6042 = vpow2.f32 %v5327_v54 }
0x16c9   :  { %6044 = vpow2.f32 %v5328_v43 }
0x16ca   :  { %6046 = vpow2.f32 %v5329_v40 }
0x16cb   :  { %6048 = vtanh.f32 %v4242_v41 }
0x16d2   :  { %v6043_v47 = vpop.eup %6042 }
0x16d3   :  { %v6045_v4 = vpop.eup %6044  ;;  %v4251_v53 = vadd.f32 1.0, %v6043_v47 }
0x16d4   :  { %v4257_v52 = vadd.f32 1.0, %v6045_v4  ;;  %v6047_v55 = vpop.eup %6046 }
0x16d5   :  { %6050 = vrcp.f32 %v4251_v53  ;;  %v6049_v9 = vpop.eup %6048  ;;  %v4264_v11 = vadd.f32 1.0, %v6047_v55 }
0x16d6   :  { %6052 = vrcp.f32 %v4257_v52 }
0x16d7   :  { %6054 = vrcp.f32 %v4264_v11 }
0x16df   :  { %v6051_v18 = vpop.eup %6050 }
0x16e0   :  { %v6053_v20 = vpop.eup %6052  ;;  %v4268_v14 = vmul.f32 %v6051_v18, %v6049_v9 }
0x16e1   :  { %v4267_v58 = vmul.f32 %v6053_v20, %v9925_v62  ;;  %v6055_v12 = vpop.eup %6054 }
0x16e3   :  { %v10381_v61 = vadd.f32 %v4268_v14, %v4267_v58  ;;  %v12210_v58 = vld [vmem:[#allocation43_spill] sm:$0xff] }
0x16e5   :  { %6056 = vtanh.f32 %v10381_v61 }
0x16ef   :  { %v6057_v36 = vpop.eup %6056 }
0x16f0   :  { %v4271_v50 = vmul.f32 %v6057_v36, %v6055_v12  ;;  %v12211_v12 = vld [vmem:[#allocation44_spill] sm:$0xff]  ;;  %v12212_v36 = vld [vmem:[#allocation45_spill] sm:$0xff] }
0x16f2   :  { %v4387_v19 = vpack.c.bf16 %v4271_v50, %v4271_v50  ;;  %v12213_v50 = vld [vmem:[#allocation46_spill] sm:$0xff] }
0x16f4   :  { %4420 = vmatprep.mubr.bf16.mxu0 %v4387_v19  ;;  %4461 = vmatprep.mubr.bf16.mxu1 %v4387_v19  ;;  %v12214_v19 = vld [vmem:[#allocation47_spill] sm:$0xff] }
0x1703   :  { %v4314_v27 = vpop.f32.mrb[104].mxu0  ;;  %v4355_v13 = vpop.f32.mrb[104].mxu1 }
0x1704   :  { %v4315_v8 = vadd.f32 %v4314_v27, %v11924_v24  ;;  %v4316_v10 = vpop.f32.mrb[105].mxu0  ;;  %v4357_v17 = vpop.f32.mrb[105].mxu1  ;;  %v4356_v54 = vadd.f32 %v4355_v13, %v8682_v39  ;;  %v12215_v27 = vld [vmem:[#allocation48_spill] sm:$0xff]  ;;  %v12216_v13 = vld [vmem:[#allocation49_spill] sm:$0xff] }
0x1705   :  { %v4317_v34 = vadd.f32 %v4316_v10, %v8673_v38  ;;  %v4318_v62 = vpop.f32.mrb[106].mxu0  ;;  %v4359_v7 = vpop.f32.mrb[106].mxu1  ;;  %v4358_v48 = vadd.f32 %v4357_v17, %v8678_v26  ;;  %v12218_v10 = vld [vmem:[#allocation51_spill] sm:$0xff]  ;;  %v12219_v17 = vld [vmem:[#allocation52_spill] sm:$0xff] }
0x1706   :  { %v5330_v3 = vmul.f32 -1.442695, %v4315_v8  ;;  %v4319_v49 = vpop.f32.mrb[107].mxu0  ;;  %v4360_v45 = vpop.f32.mrb[107].mxu1  ;;  %v12217_v8 = vld [vmem:[#allocation50_spill] sm:$0xff]  ;;  %v12222_v7 = vld [vmem:[#allocation55_spill] sm:$0xff] }
0x1707   :  { %v5331_v51 = vmul.f32 -1.442695, %v4317_v34  ;;  %v5332_v56 = vmul.f32 -1.442695, %v4358_v48  ;;  %v12220_v34 = vld [vmem:[#allocation53_spill] sm:$0xff]  ;;  %v12221_v62 = vld [vmem:[#allocation54_spill] sm:$0xff] }
0x1708   :  { %6058 = vpow2.f32 %v5330_v3  ;;  %v12223_v3 = vld [vmem:[#allocation56_spill] sm:$0xff]  ;;  %v12224_v49 = vld [vmem:[#allocation57_spill] sm:$0xff]  ;;  %v12225_v45 = vld [vmem:[#allocation58_spill] sm:$0xff] }
0x1709   :  { %6060 = vpow2.f32 %v5331_v51  ;;  %v12226_v51 = vld [vmem:[#allocation59_spill] sm:$0xff]  ;;  %v12227_v48 = vld [vmem:[#allocation60_spill] sm:$0xff] }
0x170a   :  { %6062 = vpow2.f32 %v5332_v56  ;;  %v12228_v56 = vld [vmem:[#allocation61_spill] sm:$0xff] }
0x170b   :  { %6064 = vtanh.f32 %v4356_v54  ;;  %v12229_v54 = vld [vmem:[#allocation62_spill] sm:$0xff] }
0x1712   :  { %v6059_v33 = vpop.eup %6058 }
0x1713   :  { %v6061_v28 = vpop.eup %6060  ;;  %v4365_v43 = vadd.f32 1.0, %v6059_v33  ;;  %v12230_v33 = vld [vmem:[#allocation63_spill] sm:$0xff] }
0x1714   :  { %v4371_v42 = vadd.f32 1.0, %v6061_v28  ;;  %v6063_v40 = vpop.eup %6062  ;;  %v12231_v28 = vld [vmem:[#allocation64_spill] sm:$0xff] }
0x1715   :  { %6066 = vrcp.f32 %v4365_v43  ;;  %v6065_v41 = vpop.eup %6064  ;;  %v4378_v52 = vadd.f32 1.0, %v6063_v40  ;;  %v12232_v43 = vld [vmem:[#allocation65_spill] sm:$0xff]  ;;  %v12234_v40 = vld [vmem:[#allocation67_spill] sm:$0xff] }
0x1716   :  { %6068 = vrcp.f32 %v4371_v42  ;;  %v12233_v42 = vld [vmem:[#allocation66_spill] sm:$0xff] }
0x1717   :  { %6070 = vrcp.f32 %v4378_v52  ;;  %v12239_v52 = vld [vmem:[#allocation71_spill] sm:$0xff] }
0x171f   :  { %v6067_v47 = vpop.eup %6066 }
0x1720   :  { %v6069_v4 = vpop.eup %6068  ;;  %v4382_v53 = vmul.f32 %v6067_v47, %v6065_v41  ;;  %v12235_v41 = vld [vmem:[#allocation19_spill] sm:$0xff]  ;;  %v12236_v47 = vld [vmem:[#allocation68_spill] sm:$0xff] }
0x1721   :  { %v4381_v55 = vmul.f32 %v6069_v4, %v9933_v35  ;;  %v6071_v18 = vpop.eup %6070  ;;  %v12209_v35 = vld [vmem:[#allocation18_spill] sm:$0xff]  ;;  %v12237_v4 = vld [vmem:[#allocation69_spill] sm:$0xff] }
0x1723   :  { %v10389_v9 = vadd.f32 %v4382_v53, %v4381_v55  ;;  %v12238_v53 = vld [vmem:[#allocation70_spill] sm:$0xff]  ;;  %v12240_v55 = vld [vmem:[#allocation72_spill] sm:$0xff] }
0x1725   :  { %6072 = vtanh.f32 %v10389_v9 }
0x172f   :  { %v6073_v20 = vpop.eup %6072 }
0x1730   :  { %v4385_v14 = vmul.f32 %v6073_v20, %v6071_v18  ;;  %v12241_v18 = vld [vmem:[#allocation73_spill] sm:$0xff]  ;;  %v12242_v20 = vld [vmem:[#allocation74_spill] sm:$0xff] }
0x1732   :  { %v4386_v11 = vpack.c.bf16 %v4385_v14, %v4385_v14  ;;  %v12243_v14 = vld [vmem:[#allocation75_spill] sm:$0xff] }
0x1734   :  { %4421 = vmatmul.mubr.bf16.vlgmr.msra.gmra.mrb[108].mxu0 %v4386_v11  ;;  %4462 = vmatmul.mubr.bf16.vlgmr.msra.gmra.mrb[108].mxu1 %v4386_v11 }
0x1735   :  { %4503 = vmatpush1.bf16.msra.mxu0 %v9939_v16  ;;  %4544 = vmatpush1.bf16.msra.mxu1 %v9945_v60 }
0x1736   :  { %4534 = vmatprep.mubr.bf16.mxu0 %v4386_v11  ;;  %4575 = vmatprep.mubr.bf16.mxu1 %v4386_v11  ;;  %v12244_v11 = vld [vmem:[#allocation76_spill] sm:$0xff] }
0x1737   :  { %4504 = vmatprep.subr.bf16.mxu0 %v9951_v32  ;;  %4545 = vmatprep.subr.bf16.mxu1 %v9957_v44 }
0x1739   :  { %4505 = vmatpush1.bf16.msra.mxu0 %v9963_v37  ;;  %4546 = vmatpush1.bf16.msra.mxu1 %v9969_v30 }
0x173a   :  { %4506 = vmatprep.subr.bf16.mxu0 %v9975_v0  ;;  %4547 = vmatprep.subr.bf16.mxu1 %v9981_v25 }
0x173d   :  { %4507 = vmatpush1.bf16.msra.mxu0 %v9987_v22  ;;  %4548 = vmatpush1.bf16.msra.mxu1 %v9993_v46 }
0x173e   :  { %4508 = vmatprep.subr.bf16.mxu0 %v9999_v6  ;;  %4549 = vmatprep.subr.bf16.mxu1 %v10005_v59 }
0x1741   :  { %4509 = vmatpush1.bf16.msra.mxu0 %v10011_v31  ;;  %4550 = vmatpush1.bf16.msra.mxu1 %v12209_v35 }
0x1742   :  { %4510 = vmatprep.subr.bf16.mxu0 %v12210_v58  ;;  %4551 = vmatprep.subr.bf16.mxu1 %v12211_v12 }
0x1745   :  { %4511 = vmatpush1.bf16.msra.mxu0 %v12212_v36  ;;  %4552 = vmatpush1.bf16.msra.mxu1 %v12213_v50 }
0x1746   :  { %4512 = vmatprep.subr.bf16.mxu0 %v12214_v19  ;;  %4553 = vmatprep.subr.bf16.mxu1 %v12215_v27 }
0x1749   :  { %4513 = vmatpush1.bf16.msra.mxu0 %v12216_v13  ;;  %4554 = vmatpush1.bf16.msra.mxu1 %v12217_v8 }
0x174a   :  { %4514 = vmatprep.subr.bf16.mxu0 %v12218_v10  ;;  %4555 = vmatprep.subr.bf16.mxu1 %v12219_v17 }
0x174d   :  { %4515 = vmatpush1.bf16.msra.mxu0 %v12220_v34  ;;  %4556 = vmatpush1.bf16.msra.mxu1 %v12221_v62 }
0x174e   :  { %4516 = vmatprep.subr.bf16.mxu0 %v12222_v7  ;;  %4557 = vmatprep.subr.bf16.mxu1 %v12223_v3 }
0x1751   :  { %4517 = vmatpush1.bf16.msra.mxu0 %v12224_v49  ;;  %4558 = vmatpush1.bf16.msra.mxu1 %v12225_v45 }
0x1752   :  { %4518 = vmatprep.subr.bf16.mxu0 %v12226_v51  ;;  %4559 = vmatprep.subr.bf16.mxu1 %v12227_v48 }
0x1755   :  { %4519 = vmatpush1.bf16.msra.mxu0 %v12228_v56  ;;  %4560 = vmatpush1.bf16.msra.mxu1 %v12229_v54 }
0x1756   :  { %4520 = vmatprep.subr.bf16.mxu0 %v12230_v33  ;;  %4561 = vmatprep.subr.bf16.mxu1 %v12231_v28 }
0x1759   :  { %4521 = vmatpush1.bf16.msra.mxu0 %v12232_v43  ;;  %4562 = vmatpush1.bf16.msra.mxu1 %v12233_v42 }
0x175a   :  { %4522 = vmatprep.subr.bf16.mxu0 %v12234_v40  ;;  %4563 = vmatprep.subr.bf16.mxu1 %v12235_v41  ;;  %v12245_v40 = vld [vmem:[#allocation77_spill] sm:$0xff]  ;;  %v12246_v41 = vld [vmem:[#allocation78_spill] sm:$0xff] }
0x175d   :  { %4523 = vmatpush1.bf16.msra.mxu0 %v12236_v47  ;;  %4564 = vmatpush1.bf16.msra.mxu1 %v12237_v4  ;;  %v12247_v47 = vld [vmem:[#allocation79_spill] sm:$0xff]  ;;  %v12248_v4 = vld [vmem:[#allocation17_spill] sm:$0xff] }
0x175e   :  { %4524 = vmatprep.subr.bf16.mxu0 %v12238_v53  ;;  %4565 = vmatprep.subr.bf16.mxu1 %v12239_v52  ;;  %v12249_v53 = vld [vmem:[#allocation80_spill] sm:$0xff]  ;;  %v12250_v52 = vld [vmem:[#allocation81_spill] sm:$0xff] }
0x1761   :  { %4525 = vmatpush1.bf16.msra.mxu0 %v12240_v55  ;;  %4566 = vmatpush1.bf16.msra.mxu1 %v12241_v18  ;;  %v12251_v55 = vld [vmem:[#allocation82_spill] sm:$0xff]  ;;  %v12252_v18 = vld [vmem:[#allocation83_spill] sm:$0xff] }
0x1762   :  { %4526 = vmatprep.subr.bf16.mxu0 %v12242_v20  ;;  %4567 = vmatprep.subr.bf16.mxu1 %v12243_v14  ;;  %v12253_v20 = vld [vmem:[#allocation84_spill] sm:$0xff]  ;;  %v12254_v14 = vld [vmem:[#allocation85_spill] sm:$0xff] }
0x1765   :  { %4527 = vmatpush1.bf16.msra.mxu0 %v12244_v11  ;;  %4568 = vmatpush1.bf16.msra.mxu1 %v12245_v40 }
0x1766   :  { %4528 = vmatprep.subr.bf16.mxu0 %v12246_v41  ;;  %4569 = vmatprep.subr.bf16.mxu1 %v12247_v47  ;;  %v12255_v47 = vld [vmem:[#allocation15_spill] sm:$0xff] }
0x1769   :  { %4529 = vmatpush1.bf16.msra.mxu0 %v12248_v4  ;;  %4570 = vmatpush1.bf16.msra.mxu1 %v12249_v53  ;;  %v4501_v4 = vpack.c.bf16 %v12255_v47, %v12255_v47  ;;  %v10471_v47 = vld [vmem:[%s11075_s8] ss:$16 sps:$4 sm:$0xff]  }
0x176a   :  { %4530 = vmatprep.subr.bf16.mxu0 %v12250_v52  ;;  %4571 = vmatprep.subr.bf16.mxu1 %v12251_v55  ;;  %v10459_v52 = vld [vmem:[%s11075_s8 + $0x4] ss:$16 sps:$4 sm:$0xff]   ;;  %12258 = vst [vmem:[#allocation91_spill] sm:$0xff] %v10471_v47 }
0x176b   :  { %12256 = vst [vmem:[#allocation89_spill] sm:$0xff] %v10459_v52 }
0x176d   :  { %4531 = vmatpush1.bf16.msra.mxu0 %v12252_v18  ;;  %4572 = vmatpush1.bf16.msra.mxu1 %v12253_v20 }
0x176e   :  { %4532 = vmatprep.subr.bf16.mxu0 %v12254_v14  ;;  %4573 = vmatprep.subr.bf16.mxu1 %v10293_v1  ;;  %v10465_v14 = vld [vmem:[%s11075_s8 + $0xc] ss:$16 sps:$4 sm:$0xff]  }
0x176f   :  { %12257 = vst [vmem:[#allocation90_spill] sm:$0xff] %v10465_v14 }
0x1771   :  { %4533 = vmatpush1.bf16.msra.mxu0 %v10299_v63  ;;  %4574 = vmatpush1.bf16.msra.mxu1 %v10305_v21 }
0x1772   :  { %4610 = vmatprep.subr.bf16.mxu0 %v10459_v52  ;;  %4651 = vmatprep.subr.bf16.mxu1 %v10465_v14  ;;  %v10477_v52 = vld [vmem:[%s11075_s8 + $0x8] ss:$16 sps:$4 sm:$0xff]   ;;  %v10483_v14 = vld [vmem:[%s11075_s8 + $0x24] ss:$16 sps:$4 sm:$0xff]  }
0x1773   :  { %12259 = vst [vmem:[#allocation92_spill] sm:$0xff] %v10477_v52  ;;  %12260 = vst [vmem:[#allocation93_spill] sm:$0xff] %v10483_v14 }
0x1774   :  { %4535 = vmatmul.mubr.bf16.vlgmr.msra.gmra.mrb[112].mxu0 %v4501_v4  ;;  %4576 = vmatmul.mubr.bf16.vlgmr.msra.gmra.mrb[112].mxu1 %v4501_v4  ;;  %v10489_v4 = vld [vmem:[%s11075_s8 + $0x2c] ss:$16 sps:$4 sm:$0xff]  }
0x1775   :  { %4611 = vmatpush1.bf16.msra.mxu0 %v10471_v47  ;;  %4652 = vmatpush1.bf16.msra.mxu1 %v10477_v52  ;;  %12261 = vst [vmem:[#allocation94_spill] sm:$0xff] %v10489_v4  ;;  %v10495_v47 = vld [vmem:[%s11075_s8 + $0x20] ss:$16 sps:$4 sm:$0xff]   ;;  %v10501_v52 = vld [vmem:[%s11075_s8 + $0x28] ss:$16 sps:$4 sm:$0xff]  }
0x1776   :  { %4612 = vmatprep.subr.bf16.mxu0 %v10483_v14  ;;  %4653 = vmatprep.subr.bf16.mxu1 %v10489_v4  ;;  %12262 = vst [vmem:[#allocation95_spill] sm:$0xff] %v10495_v47  ;;  %12263 = vst [vmem:[#allocation96_spill] sm:$0xff] %v10501_v52  ;;  %v10507_v14 = vld [vmem:[%s11075_s8 + $0x44] ss:$16 sps:$4 sm:$0xff]   ;;  %v10513_v4 = vld [vmem:[%s11075_s8 + $0x4c] ss:$16 sps:$4 sm:$0xff]  }
0x1777   :  { %12264 = vst [vmem:[#allocation97_spill] sm:$0xff] %v10507_v14  ;;  %12265 = vst [vmem:[#allocation98_spill] sm:$0xff] %v10513_v4 }
0x1779   :  { %4613 = vmatpush1.bf16.msra.mxu0 %v10495_v47  ;;  %4654 = vmatpush1.bf16.msra.mxu1 %v10501_v52  ;;  %v10519_v47 = vld [vmem:[%s11075_s8 + $0x40] ss:$16 sps:$4 sm:$0xff]   ;;  %v10525_v52 = vld [vmem:[%s11075_s8 + $0x48] ss:$16 sps:$4 sm:$0xff]  }
0x177a   :  { %4614 = vmatprep.subr.bf16.mxu0 %v10507_v14  ;;  %4655 = vmatprep.subr.bf16.mxu1 %v10513_v4  ;;  %12266 = vst [vmem:[#allocation99_spill] sm:$0xff] %v10519_v47  ;;  %12267 = vst [vmem:[#allocation100_spill] sm:$0xff] %v10525_v52  ;;  %v10531_v14 = vld [vmem:[%s11075_s8 + $0x64] ss:$16 sps:$4 sm:$0xff]   ;;  %v10537_v4 = vld [vmem:[%s11075_s8 + $0x6c] ss:$16 sps:$4 sm:$0xff]  }
0x177b   :  { %12268 = vst [vmem:[#allocation101_spill] sm:$0xff] %v10531_v14  ;;  %12269 = vst [vmem:[#allocation102_spill] sm:$0xff] %v10537_v4 }
0x177d   :  { %4615 = vmatpush1.bf16.msra.mxu0 %v10519_v47  ;;  %4656 = vmatpush1.bf16.msra.mxu1 %v10525_v52  ;;  %v10543_v47 = vld [vmem:[%s11075_s8 + $0x60] ss:$16 sps:$4 sm:$0xff]   ;;  %v10549_v52 = vld [vmem:[%s11075_s8 + $0x68] ss:$16 sps:$4 sm:$0xff]  }
0x177e   :  { %4616 = vmatprep.subr.bf16.mxu0 %v10531_v14  ;;  %4657 = vmatprep.subr.bf16.mxu1 %v10537_v4  ;;  %12270 = vst [vmem:[#allocation103_spill] sm:$0xff] %v10543_v47  ;;  %12271 = vst [vmem:[#allocation14_spill] sm:$0xff] %v10549_v52  ;;  %v10555_v14 = vld [vmem:[%s11075_s8 + $0x84] ss:$16 sps:$4 sm:$0xff]   ;;  %v10561_v4 = vld [vmem:[%s11075_s8 + $0x8c] ss:$16 sps:$4 sm:$0xff]  }
0x177f   :  { %12272 = vst [vmem:[#allocation104_spill] sm:$0xff] %v10555_v14  ;;  %12273 = vst [vmem:[#allocation10_spill] sm:$0xff] %v10561_v4 }
0x1781   :  { %4617 = vmatpush1.bf16.msra.mxu0 %v10543_v47  ;;  %4658 = vmatpush1.bf16.msra.mxu1 %v10549_v52  ;;  %v10567_v47 = vld [vmem:[%s11075_s8 + $0x80] ss:$16 sps:$4 sm:$0xff]   ;;  %v10573_v52 = vld [vmem:[%s11075_s8 + $0x88] ss:$16 sps:$4 sm:$0xff]  }
0x1782   :  { %4618 = vmatprep.subr.bf16.mxu0 %v10555_v14  ;;  %4659 = vmatprep.subr.bf16.mxu1 %v10561_v4  ;;  %12274 = vst [vmem:[#allocation12_spill] sm:$0xff] %v10567_v47  ;;  %12275 = vst [vmem:[#allocation20_spill] sm:$0xff] %v10573_v52  ;;  %v10579_v14 = vld [vmem:[%s11075_s8 + $0xa4] ss:$16 sps:$4 sm:$0xff]   ;;  %v10585_v4 = vld [vmem:[%s11075_s8 + $0xac] ss:$16 sps:$4 sm:$0xff]  }
0x1783   :  { %12276 = vst [vmem:[#allocation9_spill] sm:$0xff] %v10579_v14  ;;  %12277 = vst [vmem:[#allocation21_spill] sm:$0xff] %v10585_v4 }
0x1785   :  { %4619 = vmatpush1.bf16.msra.mxu0 %v10567_v47  ;;  %4660 = vmatpush1.bf16.msra.mxu1 %v10573_v52  ;;  %v10591_v47 = vld [vmem:[%s11075_s8 + $0xa0] ss:$16 sps:$4 sm:$0xff]   ;;  %v10597_v52 = vld [vmem:[%s11075_s8 + $0xa8] ss:$16 sps:$4 sm:$0xff]  }
0x1786   :  { %4620 = vmatprep.subr.bf16.mxu0 %v10579_v14  ;;  %4661 = vmatprep.subr.bf16.mxu1 %v10585_v4  ;;  %12278 = vst [vmem:[#allocation22_spill] sm:$0xff] %v10591_v47  ;;  %12279 = vst [vmem:[#allocation23_spill] sm:$0xff] %v10597_v52  ;;  %v10603_v14 = vld [vmem:[%s11075_s8 + $0xc4] ss:$16 sps:$4 sm:$0xff]   ;;  %v10609_v4 = vld [vmem:[%s11075_s8 + $0xcc] ss:$16 sps:$4 sm:$0xff]  }
0x1787   :  { %12280 = vst [vmem:[#allocation24_spill] sm:$0xff] %v10603_v14  ;;  %12281 = vst [vmem:[#allocation25_spill] sm:$0xff] %v10609_v4 }
0x1789   :  { %4621 = vmatpush1.bf16.msra.mxu0 %v10591_v47  ;;  %4662 = vmatpush1.bf16.msra.mxu1 %v10597_v52  ;;  %v10615_v47 = vld [vmem:[%s11075_s8 + $0xc0] ss:$16 sps:$4 sm:$0xff]   ;;  %v10621_v52 = vld [vmem:[%s11075_s8 + $0xc8] ss:$16 sps:$4 sm:$0xff]  }
0x178a   :  { %4622 = vmatprep.subr.bf16.mxu0 %v10603_v14  ;;  %4663 = vmatprep.subr.bf16.mxu1 %v10609_v4  ;;  %12282 = vst [vmem:[#allocation26_spill] sm:$0xff] %v10615_v47  ;;  %12283 = vst [vmem:[#allocation27_spill] sm:$0xff] %v10621_v52  ;;  %v10627_v14 = vld [vmem:[%s11075_s8 + $0xe4] ss:$16 sps:$4 sm:$0xff]   ;;  %v10633_v4 = vld [vmem:[%s11075_s8 + $0xec] ss:$16 sps:$4 sm:$0xff]  }
0x178b   :  { %12284 = vst [vmem:[#allocation28_spill] sm:$0xff] %v10627_v14  ;;  %12285 = vst [vmem:[#allocation29_spill] sm:$0xff] %v10633_v4 }
0x178d   :  { %4623 = vmatpush1.bf16.msra.mxu0 %v10615_v47  ;;  %4664 = vmatpush1.bf16.msra.mxu1 %v10621_v52  ;;  %v10639_v47 = vld [vmem:[%s11075_s8 + $0xe0] ss:$16 sps:$4 sm:$0xff]   ;;  %v10645_v52 = vld [vmem:[%s11075_s8 + $0xe8] ss:$16 sps:$4 sm:$0xff]  }
0x178e   :  { %4624 = vmatprep.subr.bf16.mxu0 %v10627_v14  ;;  %4665 = vmatprep.subr.bf16.mxu1 %v10633_v4  ;;  %12286 = vst [vmem:[#allocation30_spill] sm:$0xff] %v10639_v47  ;;  %12287 = vst [vmem:[#allocation31_spill] sm:$0xff] %v10645_v52  ;;  %v10651_v14 = vld [vmem:[%s11075_s8 + $0x104] ss:$16 sps:$4 sm:$0xff]   ;;  %v10657_v4 = vld [vmem:[%s11075_s8 + $0x10c] ss:$16 sps:$4 sm:$0xff]  }
0x178f   :  { %12288 = vst [vmem:[#allocation32_spill] sm:$0xff] %v10651_v14  ;;  %12289 = vst [vmem:[#allocation33_spill] sm:$0xff] %v10657_v4 }
0x1791   :  { %4625 = vmatpush1.bf16.msra.mxu0 %v10639_v47  ;;  %4666 = vmatpush1.bf16.msra.mxu1 %v10645_v52  ;;  %v10663_v47 = vld [vmem:[%s11075_s8 + $0x100] ss:$16 sps:$4 sm:$0xff]   ;;  %v10669_v52 = vld [vmem:[%s11075_s8 + $0x108] ss:$16 sps:$4 sm:$0xff]  }
0x1792   :  { %4626 = vmatprep.subr.bf16.mxu0 %v10651_v14  ;;  %4667 = vmatprep.subr.bf16.mxu1 %v10657_v4  ;;  %12290 = vst [vmem:[#allocation34_spill] sm:$0xff] %v10663_v47  ;;  %12291 = vst [vmem:[#allocation35_spill] sm:$0xff] %v10669_v52  ;;  %v10675_v14 = vld [vmem:[%s11075_s8 + $0x124] ss:$16 sps:$4 sm:$0xff]   ;;  %v10681_v4 = vld [vmem:[%s11075_s8 + $0x12c] ss:$16 sps:$4 sm:$0xff]  }
0x1793   :  { %12292 = vst [vmem:[#allocation36_spill] sm:$0xff] %v10675_v14  ;;  %12293 = vst [vmem:[#allocation37_spill] sm:$0xff] %v10681_v4 }
0x1795   :  { %4627 = vmatpush1.bf16.msra.mxu0 %v10663_v47  ;;  %4668 = vmatpush1.bf16.msra.mxu1 %v10669_v52  ;;  %v10687_v47 = vld [vmem:[%s11075_s8 + $0x120] ss:$16 sps:$4 sm:$0xff]   ;;  %v10693_v52 = vld [vmem:[%s11075_s8 + $0x128] ss:$16 sps:$4 sm:$0xff]  }
0x1796   :  { %4628 = vmatprep.subr.bf16.mxu0 %v10675_v14  ;;  %4669 = vmatprep.subr.bf16.mxu1 %v10681_v4  ;;  %12294 = vst [vmem:[#allocation38_spill] sm:$0xff] %v10687_v47  ;;  %12295 = vst [vmem:[#allocation39_spill] sm:$0xff] %v10693_v52  ;;  %v10699_v14 = vld [vmem:[%s11075_s8 + $0x144] ss:$16 sps:$4 sm:$0xff]   ;;  %v10705_v4 = vld [vmem:[%s11075_s8 + $0x14c] ss:$16 sps:$4 sm:$0xff]  }
0x1797   :  { %12296 = vst [vmem:[#allocation40_spill] sm:$0xff] %v10699_v14  ;;  %12297 = vst [vmem:[#allocation41_spill] sm:$0xff] %v10705_v4 }
0x1799   :  { %4629 = vmatpush1.bf16.msra.mxu0 %v10687_v47  ;;  %4670 = vmatpush1.bf16.msra.mxu1 %v10693_v52  ;;  %v10711_v47 = vld [vmem:[%s11075_s8 + $0x140] ss:$16 sps:$4 sm:$0xff]   ;;  %v10717_v52 = vld [vmem:[%s11075_s8 + $0x148] ss:$16 sps:$4 sm:$0xff]  }
0x179a   :  { %4630 = vmatprep.subr.bf16.mxu0 %v10699_v14  ;;  %4671 = vmatprep.subr.bf16.mxu1 %v10705_v4  ;;  %12298 = vst [vmem:[#allocation16_spill] sm:$0xff] %v10711_v47  ;;  %12299 = vst [vmem:[#allocation13_spill] sm:$0xff] %v10717_v52  ;;  %v10723_v14 = vld [vmem:[%s11075_s8 + $0x164] ss:$16 sps:$4 sm:$0xff]   ;;  %v10729_v4 = vld [vmem:[%s11075_s8 + $0x16c] ss:$16 sps:$4 sm:$0xff]  }
0x179b   :  { %12300 = vst [vmem:[#allocation42_spill] sm:$0xff] %v10723_v14  ;;  %12301 = vst [vmem:[#allocation18_spill] sm:$0xff] %v10729_v4 }
0x179d   :  { %4631 = vmatpush1.bf16.msra.mxu0 %v10711_v47  ;;  %4672 = vmatpush1.bf16.msra.mxu1 %v10717_v52  ;;  %v10735_v47 = vld [vmem:[%s11075_s8 + $0x160] ss:$16 sps:$4 sm:$0xff]   ;;  %v10741_v52 = vld [vmem:[%s11075_s8 + $0x168] ss:$16 sps:$4 sm:$0xff]  }
0x179e   :  { %4632 = vmatprep.subr.bf16.mxu0 %v10723_v14  ;;  %4673 = vmatprep.subr.bf16.mxu1 %v10729_v4  ;;  %12302 = vst [vmem:[#allocation43_spill] sm:$0xff] %v10735_v47  ;;  %12303 = vst [vmem:[#allocation44_spill] sm:$0xff] %v10741_v52  ;;  %v10747_v14 = vld [vmem:[%s11075_s8 + $0x184] ss:$16 sps:$4 sm:$0xff]   ;;  %v10753_v4 = vld [vmem:[%s11075_s8 + $0x18c] ss:$16 sps:$4 sm:$0xff]  }
0x179f   :  { %12304 = vst [vmem:[#allocation45_spill] sm:$0xff] %v10747_v14  ;;  %12305 = vst [vmem:[#allocation46_spill] sm:$0xff] %v10753_v4 }
0x17a1   :  { %4633 = vmatpush1.bf16.msra.mxu0 %v10735_v47  ;;  %4674 = vmatpush1.bf16.msra.mxu1 %v10741_v52  ;;  %v10759_v47 = vld [vmem:[%s11075_s8 + $0x180] ss:$16 sps:$4 sm:$0xff]   ;;  %v10765_v52 = vld [vmem:[%s11075_s8 + $0x188] ss:$16 sps:$4 sm:$0xff]  }
0x17a2   :  { %4634 = vmatprep.subr.bf16.mxu0 %v10747_v14  ;;  %4675 = vmatprep.subr.bf16.mxu1 %v10753_v4  ;;  %12306 = vst [vmem:[#allocation47_spill] sm:$0xff] %v10759_v47  ;;  %12307 = vst [vmem:[#allocation48_spill] sm:$0xff] %v10765_v52  ;;  %v10771_v14 = vld [vmem:[%s11075_s8 + $0x1a4] ss:$16 sps:$4 sm:$0xff]   ;;  %v10777_v4 = vld [vmem:[%s11075_s8 + $0x1ac] ss:$16 sps:$4 sm:$0xff]  }
0x17a3   :  { %12308 = vst [vmem:[#allocation49_spill] sm:$0xff] %v10771_v14  ;;  %12309 = vst [vmem:[#allocation50_spill] sm:$0xff] %v10777_v4 }
0x17a5   :  { %4635 = vmatpush1.bf16.msra.mxu0 %v10759_v47  ;;  %4676 = vmatpush1.bf16.msra.mxu1 %v10765_v52  ;;  %v10783_v47 = vld [vmem:[%s11075_s8 + $0x1a0] ss:$16 sps:$4 sm:$0xff]   ;;  %v10789_v52 = vld [vmem:[%s11075_s8 + $0x1a8] ss:$16 sps:$4 sm:$0xff]  }
0x17a6   :  { %4636 = vmatprep.subr.bf16.mxu0 %v10771_v14  ;;  %4677 = vmatprep.subr.bf16.mxu1 %v10777_v4  ;;  %12310 = vst [vmem:[#allocation51_spill] sm:$0xff] %v10783_v47  ;;  %12311 = vst [vmem:[#allocation52_spill] sm:$0xff] %v10789_v52  ;;  %v10795_v14 = vld [vmem:[%s11075_s8 + $0x1c4] ss:$16 sps:$4 sm:$0xff]   ;;  %v10801_v4 = vld [vmem:[%s11075_s8 + $0x1cc] ss:$16 sps:$4 sm:$0xff]  }
0x17a7   :  { %12312 = vst [vmem:[#allocation53_spill] sm:$0xff] %v10795_v14  ;;  %12313 = vst [vmem:[#allocation54_spill] sm:$0xff] %v10801_v4 }
0x17a9   :  { %4637 = vmatpush1.bf16.msra.mxu0 %v10783_v47  ;;  %4678 = vmatpush1.bf16.msra.mxu1 %v10789_v52  ;;  %v10807_v47 = vld [vmem:[%s11075_s8 + $0x1c0] ss:$16 sps:$4 sm:$0xff]   ;;  %v10813_v52 = vld [vmem:[%s11075_s8 + $0x1c8] ss:$16 sps:$4 sm:$0xff]  }
0x17aa   :  { %4638 = vmatprep.subr.bf16.mxu0 %v10795_v14  ;;  %4679 = vmatprep.subr.bf16.mxu1 %v10801_v4  ;;  %12314 = vst [vmem:[#allocation55_spill] sm:$0xff] %v10807_v47  ;;  %12315 = vst [vmem:[#allocation56_spill] sm:$0xff] %v10813_v52  ;;  %v10819_v14 = vld [vmem:[%s11075_s8 + $0x1e4] ss:$16 sps:$4 sm:$0xff]   ;;  %v10825_v4 = vld [vmem:[%s11075_s8 + $0x1ec] ss:$16 sps:$4 sm:$0xff]  }
0x17ab   :  { %12316 = vst [vmem:[#allocation57_spill] sm:$0xff] %v10819_v14  ;;  %12317 = vst [vmem:[#allocation58_spill] sm:$0xff] %v10825_v4 }
0x17ad   :  { %4639 = vmatpush1.bf16.msra.mxu0 %v10807_v47  ;;  %4680 = vmatpush1.bf16.msra.mxu1 %v10813_v52  ;;  %v10831_v47 = vld [vmem:[%s11075_s8 + $0x1e0] ss:$16 sps:$4 sm:$0xff]   ;;  %v10837_v52 = vld [vmem:[%s11075_s8 + $0x1e8] ss:$16 sps:$4 sm:$0xff]  }
0x17ae   :  { %4640 = vmatprep.subr.bf16.mxu0 %v10819_v14  ;;  %4681 = vmatprep.subr.bf16.mxu1 %v10825_v4  ;;  %12318 = vst [vmem:[#allocation59_spill] sm:$0xff] %v10831_v47  ;;  %12319 = vst [vmem:[#allocation60_spill] sm:$0xff] %v10837_v52 }
0x17b1   :  { %4641 = vmatpush1.bf16.msra.mxu0 %v10831_v47  ;;  %4682 = vmatpush1.bf16.msra.mxu1 %v10837_v52 }
0x17b2   :  { %4724 = vmatprep.subr.bf16.mxu0 %v12206_v15  ;;  %4765 = vmatprep.subr.bf16.mxu1 %v12207_v5 }
0x1807   :  { %v4422_v14 = vpop.f32.mrb[108].mxu0  ;;  %v4463_v4 = vpop.f32.mrb[108].mxu1 }
0x1808   :  { %v4423_v21 = vadd.f32 %v4422_v14, %v12208_v2  ;;  %v4424_v63 = vpop.f32.mrb[109].mxu0  ;;  %v4465_v1 = vpop.f32.mrb[109].mxu1  ;;  %v4464_v5 = vadd.f32 %v4463_v4, %v8844_v23 }
0x1809   :  { %v4425_v20 = vadd.f32 %v4424_v63, %v8835_v29  ;;  %v4426_v47 = vpop.f32.mrb[110].mxu0  ;;  %v4467_v18 = vpop.f32.mrb[110].mxu1  ;;  %v4466_v15 = vadd.f32 %v4465_v1, %v8840_v57 }
0x180a   :  { %v5333_v55 = vmul.f32 -1.442695, %v4423_v21  ;;  %v4427_v53 = vpop.f32.mrb[111].mxu0  ;;  %v4468_v41 = vpop.f32.mrb[111].mxu1 }
0x180b   :  { %v5334_v40 = vmul.f32 -1.442695, %v4425_v20  ;;  %v5335_v52 = vmul.f32 -1.442695, %v4466_v15 }
0x180c   :  { %6074 = vpow2.f32 %v5333_v55 }
0x180d   :  { %6076 = vpow2.f32 %v5334_v40 }
0x180e   :  { %6078 = vpow2.f32 %v5335_v52 }
0x180f   :  { %6080 = vtanh.f32 %v4464_v5 }
0x1816   :  { %v6075_v11 = vpop.eup %6074 }
0x1817   :  { %v6077_v42 = vpop.eup %6076  ;;  %v4473_v14 = vadd.f32 1.0, %v6075_v11 }
0x1818   :  { %v4479_v2 = vadd.f32 1.0, %v6077_v42  ;;  %v6079_v63 = vpop.eup %6078 }
0x1819   :  { %6082 = vrcp.f32 %v4473_v14  ;;  %v6081_v21 = vpop.eup %6080  ;;  %v4486_v55 = vadd.f32 1.0, %v6079_v63 }
0x181a   :  { %6084 = vrcp.f32 %v4479_v2 }
0x181b   :  { %6086 = vrcp.f32 %v4486_v55 }
0x1823   :  { %v6083_v53 = vpop.eup %6082 }
0x1824   :  { %v6085_v41 = vpop.eup %6084  ;;  %v4490_v18 = vmul.f32 %v6083_v53, %v6081_v21 }
0x1825   :  { %v4489_v40 = vmul.f32 %v6085_v41, %v10381_v61  ;;  %v6087_v20 = vpop.eup %6086 }
0x1827   :  { %v10847_v1 = vadd.f32 %v4490_v18, %v4489_v40 }
0x1829   :  { %6088 = vtanh.f32 %v10847_v1 }
0x1833   :  { %v6089_v11 = vpop.eup %6088 }
0x1834   :  { %v4493_v52 = vmul.f32 %v6089_v11, %v6087_v20 }
0x1836   :  { %v4609_v47 = vpack.c.bf16 %v4493_v52, %v4493_v52 }
0x1838   :  { %4642 = vmatprep.mubr.bf16.mxu0 %v4609_v47  ;;  %4683 = vmatprep.mubr.bf16.mxu1 %v4609_v47 }
0x1847   :  { %v4536_v2 = vpop.f32.mrb[112].mxu0  ;;  %v4577_v42 = vpop.f32.mrb[112].mxu1 }
0x1848   :  { %v4537_v4 = vadd.f32 %v4536_v2, %v11924_v24  ;;  %v4538_v15 = vpop.f32.mrb[113].mxu0  ;;  %v4579_v5 = vpop.f32.mrb[113].mxu1  ;;  %v4578_v20 = vadd.f32 %v4577_v42, %v8682_v39 }
0x1849   :  { %v4539_v14 = vadd.f32 %v4538_v15, %v8673_v38  ;;  %v4540_v61 = vpop.f32.mrb[114].mxu0  ;;  %v4581_v63 = vpop.f32.mrb[114].mxu1  ;;  %v4580_v55 = vadd.f32 %v4579_v5, %v8678_v26 }
0x184a   :  { %v5336_v21 = vmul.f32 -1.442695, %v4537_v4  ;;  %v4541_v53 = vpop.f32.mrb[115].mxu0  ;;  %v4582_v41 = vpop.f32.mrb[115].mxu1 }
0x184b   :  { %v5337_v18 = vmul.f32 -1.442695, %v4539_v14  ;;  %v5338_v40 = vmul.f32 -1.442695, %v4580_v55 }
0x184c   :  { %6090 = vpow2.f32 %v5336_v21 }
0x184d   :  { %6092 = vpow2.f32 %v5337_v18 }
0x184e   :  { %6094 = vpow2.f32 %v5338_v40  ;;  %v12357_v40 = vld [vmem:[#allocation100_spill] sm:$0xff] }
0x184f   :  { %6096 = vtanh.f32 %v4578_v20  ;;  %v12358_v20 = vld [vmem:[#allocation101_spill] sm:$0xff] }
0x1856   :  { %v6091_v11 = vpop.eup %6090 }
0x1857   :  { %v6093_v52 = vpop.eup %6092  ;;  %v4587_v47 = vadd.f32 1.0, %v6091_v11  ;;  %v12359_v11 = vld [vmem:[#allocation102_spill] sm:$0xff] }
0x1858   :  { %v4593_v2 = vadd.f32 1.0, %v6093_v52  ;;  %v6095_v15 = vpop.eup %6094  ;;  %v12360_v52 = vld [vmem:[#allocation103_spill] sm:$0xff] }
0x1859   :  { %6098 = vrcp.f32 %v4587_v47  ;;  %v6097_v4 = vpop.eup %6096  ;;  %v4600_v21 = vadd.f32 1.0, %v6095_v15  ;;  %v12361_v47 = vld [vmem:[#allocation14_spill] sm:$0xff] }
0x185a   :  { %6100 = vrcp.f32 %v4593_v2  ;;  %v12362_v2 = vld [vmem:[#allocation104_spill] sm:$0xff]  ;;  %v12363_v15 = vld [vmem:[#allocation10_spill] sm:$0xff] }
0x185b   :  { %6102 = vrcp.f32 %v4600_v21  ;;  %v12368_v21 = vld [vmem:[#allocation22_spill] sm:$0xff] }
0x1863   :  { %v6099_v61 = vpop.eup %6098 }
0x1864   :  { %v6101_v63 = vpop.eup %6100  ;;  %v4604_v14 = vmul.f32 %v6099_v61, %v6097_v4  ;;  %v12364_v4 = vld [vmem:[#allocation12_spill] sm:$0xff] }
0x1865   :  { %v4603_v53 = vmul.f32 %v6101_v63, %v10389_v9  ;;  %v6103_v42 = vpop.eup %6102  ;;  %v12333_v9 = vld [vmem:[#allocation78_spill] sm:$0xff]  ;;  %v12365_v61 = vld [vmem:[#allocation20_spill] sm:$0xff]  ;;  %v12366_v63 = vld [vmem:[#allocation9_spill] sm:$0xff] }
0x1867   :  { %v10855_v5 = vadd.f32 %v4604_v14, %v4603_v53  ;;  %v12367_v14 = vld [vmem:[#allocation21_spill] sm:$0xff]  ;;  %v12369_v53 = vld [vmem:[#allocation23_spill] sm:$0xff] }
0x1869   :  { %6104 = vtanh.f32 %v10855_v5 }
0x1873   :  { %v6105_v41 = vpop.eup %6104 }
0x1874   :  { %v4607_v18 = vmul.f32 %v6105_v41, %v6103_v42  ;;  %v12370_v42 = vld [vmem:[#allocation24_spill] sm:$0xff]  ;;  %v12371_v41 = vld [vmem:[#allocation25_spill] sm:$0xff] }
0x1876   :  { %v4608_v55 = vpack.c.bf16 %v4607_v18, %v4607_v18  ;;  %v12372_v18 = vld [vmem:[#allocation26_spill] sm:$0xff] }
0x1878   :  { %4643 = vmatmul.mubr.bf16.vlgmr.msra.gmra.mrb[116].mxu0 %v4608_v55  ;;  %4684 = vmatmul.mubr.bf16.vlgmr.msra.gmra.mrb[116].mxu1 %v4608_v55 }
0x1879   :  { %4725 = vmatpush1.bf16.msra.mxu0 %v9939_v16  ;;  %4766 = vmatpush1.bf16.msra.mxu1 %v9945_v60  ;;  %v12320_v16 = vld [vmem:[#allocation66_spill] sm:$0xff]  ;;  %v12321_v60 = vld [vmem:[#allocation67_spill] sm:$0xff] }
0x187a   :  { %4756 = vmatprep.mubr.bf16.mxu0 %v4608_v55  ;;  %4797 = vmatprep.mubr.bf16.mxu1 %v4608_v55  ;;  %v12373_v55 = vld [vmem:[#allocation27_spill] sm:$0xff] }
0x187b   :  { %4726 = vmatprep.subr.bf16.mxu0 %v9951_v32  ;;  %4767 = vmatprep.subr.bf16.mxu1 %v9957_v44  ;;  %v12322_v32 = vld [vmem:[#allocation19_spill] sm:$0xff]  ;;  %v12323_v44 = vld [vmem:[#allocation68_spill] sm:$0xff] }
0x187d   :  { %4727 = vmatpush1.bf16.msra.mxu0 %v9963_v37  ;;  %4768 = vmatpush1.bf16.msra.mxu1 %v9969_v30  ;;  %v12324_v37 = vld [vmem:[#allocation69_spill] sm:$0xff]  ;;  %v12325_v30 = vld [vmem:[#allocation70_spill] sm:$0xff] }
0x187e   :  { %4728 = vmatprep.subr.bf16.mxu0 %v9975_v0  ;;  %4769 = vmatprep.subr.bf16.mxu1 %v9981_v25  ;;  %v12326_v0 = vld [vmem:[#allocation71_spill] sm:$0xff]  ;;  %v12327_v25 = vld [vmem:[#allocation72_spill] sm:$0xff] }
0x1881   :  { %4729 = vmatpush1.bf16.msra.mxu0 %v9987_v22  ;;  %4770 = vmatpush1.bf16.msra.mxu1 %v9993_v46  ;;  %v12328_v22 = vld [vmem:[#allocation73_spill] sm:$0xff]  ;;  %v12329_v46 = vld [vmem:[#allocation74_spill] sm:$0xff] }
0x1882   :  { %4730 = vmatprep.subr.bf16.mxu0 %v9999_v6  ;;  %4771 = vmatprep.subr.bf16.mxu1 %v10005_v59  ;;  %v12330_v6 = vld [vmem:[#allocation75_spill] sm:$0xff]  ;;  %v12331_v59 = vld [vmem:[#allocation76_spill] sm:$0xff] }
0x1885   :  { %4731 = vmatpush1.bf16.msra.mxu0 %v10011_v31  ;;  %4772 = vmatpush1.bf16.msra.mxu1 %v12209_v35  ;;  %v12332_v31 = vld [vmem:[#allocation77_spill] sm:$0xff]  ;;  %v12334_v35 = vld [vmem:[#allocation79_spill] sm:$0xff] }
0x1886   :  { %4732 = vmatprep.subr.bf16.mxu0 %v12210_v58  ;;  %4773 = vmatprep.subr.bf16.mxu1 %v12211_v12  ;;  %v12335_v58 = vld [vmem:[#allocation17_spill] sm:$0xff]  ;;  %v12336_v12 = vld [vmem:[#allocation80_spill] sm:$0xff] }
0x1889   :  { %4733 = vmatpush1.bf16.msra.mxu0 %v12212_v36  ;;  %4774 = vmatpush1.bf16.msra.mxu1 %v12213_v50  ;;  %v12337_v36 = vld [vmem:[#allocation81_spill] sm:$0xff]  ;;  %v12338_v50 = vld [vmem:[#allocation82_spill] sm:$0xff] }
0x188a   :  { %4734 = vmatprep.subr.bf16.mxu0 %v12214_v19  ;;  %4775 = vmatprep.subr.bf16.mxu1 %v12215_v27  ;;  %v12339_v19 = vld [vmem:[#allocation83_spill] sm:$0xff]  ;;  %v12340_v27 = vld [vmem:[#allocation84_spill] sm:$0xff] }
0x188d   :  { %4735 = vmatpush1.bf16.msra.mxu0 %v12216_v13  ;;  %4776 = vmatpush1.bf16.msra.mxu1 %v12217_v8  ;;  %v12341_v13 = vld [vmem:[#allocation85_spill] sm:$0xff]  ;;  %v12342_v8 = vld [vmem:[#allocation86_spill] sm:$0xff] }
0x188e   :  { %4736 = vmatprep.subr.bf16.mxu0 %v12218_v10  ;;  %4777 = vmatprep.subr.bf16.mxu1 %v12219_v17  ;;  %v12343_v10 = vld [vmem:[#allocation87_spill] sm:$0xff]  ;;  %v12344_v17 = vld [vmem:[#allocation88_spill] sm:$0xff] }
0x1891   :  { %4737 = vmatpush1.bf16.msra.mxu0 %v12220_v34  ;;  %4778 = vmatpush1.bf16.msra.mxu1 %v12221_v62  ;;  %v12345_v34 = vld [vmem:[#allocation105_spill] sm:$0xff] }
0x1892   :  { %4738 = vmatprep.subr.bf16.mxu0 %v12222_v7  ;;  %4779 = vmatprep.subr.bf16.mxu1 %v12223_v3  ;;  %v4723_v62 = vpack.c.bf16 %v12345_v34, %v12345_v34  ;;  %v12346_v7 = vld [vmem:[#allocation89_spill] sm:$0xff]  ;;  %v12347_v3 = vld [vmem:[#allocation90_spill] sm:$0xff] }
0x1893   :  { %v12399_v34 = vld [vmem:[#allocation50_spill] sm:$0xff] }
0x1895   :  { %4739 = vmatpush1.bf16.msra.mxu0 %v12224_v49  ;;  %4780 = vmatpush1.bf16.msra.mxu1 %v12225_v45  ;;  %v12348_v49 = vld [vmem:[#allocation91_spill] sm:$0xff]  ;;  %v12349_v45 = vld [vmem:[#allocation92_spill] sm:$0xff] }
0x1896   :  { %4740 = vmatprep.subr.bf16.mxu0 %v12226_v51  ;;  %4781 = vmatprep.subr.bf16.mxu1 %v12227_v48  ;;  %v12350_v51 = vld [vmem:[#allocation93_spill] sm:$0xff]  ;;  %v12351_v48 = vld [vmem:[#allocation94_spill] sm:$0xff] }
0x1899   :  { %4741 = vmatpush1.bf16.msra.mxu0 %v12228_v56  ;;  %4782 = vmatpush1.bf16.msra.mxu1 %v12229_v54  ;;  %v12352_v56 = vld [vmem:[#allocation95_spill] sm:$0xff]  ;;  %v12353_v54 = vld [vmem:[#allocation96_spill] sm:$0xff] }
0x189a   :  { %4742 = vmatprep.subr.bf16.mxu0 %v12230_v33  ;;  %4783 = vmatprep.subr.bf16.mxu1 %v12231_v28  ;;  %v12354_v33 = vld [vmem:[#allocation97_spill] sm:$0xff]  ;;  %v12355_v28 = vld [vmem:[#allocation98_spill] sm:$0xff] }
0x189d   :  { %4743 = vmatpush1.bf16.msra.mxu0 %v12232_v43  ;;  %4784 = vmatpush1.bf16.msra.mxu1 %v12320_v16  ;;  %v12356_v43 = vld [vmem:[#allocation99_spill] sm:$0xff]  ;;  %v12374_v16 = vld [vmem:[#allocation28_spill] sm:$0xff] }
0x189e   :  { %4744 = vmatprep.subr.bf16.mxu0 %v12321_v60  ;;  %4785 = vmatprep.subr.bf16.mxu1 %v12322_v32  ;;  %v12375_v60 = vld [vmem:[#allocation29_spill] sm:$0xff]  ;;  %v12376_v32 = vld [vmem:[#allocation30_spill] sm:$0xff] }
0x18a1   :  { %4745 = vmatpush1.bf16.msra.mxu0 %v12323_v44  ;;  %4786 = vmatpush1.bf16.msra.mxu1 %v12324_v37  ;;  %v12377_v44 = vld [vmem:[#allocation31_spill] sm:$0xff]  ;;  %v12378_v37 = vld [vmem:[#allocation32_spill] sm:$0xff] }
0x18a2   :  { %4746 = vmatprep.subr.bf16.mxu0 %v12325_v30  ;;  %4787 = vmatprep.subr.bf16.mxu1 %v12326_v0  ;;  %v12379_v30 = vld [vmem:[#allocation33_spill] sm:$0xff]  ;;  %v12380_v0 = vld [vmem:[#allocation34_spill] sm:$0xff] }
0x18a5   :  { %4747 = vmatpush1.bf16.msra.mxu0 %v12327_v25  ;;  %4788 = vmatpush1.bf16.msra.mxu1 %v12328_v22  ;;  %v12381_v25 = vld [vmem:[#allocation35_spill] sm:$0xff]  ;;  %v12382_v22 = vld [vmem:[#allocation36_spill] sm:$0xff] }
0x18a6   :  { %4748 = vmatprep.subr.bf16.mxu0 %v12329_v46  ;;  %4789 = vmatprep.subr.bf16.mxu1 %v12330_v6  ;;  %v12383_v46 = vld [vmem:[#allocation37_spill] sm:$0xff]  ;;  %v12384_v6 = vld [vmem:[#allocation38_spill] sm:$0xff] }
0x18a9   :  { %4749 = vmatpush1.bf16.msra.mxu0 %v12331_v59  ;;  %4790 = vmatpush1.bf16.msra.mxu1 %v12332_v31  ;;  %v12385_v59 = vld [vmem:[#allocation39_spill] sm:$0xff]  ;;  %v12386_v31 = vld [vmem:[#allocation40_spill] sm:$0xff] }
0x18aa   :  { %4750 = vmatprep.subr.bf16.mxu0 %v12333_v9  ;;  %4791 = vmatprep.subr.bf16.mxu1 %v12334_v35  ;;  %v12387_v9 = vld [vmem:[#allocation41_spill] sm:$0xff]  ;;  %v12388_v35 = vld [vmem:[#allocation16_spill] sm:$0xff] }
0x18ad   :  { %4751 = vmatpush1.bf16.msra.mxu0 %v12335_v58  ;;  %4792 = vmatpush1.bf16.msra.mxu1 %v12336_v12  ;;  %v12389_v58 = vld [vmem:[#allocation13_spill] sm:$0xff]  ;;  %v12390_v12 = vld [vmem:[#allocation42_spill] sm:$0xff] }
0x18ae   :  { %4752 = vmatprep.subr.bf16.mxu0 %v12337_v36  ;;  %4793 = vmatprep.subr.bf16.mxu1 %v12338_v50  ;;  %v12391_v36 = vld [vmem:[#allocation18_spill] sm:$0xff]  ;;  %v12392_v50 = vld [vmem:[#allocation43_spill] sm:$0xff] }
0x18b1   :  { %4753 = vmatpush1.bf16.msra.mxu0 %v12339_v19  ;;  %4794 = vmatpush1.bf16.msra.mxu1 %v12340_v27  ;;  %v12393_v19 = vld [vmem:[#allocation44_spill] sm:$0xff]  ;;  %v12394_v27 = vld [vmem:[#allocation45_spill] sm:$0xff] }
0x18b2   :  { %4754 = vmatprep.subr.bf16.mxu0 %v12341_v13  ;;  %4795 = vmatprep.subr.bf16.mxu1 %v12342_v8  ;;  %v12395_v13 = vld [vmem:[#allocation46_spill] sm:$0xff]  ;;  %v12396_v8 = vld [vmem:[#allocation47_spill] sm:$0xff] }
0x18b5   :  { %4755 = vmatpush1.bf16.msra.mxu0 %v12343_v10  ;;  %4796 = vmatpush1.bf16.msra.mxu1 %v12344_v17  ;;  %v12397_v10 = vld [vmem:[#allocation48_spill] sm:$0xff]  ;;  %v12398_v17 = vld [vmem:[#allocation49_spill] sm:$0xff] }
0x18b6   :  { %4832 = vmatprep.subr.bf16.mxu0 %v12346_v7  ;;  %4873 = vmatprep.subr.bf16.mxu1 %v12347_v3  ;;  %v12401_v7 = vld [vmem:[#allocation52_spill] sm:$0xff]  ;;  %v12402_v3 = vld [vmem:[#allocation53_spill] sm:$0xff] }
0x18b8   :  { %4757 = vmatmul.mubr.bf16.vlgmr.msra.gmra.mrb[120].mxu0 %v4723_v62  ;;  %4798 = vmatmul.mubr.bf16.vlgmr.msra.gmra.mrb[120].mxu1 %v4723_v62  ;;  %v12400_v62 = vld [vmem:[#allocation51_spill] sm:$0xff] }
0x18b9   :  { %4833 = vmatpush1.bf16.msra.mxu0 %v12348_v49  ;;  %4874 = vmatpush1.bf16.msra.mxu1 %v12349_v45  ;;  %v12403_v49 = vld [vmem:[#allocation54_spill] sm:$0xff]  ;;  %v12404_v45 = vld [vmem:[#allocation55_spill] sm:$0xff] }
0x18ba   :  { %4834 = vmatprep.subr.bf16.mxu0 %v12350_v51  ;;  %4875 = vmatprep.subr.bf16.mxu1 %v12351_v48  ;;  %v12405_v51 = vld [vmem:[#allocation56_spill] sm:$0xff]  ;;  %v12406_v48 = vld [vmem:[#allocation57_spill] sm:$0xff] }
0x18bd   :  { %4835 = vmatpush1.bf16.msra.mxu0 %v12352_v56  ;;  %4876 = vmatpush1.bf16.msra.mxu1 %v12353_v54  ;;  %v12407_v56 = vld [vmem:[#allocation58_spill] sm:$0xff]  ;;  %v12408_v54 = vld [vmem:[#allocation59_spill] sm:$0xff] }
0x18be   :  { %4836 = vmatprep.subr.bf16.mxu0 %v12354_v33  ;;  %4877 = vmatprep.subr.bf16.mxu1 %v12355_v28  ;;  %v12409_v33 = vld [vmem:[#allocation60_spill] sm:$0xff] }
0x18c1   :  { %4837 = vmatpush1.bf16.msra.mxu0 %v12356_v43  ;;  %4878 = vmatpush1.bf16.msra.mxu1 %v12357_v40  ;;  %v12410_v40 = vld [vmem:[#allocation11_spill] sm:$0xff] }
0x18c2   :  { %4838 = vmatprep.subr.bf16.mxu0 %v12358_v20  ;;  %4879 = vmatprep.subr.bf16.mxu1 %v12359_v11 }
0x18c5   :  { %4839 = vmatpush1.bf16.msra.mxu0 %v12360_v52  ;;  %4880 = vmatpush1.bf16.msra.mxu1 %v12361_v47 }
0x18c6   :  { %4840 = vmatprep.subr.bf16.mxu0 %v12362_v2  ;;  %4881 = vmatprep.subr.bf16.mxu1 %v12363_v15 }
0x18c9   :  { %4841 = vmatpush1.bf16.msra.mxu0 %v12364_v4  ;;  %4882 = vmatpush1.bf16.msra.mxu1 %v12365_v61 }
0x18ca   :  { %4842 = vmatprep.subr.bf16.mxu0 %v12366_v63  ;;  %4883 = vmatprep.subr.bf16.mxu1 %v12367_v14 }
0x18cd   :  { %4843 = vmatpush1.bf16.msra.mxu0 %v12368_v21  ;;  %4884 = vmatpush1.bf16.msra.mxu1 %v12369_v53 }
0x18ce   :  { %4844 = vmatprep.subr.bf16.mxu0 %v12370_v42  ;;  %4885 = vmatprep.subr.bf16.mxu1 %v12371_v41 }
0x18d1   :  { %4845 = vmatpush1.bf16.msra.mxu0 %v12372_v18  ;;  %4886 = vmatpush1.bf16.msra.mxu1 %v12373_v55 }
0x18d2   :  { %4846 = vmatprep.subr.bf16.mxu0 %v12374_v16  ;;  %4887 = vmatprep.subr.bf16.mxu1 %v12375_v60 }
0x18d5   :  { %4847 = vmatpush1.bf16.msra.mxu0 %v12376_v32  ;;  %4888 = vmatpush1.bf16.msra.mxu1 %v12377_v44 }
0x18d6   :  { %4848 = vmatprep.subr.bf16.mxu0 %v12378_v37  ;;  %4889 = vmatprep.subr.bf16.mxu1 %v12379_v30 }
0x18d9   :  { %4849 = vmatpush1.bf16.msra.mxu0 %v12380_v0  ;;  %4890 = vmatpush1.bf16.msra.mxu1 %v12381_v25 }
0x18da   :  { %4850 = vmatprep.subr.bf16.mxu0 %v12382_v22  ;;  %4891 = vmatprep.subr.bf16.mxu1 %v12383_v46 }
0x18dd   :  { %4851 = vmatpush1.bf16.msra.mxu0 %v12384_v6  ;;  %4892 = vmatpush1.bf16.msra.mxu1 %v12385_v59 }
0x18de   :  { %4852 = vmatprep.subr.bf16.mxu0 %v12386_v31  ;;  %4893 = vmatprep.subr.bf16.mxu1 %v12387_v9 }
0x18e1   :  { %4853 = vmatpush1.bf16.msra.mxu0 %v12388_v35  ;;  %4894 = vmatpush1.bf16.msra.mxu1 %v12389_v58 }
0x18e2   :  { %4854 = vmatprep.subr.bf16.mxu0 %v12390_v12  ;;  %4895 = vmatprep.subr.bf16.mxu1 %v12391_v36 }
0x18e5   :  { %4855 = vmatpush1.bf16.msra.mxu0 %v12392_v50  ;;  %4896 = vmatpush1.bf16.msra.mxu1 %v12393_v19 }
0x18e6   :  { %4856 = vmatprep.subr.bf16.mxu0 %v12394_v27  ;;  %4897 = vmatprep.subr.bf16.mxu1 %v12395_v13 }
0x18e9   :  { %4857 = vmatpush1.bf16.msra.mxu0 %v12396_v8  ;;  %4898 = vmatpush1.bf16.msra.mxu1 %v12397_v10 }
0x18ea   :  { %4858 = vmatprep.subr.bf16.mxu0 %v12398_v17  ;;  %4899 = vmatprep.subr.bf16.mxu1 %v12399_v34 }
0x18ed   :  { %4859 = vmatpush1.bf16.msra.mxu0 %v12400_v62  ;;  %4900 = vmatpush1.bf16.msra.mxu1 %v12401_v7 }
0x18ee   :  { %4860 = vmatprep.subr.bf16.mxu0 %v12402_v3  ;;  %4901 = vmatprep.subr.bf16.mxu1 %v12403_v49 }
0x18f1   :  { %4861 = vmatpush1.bf16.msra.mxu0 %v12404_v45  ;;  %4902 = vmatpush1.bf16.msra.mxu1 %v12405_v51 }
0x18f2   :  { %4862 = vmatprep.subr.bf16.mxu0 %v12406_v48  ;;  %4903 = vmatprep.subr.bf16.mxu1 %v12407_v56 }
0x18f5   :  { %4863 = vmatpush1.bf16.msra.mxu0 %v12408_v54  ;;  %4904 = vmatpush1.bf16.msra.mxu1 %v12409_v33 }
0x194b   :  { %v4644_v28 = vpop.f32.mrb[116].mxu0  ;;  %v4685_v43 = vpop.f32.mrb[116].mxu1 }
0x194c   :  { %v4645_v20 = vadd.f32 %v4644_v28, %v12410_v40  ;;  %v4646_v11 = vpop.f32.mrb[117].mxu0  ;;  %v4687_v52 = vpop.f32.mrb[117].mxu1  ;;  %v4686_v42 = vadd.f32 %v4685_v43, %v8844_v23 }
0x194d   :  { %v4647_v47 = vadd.f32 %v4646_v11, %v8835_v29  ;;  %v4648_v2 = vpop.f32.mrb[118].mxu0  ;;  %v4689_v15 = vpop.f32.mrb[118].mxu1  ;;  %v4688_v21 = vadd.f32 %v4687_v52, %v8840_v57  ;;  %v5634_v11 = vld [vmem:[%s11077_s10] sm:$0xff]   ;;  %v6546_v52 = vmov 0.0  }
0x194e   :  { %v5339_v4 = vmul.f32 -1.442695, %v4645_v20  ;;  %v4649_v61 = vpop.f32.mrb[119].mxu0  ;;  %v4690_v63 = vpop.f32.mrb[119].mxu1  ;;  %5366 = vmatprep.subr.bf16.mxu0 %v6546_v52  ;;  %v5637_v2 = vld [vmem:[%s11077_s10 + $0x18] sm:$0xff]   ;;  %v5638_v15 = vld [vmem:[%s11077_s10 + $0x20] sm:$0xff]  }
0x194f   :  { %v5340_v14 = vmul.f32 -1.442695, %v4647_v47  ;;  %v5341_v53 = vmul.f32 -1.442695, %v4688_v21  ;;  %v5636_v47 = vld [vmem:[%s11077_s10 + $0x10] sm:$0xff]   ;;  %v5641_v63 = vld [vmem:[%s11077_s10 + $0x38] sm:$0xff]  }
0x1950   :  { %6106 = vpow2.f32 %v5339_v4  ;;  %v5639_v4 = vld [vmem:[%s11077_s10 + $0x28] sm:$0xff]   ;;  %v5640_v61 = vld [vmem:[%s11077_s10 + $0x30] sm:$0xff]  }
0x1951   :  { %6108 = vpow2.f32 %v5340_v14 }
0x1952   :  { %6110 = vpow2.f32 %v5341_v53 }
0x1953   :  { %6112 = vtanh.f32 %v4686_v42 }
0x195a   :  { %v6107_v41 = vpop.eup %6106 }
0x195b   :  { %v6109_v18 = vpop.eup %6108  ;;  %v4695_v55 = vadd.f32 1.0, %v6107_v41 }
0x195c   :  { %v4701_v16 = vadd.f32 1.0, %v6109_v18  ;;  %v6111_v60 = vpop.eup %6110 }
0x195d   :  { %6114 = vrcp.f32 %v4695_v55  ;;  %v6113_v32 = vpop.eup %6112  ;;  %v4708_v0 = vadd.f32 1.0, %v6111_v60 }
0x195e   :  { %6116 = vrcp.f32 %v4701_v16 }
0x195f   :  { %6118 = vrcp.f32 %v4708_v0 }
0x1967   :  { %v6115_v44 = vpop.eup %6114 }
0x1968   :  { %v6117_v37 = vpop.eup %6116  ;;  %v4712_v30 = vmul.f32 %v6115_v44, %v6113_v32 }
0x1969   :  { %v4711_v25 = vmul.f32 %v6117_v37, %v10847_v1  ;;  %v6119_v46 = vpop.eup %6118 }
0x196b   :  { %v10991_v22 = vadd.f32 %v4712_v30, %v4711_v25 }
0x196d   :  { %6120 = vtanh.f32 %v10991_v22 }
0x1977   :  { %v6121_v6 = vpop.eup %6120 }
0x1978   :  { %v4715_v59 = vmul.f32 %v6121_v6, %v6119_v46 }
0x197a   :  { %v4831_v31 = vpack.c.bf16 %v4715_v59, %v4715_v59 }
0x197c   :  { %4864 = vmatprep.mubr.bf16.mxu0 %v4831_v31  ;;  %4905 = vmatprep.mubr.bf16.mxu1 %v4831_v31 }
0x198b   :  { %v4758_v9 = vpop.f32.mrb[120].mxu0  ;;  %v4799_v35 = vpop.f32.mrb[120].mxu1 }
0x198c   :  { %v4759_v58 = vadd.f32 %v4758_v9, %v11924_v24  ;;  %v4760_v12 = vpop.f32.mrb[121].mxu0  ;;  %v4801_v36 = vpop.f32.mrb[121].mxu1  ;;  %v4800_v62 = vadd.f32 %v4799_v35, %v8682_v39 }
0x198d   :  { %v4761_v50 = vadd.f32 %v4760_v12, %v8673_v38  ;;  %v4762_v1 = vpop.f32.mrb[122].mxu0  ;;  %v4803_v19 = vpop.f32.mrb[122].mxu1  ;;  %v4802_v17 = vadd.f32 %v4801_v36, %v8678_v26 }
0x198e   :  { %v5342_v27 = vmul.f32 -1.442695, %v4759_v58  ;;  %v4763_v13 = vpop.f32.mrb[123].mxu0  ;;  %v4804_v8 = vpop.f32.mrb[123].mxu1 }
0x198f   :  { %v5343_v10 = vmul.f32 -1.442695, %v4761_v50  ;;  %v5344_v34 = vmul.f32 -1.442695, %v4802_v17 }
0x1990   :  { %6122 = vpow2.f32 %v5342_v27 }
0x1991   :  { %6124 = vpow2.f32 %v5343_v10 }
0x1992   :  { %6126 = vpow2.f32 %v5344_v34 }
0x1993   :  { %6128 = vtanh.f32 %v4800_v62 }
0x199a   :  { %v6123_v7 = vpop.eup %6122 }
0x199b   :  { %v6125_v3 = vpop.eup %6124  ;;  %v4809_v24 = vadd.f32 1.0, %v6123_v7 }
0x199c   :  { %v4815_v49 = vadd.f32 1.0, %v6125_v3  ;;  %v6127_v38 = vpop.eup %6126 }
0x199d   :  { %6130 = vrcp.f32 %v4809_v24  ;;  %v6129_v45 = vpop.eup %6128  ;;  %v4822_v54 = vadd.f32 1.0, %v6127_v38 }
0x199e   :  { %6132 = vrcp.f32 %v4815_v49 }
0x199f   :  { %6134 = vrcp.f32 %v4822_v54 }
0x19a7   :  { %v6131_v51 = vpop.eup %6130 }
0x19a8   :  { %v6133_v48 = vpop.eup %6132  ;;  %v4826_v56 = vmul.f32 %v6131_v51, %v6129_v45 }
0x19a9   :  { %v4825_v33 = vmul.f32 %v6133_v48, %v10855_v5  ;;  %v6135_v39 = vpop.eup %6134  ;;  %v5635_v5 = vld [vmem:[%s11077_s10 + $0x8] sm:$0xff]   ;;  %s6548_s10 = smov [#allocation4]  }
0x19aa   :  { %s5067_s15 = sshll.u32 %s6548_s10, 4  ;;  %s5068_s15 = int_to_ptr.vmem [resolvable:$true] %s5067_s15 }
0x19ab   :  { %v4827_v26 = vadd.f32 %v4826_v56, %v4825_v33  ;;  %s6474_s16 = scalar_lea.vmem %s5068_s15, 16  ;;  %s6478_s17 = scalar_lea.vmem %s5068_s15, 32 }
0x19ac   :  { %p6475_p0 = scmp.ne.s32.totalorder %s5068_s15, %s6474_s16  ;;  %p6479_p1 = scmp.lt.s32.totalorder %s5068_s15, %s5068_s15 }
0x19ad   :  { %6136 = vtanh.f32 %v4827_v26  ;;  %p6480_p2 = scmp.lt.s32.totalorder %s6478_s17, %s6474_s16 }
0x19af   :  { %p6481_p3 = por %p6480_p2, %p6479_p1 }
0x19b1   :  { %p6482_p4 = pnand %p6481_p3, %p6475_p0 }
0x19b7   :  { %v6137_v28 = vpop.eup %6136 }
0x19b8   :  { %v4829_v43 = vmul.f32 %v6137_v28, %v6135_v39 }
0x19ba   :  { %v4830_v20 = vpack.c.bf16 %v4829_v43, %v4829_v43 }
0x19bc   :  { %4865 = vmatmul.mubr.bf16.vlgmr.msra.gmra.mrb[124].mxu0 %v4830_v20  ;;  %4906 = vmatmul.mubr.bf16.vlgmr.msra.gmra.mrb[124].mxu1 %v4830_v20 }
0x19bd   :  { %5367 = vmatpush3.bf16.msra.mxu0 %v5634_v11  ;;  %5382 = vmatprep.mubr.msk.bf16.mxu0 %vm6547_vm1, %v6546_v52 }
0x19be   :  { %5368 = vmatprep.subr.bf16.mxu0 %v6546_v52 }
0x19c1   :  { %5369 = vmatpush3.bf16.msra.mxu0 %v5635_v5 }
0x19c2   :  { %5370 = vmatprep.subr.bf16.mxu0 %v6546_v52 }
0x19c5   :  { %5371 = vmatpush3.bf16.msra.mxu0 %v5636_v47 }
0x19c6   :  { %5372 = vmatprep.subr.bf16.mxu0 %v6546_v52 }
0x19c9   :  { %5373 = vmatpush3.bf16.msra.mxu0 %v5637_v2 }
0x19ca   :  { %5374 = vmatprep.subr.bf16.mxu0 %v6546_v52 }
0x19cd   :  { %5375 = vmatpush3.bf16.msra.mxu0 %v5638_v15 }
0x19ce   :  { %5376 = vmatprep.subr.bf16.mxu0 %v6546_v52 }
0x19d1   :  { %5377 = vmatpush3.bf16.msra.mxu0 %v5639_v4 }
0x19d2   :  { %5378 = vmatprep.subr.bf16.mxu0 %v6546_v52 }
0x19d5   :  { %5379 = vmatpush3.bf16.msra.mxu0 %v5640_v61 }
0x19d6   :  { %5380 = vmatprep.subr.bf16.mxu0 %v6546_v52 }
0x19d9   :  { %5381 = vmatpush3.bf16.msra.mxu0 %v5641_v63 }
0x1a8f   :  { %v4866_v14 = vpop.f32.mrb[124].mxu0  ;;  %v4907_v21 = vpop.f32.mrb[124].mxu1 }
0x1a90   :  { %v4867_v53 = vadd.f32 %v4866_v14, %v12410_v40  ;;  %v4868_v42 = vpop.f32.mrb[125].mxu0  ;;  %v4909_v41 = vpop.f32.mrb[125].mxu1  ;;  %v4908_v25 = vadd.f32 %v4907_v21, %v8844_v23 }
0x1a91   :  { %v4869_v18 = vadd.f32 %v4868_v42, %v8835_v29  ;;  %v4870_v55 = vpop.f32.mrb[126].mxu0  ;;  %v4911_v16 = vpop.f32.mrb[126].mxu1  ;;  %v4910_v30 = vadd.f32 %v4909_v41, %v8840_v57 }
0x1a92   :  { %v5345_v60 = vmul.f32 -1.442695, %v4867_v53  ;;  %v4871_v32 = vpop.f32.mrb[127].mxu0  ;;  %v4912_v44 = vpop.f32.mrb[127].mxu1 }
0x1a93   :  { %v5346_v37 = vmul.f32 -1.442695, %v4869_v18  ;;  %v5347_v0 = vmul.f32 -1.442695, %v4910_v30 }
0x1a94   :  { %6138 = vpow2.f32 %v5345_v60 }
0x1a95   :  { %6140 = vpow2.f32 %v5346_v37 }
0x1a96   :  { %6142 = vpow2.f32 %v5347_v0 }
0x1a97   :  { %6144 = vtanh.f32 %v4908_v25 }
0x1a9e   :  { %v6139_v46 = vpop.eup %6138 }
0x1a9f   :  { %v6141_v6 = vpop.eup %6140  ;;  %v4917_v40 = vadd.f32 1.0, %v6139_v46 }
0x1aa0   :  { %v4923_v59 = vadd.f32 1.0, %v6141_v6  ;;  %v6143_v29 = vpop.eup %6142 }
0x1aa1   :  { %6146 = vrcp.f32 %v4917_v40  ;;  %v6145_v31 = vpop.eup %6144  ;;  %v4930_v12 = vadd.f32 1.0, %v6143_v29 }
0x1aa2   :  { %6148 = vrcp.f32 %v4923_v59 }
0x1aa3   :  { %6150 = vrcp.f32 %v4930_v12 }
0x1aab   :  { %v6147_v9 = vpop.eup %6146 }
0x1aac   :  { %v6149_v35 = vpop.eup %6148  ;;  %v4934_v58 = vmul.f32 %v6147_v9, %v6145_v31 }
0x1aad   :  { %v4933_v36 = vmul.f32 %v6149_v35, %v10991_v22  ;;  %v6151_v23 = vpop.eup %6150 }
0x1aaf   :  { %v4935_v57 = vadd.f32 %v4934_v58, %v4933_v36 }
0x1ab1   :  { %6152 = vtanh.f32 %v4935_v57 }
0x1abb   :  { %v6153_v50 = vpop.eup %6152 }
0x1abc   :  { %v4937_v1 = vmul.f32 %v6153_v50, %v6151_v23 }
0x1abe   :  { %v4938_v19 = vpack.c.bf16 %v4937_v1, %v4937_v1 }
0x1ac0   :  { %5383 = vmatmul.mubr.bf16.vlgmr.msra.gmra.mrb[128].mxu0 %v4938_v19 }
0x1ac1   :  { %6485 = shalt.err (!%p6482_p4)
}
0x1ac2   :  { %s6486_s7 = scalar_lea.hbm %s11080_s13, 16 }
0x1ac3   :  { %p6487_p5 = scmp.ne.s32.totalorder %s11080_s13, %s6486_s7  ;;  %p6490_p6 = scmp.lt.u32.totalorder %s6486_s7, %s11080_s13 }
0x1ac5   :  { %p6492_p7 = pnand %p6490_p6, %p6487_p5 }
0x1ac7   :  { %6495 = shalt.err (!%p6492_p7)
}
0x1ac8   :  { %5070 = dma.vmem_to_hbm [thread:$0]  %s5068_s15, 16, %s11080_s13, [#allocation5]  }
0x1ac9   :  { %s6549_s2 = smov [#allocation6]  }
0x1aca   :  { %s5077_s9 = sshll.u32 %s6549_s2, 4  ;;  %s5078_s9 = int_to_ptr.vmem [resolvable:$true] %s5077_s9 }
0x1acb   :  { %s6496_s21 = scalar_lea.vmem %s5078_s9, 16  ;;  %s6500_s4 = scalar_lea.vmem %s5078_s9, 32 }
0x1acc   :  { %p6497_p8 = scmp.ne.s32.totalorder %s5078_s9, %s6496_s21  ;;  %p6501_p9 = scmp.lt.s32.totalorder %s5078_s9, %s5078_s9 }
0x1acd   :  { %p6502_p10 = scmp.lt.s32.totalorder %s6500_s4, %s6496_s21 }
0x1acf   :  { %p6503_p11 = por %p6502_p10, %p6501_p9 }
0x1ad1   :  { %p6504_p12 = pnand %p6503_p11, %p6497_p8 }
0x1ad3   :  { %6507 = shalt.err (!%p6504_p12)
}
0x1ad4   :  { %s6508_s24 = scalar_lea.hbm %s11081_s14, 16 }
0x1ad5   :  { %p6509_p13 = scmp.ne.s32.totalorder %s11081_s14, %s6508_s24  ;;  %p6512_p0 = scmp.lt.u32.totalorder %s6508_s24, %s11081_s14 }
0x1ad7   :  { %p6514_p1 = pnand %p6512_p0, %p6509_p13 }
0x1ad9   :  { %6517 = shalt.err (!%p6514_p1)
}
0x1ada   :  { %5080 = dma.vmem_to_hbm [thread:$0]  %s5078_s9, 16, %s11081_s14, [#allocation5]   ;;  %v5348_v22 = vld [vmem:[%s11078_s11] ss:$0 sm:$0xff] }
0x1adb   :  { %s6550_s10 = smov [#allocation2]  }
0x1adc   :  { %s5057_s15 = sshll.u32 %s6550_s10, 4  ;;  %s5058_s15 = int_to_ptr.vmem [resolvable:$true] %s5057_s15 }
0x1add   :  { %s6518_s16 = scalar_lea.vmem %s5058_s15, 32  ;;  %p6523_p3 = scmp.lt.s32.totalorder %s5058_s15, %s5058_s15 }
0x1ade   :  { %p6519_p2 = scmp.ne.s32.totalorder %s5058_s15, %s6518_s16  ;;  %p6524_p4 = scmp.lt.s32.totalorder %s6518_s16, %s6518_s16 }
0x1ae0   :  { %p6525_p5 = por %p6524_p4, %p6523_p3 }
0x1ae2   :  { %p6526_p6 = pnand %p6525_p5, %p6519_p2 }
0x1b93   :  { %v5044_v27 = vpop.f32.mrb[128].mxu0 }
0x1b94   :  { %v5045_v13 = vadd.f32 %v5348_v22, %v5044_v27  ;;  %v5384_v8 = vpop.f32.mrb[129].mxu0 }
0x1b95   :  { %v5047_v10 = vpop.f32.mrb[130].mxu0 }
0x1b96   :  { %5050 = vst [vmem:[#allocation2] sm:$0x3] %v5045_v13  ;;  %v5385_v17 = vpop.f32.mrb[131].mxu0 }
0x1b97   :  { %6529 = shalt.err (!%p6526_p6)
}
0x1b98   :  { %s6530_s11 = scalar_lea.hbm %s11079_s12, 32 }
0x1b99   :  { %p6531_p7 = scmp.ne.s32.totalorder %s11079_s12, %s6530_s11  ;;  %p6534_p8 = scmp.lt.u32.totalorder %s6530_s11, %s11079_s12 }
0x1b9b   :  { %p6536_p9 = pnand %p6534_p8, %p6531_p7 }
0x1b9d   :  { %6539 = shalt.err (!%p6536_p9)
}
0x1b9e   :  { %5060 = dma.vmem_to_hbm [thread:$0]  %s5058_s15, 32, %s11079_s12, [#allocation3]  }
0x1b9f   :  { %6540 = dma.done.wait [#allocation3], 32  }
0x1ba0   :  { %6541 = vsyncadd [#allocation3], 4294967264 }
0x1ba1   :  { %6542 = dma.done.wait [#allocation5], 32  }
0x1ba2   :  { %6543 = vsyncadd [#allocation5], 4294967264 }
0x1ba3   :  { %5090 = vsyncpa [#allocation3], 1 }
0x1ba4   :  { %5091 = vsyncpa [#allocation5], 1 }

</bundles_post_ra>
